<compile_context>
chip_gen: v5e
topology: v5e:2x2
jax: 0.10.0
libtpu: 0.0.40
codegen_flags: <defaults>
</compile_context>

<pallas_src>
import jax
import jax.numpy as jnp
from jax.experimental import pallas as pl
from jax.experimental.pallas import tpu as pltpu  # noqa: F401 (TPU backend)


def fused_kernel(x98_ref, x95_ref, x89_ref, w1_ref, b1_ref, w2_ref,
                 gamma_ref, beta_ref, out_ref):
    # --- SE gate: conv2d32 on a 1x1 spatial input, channel-major ------------
    # [320,80] @ [80,1] -> [320,1]  (M=320 fills the MXU sublanes)
    s = jnp.dot(w1_ref[...], x98_ref[...], preferred_element_type=jnp.float32)
    gate = jax.nn.sigmoid(s + b1_ref[...])                       # [320, 1]

    # gate broadcast over the 196 spatial lanes
    x101 = x95_ref[...] * gate                                   # [320, 196]

    # --- conv2d33 (1x1, no bias): channel matmul -----------------------------
    # [320,320] @ [320,196] -> [320,196]
    x102 = jnp.dot(w2_ref[...], x101, preferred_element_type=jnp.float32)

    # --- BatchNorm2d (train mode, biased var, eps=1e-5) ----------------------
    # One-pass stats over the spatial (lane) axis + folded affine.
    inv_m = 1.0 / x102.shape[1]                                   # 1/196
    mean = jnp.sum(x102, axis=1, keepdims=True) * inv_m           # [320, 1]
    ex2 = jnp.sum(x102 * x102, axis=1, keepdims=True) * inv_m     # [320, 1]
    var = ex2 - mean * mean
    scale = gamma_ref[...] * jax.lax.rsqrt(var + 1e-5)            # [320, 1]
    shift = beta_ref[...] - mean * scale                          # [320, 1]

    # --- residual add + ReLU, single FMA-style epilogue ----------------------
    out_ref[...] = jnp.maximum(x89_ref[...] + x102 * scale + shift, 0.0)


def module_forward(x98, x95, x89, w1, b1, w2, gamma, beta):
    """Inputs in PyTorch NCHW layout; weights in PyTorch [Cout, Cin] layout.

    Returns the NCHW output. All host-side reshapes are layout-preserving
    (no transposes / extra HBM passes).
    """
    N, C, H, W = x95.shape
    Cin = x98.shape[1]
    M = N * H * W                                   # 196 (N == 1)

    # Free reshapes of NCHW -> channel-major [C, H*W]
    x95_cm = x95.reshape(C, M)
    x89_cm = x89.reshape(C, M)
    x98_col = x98.reshape(Cin, 1)
    b1_col = b1.reshape(C, 1)
    gamma_col = gamma.reshape(C, 1)
    beta_col = beta.reshape(C, 1)

    def full(shp):
        # single full-array block (no grid) -> block index is all zeros
        return pl.BlockSpec(shp, lambda: (0,) * len(shp))

    out_cm = pl.pallas_call(
        fused_kernel,
        out_shape=jax.ShapeDtypeStruct((C, M), jnp.float32),
        in_specs=[full((Cin, 1)),          # x98 column
                  full((C, M)),            # x95 channel-major
                  full((C, M)),            # x89 channel-major
                  full((C, Cin)),          # conv2d32 weight [Cout, Cin]
                  full((C, 1)),            # conv2d32 bias
                  full((C, C)),            # conv2d33 weight [Cout, Cin]
                  full((C, 1)),            # BN gamma
                  full((C, 1))],           # BN beta
        out_specs=full((C, M)),
    )(x98_col, x95_cm, x89_cm, w1, b1_col, w2, gamma_col, beta_col)

    # Free reshape back to NCHW
    return out_cm.reshape(N, C, H, W)


def reference_forward(x98, x95, x89, w1, b1, w2, gamma, beta):
    """Pure-JAX reference matching PyTorch semantics (train-mode BN)."""
    s = w1 @ x98.reshape(-1) + b1                               # [Cout]
    gate = jax.nn.sigmoid(s)
    x101 = x95 * gate.reshape(1, -1, 1, 1)
    x102 = jnp.einsum('dc,nchw->ndhw', w2, x101)
    mean = jnp.mean(x102, axis=(0, 2, 3), keepdims=True)
    var = jnp.mean((x102 - mean) ** 2, axis=(0, 2, 3), keepdims=True)
    xhat = (x102 - mean) / jnp.sqrt(var + 1e-5)
    x103 = xhat * gamma.reshape(1, -1, 1, 1) + beta.reshape(1, -1, 1, 1)
    return jnp.maximum(x89 + x103, 0.0)


if __name__ == "__main__":
    N, Cin, Cout, H, W = 1, 80, 320, 14, 14

    key = jax.random.PRNGKey(0)
    k = jax.random.split(key, 8)

    # Deterministic synthetic parameters (PyTorch-native layouts):
    #   conv weight [Cout, Cin], biases / BN params [Cout].
    bound1 = 1.0 / (Cin ** 0.5)
    w1 = jax.random.uniform(k[0], (Cout, Cin), jnp.float32, -bound1, bound1)
    b1 = jax.random.uniform(k[1], (Cout,), jnp.float32, -bound1, bound1)
    bound2 = 1.0 / (Cout ** 0.5)
    w2 = jax.random.uniform(k[2], (Cout, Cout), jnp.float32, -bound2, bound2)
    gamma = 1.0 + 0.1 * jax.random.normal(k[3], (Cout,), jnp.float32)
    beta = 0.1 * jax.random.normal(k[4], (Cout,), jnp.float32)

    # Example inputs (PyTorch NCHW convention).
    x98 = jax.random.normal(k[5], (N, Cin, 1, 1), jnp.float32)
    x95 = jax.random.normal(k[6], (N, Cout, H, W), jnp.float32)
    x89 = jax.random.normal(k[7], (N, Cout, H, W), jnp.float32)

    out = jax.block_until_ready(
        module_forward(x98, x95, x89, w1, b1, w2, gamma, beta))
    ref = jax.block_until_ready(
        reference_forward(x98, x95, x89, w1, b1, w2, gamma, beta))

    assert out.shape == (N, Cout, H, W)
    assert jnp.allclose(out, ref, atol=1e-4, rtol=1e-4), \
        f"max abs err {jnp.max(jnp.abs(out - ref))}"
    print("KERNEL_OK")
</pallas_src>

<mosaic_0001>
module attributes {stable_mosaic.version = 11 : i64} {
  func.func @fused_kernel(%arg0: memref<80x1xf32, #tpu.memory_space<vmem>>, %arg1: memref<320x196xf32, #tpu.memory_space<vmem>>, %arg2: memref<320x196xf32, #tpu.memory_space<vmem>>, %arg3: memref<320x80xf32, #tpu.memory_space<vmem>>, %arg4: memref<320x1xf32, #tpu.memory_space<vmem>>, %arg5: memref<320x320xf32, #tpu.memory_space<vmem>>, %arg6: memref<320x1xf32, #tpu.memory_space<vmem>>, %arg7: memref<320x1xf32, #tpu.memory_space<vmem>>, %arg8: memref<320x196xf32, #tpu.memory_space<vmem>>) attributes {dimension_semantics = [], scalar_prefetch = 0 : i64, scratch_operands = 0 : i64, tpu.core_type = #tpu.core_type<tc>} {
    %c0 = arith.constant 0 : index
    %c0_0 = arith.constant 0 : index
    %0 = vector.load %arg3[%c0, %c0_0] : memref<320x80xf32, #tpu.memory_space<vmem>>, vector<320x80xf32>
    %c0_1 = arith.constant 0 : index
    %c0_2 = arith.constant 0 : index
    %1 = vector.load %arg0[%c0_1, %c0_2] : memref<80x1xf32, #tpu.memory_space<vmem>>, vector<80x1xf32>
    %cst = arith.constant dense<0.000000e+00> : vector<320x1xf32>
    %2 = tpu.matmul %0, %1, %cst {dimension_numbers = #tpu.dot_dimension_numbers<[1], [0], [0], [1], [0, 0, 1, 1], [], []>} : vector<320x80xf32>, vector<80x1xf32>, vector<320x1xf32> -> vector<320x1xf32>
    %c0_3 = arith.constant 0 : index
    %c0_4 = arith.constant 0 : index
    %3 = vector.load %arg4[%c0_3, %c0_4] : memref<320x1xf32, #tpu.memory_space<vmem>>, vector<320x1xf32>
    %4 = arith.addf %2, %3 : vector<320x1xf32>
    %5 = arith.negf %4 : vector<320x1xf32>
    %6 = math.exp %5 : vector<320x1xf32>
    %cst_5 = arith.constant 1.000000e+00 : f32
    %7 = vector.broadcast %cst_5 : f32 to vector<320x1xf32>
    %8 = arith.addf %7, %6 : vector<320x1xf32>
    %9 = arith.divf %7, %8 : vector<320x1xf32>
    %c0_6 = arith.constant 0 : index
    %c0_7 = arith.constant 0 : index
    %10 = vector.load %arg1[%c0_6, %c0_7] : memref<320x196xf32, #tpu.memory_space<vmem>>, vector<320x196xf32>
    %11 = vector.broadcast %9 : vector<320x1xf32> to vector<320x196xf32>
    %12 = arith.mulf %10, %11 : vector<320x196xf32>
    %c0_8 = arith.constant 0 : index
    %c0_9 = arith.constant 0 : index
    %13 = vector.load %arg5[%c0_8, %c0_9] : memref<320x320xf32, #tpu.memory_space<vmem>>, vector<320x320xf32>
    %cst_10 = arith.constant dense<0.000000e+00> : vector<320x196xf32>
    %14 = tpu.matmul %13, %12, %cst_10 {dimension_numbers = #tpu.dot_dimension_numbers<[1], [0], [0], [1], [0, 0, 1, 1], [], []>} : vector<320x320xf32>, vector<320x196xf32>, vector<320x196xf32> -> vector<320x196xf32>
    %cst_11 = arith.constant dense<0.000000e+00> : vector<320xf32>
    %15 = vector.multi_reduction <add>, %14, %cst_11 [1] : vector<320x196xf32> to vector<320xf32>
    %16 = vector.shape_cast %15 : vector<320xf32> to vector<320x1xf32>
    %cst_12 = arith.constant 0.00510204071 : f32
    %17 = vector.broadcast %cst_12 : f32 to vector<320x1xf32>
    %18 = arith.mulf %16, %17 : vector<320x1xf32>
    %19 = arith.mulf %14, %14 : vector<320x196xf32>
    %cst_13 = arith.constant dense<0.000000e+00> : vector<320xf32>
    %20 = vector.multi_reduction <add>, %19, %cst_13 [1] : vector<320x196xf32> to vector<320xf32>
    %21 = vector.shape_cast %20 : vector<320xf32> to vector<320x1xf32>
    %cst_14 = arith.constant 0.00510204071 : f32
    %22 = vector.broadcast %cst_14 : f32 to vector<320x1xf32>
    %23 = arith.mulf %21, %22 : vector<320x1xf32>
    %24 = arith.mulf %18, %18 : vector<320x1xf32>
    %25 = arith.subf %23, %24 : vector<320x1xf32>
    %c0_15 = arith.constant 0 : index
    %c0_16 = arith.constant 0 : index
    %26 = vector.load %arg6[%c0_15, %c0_16] : memref<320x1xf32, #tpu.memory_space<vmem>>, vector<320x1xf32>
    %cst_17 = arith.constant 9.99999974E-6 : f32
    %27 = vector.broadcast %cst_17 : f32 to vector<320x1xf32>
    %28 = arith.addf %25, %27 : vector<320x1xf32>
    %29 = math.rsqrt %28 : vector<320x1xf32>
    %30 = arith.mulf %26, %29 : vector<320x1xf32>
    %c0_18 = arith.constant 0 : index
    %c0_19 = arith.constant 0 : index
    %31 = vector.load %arg7[%c0_18, %c0_19] : memref<320x1xf32, #tpu.memory_space<vmem>>, vector<320x1xf32>
    %32 = arith.mulf %18, %30 : vector<320x1xf32>
    %33 = arith.subf %31, %32 : vector<320x1xf32>
    %c0_20 = arith.constant 0 : index
    %c0_21 = arith.constant 0 : index
    %34 = vector.load %arg2[%c0_20, %c0_21] : memref<320x196xf32, #tpu.memory_space<vmem>>, vector<320x196xf32>
    %35 = vector.broadcast %30 : vector<320x1xf32> to vector<320x196xf32>
    %36 = arith.mulf %14, %35 : vector<320x196xf32>
    %37 = arith.addf %34, %36 : vector<320x196xf32>
    %38 = vector.broadcast %33 : vector<320x1xf32> to vector<320x196xf32>
    %39 = arith.addf %37, %38 : vector<320x196xf32>
    %cst_22 = arith.constant 0.000000e+00 : f32
    %40 = vector.broadcast %cst_22 : f32 to vector<320x196xf32>
    %41 = arith.maximumf %39, %40 : vector<320x196xf32>
    %c0_23 = arith.constant 0 : index
    %c0_24 = arith.constant 0 : index
    %42 = vector.load %arg8[%c0_23, %c0_24] : memref<320x196xf32, #tpu.memory_space<vmem>>, vector<320x196xf32>
    tpu.vector_store %arg8[%c0_23, %c0_24], %41 {strides = array<i32>} : memref<320x196xf32, #tpu.memory_space<vmem>>, vector<320x196xf32>,
    return
  }
}

</mosaic_0001>

<bundles_post_ra>
// kernel: tpu_custom_call.1
= control target key start
LH: loop header
LB: loop body
LE: loop exit
PB: predicated region body
PF: predicated region fallthrough
CT: control target
= control target key end

     0   :  { %vm119_vm0 = vcmask 654336   ;;  %v5124_v36 = vmov 0   ;;  %s10002_s0 = inlined_call_operand.vmem [shape: f32[80,1], index: 0, kind: input, shape index: {}]   ;;  %s10003_s3 = inlined_call_operand.vmem [shape: f32[320,80], index: 3, kind: input, shape index: {}]   ;;  %s10004_s4 = inlined_call_operand.vmem [shape: f32[320,1], index: 4, kind: input, shape index: {}]   ;;  %s10005_s1 = inlined_call_operand.vmem [shape: f32[320,196], index: 1, kind: input, shape index: {}]   ;;  %s10006_s5 = inlined_call_operand.vmem [shape: f32[320,320], index: 5, kind: input, shape index: {}]   ;;  %s10007_s6 = inlined_call_operand.vmem [shape: f32[320,1], index: 6, kind: input, shape index: {}]   ;;  %s10008_s7 = inlined_call_operand.vmem [shape: f32[320,1], index: 7, kind: input, shape index: {}]   ;;  %s10009_s2 = inlined_call_operand.vmem [shape: f32[320,196], index: 2, kind: input, shape index: {}]   ;;  %s10010_s8 = inlined_call_operand.vmem [shape: f32[320,196], index: 8, kind: output, shape index: {}]  }
   0x1   :  { %v78_v0 = vld [vmem:[%s10002_s0 + $0x48] sm:$0xff]  ;;  %v77_v1 = vld [vmem:[%s10002_s0 + $0x40] sm:$0xff]  ;;  %v76_v2 = vld [vmem:[%s10002_s0 + $0x38] sm:$0xff]  ;;  %4848 = vset.pattern.permute.xlu0 %v5124_v36  ;;  %4849 = vset.pattern.permute.xlu1 %v5124_v36 }
   0x2   :  { %246 = vmatpush.msra.mxu0 %v78_v0  ;;  %4805 = vmatpush.msra.mxu2 %v78_v0  ;;  %v75_v3 = vld [vmem:[%s10002_s0 + $0x30] sm:$0xff]  ;;  %v74_v4 = vld [vmem:[%s10002_s0 + $0x28] sm:$0xff]  ;;  %v73_v5 = vld [vmem:[%s10002_s0 + $0x20] sm:$0xff] }
   0x3   :  { %v72_v6 = vld [vmem:[%s10002_s0 + $0x18] sm:$0xff]  ;;  %v71_v7 = vld [vmem:[%s10002_s0 + $0x10] sm:$0xff]  ;;  %v70_v8 = vld [vmem:[%s10002_s0 + $0x8] sm:$0xff]  ;;  %4850 = vset.pattern.permute.xlu2 %v5124_v36 }
   0x4   :  { %247 = vmatpush.msra.mxu0 %v77_v1  ;;  %4806 = vmatpush.msra.mxu2 %v77_v1  ;;  %v69_v9 = vld [vmem:[%s10002_s0] sm:$0xff]  ;;  %v60_v11 = vld [vmem:[%s10003_s3 + $0xf8] sm:$0xff]  ;;  %v30_v12 = vld [vmem:[%s10003_s3 + $0x8] sm:$0xff] }
   0x5   :  { %v29_v10 = vld [vmem:[%s10003_s3] sm:$0xff]  ;;  %v31_v14 = vld [vmem:[%s10003_s3 + $0x10] sm:$0xff]  ;;  %v62_v15 = vld [vmem:[%s10003_s3 + $0x108] sm:$0xff] }
   0x6   :  { %248 = vmatpush.msra.mxu0 %v76_v2  ;;  %4807 = vmatpush.msra.mxu2 %v76_v2  ;;  %v61_v13 = vld [vmem:[%s10003_s3 + $0x100] sm:$0xff]  ;;  %v32_v16 = vld [vmem:[%s10003_s3 + $0x18] sm:$0xff]  ;;  %v63_v17 = vld [vmem:[%s10003_s3 + $0x110] sm:$0xff] }
   0x7   :  { %v33_v18 = vld [vmem:[%s10003_s3 + $0x20] sm:$0xff]  ;;  %v64_v19 = vld [vmem:[%s10003_s3 + $0x118] sm:$0xff]  ;;  %v34_v20 = vld [vmem:[%s10003_s3 + $0x28] sm:$0xff] }
   0x8   :  { %249 = vmatpush.msra.mxu0 %v75_v3  ;;  %4808 = vmatpush.msra.mxu2 %v75_v3  ;;  %v65_v21 = vld [vmem:[%s10003_s3 + $0x120] sm:$0xff]  ;;  %v35_v22 = vld [vmem:[%s10003_s3 + $0x30] sm:$0xff]  ;;  %v66_v23 = vld [vmem:[%s10003_s3 + $0x128] sm:$0xff] }
   0x9   :  { %v36_v24 = vld [vmem:[%s10003_s3 + $0x38] sm:$0xff]  ;;  %v67_v25 = vld [vmem:[%s10003_s3 + $0x130] sm:$0xff]  ;;  %v37_v26 = vld [vmem:[%s10003_s3 + $0x40] sm:$0xff] }
   0xa   :  { %250 = vmatpush.msra.mxu0 %v74_v4  ;;  %4809 = vmatpush.msra.mxu2 %v74_v4  ;;  %v68_v27 = vld [vmem:[%s10003_s3 + $0x138] sm:$0xff]  ;;  %v38_v28 = vld [vmem:[%s10003_s3 + $0x48] sm:$0xff]  ;;  %v39_v29 = vld [vmem:[%s10003_s3 + $0x50] sm:$0xff] }
   0xb   :  { %v40_v30 = vld [vmem:[%s10003_s3 + $0x58] sm:$0xff]  ;;  %v41_v31 = vld [vmem:[%s10003_s3 + $0x60] sm:$0xff]  ;;  %v42_v32 = vld [vmem:[%s10003_s3 + $0x68] sm:$0xff] }
   0xc   :  { %251 = vmatpush.msra.mxu0 %v73_v5  ;;  %4810 = vmatpush.msra.mxu2 %v73_v5  ;;  %v43_v33 = vld [vmem:[%s10003_s3 + $0x70] sm:$0xff]  ;;  %v44_v34 = vld [vmem:[%s10003_s3 + $0x78] sm:$0xff]  ;;  %v79_v35 = vld [vmem:[%s10004_s4] sm:$0xff] }
   0xd   :  { %v45_v38 = vld [vmem:[%s10003_s3 + $0x80] sm:$0xff]  ;;  %v80_v42 = vld [vmem:[%s10004_s4 + $0x8] sm:$0xff]  ;;  %v81_v50 = vld [vmem:[%s10004_s4 + $0x10] sm:$0xff] }
   0xe   :  { %252 = vmatpush.msra.mxu0 %v72_v6  ;;  %4811 = vmatpush.msra.mxu2 %v72_v6  ;;  %v46_v44 = vld [vmem:[%s10003_s3 + $0x88] sm:$0xff]  ;;  %v47_v52 = vld [vmem:[%s10003_s3 + $0x90] sm:$0xff]  ;;  %v82_v61 = vld [vmem:[%s10004_s4 + $0x18] sm:$0xff] }
   0xf   :  { %v112_v58 = vld [vmem:[%s10004_s4 + $0x108] sm:$0xff]  ;;  %v48_v1 = vld [vmem:[%s10003_s3 + $0x98] sm:$0xff] }
  0x10   :  { %253 = vmatpush.msra.mxu0 %v71_v7  ;;  %4812 = vmatpush.msra.mxu2 %v71_v7 }
  0x12   :  { %254 = vmatpush.msra.mxu0 %v70_v8  ;;  %4813 = vmatpush.msra.mxu2 %v70_v8 }
  0x14   :  { %255 = vmatpush.msra.mxu0 %v69_v9  ;;  %4814 = vmatpush.msra.mxu2 %v69_v9 }
  0x15   :  { %4645 = vmatmul.msk.f32.vlgmr.msra.gmra.mxu0 %vm119_vm0, %v29_v10  ;;  %4676 = vmatmul.msk.f32.vlgmr.msra.gmra.mxu2 %vm119_vm0, %v60_v11 }
  0x1d   :  { %4646 = vmatmul.msk.f32.gmra.mxu0 %vm119_vm0, %v30_v12  ;;  %4677 = vmatmul.msk.f32.gmra.mxu2 %vm119_vm0, %v61_v13  ;;  %v113_v12 = vld [vmem:[%s10004_s4 + $0x110] sm:$0xff] }
  0x25   :  { %4647 = vmatmul.msk.f32.gmra.mxu0 %vm119_vm0, %v31_v14  ;;  %4678 = vmatmul.msk.f32.gmra.mxu2 %vm119_vm0, %v62_v15 }
  0x2d   :  { %4648 = vmatmul.msk.f32.gmra.mxu0 %vm119_vm0, %v32_v16  ;;  %4679 = vmatmul.msk.f32.gmra.mxu2 %vm119_vm0, %v63_v17 }
  0x35   :  { %4649 = vmatmul.msk.f32.gmra.mxu0 %vm119_vm0, %v33_v18  ;;  %4680 = vmatmul.msk.f32.gmra.mxu2 %vm119_vm0, %v64_v19  ;;  %v83_v18 = vld [vmem:[%s10004_s4 + $0x20] sm:$0xff] }
  0x3d   :  { %4650 = vmatmul.msk.f32.gmra.mxu0 %vm119_vm0, %v34_v20  ;;  %4681 = vmatmul.msk.f32.gmra.mxu2 %vm119_vm0, %v65_v21 }
  0x45   :  { %4651 = vmatmul.msk.f32.gmra.mxu0 %vm119_vm0, %v35_v22  ;;  %4682 = vmatmul.msk.f32.gmra.mxu2 %vm119_vm0, %v66_v23  ;;  %v49_v23 = vld [vmem:[%s10003_s3 + $0xa0] sm:$0xff] }
  0x4d   :  { %4652 = vmatmul.msk.f32.gmra.mxu0 %vm119_vm0, %v36_v24  ;;  %4683 = vmatmul.msk.f32.gmra.mxu2 %vm119_vm0, %v67_v25 }
  0x55   :  { %4653 = vmatmul.msk.f32.gmra.mxu0 %vm119_vm0, %v37_v26  ;;  %4684 = vmatmul.msk.f32.gmra.mxu2 %vm119_vm0, %v68_v27 }
  0x5d   :  { %4654 = vmatmul.msk.f32.gmra.mxu0 %vm119_vm0, %v38_v28 }
  0x65   :  { %4655 = vmatmul.msk.f32.gmra.mxu0 %vm119_vm0, %v39_v29 }
  0x6d   :  { %4656 = vmatmul.msk.f32.gmra.mxu0 %vm119_vm0, %v40_v30 }
  0x75   :  { %4657 = vmatmul.msk.f32.gmra.mxu0 %vm119_vm0, %v41_v31 }
  0x7d   :  { %4658 = vmatmul.msk.f32.gmra.mxu0 %vm119_vm0, %v42_v32 }
  0x85   :  { %4659 = vmatmul.msk.f32.gmra.mxu0 %vm119_vm0, %v43_v33 }
  0x8d   :  { %4660 = vmatmul.msk.f32.gmra.mxu0 %vm119_vm0, %v44_v34 }
  0x92   :  { %v257_v37 = vpop.f32.mrf.mxu0 }
  0x93   :  { %v258_v39 = vadd.f32 %v257_v37, %v79_v35  ;;  %v110_v35 = vld [vmem:[%s10004_s4 + $0xf8] sm:$0xff] }
  0x94   :  { %v114_v37 = vld [vmem:[%s10004_s4 + $0x118] sm:$0xff] }
  0x95   :  { %v4685_v40 = vmul.f32 -1.442695, %v258_v39  ;;  %4661 = vmatmul.msk.f32.gmra.mxu0 %vm119_vm0, %v45_v38 }
  0x97   :  { %4851 = vpow2.f32 %v4685_v40 }
  0x98   :  { %v5307_v41 = vpop.f32.mrf.mxu2 }
  0x9a   :  { %v260_v43 = vpop.f32.mrf.mxu0 }
  0x9b   :  { %v261_v45 = vadd.f32 %v260_v43, %v80_v42 }
  0x9d   :  { %v4852_v46 = vpop.eup %4851  ;;  %v4686_v47 = vmul.f32 -1.442695, %v261_v45  ;;  %4662 = vmatmul.msk.f32.gmra.mxu0 %vm119_vm0, %v46_v44  ;;  %v84_v45 = vld [vmem:[%s10004_s4 + $0x28] sm:$0xff] }
  0x9e   :  { %v497_v48 = vadd.f32 1.0, %v4852_v46  ;;  %v5374_v46 = vadd.f32 %v5307_v41, %v110_v35 }
  0x9f   :  { %4853 = vpow2.f32 %v4686_v47 }
  0xa0   :  { %4855 = vrcp.f32 %v497_v48  ;;  %v5316_v49 = vpop.f32.mrf.mxu2  ;;  %v546_v2 = vand.u32 2147483647, %v497_v48  ;;  %v548_v3 = vand.u32 2147483648, %v497_v48  ;;  %vm542_vm2 = vweird.f32 %v497_v48 }
  0xa2   :  { %v263_v51 = vpop.f32.mrf.mxu0  ;;  %v549_v13 = vor.u32 1.1754944e-38, %v548_v3  ;;  %vm547_vm4 = vcmp.eq.f32.partialorder %v546_v2, 8.507059e+37 }
  0xa3   :  { %v264_v53 = vadd.f32 %v263_v51, %v81_v50  ;;  %v50_v51 = vld [vmem:[%s10003_s3 + $0xa8] sm:$0xff] }
  0xa5   :  { %v4854_v54 = vpop.eup %4853  ;;  %v4687_v55 = vmul.f32 -1.442695, %v264_v53  ;;  %4663 = vmatmul.msk.f32.gmra.mxu0 %vm119_vm0, %v47_v52 }
  0xa6   :  { %v4856_v56 = vpop.eup %4855  ;;  %v5325_v57 = vadd.f32 1.0, %v4854_v54 }
  0xa7   :  { %4857 = vpow2.f32 %v4687_v55  ;;  %v538_v59 = vmul.f32 %v4856_v56, %v497_v48  ;;  %vm543_vm1 = vweird.f32 %v4856_v56 }
  0xa8   :  { %4859 = vrcp.f32 %v5325_v57  ;;  %v356_v60 = vpop.f32.mrf.mxu2  ;;  %vm544_vm3 = vmor %vm542_vm2, %vm543_vm1  ;;  %v563_v21 = vand.u32 2147483648, %v5325_v57  ;;  %v561_v24 = vand.u32 2147483647, %v5325_v57  ;;  %vm557_vm6 = vweird.f32 %v5325_v57 }
  0xa9   :  { %v357_v62 = vadd.f32 %v356_v60, %v112_v58  ;;  %v539_v63 = vsub.f32 1.0, %v538_v59 }
  0xaa   :  { %v266_v0 = vpop.f32.mrf.mxu0  ;;  %v564_v33 = vor.u32 1.1754944e-38, %v563_v21  ;;  %vm562_vm8 = vcmp.eq.f32.partialorder %v561_v24, 8.507059e+37 }
  0xab   :  { %v4718_v4 = vmul.f32 -1.442695, %v357_v62  ;;  %v267_v5 = vadd.f32 %v266_v0, %v82_v61  ;;  %v540_v6 = vmul.f32 %v4856_v56, %v539_v63 }
  0xad   :  { %v4858_v7 = vpop.eup %4857  ;;  %4861 = vpow2.f32 %v4718_v4  ;;  %v4688_v8 = vmul.f32 -1.442695, %v267_v5  ;;  %4664 = vmatmul.msk.f32.gmra.mxu0 %vm119_vm0, %v48_v1  ;;  %v541_v9 = vadd.f32 %v4856_v56, %v540_v6  ;;  %v115_v4 = vld [vmem:[%s10004_s4 + $0x120] sm:$0xff] }
  0xae   :  { %v4860_v10 = vpop.eup %4859  ;;  %v5338_v11 = vadd.f32 1.0, %v4858_v7 }
  0xaf   :  { %4863 = vpow2.f32 %v4688_v8  ;;  %v545_v14 = vsel %vm544_vm3, %v4856_v56, %v541_v9  ;;  %v553_v15 = vmul.f32 %v4860_v10, %v5325_v57  ;;  %vm558_vm5 = vweird.f32 %v4860_v10 }
  0xb0   :  { %4865 = vrcp.f32 %v5338_v11  ;;  %v359_v16 = vpop.f32.mrf.mxu2  ;;  %v550_v17 = vsel %vm547_vm4, %v549_v13, %v545_v14  ;;  %vm559_vm7 = vmor %vm557_vm6, %vm558_vm5  ;;  %v576_v38 = vand.u32 2147483647, %v5338_v11  ;;  %v578_v39 = vand.u32 2147483648, %v5338_v11 }
  0xb1   :  { %v360_v19 = vadd.f32 %v359_v16, %v113_v12  ;;  %1219 = vperm.xlu0 %4848, %v550_v17   ;;  %v554_v20 = vsub.f32 1.0, %v553_v15  ;;  %vm572_vm9 = vweird.f32 %v5338_v11 }
  0xb2   :  { %v269_v22 = vpop.f32.mrf.mxu0  ;;  %vm5380_vm10 = vcmp.eq.f32.partialorder %v576_v38, 8.507059e+37  ;;  %v579_v53 = vor.u32 1.1754944e-38, %v578_v39 }
  0xb3   :  { %v4862_v25 = vpop.eup %4861  ;;  %v4719_v26 = vmul.f32 -1.442695, %v360_v19  ;;  %v270_v27 = vadd.f32 %v269_v22, %v83_v18  ;;  %v555_v28 = vmul.f32 %v4860_v10, %v554_v20  ;;  %v51_v18 = vld [vmem:[%s10003_s3 + $0xb0] sm:$0xff] }
  0xb4   :  { %v5353_v29 = vadd.f32 1.0, %v4862_v25 }
  0xb5   :  { %v4864_v30 = vpop.eup %4863  ;;  %4867 = vpow2.f32 %v4719_v26  ;;  %v4689_v31 = vmul.f32 -1.442695, %v270_v27  ;;  %4665 = vmatmul.msk.f32.gmra.mxu0 %vm119_vm0, %v49_v23  ;;  %v556_v32 = vadd.f32 %v4860_v10, %v555_v28 }
  0xb6   :  { %v4866_v34 = vpop.eup %4865  ;;  %4869 = vrcp.f32 %v5353_v29  ;;  %v5361_v36 = vadd.f32 1.0, %v4864_v30  ;;  %vm1037_vm11 = vweird.f32 %v5353_v29  ;;  %v1041_v59 = vand.u32 2147483647, %v5353_v29 }
  0xb7   :  { %4871 = vpow2.f32 %v4689_v31  ;;  %v560_v40 = vsel %vm559_vm7, %v4860_v10, %v556_v32  ;;  %v568_v42 = vmul.f32 %v4866_v34, %v5338_v11  ;;  %vm573_vm12 = vweird.f32 %v4866_v34  ;;  %v85_v11 = vld [vmem:[%s10004_s4 + $0x30] sm:$0xff] }
  0xb8   :  { %4873 = vrcp.f32 %v5361_v36  ;;  %v362_v43 = vpop.f32.mrf.mxu2  ;;  %v565_v44 = vsel %vm562_vm8, %v564_v33, %v560_v40  ;;  %v1043_v60 = vand.u32 2147483648, %v5353_v29  ;;  %v591_v61 = vand.u32 2147483647, %v5361_v36  ;;  %vm574_vm13 = vmor %vm572_vm9, %vm573_vm12  ;;  %v116_v40 = vld [vmem:[%s10004_s4 + $0x128] sm:$0xff] }
  0xb9   :  { %v363_v47 = vadd.f32 %v362_v43, %v114_v37  ;;  %1224 = vperm.xlu0 %4848, %v565_v44   ;;  %v569_v48 = vsub.f32 1.0, %v568_v42  ;;  %v593_v5 = vand.u32 2147483648, %v5361_v36  ;;  %vm5416_vm15 = vcmp.eq.f32.partialorder %v1041_v59, 8.507059e+37  ;;  %v52_v59 = vld [vmem:[%s10003_s3 + $0xb8] sm:$0xff] }
  0xba   :  { %v272_v50 = vpop.f32.mrf.mxu0  ;;  %vm587_vm1 = vweird.f32 %v5361_v36  ;;  %v1044_v15 = vor.u32 1.1754944e-38, %v1043_v60  ;;  %vm5438_vm5 = vcmp.eq.f32.partialorder %v591_v61, 8.507059e+37 }
  0xbb   :  { %v4868_v54 = vpop.eup %4867  ;;  %v4720_v41 = vmul.f32 -1.442695, %v363_v47  ;;  %v273_v55 = vadd.f32 %v272_v50, %v84_v45  ;;  %v570_v56 = vmul.f32 %v4866_v34, %v569_v48  ;;  %v594_v22 = vor.u32 1.1754944e-38, %v593_v5  ;;  %v86_v50 = vld [vmem:[%s10004_s4 + $0x38] sm:$0xff] }
  0xbc   :  { %v5385_v57 = vpop.eup %4869  ;;  %v5387_v58 = vadd.f32 1.0, %v4868_v54 }
  0xbd   :  { %v4872_v62 = vpop.eup %4871  ;;  %4875 = vpow2.f32 %v4720_v41  ;;  %v4690_v63 = vmul.f32 -1.442695, %v273_v55  ;;  %4666 = vmatmul.msk.f32.gmra.mxu0 %vm119_vm0, %v50_v51  ;;  %v571_v0 = vadd.f32 %v4866_v34, %v570_v56  ;;  %v1033_v1 = vmul.f32 %v5385_v57, %v5353_v29 }
  0xbe   :  { %v5395_v2 = vpop.eup %4873  ;;  %4877 = vrcp.f32 %v5387_v58  ;;  %v5398_v3 = vadd.f32 1.0, %v4872_v62  ;;  %vm1038_vm14 = vweird.f32 %v5385_v57  ;;  %vm1052_vm3 = vweird.f32 %v5387_v58 }
  0xbf   :  { %4879 = vpow2.f32 %v4690_v63  ;;  %v575_v6 = vsel %vm574_vm13, %v4866_v34, %v571_v0  ;;  %v1034_v7 = vsub.f32 1.0, %v1033_v1  ;;  %v583_v8 = vmul.f32 %v5395_v2, %v5361_v36  ;;  %vm5429_vm2 = vmor %vm1037_vm11, %vm1038_vm14 }
  0xc0   :  { %4881 = vrcp.f32 %v5398_v3  ;;  %v365_v9 = vpop.f32.mrf.mxu2  ;;  %v580_v10 = vsel %vm5380_vm10, %v579_v53, %v575_v6  ;;  %v606_v20 = vand.u32 2147483647, %v5398_v3  ;;  %v608_v21 = vand.u32 2147483648, %v5398_v3 }
  0xc1   :  { %v366_v13 = vadd.f32 %v365_v9, %v115_v4  ;;  %1229 = vperm.xlu1 %4849, %v580_v10   ;;  %v1035_v14 = vmul.f32 %v5385_v57, %v1034_v7  ;;  %v584_v16 = vsub.f32 1.0, %v583_v8  ;;  %vm588_vm4 = vweird.f32 %v5395_v2 }
  0xc2   :  { %v275_v17 = vpop.f32.mrf.mxu0  ;;  %v1056_v31 = vand.u32 2147483647, %v5387_v58  ;;  %v1058_v32 = vand.u32 2147483648, %v5387_v58  ;;  %vm602_vm6 = vweird.f32 %v5398_v3  ;;  %vm5466_vm7 = vcmp.eq.f32.partialorder %v606_v20, 8.507059e+37  ;;  %vm5478_vm8 = vmor %vm587_vm1, %vm588_vm4 }
  0xc3   :  { %v4876_v23 = vpop.eup %4875  ;;  %v4721_v24 = vmul.f32 -1.442695, %v366_v13  ;;  %v276_v25 = vadd.f32 %v275_v17, %v85_v11  ;;  %v1036_v26 = vadd.f32 %v5385_v57, %v1035_v14  ;;  %v585_v30 = vmul.f32 %v5395_v2, %v584_v16 }
  0xc4   :  { %v5442_v28 = vpop.eup %4877  ;;  %v5444_v29 = vadd.f32 1.0, %v4876_v23  ;;  %v609_v47 = vor.u32 1.1754944e-38, %v608_v21  ;;  %vm5483_vm9 = vcmp.eq.f32.partialorder %v1056_v31, 8.507059e+37  ;;  %v1059_v54 = vor.u32 1.1754944e-38, %v1058_v32 }
  0xc5   :  { %v4880_v33 = vpop.eup %4879  ;;  %4883 = vpow2.f32 %v4721_v24  ;;  %v4691_v34 = vmul.f32 -1.442695, %v276_v25  ;;  %4667 = vmatmul.msk.f32.gmra.mxu0 %vm119_vm0, %v51_v18  ;;  %v1040_v35 = vsel %vm5429_vm2, %v5385_v57, %v1036_v26  ;;  %v1048_v37 = vmul.f32 %v5442_v28, %v5387_v58 }
  0xc6   :  { %v4882_v38 = vpop.eup %4881  ;;  %4885 = vrcp.f32 %v5444_v29  ;;  %v5457_v39 = vadd.f32 1.0, %v4880_v33  ;;  %v1045_v42 = vsel %vm5416_vm15, %v1044_v15, %v1040_v35  ;;  %v586_v43 = vadd.f32 %v5395_v2, %v585_v30  ;;  %v117_v15 = vld [vmem:[%s10004_s4 + $0x130] sm:$0xff]  ;;  %v53_v30 = vld [vmem:[%s10003_s3 + $0xc0] sm:$0xff] }
  0xc7   :  { %4887 = vpow2.f32 %v4691_v34  ;;  %v598_v44 = vmul.f32 %v4882_v38, %v5398_v3  ;;  %v1071_v52 = vand.u32 2147483647, %v5444_v29  ;;  %v1049_v57 = vsub.f32 1.0, %v1048_v37  ;;  %v87_v3 = vld [vmem:[%s10004_s4 + $0x40] sm:$0xff] }
  0xc8   :  { %4889 = vrcp.f32 %v5457_v39  ;;  %v368_v48 = vpop.f32.mrf.mxu2  ;;  %v590_v56 = vsel %vm5478_vm8, %v5395_v2, %v586_v43  ;;  %vm603_vm10 = vweird.f32 %v4882_v38  ;;  %vm1067_vm11 = vweird.f32 %v5444_v29 }
  0xc9   :  { %v369_v41 = vadd.f32 %v368_v48, %v116_v40  ;;  %1384 = vperm.xlu1 %4849, %v1045_v42   ;;  %v599_v55 = vsub.f32 1.0, %v598_v44  ;;  %v1073_v60 = vand.u32 2147483648, %v5444_v29  ;;  %vm1053_vm12 = vweird.f32 %v5442_v28  ;;  %vm604_vm15 = vmor %vm602_vm6, %vm603_vm10 }
  0xca   :  { %v278_v36 = vpop.f32.mrf.mxu0  ;;  %v1050_v1 = vmul.f32 %v5442_v28, %v1049_v57  ;;  %v595_v5 = vsel %vm5438_vm5, %v594_v22, %v590_v56  ;;  %vm5503_vm13 = vcmp.eq.f32.partialorder %v1071_v52, 8.507059e+37  ;;  %v621_v7 = vand.u32 2147483647, %v5457_v39  ;;  %vm5515_vm14 = vmor %vm1052_vm3, %vm1053_vm12 }
  0xcb   :  { %v4884_v61 = vpop.eup %4883  ;;  %v4722_v62 = vmul.f32 -1.442695, %v369_v41  ;;  %v279_v63 = vadd.f32 %v278_v36, %v86_v50  ;;  %v600_v0 = vmul.f32 %v4882_v38, %v599_v55  ;;  %v623_v22 = vand.u32 2147483648, %v5457_v39 }
  0xcc   :  { %v5497_v2 = vpop.eup %4885  ;;  %v5499_v4 = vadd.f32 1.0, %v4884_v61  ;;  %v1051_v58 = vadd.f32 %v5442_v28, %v1050_v1  ;;  %v1074_v31 = vor.u32 1.1754944e-38, %v1073_v60  ;;  %vm617_vm3 = vweird.f32 %v5457_v39  ;;  %v54_v1 = vld [vmem:[%s10003_s3 + $0xc8] sm:$0xff] }
  0xcd   :  { %v4888_v8 = vpop.eup %4887  ;;  %4891 = vpow2.f32 %v4722_v62  ;;  %v4692_v9 = vmul.f32 -1.442695, %v279_v63  ;;  %4668 = vmatmul.msk.f32.gmra.mxu0 %vm119_vm0, %v52_v59  ;;  %v601_v10 = vadd.f32 %v4882_v38, %v600_v0  ;;  %v1063_v11 = vmul.f32 %v5497_v2, %v5444_v29 }
  0xce   :  { %v5519_v13 = vpop.eup %4889  ;;  %4893 = vrcp.f32 %v5499_v4  ;;  %v5522_v14 = vadd.f32 1.0, %v4888_v8  ;;  %vm1068_vm1 = vweird.f32 %v5497_v2  ;;  %v1055_v21 = vsel %vm5515_vm14, %v5442_v28, %v1051_v58 }
  0xcf   :  { %4895 = vpow2.f32 %v4692_v9  ;;  %v605_v16 = vsel %vm604_vm15, %v4882_v38, %v601_v10  ;;  %v1064_v17 = vsub.f32 1.0, %v1063_v11  ;;  %v613_v18 = vmul.f32 %v5519_v13, %v5457_v39  ;;  %vm5554_vm2 = vmor %vm1067_vm11, %vm1068_vm1  ;;  %v88_v39 = vld [vmem:[%s10004_s4 + $0x48] sm:$0xff] }
  0xd0   :  { %4897 = vrcp.f32 %v5522_v14  ;;  %v371_v19 = vpop.f32.mrf.mxu2  ;;  %v610_v20 = vsel %vm5466_vm7, %v609_v47, %v605_v16  ;;  %v1060_v25 = vsel %vm5483_vm9, %v1059_v54, %v1055_v21  ;;  %vm618_vm4 = vweird.f32 %v5519_v13  ;;  %v118_v54 = vld [vmem:[%s10004_s4 + $0x138] sm:$0xff] }
  0xd1   :  { %v372_v23 = vadd.f32 %v371_v19, %v117_v15  ;;  %1239 = vperm.xlu2 %4850, %v610_v20   ;;  %1234 = vperm.xlu1 %4849, %v595_v5   ;;  %v1065_v24 = vmul.f32 %v5497_v2, %v1064_v17  ;;  %v614_v26 = vsub.f32 1.0, %v613_v18  ;;  %v1086_v32 = vand.u32 2147483647, %v5499_v4  ;;  %vm5591_vm6 = vmor %vm617_vm3, %vm618_vm4 }
  0xd2   :  { %v281_v27 = vpop.f32.mrf.mxu0  ;;  %1389 = vperm.xlu0 %4848, %v1060_v25   ;;  %vm5567_vm5 = vcmp.eq.f32.partialorder %v621_v7, 8.507059e+37  ;;  %v624_v43 = vor.u32 1.1754944e-38, %v623_v22  ;;  %v1088_v44 = vand.u32 2147483648, %v5499_v4  ;;  %vm1082_vm7 = vweird.f32 %v5499_v4 }
  0xd3   :  { %v4892_v33 = vpop.eup %4891  ;;  %v4723_v34 = vmul.f32 -1.442695, %v372_v23  ;;  %v282_v35 = vadd.f32 %v281_v27, %v87_v3  ;;  %v1066_v37 = vadd.f32 %v5497_v2, %v1065_v24  ;;  %v615_v38 = vmul.f32 %v5519_v13, %v614_v26 }
  0xd4   :  { %v5563_v29 = vpop.eup %4893  ;;  %v5565_v40 = vadd.f32 1.0, %v4892_v33  ;;  %vm5601_vm8 = vcmp.eq.f32.partialorder %v1086_v32, 8.507059e+37  ;;  %v1089_v62 = vor.u32 1.1754944e-38, %v1088_v44  ;;  %vm632_vm10 = vweird.f32 %v5522_v14 }
  0xd5   :  { %v4896_v45 = vpop.eup %4895  ;;  %4899 = vpow2.f32 %v4723_v34  ;;  %v4693_v47 = vmul.f32 -1.442695, %v282_v35  ;;  %4669 = vmatmul.msk.f32.gmra.mxu0 %vm119_vm0, %v53_v30  ;;  %v1070_v48 = vsel %vm5554_vm2, %v5497_v2, %v1066_v37  ;;  %v616_v50 = vadd.f32 %v5519_v13, %v615_v38  ;;  %v89_v30 = vld [vmem:[%s10004_s4 + $0x50] sm:$0xff] }
  0xd6   :  { %v5577_v51 = vpop.eup %4897  ;;  %4901 = vrcp.f32 %v5565_v40  ;;  %v5580_v52 = vadd.f32 1.0, %v4896_v45  ;;  %v1075_v53 = vsel %vm5503_vm13, %v1074_v31, %v1070_v48  ;;  %v1078_v55 = vmul.f32 %v5563_v29, %v5499_v4  ;;  %v55_v34 = vld [vmem:[%s10003_s3 + $0xd0] sm:$0xff] }
  0xd7   :  { %4903 = vpow2.f32 %v4693_v47  ;;  %v620_v56 = vsel %vm5591_vm6, %v5519_v13, %v616_v50  ;;  %vm1083_vm9 = vweird.f32 %v5563_v29  ;;  %v628_v60 = vmul.f32 %v5577_v51, %v5522_v14 }
  0xd8   :  { %4905 = vrcp.f32 %v5580_v52  ;;  %v374_v36 = vpop.f32.mrf.mxu2  ;;  %v1079_v59 = vsub.f32 1.0, %v1078_v55  ;;  %v636_v63 = vand.u32 2147483647, %v5522_v14  ;;  %v625_v2 = vsel %vm5567_vm5, %v624_v43, %v620_v56  ;;  %vm5625_vm12 = vmor %vm1082_vm7, %vm1083_vm9 }
  0xd9   :  { %1394 = vperm.xlu2 %4850, %v1075_v53   ;;  %v375_v61 = vadd.f32 %v374_v36, %v118_v54  ;;  %v629_v6 = vsub.f32 1.0, %v628_v60  ;;  %vm633_vm11 = vweird.f32 %v5577_v51  ;;  %v638_v11 = vand.u32 2147483648, %v5522_v14 }
  0xda   :  { %v284_v0 = vpop.f32.mrf.mxu0  ;;  %v1080_v5 = vmul.f32 %v5563_v29, %v1079_v59  ;;  %v651_v12 = vand.u32 2147483647, %v5580_v52  ;;  %vm5637_vm13 = vcmp.eq.f32.partialorder %v636_v63, 8.507059e+37  ;;  %vm647_vm14 = vweird.f32 %v5580_v52  ;;  %vm634_vm15 = vmor %vm632_vm10, %vm633_vm11 }
  0xdb   :  { %v4900_v7 = vpop.eup %4899  ;;  %v285_v8 = vadd.f32 %v284_v0, %v88_v39  ;;  %v4724_v9 = vmul.f32 -1.442695, %v375_v61  ;;  %v630_v16 = vmul.f32 %v5577_v51, %v629_v6  ;;  %v653_v19 = vand.u32 2147483648, %v5580_v52  ;;  %v56_v6 = vld [vmem:[%s10003_s3 + $0xd8] sm:$0xff] }
  0xdc   :  { %v5631_v13 = vpop.eup %4901  ;;  %v5633_v15 = vadd.f32 1.0, %v4900_v7  ;;  %v1081_v58 = vadd.f32 %v5563_v29, %v1080_v5  ;;  %v639_v25 = vor.u32 1.1754944e-38, %v638_v11  ;;  %vm5665_vm2 = vcmp.eq.f32.partialorder %v651_v12, 8.507059e+37 }
  0xdd   :  { %v4904_v4 = vpop.eup %4903  ;;  %v4694_v18 = vmul.f32 -1.442695, %v285_v8  ;;  %4907 = vpow2.f32 %v4724_v9  ;;  %4670 = vmatmul.msk.f32.gmra.mxu0 %vm119_vm0, %v54_v1  ;;  %v1093_v20 = vmul.f32 %v5631_v13, %v5565_v40  ;;  %v631_v23 = vadd.f32 %v5577_v51, %v630_v16 }
  0xde   :  { %v4906_v3 = vpop.eup %4905  ;;  %4909 = vrcp.f32 %v5633_v15  ;;  %v5647_v21 = vadd.f32 1.0, %v4904_v4  ;;  %v1085_v22 = vsel %vm5625_vm12, %v5563_v29, %v1081_v58  ;;  %v654_v32 = vor.u32 1.1754944e-38, %v653_v19 }
  0xdf   :  { %4911 = vpow2.f32 %v4694_v18  ;;  %v1090_v24 = vsel %vm5601_vm8, %v1089_v62, %v1085_v22  ;;  %v643_v26 = vmul.f32 %v4906_v3, %v5580_v52  ;;  %v635_v27 = vsel %vm634_vm15, %v5577_v51, %v631_v23  ;;  %v90_v52 = vld [vmem:[%s10004_s4 + $0x58] sm:$0xff] }
  0xe0   :  { %4913 = vrcp.f32 %v5647_v21  ;;  %1399 = vperm.xlu1 %4849, %v1090_v24   ;;  %vm648_vm1 = vweird.f32 %v4906_v3  ;;  %v640_v14 = vsel %vm5637_vm13, %v639_v25, %v635_v27  ;;  %vm1112_vm3 = vweird.f32 %v5633_v15  ;;  %v91_v24 = vld [vmem:[%s10004_s4 + $0x60] sm:$0xff] }
  0xe1   :  { %1244 = vperm.xlu2 %4850, %v625_v2   ;;  %v644_v31 = vsub.f32 1.0, %v643_v26  ;;  %1249 = vperm.xlu0 %4848, %v640_v14   ;;  %v1094_v35 = vsub.f32 1.0, %v1093_v20  ;;  %vm1097_vm4 = vweird.f32 %v5565_v40  ;;  %vm1098_vm5 = vweird.f32 %v5631_v13  ;;  %vm649_vm9 = vmor %vm647_vm14, %vm648_vm1  ;;  %v111_v27 = vld [vmem:[%s10004_s4 + $0x100] sm:$0xff] }
  0xe2   :  { %v287_v33 = vpop.f32.mrf.mxu0  ;;  %v1101_v37 = vand.u32 2147483647, %v5565_v40  ;;  %v1116_v43 = vand.u32 2147483647, %v5633_v15  ;;  %v1118_v44 = vand.u32 2147483648, %v5633_v15  ;;  %v1103_v51 = vand.u32 2147483648, %v5565_v40  ;;  %vm5694_vm8 = vmor %vm1097_vm4, %vm1098_vm5 }
  0xe3   :  { %v4908_v38 = vpop.eup %4907  ;;  %v288_v29 = vadd.f32 %v287_v33, %v89_v30  ;;  %v645_v42 = vmul.f32 %v4906_v3, %v644_v31  ;;  %v1095_v48 = vmul.f32 %v5631_v13, %v1094_v35  ;;  %v4716_v62 = vmul.f32 -1.442695, %v5374_v46 }
  0xe4   :  { %v4910_v45 = vpop.eup %4909  ;;  %v5680_v47 = vadd.f32 1.0, %v4908_v38  ;;  %vm5683_vm6 = vcmp.eq.f32.partialorder %v1101_v37, 8.507059e+37  ;;  %v1104_v59 = vor.u32 1.1754944e-38, %v1103_v51  ;;  %v1119_v8 = vor.u32 1.1754944e-38, %v1118_v44 }
  0xe5   :  { %v4912_v53 = vpop.eup %4911  ;;  %v4695_v54 = vmul.f32 -1.442695, %v288_v29  ;;  %4671 = vmatmul.msk.f32.gmra.mxu0 %vm119_vm0, %v55_v34  ;;  %v646_v41 = vadd.f32 %v4906_v3, %v645_v42  ;;  %v1108_v55 = vmul.f32 %v4910_v45, %v5633_v15  ;;  %vm1113_vm7 = vweird.f32 %v4910_v45 }
  0xe6   :  { %v5698_v57 = vpop.eup %4913  ;;  %v5700_v39 = vadd.f32 1.0, %v4912_v53  ;;  %4915 = vrcp.f32 %v5680_v47  ;;  %v1096_v36 = vadd.f32 %v5631_v13, %v1095_v48  ;;  %vm5727_vm10 = vmor %vm1112_vm3, %vm1113_vm7  ;;  %vm1117_vm11 = vcmp.eq.f32.partialorder %v1116_v43, 8.507059e+37 }
  0xe7   :  { %4917 = vpow2.f32 %v4695_v54  ;;  %v650_v60 = vsel %vm649_vm9, %v4906_v3, %v646_v41  ;;  %v1109_v40 = vsub.f32 1.0, %v1108_v55  ;;  %v658_v61 = vmul.f32 %v5698_v57, %v5647_v21 }
  0xe8   :  { %4919 = vrcp.f32 %v5700_v39  ;;  %v655_v63 = vsel %vm5665_vm2, %v654_v32, %v650_v60  ;;  %v1100_v0 = vsel %vm5694_vm8, %v5631_v13, %v1096_v36  ;;  %vm663_vm12 = vweird.f32 %v5698_v57  ;;  %v92_v60 = vld [vmem:[%s10004_s4 + $0x68] sm:$0xff] }
  0xe9   :  { %1254 = vperm.xlu1 %4849, %v655_v63   ;;  %v1110_v1 = vmul.f32 %v4910_v45, %v1109_v40  ;;  %v1105_v2 = vsel %vm5683_vm6, %v1104_v59, %v1100_v0  ;;  %v659_v5 = vsub.f32 1.0, %v658_v61  ;;  %4921 = vpow2.f32 %v4716_v62  ;;  %v58_v63 = vld [vmem:[%s10003_s3 + $0xe8] sm:$0xff] }
  0xea   :  { %v290_v46 = vpop.f32.mrf.mxu0  ;;  %1404 = vperm.xlu0 %4848, %v1105_v2   ;;  %vm1127_vm13 = vweird.f32 %v5680_v47  ;;  %v1131_v17 = vand.u32 2147483647, %v5680_v47  ;;  %v1133_v3 = vand.u32 2147483648, %v5680_v47  ;;  %vm662_vm15 = vweird.f32 %v5647_v21 }
  0xeb   :  { %v291_v9 = vadd.f32 %v290_v46, %v90_v52  ;;  %v1111_v10 = vadd.f32 %v4910_v45, %v1110_v1  ;;  %v660_v11 = vmul.f32 %v5698_v57, %v659_v5  ;;  %v666_v25 = vand.u32 2147483647, %v5647_v21  ;;  %vm5756_vm1 = vmor %vm662_vm15, %vm663_vm12 }
  0xec   :  { %v4916_v12 = vpop.eup %4915  ;;  %v668_v26 = vand.u32 2147483648, %v5647_v21  ;;  %vm5760_vm2 = vcmp.eq.f32.partialorder %v1131_v17, 8.507059e+37  ;;  %v57_v21 = vld [vmem:[%s10003_s3 + $0xe0] sm:$0xff]  ;;  %v1134_v37 = vor.u32 1.1754944e-38, %v1133_v3  ;;  %v683_v38 = vand.u32 2147483648, %v5700_v39  ;;  %v59_v17 = vld [vmem:[%s10003_s3 + $0xf0] sm:$0xff] }
  0xed   :  { %v4918_v13 = vpop.eup %4917  ;;  %v4696_v58 = vmul.f32 -1.442695, %v291_v9  ;;  %4672 = vmatmul.msk.f32.gmra.mxu0 %vm119_vm0, %v56_v6  ;;  %v1115_v15 = vsel %vm5727_vm10, %v4910_v45, %v1111_v10  ;;  %v1123_v16 = vmul.f32 %v4916_v12, %v5680_v47  ;;  %v661_v20 = vadd.f32 %v5698_v57, %v660_v11 }
  0xee   :  { %v4920_v4 = vpop.eup %4919  ;;  %v5739_v18 = vadd.f32 1.0, %v4918_v13  ;;  %v1120_v19 = vsel %vm1117_vm11, %v1119_v8, %v1115_v15  ;;  %vm1128_vm14 = vweird.f32 %v4916_v12  ;;  %v681_v44 = vand.u32 2147483647, %v5700_v39  ;;  %v93_v13 = vld [vmem:[%s10004_s4 + $0x70] sm:$0xff] }
  0xef   :  { %4923 = vpow2.f32 %v4696_v58  ;;  %1409 = vperm.xlu2 %4850, %v1120_v19   ;;  %v1124_v22 = vsub.f32 1.0, %v1123_v16  ;;  %v673_v23 = vmul.f32 %v4920_v4, %v5700_v39  ;;  %v4922_v32 = vpop.eup %4921  ;;  %v665_v34 = vsel %vm5756_vm1, %v5698_v57, %v661_v20  ;;  %vm5773_vm3 = vmor %vm1127_vm13, %vm1128_vm14 }
  0xf0   :  { %4925 = vrcp.f32 %v5739_v18  ;;  %vm678_vm4 = vweird.f32 %v4920_v4  ;;  %v354_v45 = vadd.f32 %v5316_v49, %v111_v27  ;;  %vm667_vm5 = vcmp.eq.f32.partialorder %v666_v25, 8.507059e+37 }
  0xf1   :  { %v1125_v28 = vmul.f32 %v4916_v12, %v1124_v22  ;;  %v674_v31 = vsub.f32 1.0, %v673_v23  ;;  %v669_v48 = vor.u32 1.1754944e-38, %v668_v26  ;;  %vm677_vm6 = vweird.f32 %v5700_v39 }
  0xf2   :  { %v293_v33 = vpop.f32.mrf.mxu0  ;;  %vm679_vm7 = vmor %vm677_vm6, %vm678_vm4  ;;  %v684_v49 = vor.u32 1.1754944e-38, %v683_v38  ;;  %vm682_vm8 = vcmp.eq.f32.partialorder %v681_v44, 8.507059e+37  ;;  %v5790_v59 = vadd.f32 1.0, %v4922_v32  ;;  %v4717_v40 = vmul.f32 -1.442695, %v354_v45 }
  0xf3   :  { %v294_v29 = vadd.f32 %v293_v33, %v91_v24  ;;  %v1126_v42 = vadd.f32 %v4916_v12, %v1125_v28  ;;  %v675_v43 = vmul.f32 %v4920_v4, %v674_v31  ;;  %v670_v55 = vsel %vm667_vm5, %v669_v48, %v665_v34  ;;  %v94_v33 = vld [vmem:[%s10004_s4 + $0x78] sm:$0xff] }
  0xf4   :  { %v698_v52 = vand.u32 2147483648, %v5739_v18  ;;  %v696_v2 = vand.u32 2147483647, %v5739_v18  ;;  %vm692_vm10 = vweird.f32 %v5739_v18  ;;  %vm1007_vm4 = vweird.f32 %v5790_v59 }
  0xf5   :  { %v4924_v50 = vpop.eup %4923  ;;  %v4697_v51 = vmul.f32 -1.442695, %v294_v29  ;;  %4673 = vmatmul.msk.f32.gmra.mxu0 %vm119_vm0, %v57_v21  ;;  %v1130_v47 = vsel %vm5773_vm3, %v4916_v12, %v1126_v42  ;;  %v676_v53 = vadd.f32 %v4920_v4, %v675_v43 }
  0xf6   :  { %v4926_v54 = vpop.eup %4925  ;;  %v5784_v41 = vadd.f32 1.0, %v4924_v50  ;;  %v1135_v56 = vsel %vm5760_vm2, %v1134_v37, %v1130_v47  ;;  %v699_v9 = vor.u32 1.1754944e-38, %v698_v52  ;;  %vm697_vm12 = vcmp.eq.f32.partialorder %v696_v2, 8.507059e+37 }
  0xf7   :  { %4927 = vpow2.f32 %v4697_v51  ;;  %1259 = vperm.xlu2 %4850, %v670_v55   ;;  %1414 = vperm.xlu1 %4849, %v1135_v56   ;;  %v680_v57 = vsel %vm679_vm7, %v4920_v4, %v676_v53  ;;  %v688_v36 = vmul.f32 %v4926_v54, %v5739_v18  ;;  %vm693_vm9 = vweird.f32 %v4926_v54  ;;  %v95_v56 = vld [vmem:[%s10004_s4 + $0x80] sm:$0xff] }
  0xf8   :  { %4929 = vrcp.f32 %v5784_v41  ;;  %v685_v39 = vsel %vm682_vm8, %v684_v49, %v680_v57  ;;  %vm694_vm11 = vmor %vm692_vm10, %vm693_vm9  ;;  %v713_v4 = vand.u32 2147483648, %v5784_v41  ;;  %v711_v3 = vand.u32 2147483647, %v5784_v41 }
  0xf9   :  { %1264 = vperm.xlu0 %4848, %v685_v39   ;;  %v689_v61 = vsub.f32 1.0, %v688_v36  ;;  %4931 = vrcp.f32 %v5790_v59  ;;  %vm707_vm14 = vweird.f32 %v5784_v41  ;;  %v1011_v49 = vand.u32 2147483647, %v5790_v59 }
  0xfa   :  { %v296_v62 = vpop.f32.mrf.mxu0  ;;  %4933 = vpow2.f32 %v4717_v40  ;;  %v714_v28 = vor.u32 1.1754944e-38, %v713_v4  ;;  %vm712_vm1 = vcmp.eq.f32.partialorder %v711_v3, 8.507059e+37  ;;  %v1013_v57 = vand.u32 2147483648, %v5790_v59 }
  0xfb   :  { %v297_v0 = vadd.f32 %v296_v62, %v92_v60  ;;  %v690_v1 = vmul.f32 %v4926_v54, %v689_v61  ;;  %vm5860_vm9 = vcmp.eq.f32.partialorder %v1011_v49, 8.507059e+37 }
  0xfd   :  { %v4928_v5 = vpop.eup %4927  ;;  %v4698_v46 = vmul.f32 -1.442695, %v297_v0  ;;  %4674 = vmatmul.msk.f32.gmra.mxu0 %vm119_vm0, %v58_v63  ;;  %v691_v6 = vadd.f32 %v4926_v54, %v690_v1  ;;  %v1014_v1 = vor.u32 1.1754944e-38, %v1013_v57 }
  0xfe   :  { %v4930_v7 = vpop.eup %4929  ;;  %v5804_v8 = vadd.f32 1.0, %v4928_v5 }
  0xff   :  { %4935 = vpow2.f32 %v4698_v46  ;;  %v695_v10 = vsel %vm694_vm11, %v4926_v54, %v691_v6  ;;  %v703_v11 = vmul.f32 %v4930_v7, %v5784_v41  ;;  %v5811_v15 = vpop.eup %4931  ;;  %vm708_vm13 = vweird.f32 %v4930_v7 }
 0x100   :  { %4937 = vrcp.f32 %v5804_v8  ;;  %v700_v12 = vsel %vm697_vm12, %v699_v9, %v695_v10  ;;  %v4934_v18 = vpop.eup %4933  ;;  %v1003_v25 = vmul.f32 %v5811_v15, %v5790_v59  ;;  %vm709_vm15 = vmor %vm707_vm14, %vm708_vm13  ;;  %v728_v37 = vand.u32 2147483648, %v5804_v8 }
 0x101   :  { %1269 = vperm.xlu1 %4849, %v700_v12   ;;  %v704_v58 = vsub.f32 1.0, %v703_v11  ;;  %v5822_v27 = vadd.f32 1.0, %v4934_v18  ;;  %v726_v42 = vand.u32 2147483647, %v5804_v8  ;;  %vm722_vm2 = vweird.f32 %v5804_v8 }
 0x102   :  { %v299_v16 = vpop.f32.mrf.mxu0  ;;  %v1004_v34 = vsub.f32 1.0, %v1003_v25  ;;  %v729_v47 = vor.u32 1.1754944e-38, %v728_v37  ;;  %vm1008_vm5 = vweird.f32 %v5811_v15 }
 0x103   :  { %v300_v19 = vadd.f32 %v299_v16, %v93_v13  ;;  %v705_v20 = vmul.f32 %v4930_v7, %v704_v58  ;;  %vm727_vm6 = vcmp.eq.f32.partialorder %v726_v42, 8.507059e+37  ;;  %vm5855_vm7 = vmor %vm1007_vm4, %vm1008_vm5  ;;  %v96_v58 = vld [vmem:[%s10004_s4 + $0x88] sm:$0xff] }
 0x104   :  { %v1005_v48 = vmul.f32 %v5811_v15, %v1004_v34 }
 0x105   :  { %v4936_v22 = vpop.eup %4935  ;;  %v4699_v23 = vmul.f32 -1.442695, %v300_v19  ;;  %4675 = vmatmul.msk.f32.gmra.mxu0 %vm119_vm0, %v59_v17  ;;  %v706_v24 = vadd.f32 %v4930_v7, %v705_v20 }
 0x106   :  { %v4938_v26 = vpop.eup %4937  ;;  %v5824_v30 = vadd.f32 1.0, %v4936_v22  ;;  %v1006_v39 = vadd.f32 %v5811_v15, %v1005_v48 }
 0x107   :  { %4939 = vpow2.f32 %v4699_v23  ;;  %v710_v14 = vsel %vm709_vm15, %v4930_v7, %v706_v24  ;;  %v718_v31 = vmul.f32 %v4938_v26, %v5804_v8  ;;  %vm723_vm0 = vweird.f32 %v4938_v26 }
 0x108   :  { %4941 = vrcp.f32 %v5824_v30  ;;  %v715_v32 = vsel %vm712_vm1, %v714_v28, %v710_v14  ;;  %vm724_vm3 = vmor %vm722_vm2, %vm723_vm0  ;;  %v743_v40 = vand.u32 2147483648, %v5824_v30  ;;  %v741_v52 = vand.u32 2147483647, %v5824_v30 }
 0x109   :  { %1274 = vperm.xlu2 %4850, %v715_v32   ;;  %v719_v21 = vsub.f32 1.0, %v718_v31  ;;  %4943 = vrcp.f32 %v5822_v27  ;;  %vm737_vm10 = vweird.f32 %v5824_v30  ;;  %v1010_v6 = vsel %vm5855_vm7, %v5811_v15, %v1006_v39  ;;  %v97_v32 = vld [vmem:[%s10004_s4 + $0x90] sm:$0xff] }
 0x10a   :  { %v302_v35 = vpop.f32.mrf.mxu0  ;;  %v744_v9 = vor.u32 1.1754944e-38, %v743_v40  ;;  %vm742_vm12 = vcmp.eq.f32.partialorder %v741_v52, 8.507059e+37  ;;  %v1015_v13 = vsel %vm5860_vm9, %v1014_v1, %v1010_v6  ;;  %vm1022_vm1 = vweird.f32 %v5822_v27 }
 0x10b   :  { %v303_v38 = vadd.f32 %v302_v35, %v94_v33  ;;  %v720_v29 = vmul.f32 %v4938_v26, %v719_v21  ;;  %v1028_v21 = vand.u32 2147483648, %v5822_v27  ;;  %v1026_v35 = vand.u32 2147483647, %v5822_v27 }
 0x10d   :  { %v4940_v43 = vpop.eup %4939  ;;  %v4700_v44 = vmul.f32 -1.442695, %v303_v38  ;;  %v721_v45 = vadd.f32 %v4938_v26, %v720_v29  ;;  %v1029_v48 = vor.u32 1.1754944e-38, %v1028_v21  ;;  %vm1027_vm5 = vcmp.eq.f32.partialorder %v1026_v35, 8.507059e+37 }
 0x10e   :  { %v4942_v50 = vpop.eup %4941  ;;  %v5836_v51 = vadd.f32 1.0, %v4940_v43 }
 0x10f   :  { %4945 = vpow2.f32 %v4700_v44  ;;  %v725_v53 = vsel %vm724_vm3, %v4938_v26, %v721_v45  ;;  %v733_v54 = vmul.f32 %v4942_v50, %v5824_v30  ;;  %v5841_v41 = vpop.eup %4943  ;;  %vm738_vm8 = vweird.f32 %v4942_v50 }
 0x110   :  { %4947 = vrcp.f32 %v5836_v51  ;;  %v730_v55 = vsel %vm727_vm6, %v729_v47, %v725_v53  ;;  %v1018_v2 = vmul.f32 %v5841_v41, %v5822_v27  ;;  %vm739_vm11 = vmor %vm737_vm10, %vm738_vm8  ;;  %v758_v4 = vand.u32 2147483648, %v5836_v51 }
 0x111   :  { %1279 = vperm.xlu0 %4848, %v730_v55   ;;  %v734_v36 = vsub.f32 1.0, %v733_v54  ;;  %v756_v20 = vand.u32 2147483647, %v5836_v51  ;;  %vm752_vm14 = vweird.f32 %v5836_v51  ;;  %vm1023_vm0 = vweird.f32 %v5841_v41 }
 0x112   :  { %v305_v60 = vpop.f32.mrf.mxu0  ;;  %v1019_v15 = vsub.f32 1.0, %v1018_v2  ;;  %v759_v30 = vor.u32 1.1754944e-38, %v758_v4  ;;  %vm5891_vm3 = vmor %vm1022_vm1, %vm1023_vm0 }
 0x113   :  { %v306_v62 = vadd.f32 %v305_v60, %v95_v56  ;;  %v735_v63 = vmul.f32 %v4942_v50, %v734_v36  ;;  %vm757_vm2 = vcmp.eq.f32.partialorder %v756_v20, 8.507059e+37 }
 0x114   :  { %v1020_v3 = vmul.f32 %v5841_v41, %v1019_v15 }
 0x115   :  { %v4946_v5 = vpop.eup %4945  ;;  %v4701_v46 = vmul.f32 -1.442695, %v306_v62  ;;  %v736_v59 = vadd.f32 %v4942_v50, %v735_v63 }
 0x116   :  { %v4948_v7 = vpop.eup %4947  ;;  %v5870_v8 = vadd.f32 1.0, %v4946_v5  ;;  %v1021_v33 = vadd.f32 %v5841_v41, %v1020_v3 }
 0x117   :  { %4949 = vpow2.f32 %v4701_v46  ;;  %v740_v10 = vsel %vm739_vm11, %v4942_v50, %v736_v59  ;;  %v748_v11 = vmul.f32 %v4948_v7, %v5836_v51  ;;  %vm753_vm13 = vweird.f32 %v4948_v7 }
 0x118   :  { %4951 = vrcp.f32 %v5870_v8  ;;  %v745_v12 = vsel %vm742_vm12, %v744_v9, %v740_v10  ;;  %vm754_vm15 = vmor %vm752_vm14, %vm753_vm13  ;;  %v773_v29 = vand.u32 2147483648, %v5870_v8  ;;  %v771_v44 = vand.u32 2147483647, %v5870_v8 }
 0x119   :  { %1284 = vperm.xlu1 %4849, %v745_v12   ;;  %1374 = vperm.xlu0 %4848, %v1015_v13   ;;  %v749_v16 = vsub.f32 1.0, %v748_v11  ;;  %v1025_v45 = vsel %vm5891_vm3, %v5841_v41, %v1021_v33  ;;  %vm767_vm6 = vweird.f32 %v5870_v8  ;;  %v98_v41 = vld [vmem:[%s10004_s4 + $0x98] sm:$0xff] }
 0x11a   :  { %v308_v17 = vpop.f32.mrf.mxu0  ;;  %v774_v54 = vor.u32 1.1754944e-38, %v773_v29  ;;  %vm772_vm8 = vcmp.eq.f32.partialorder %v771_v44, 8.507059e+37  ;;  %v1030_v49 = vsel %vm1027_vm5, %v1029_v48, %v1025_v45 }
 0x11b   :  { %v309_v18 = vadd.f32 %v308_v17, %v96_v58  ;;  %v750_v19 = vmul.f32 %v4948_v7, %v749_v16 }
 0x11d   :  { %v4950_v22 = vpop.eup %4949  ;;  %v4702_v23 = vmul.f32 -1.442695, %v309_v18  ;;  %v751_v24 = vadd.f32 %v4948_v7, %v750_v19 }
 0x11e   :  { %v4952_v25 = vpop.eup %4951  ;;  %v513_v26 = vadd.f32 1.0, %v4950_v22  ;;  %v100_v22 = vld [vmem:[%s10004_s4 + $0xa8] sm:$0xff] }
 0x11f   :  { %4953 = vpow2.f32 %v4702_v23  ;;  %v755_v28 = vsel %vm754_vm15, %v4948_v7, %v751_v24  ;;  %v763_v14 = vmul.f32 %v4952_v25, %v5870_v8  ;;  %vm768_vm4 = vweird.f32 %v4952_v25  ;;  %v99_v7 = vld [vmem:[%s10004_s4 + $0xa0] sm:$0xff] }
 0x120   :  { %4955 = vrcp.f32 %v513_v26  ;;  %v760_v31 = vsel %vm757_vm2, %v759_v30, %v755_v28  ;;  %vm769_vm7 = vmor %vm767_vm6, %vm768_vm4  ;;  %v788_v36 = vand.u32 2147483648, %v513_v26  ;;  %vm782_vm9 = vweird.f32 %v513_v26 }
 0x121   :  { %1289 = vperm.xlu2 %4850, %v760_v31   ;;  %v764_v37 = vsub.f32 1.0, %v763_v14  ;;  %v786_v60 = vand.u32 2147483647, %v513_v26 }
 0x122   :  { %v311_v38 = vpop.f32.mrf.mxu0  ;;  %v789_v63 = vor.u32 1.1754944e-38, %v788_v36 }
 0x123   :  { %v312_v42 = vadd.f32 %v311_v38, %v97_v32  ;;  %v765_v43 = vmul.f32 %v4952_v25, %v764_v37  ;;  %vm787_vm12 = vcmp.eq.f32.partialorder %v786_v60, 8.507059e+37 }
 0x125   :  { %v4954_v50 = vpop.eup %4953  ;;  %v4703_v51 = vmul.f32 -1.442695, %v312_v42  ;;  %v766_v47 = vadd.f32 %v4952_v25, %v765_v43  ;;  %v101_v42 = vld [vmem:[%s10004_s4 + $0xb0] sm:$0xff] }
 0x126   :  { %v4956_v27 = vpop.eup %4955  ;;  %v514_v53 = vadd.f32 1.0, %v4954_v50 }
 0x127   :  { %4957 = vpow2.f32 %v4703_v51  ;;  %v770_v55 = vsel %vm769_vm7, %v4952_v25, %v766_v47  ;;  %v778_v56 = vmul.f32 %v4956_v27, %v513_v26  ;;  %vm783_vm10 = vweird.f32 %v4956_v27 }
 0x128   :  { %4959 = vrcp.f32 %v514_v53  ;;  %v775_v57 = vsel %vm772_vm8, %v774_v54, %v770_v55  ;;  %vm784_vm11 = vmor %vm782_vm9, %vm783_vm10  ;;  %v803_v8 = vand.u32 2147483648, %v514_v53  ;;  %vm797_vm13 = vweird.f32 %v514_v53  ;;  %v5918_v54 = vpop.permute.xlu0 %1219 }
 0x129   :  { %1379 = vperm.xlu2 %4850, %v1030_v49   ;;  %1294 = vperm.xlu0 %4848, %v775_v57   ;;  %v779_v39 = vsub.f32 1.0, %v778_v56  ;;  %v801_v10 = vand.u32 2147483647, %v514_v53 }
 0x12a   :  { %v314_v40 = vpop.f32.mrf.mxu0  ;;  %v804_v58 = vor.u32 1.1754944e-38, %v803_v8 }
 0x12b   :  { %v315_v61 = vadd.f32 %v314_v40, %v98_v41  ;;  %v780_v62 = vmul.f32 %v4956_v27, %v779_v39  ;;  %vm802_vm1 = vcmp.eq.f32.partialorder %v801_v10, 8.507059e+37  ;;  %v5916_v47 = vpop.permute.xlu2 %1239  ;;  %v102_v40 = vld [vmem:[%s10004_s4 + $0xb8] sm:$0xff] }
 0x12d   :  { %v4958_v52 = vpop.eup %4957  ;;  %v4704_v0 = vmul.f32 -1.442695, %v315_v61  ;;  %v781_v1 = vadd.f32 %v4956_v27, %v780_v62 }
 0x12e   :  { %v4960_v2 = vpop.eup %4959  ;;  %v515_v5 = vadd.f32 1.0, %v4958_v52 }
 0x12f   :  { %4961 = vpow2.f32 %v4704_v0  ;;  %v785_v46 = vsel %vm784_vm11, %v4956_v27, %v781_v1  ;;  %v793_v59 = vmul.f32 %v4960_v2, %v514_v53  ;;  %vm798_vm14 = vweird.f32 %v4960_v2 }
 0x130   :  { %4963 = vrcp.f32 %v515_v5  ;;  %v790_v6 = vsel %vm787_vm12, %v789_v63, %v785_v46  ;;  %vm799_vm15 = vmor %vm797_vm13, %vm798_vm14  ;;  %v818_v23 = vand.u32 2147483648, %v515_v5  ;;  %vm812_vm0 = vweird.f32 %v515_v5  ;;  %v5931_v10 = vpop.permute.xlu0 %1224 }
 0x131   :  { %1299 = vperm.xlu1 %4849, %v790_v6   ;;  %v794_v9 = vsub.f32 1.0, %v793_v59  ;;  %v816_v25 = vand.u32 2147483647, %v515_v5 }
 0x132   :  { %v317_v11 = vpop.f32.mrf.mxu0  ;;  %v819_v31 = vor.u32 1.1754944e-38, %v818_v23 }
 0x133   :  { %v318_v12 = vadd.f32 %v317_v11, %v99_v7  ;;  %v795_v13 = vmul.f32 %v4960_v2, %v794_v9  ;;  %v5911_v30 = vpop.permute.xlu1 %1229  ;;  %vm817_vm4 = vcmp.eq.f32.partialorder %v816_v25, 8.507059e+37  ;;  %v5929_v8 = vpop.permute.xlu2 %1394 }
 0x135   :  { %v4962_v15 = vpop.eup %4961  ;;  %v4705_v16 = vmul.f32 -1.442695, %v318_v12  ;;  %v796_v17 = vadd.f32 %v4960_v2, %v795_v13 }
 0x136   :  { %v4964_v4 = vpop.eup %4963  ;;  %v516_v18 = vadd.f32 1.0, %v4962_v15  ;;  %v103_v15 = vld [vmem:[%s10004_s4 + $0xc0] sm:$0xff] }
 0x137   :  { %4965 = vpow2.f32 %v4705_v16  ;;  %v800_v19 = vsel %vm799_vm15, %v4960_v2, %v796_v17  ;;  %v808_v20 = vmul.f32 %v4964_v4, %v515_v5  ;;  %vm813_vm2 = vweird.f32 %v4964_v4 }
 0x138   :  { %4967 = vrcp.f32 %v516_v18  ;;  %v805_v3 = vsel %vm802_vm1, %v804_v58, %v800_v19  ;;  %vm814_vm3 = vmor %vm812_vm0, %vm813_vm2  ;;  %v833_v43 = vand.u32 2147483648, %v516_v18  ;;  %vm827_vm5 = vweird.f32 %v516_v18 }
 0x139   :  { %1304 = vperm.xlu2 %4850, %v805_v3   ;;  %v809_v24 = vsub.f32 1.0, %v808_v20  ;;  %v831_v45 = vand.u32 2147483647, %v516_v18 }
 0x13a   :  { %v320_v26 = vpop.f32.mrf.mxu0  ;;  %v834_v27 = vor.u32 1.1754944e-38, %v833_v43 }
 0x13b   :  { %v321_v28 = vadd.f32 %v320_v26, %v100_v22  ;;  %v810_v14 = vmul.f32 %v4964_v4, %v809_v24  ;;  %v5920_v55 = vpop.permute.xlu1 %1384  ;;  %vm832_vm8 = vcmp.eq.f32.partialorder %v831_v45, 8.507059e+37 }
 0x13d   :  { %v4966_v32 = vpop.eup %4965  ;;  %v4706_v33 = vmul.f32 -1.442695, %v321_v28  ;;  %v811_v21 = vadd.f32 %v4964_v4, %v810_v14 }
 0x13e   :  { %v4968_v34 = vpop.eup %4967  ;;  %v517_v35 = vadd.f32 1.0, %v4966_v32 }
 0x13f   :  { %4969 = vpow2.f32 %v4706_v33  ;;  %v815_v37 = vsel %vm814_vm3, %v4964_v4, %v811_v21  ;;  %v823_v38 = vmul.f32 %v4968_v34, %v516_v18  ;;  %vm828_vm6 = vweird.f32 %v4968_v34  ;;  %v5950_v21 = vpop.permute.xlu2 %1244 }
 0x140   :  { %4971 = vrcp.f32 %v517_v35  ;;  %v820_v29 = vsel %vm817_vm4, %v819_v31, %v815_v37  ;;  %vm829_vm7 = vmor %vm827_vm5, %vm828_vm6  ;;  %v848_v61 = vand.u32 2147483648, %v517_v35  ;;  %vm842_vm9 = vweird.f32 %v517_v35 }
 0x141   :  { %1309 = vperm.xlu0 %4848, %v820_v29   ;;  %v824_v44 = vsub.f32 1.0, %v823_v38  ;;  %v846_v63 = vand.u32 2147483647, %v517_v35 }
 0x142   :  { %v323_v48 = vpop.f32.mrf.mxu0  ;;  %v849_v5 = vor.u32 1.1754944e-38, %v848_v61 }
 0x143   :  { %v324_v50 = vadd.f32 %v323_v48, %v101_v42  ;;  %v825_v51 = vmul.f32 %v4968_v34, %v824_v44  ;;  %vm847_vm12 = vcmp.eq.f32.partialorder %v846_v63, 8.507059e+37  ;;  %v5933_v11 = vpop.permute.xlu1 %1234 }
 0x144   :  { %v5944_v14 = vpop.permute.xlu0 %1389 }
 0x145   :  { %v4970_v53 = vpop.eup %4969  ;;  %v4707_v56 = vmul.f32 -1.442695, %v324_v50  ;;  %v826_v49 = vadd.f32 %v4968_v34, %v825_v51 }
 0x146   :  { %v4972_v57 = vpop.eup %4971  ;;  %v518_v41 = vadd.f32 1.0, %v4970_v53 }
 0x147   :  { %4973 = vpow2.f32 %v4707_v56  ;;  %v830_v36 = vsel %vm829_vm7, %v4968_v34, %v826_v49  ;;  %v838_v39 = vmul.f32 %v4972_v57, %v517_v35  ;;  %vm843_vm10 = vweird.f32 %v4972_v57  ;;  %v104_v35 = vld [vmem:[%s10004_s4 + $0xc8] sm:$0xff] }
 0x148   :  { %4975 = vrcp.f32 %v518_v41  ;;  %v835_v60 = vsel %vm832_vm8, %v834_v27, %v830_v36  ;;  %vm5925_vm11 = vmor %vm842_vm9, %vm843_vm10  ;;  %v863_v16 = vand.u32 2147483648, %v518_v41  ;;  %vm857_vm13 = vweird.f32 %v518_v41  ;;  %v105_v36 = vld [vmem:[%s10004_s4 + $0xd0] sm:$0xff] }
 0x149   :  { %1314 = vperm.xlu0 %4848, %v835_v60   ;;  %v839_v62 = vsub.f32 1.0, %v838_v39  ;;  %v861_v4 = vand.u32 2147483647, %v518_v41 }
 0x14a   :  { %v326_v52 = vpop.f32.mrf.mxu0  ;;  %v864_v22 = vor.u32 1.1754944e-38, %v863_v16 }
 0x14b   :  { %v327_v0 = vadd.f32 %v326_v52, %v102_v40  ;;  %v840_v1 = vmul.f32 %v4972_v57, %v839_v62  ;;  %vm862_vm1 = vcmp.eq.f32.partialorder %v861_v4, 8.507059e+37 }
 0x14d   :  { %v4974_v46 = vpop.eup %4973  ;;  %v4708_v59 = vmul.f32 -1.442695, %v327_v0  ;;  %v841_v6 = vadd.f32 %v4972_v57, %v840_v1 }
 0x14e   :  { %v4976_v7 = vpop.eup %4975  ;;  %v519_v9 = vadd.f32 1.0, %v4974_v46 }
 0x14f   :  { %4977 = vpow2.f32 %v4708_v59  ;;  %v845_v12 = vsel %vm5925_vm11, %v4972_v57, %v841_v6  ;;  %v853_v13 = vmul.f32 %v4976_v7, %v518_v41  ;;  %vm858_vm14 = vweird.f32 %v4976_v7  ;;  %v5955_v57 = vpop.permute.xlu2 %1409 }
 0x150   :  { %4979 = vrcp.f32 %v519_v9  ;;  %v850_v58 = vsel %vm847_vm12, %v849_v5, %v845_v12  ;;  %vm5940_vm15 = vmor %vm857_vm13, %vm858_vm14  ;;  %v878_v37 = vand.u32 2147483648, %v519_v9  ;;  %vm872_vm0 = vweird.f32 %v519_v9  ;;  %v1215_v12 = vld [vmem:[%s10005_s1 + $0x270] sm:$0xff] }
 0x151   :  { %1319 = vperm.xlu1 %4849, %v850_v58   ;;  %v854_v17 = vsub.f32 1.0, %v853_v13  ;;  %v876_v29 = vand.u32 2147483647, %v519_v9  ;;  %v106_v58 = vld [vmem:[%s10004_s4 + $0xd8] sm:$0xff] }
 0x152   :  { %v329_v18 = vpop.f32.mrf.mxu0  ;;  %v5946_v31 = vpop.permute.xlu1 %1399  ;;  %v879_v45 = vor.u32 1.1754944e-38, %v878_v37  ;;  %v1209_v37 = vld [vmem:[%s10005_s1 + $0x240] sm:$0xff] }
 0x153   :  { %v330_v19 = vadd.f32 %v329_v18, %v103_v15  ;;  %v855_v20 = vmul.f32 %v4976_v7, %v854_v17  ;;  %vm877_vm4 = vcmp.eq.f32.partialorder %v876_v29, 8.507059e+37  ;;  %v5960_v60 = vpop.permute.xlu0 %1249  ;;  %v1213_v18 = vld [vmem:[%s10005_s1 + $0x260] sm:$0xff] }
 0x155   :  { %v4978_v23 = vpop.eup %4977  ;;  %v4709_v24 = vmul.f32 -1.442695, %v330_v19  ;;  %v856_v25 = vadd.f32 %v4976_v7, %v855_v20 }
 0x156   :  { %v4980_v26 = vpop.eup %4979  ;;  %v520_v28 = vadd.f32 1.0, %v4978_v23 }
 0x157   :  { %4981 = vpow2.f32 %v4709_v24  ;;  %v860_v32 = vsel %vm5940_vm15, %v4976_v7, %v856_v25  ;;  %v868_v33 = vmul.f32 %v4980_v26, %v519_v9  ;;  %vm873_vm2 = vweird.f32 %v4980_v26  ;;  %v5981_v3 = vpop.permute.xlu2 %1259  ;;  %v1211_v25 = vld [vmem:[%s10005_s1 + $0x250] sm:$0xff] }
 0x158   :  { %4983 = vrcp.f32 %v520_v28  ;;  %v865_v34 = vsel %vm862_vm1, %v864_v22, %v860_v32  ;;  %vm874_vm3 = vmor %vm872_vm0, %vm873_vm2  ;;  %v893_v39 = vand.u32 2147483648, %v520_v28  ;;  %vm887_vm5 = vweird.f32 %v520_v28 }
 0x159   :  { %1324 = vperm.xlu2 %4850, %v865_v34   ;;  %v869_v38 = vsub.f32 1.0, %v868_v33  ;;  %v891_v62 = vand.u32 2147483647, %v520_v28  ;;  %v5994_v32 = vmul.f32 %v5955_v57, %v1213_v18 }
 0x15a   :  { %v332_v42 = vpop.f32.mrf.mxu0  ;;  %v894_v1 = vor.u32 1.1754944e-38, %v893_v39 }
 0x15b   :  { %v333_v43 = vadd.f32 %v332_v42, %v104_v35  ;;  %v870_v44 = vmul.f32 %v4980_v26, %v869_v38  ;;  %v5962_v40 = vpop.permute.xlu1 %1254  ;;  %vm892_vm8 = vcmp.eq.f32.partialorder %v891_v62, 8.507059e+37 }
 0x15c   :  { %v5983_v22 = vpop.permute.xlu0 %1404 }
 0x15d   :  { %v4982_v48 = vpop.eup %4981  ;;  %v4710_v50 = vmul.f32 -1.442695, %v333_v43  ;;  %v871_v51 = vadd.f32 %v4980_v26, %v870_v44  ;;  %v6001_v42 = vmul.f32 %v5983_v22, %v1211_v25 }
 0x15e   :  { %v4984_v27 = vpop.eup %4983  ;;  %v521_v53 = vadd.f32 1.0, %v4982_v48 }
 0x15f   :  { %4985 = vpow2.f32 %v4710_v50  ;;  %v875_v56 = vsel %vm874_vm3, %v4980_v26, %v871_v51  ;;  %v883_v49 = vmul.f32 %v4984_v27, %v520_v28  ;;  %vm888_vm6 = vweird.f32 %v4984_v27  ;;  %v107_v50 = vld [vmem:[%s10004_s4 + $0xe0] sm:$0xff] }
 0x160   :  { %4987 = vrcp.f32 %v521_v53  ;;  %v880_v41 = vsel %vm877_vm4, %v879_v45, %v875_v56  ;;  %vm889_vm7 = vmor %vm887_vm5, %vm888_vm6  ;;  %v908_v15 = vand.u32 2147483648, %v521_v53  ;;  %vm902_vm9 = vweird.f32 %v521_v53  ;;  %v1207_v45 = vld [vmem:[%s10005_s1 + $0x230] sm:$0xff] }
 0x161   :  { %1329 = vperm.xlu0 %4848, %v880_v41   ;;  %v884_v61 = vsub.f32 1.0, %v883_v49  ;;  %v906_v4 = vand.u32 2147483647, %v521_v53  ;;  %v1205_v49 = vld [vmem:[%s10005_s1 + $0x220] sm:$0xff] }
 0x162   :  { %v335_v63 = vpop.f32.mrf.mxu0  ;;  %v909_v28 = vor.u32 1.1754944e-38, %v908_v15 }
 0x163   :  { %v336_v52 = vadd.f32 %v335_v63, %v105_v36  ;;  %v885_v0 = vmul.f32 %v4984_v27, %v884_v61  ;;  %vm907_vm12 = vcmp.eq.f32.partialorder %v906_v4, 8.507059e+37  ;;  %v6024_v36 = vmul.f32 %v5929_v8, %v1207_v45  ;;  %v6026_v39 = vpop.permute.xlu2 %1274  ;;  %v1203_v63 = vld [vmem:[%s10005_s1 + $0x210] sm:$0xff] }
 0x165   :  { %v4986_v2 = vpop.eup %4985  ;;  %v4711_v5 = vmul.f32 -1.442695, %v336_v52  ;;  %v886_v46 = vadd.f32 %v4984_v27, %v885_v0 }
 0x166   :  { %v4988_v59 = vpop.eup %4987  ;;  %v5964_v6 = vadd.f32 1.0, %v4986_v2 }
 0x167   :  { %4989 = vpow2.f32 %v4711_v5  ;;  %v890_v7 = vsel %vm889_vm7, %v4984_v27, %v886_v46  ;;  %v898_v9 = vmul.f32 %v4988_v59, %v521_v53  ;;  %vm903_vm10 = vweird.f32 %v4988_v59 }
 0x168   :  { %4991 = vrcp.f32 %v5964_v6  ;;  %v895_v13 = vsel %vm892_vm8, %v894_v1, %v890_v7  ;;  %vm5988_vm11 = vmor %vm902_vm9, %vm903_vm10  ;;  %v923_v51 = vand.u32 2147483648, %v5964_v6  ;;  %v6015_v27 = vmul.f32 %v5946_v31, %v1209_v37 }
 0x169   :  { %1334 = vperm.xlu1 %4849, %v895_v13   ;;  %v5973_v16 = vpop.permute.xlu1 %1414  ;;  %v899_v17 = vsub.f32 1.0, %v898_v9  ;;  %vm917_vm13 = vweird.f32 %v5964_v6  ;;  %v921_v56 = vand.u32 2147483647, %v5964_v6  ;;  %v6037_v1 = vmul.f32 %v5944_v14, %v1205_v49 }
 0x16a   :  { %v338_v19 = vpop.f32.mrf.mxu0  ;;  %v5979_v20 = vmul.f32 %v5973_v16, %v1215_v12  ;;  %v924_v0 = vor.u32 1.1754944e-38, %v923_v51  ;;  %v6041_v7 = vmul.f32 %v5920_v55, %v1203_v63  ;;  %v1526_v63 = vld [vmem:[%s10006_s5 + $0xe8] sm:$0xff]  ;;  %vm1617_vm7 = vcmask 523264  }
 0x16b   :  { %v339_v23 = vadd.f32 %v338_v19, %v106_v58  ;;  %v900_v24 = vmul.f32 %v4988_v59, %v899_v17  ;;  %vm922_vm1 = vcmp.eq.f32.partialorder %v921_v56, 8.507059e+37  ;;  %v108_v58 = vld [vmem:[%s10004_s4 + $0xe8] sm:$0xff]  ;;  %v6049_v19 = vpop.permute.xlu0 %1264 }
 0x16c   :  { %4831 = vmatpush.msra.mxu3 %v5979_v20 }
 0x16d   :  { %v4990_v33 = vpop.eup %4989  ;;  %v4712_v34 = vmul.f32 -1.442695, %v339_v23  ;;  %v901_v35 = vadd.f32 %v4988_v59, %v900_v24 }
 0x16e   :  { %v4992_v38 = vpop.eup %4991  ;;  %v523_v29 = vadd.f32 1.0, %v4990_v33  ;;  %4832 = vmatpush.msra.mxu3 %v5994_v32 }
 0x16f   :  { %4993 = vpow2.f32 %v4712_v34  ;;  %v905_v43 = vsel %vm5988_vm11, %v4988_v59, %v901_v35  ;;  %v913_v44 = vmul.f32 %v4992_v38, %v5964_v6  ;;  %vm918_vm14 = vweird.f32 %v4992_v38 }
 0x170   :  { %4995 = vrcp.f32 %v523_v29  ;;  %v910_v48 = vsel %vm907_vm12, %v909_v28, %v905_v43  ;;  %4833 = vmatpush.msra.mxu3 %v6001_v42  ;;  %vm6031_vm15 = vmor %vm917_vm13, %vm918_vm14  ;;  %v938_v15 = vand.u32 2147483648, %v523_v29  ;;  %vm932_vm0 = vweird.f32 %v523_v29 }
 0x171   :  { %1339 = vperm.xlu2 %4850, %v910_v48   ;;  %v914_v53 = vsub.f32 1.0, %v913_v44  ;;  %v936_v4 = vand.u32 2147483647, %v523_v29  ;;  %v109_v44 = vld [vmem:[%s10004_s4 + $0xf0] sm:$0xff]  ;;  %v1201_v48 = vld [vmem:[%s10005_s1 + $0x200] sm:$0xff] }
 0x172   :  { %v341_v41 = vpop.f32.mrf.mxu0  ;;  %4834 = vmatpush.msra.mxu3 %v6015_v27  ;;  %v939_v26 = vor.u32 1.1754944e-38, %v938_v15 }
 0x173   :  { %v342_v61 = vadd.f32 %v341_v41, %v107_v50  ;;  %v915_v62 = vmul.f32 %v4992_v38, %v914_v53  ;;  %vm937_vm4 = vcmp.eq.f32.partialorder %v936_v4, 8.507059e+37 }
 0x174   :  { %4835 = vmatpush.msra.mxu3 %v6024_v36 }
 0x175   :  { %v4994_v2 = vpop.eup %4993  ;;  %v4713_v5 = vmul.f32 -1.442695, %v342_v61  ;;  %v916_v46 = vadd.f32 %v4992_v38, %v915_v62 }
 0x176   :  { %v4996_v59 = vpop.eup %4995  ;;  %v524_v6 = vadd.f32 1.0, %v4994_v2  ;;  %4836 = vmatpush.msra.mxu3 %v6037_v1 }
 0x177   :  { %4997 = vpow2.f32 %v4713_v5  ;;  %v920_v9 = vsel %vm6031_vm15, %v4992_v38, %v916_v46  ;;  %v928_v12 = vmul.f32 %v4996_v59, %v523_v29  ;;  %vm933_vm2 = vweird.f32 %v4996_v59 }
 0x178   :  { %4999 = vrcp.f32 %v524_v6  ;;  %v925_v13 = vsel %vm922_vm1, %v924_v0, %v920_v9  ;;  %4837 = vmatpush.msra.mxu3 %v6041_v7  ;;  %vm934_vm3 = vmor %vm932_vm0, %vm933_vm2  ;;  %v953_v45 = vand.u32 2147483648, %v524_v6  ;;  %vm947_vm5 = vweird.f32 %v524_v6 }
 0x179   :  { %1344 = vperm.xlu0 %4848, %v925_v13   ;;  %v929_v17 = vsub.f32 1.0, %v928_v12  ;;  %v951_v51 = vand.u32 2147483647, %v524_v6 }
 0x17a   :  { %v344_v18 = vpop.f32.mrf.mxu0  ;;  %v954_v52 = vor.u32 1.1754944e-38, %v953_v45 }
 0x17b   :  { %v345_v23 = vadd.f32 %v344_v18, %v108_v58  ;;  %v6051_v24 = vpop.permute.xlu2 %1289  ;;  %v930_v25 = vmul.f32 %v4996_v59, %v929_v17  ;;  %vm952_vm9 = vcmp.eq.f32.partialorder %v951_v51, 8.507059e+37  ;;  %v1200_v58 = vld [vmem:[%s10005_s1 + $0x1f8] sm:$0xff] }
 0x17d   :  { %v4998_v28 = vpop.eup %4997  ;;  %v4714_v33 = vmul.f32 -1.442695, %v345_v23  ;;  %v931_v34 = vadd.f32 %v4996_v59, %v930_v25  ;;  %v1529_v25 = vld [vmem:[%s10006_s5 + $0x100] sm:$0xff] }
 0x17e   :  { %v5000_v35 = vpop.eup %4999  ;;  %v525_v37 = vadd.f32 1.0, %v4998_v28 }
 0x17f   :  { %5001 = vpow2.f32 %v4714_v33  ;;  %v935_v38 = vsel %vm934_vm3, %v4996_v59, %v931_v34  ;;  %v943_v43 = vmul.f32 %v5000_v35, %v524_v6  ;;  %vm948_vm6 = vweird.f32 %v5000_v35 }
 0x180   :  { %5003 = vrcp.f32 %v525_v37  ;;  %v940_v29 = vsel %vm937_vm4, %v939_v26, %v935_v38  ;;  %vm949_vm8 = vmor %vm947_vm5, %vm948_vm6  ;;  %v968_v13 = vand.u32 2147483648, %v525_v37  ;;  %vm962_vm10 = vweird.f32 %v525_v37 }
 0x181   :  { %1349 = vperm.xlu1 %4849, %v940_v29   ;;  %v944_v50 = vsub.f32 1.0, %v943_v43  ;;  %v966_v17 = vand.u32 2147483647, %v525_v37  ;;  %vm2560_vm6 = vcmask 556032  }
 0x182   :  { %v347_v53 = vpop.f32.mrf.mxu0  ;;  %v969_v26 = vor.u32 1.1754944e-38, %v968_v13 }
 0x183   :  { %v348_v56 = vadd.f32 %v347_v53, %v109_v44  ;;  %v6059_v49 = vpop.permute.xlu2 %1379  ;;  %v6061_v41 = vpop.permute.xlu0 %1279  ;;  %v945_v61 = vmul.f32 %v5000_v35, %v944_v50  ;;  %vm967_vm13 = vcmp.eq.f32.partialorder %v966_v17, 8.507059e+37  ;;  %v1532_v50 = vld [vmem:[%s10006_s5 + $0x118] sm:$0xff]  ;;  %v1166_v17 = vld [vmem:[%s10005_s1 + $0xe8] sm:$0xff] }
 0x184   :  { %v6064_v62 = vmul.f32 %v6059_v49, %v1201_v48  ;;  %v6084_v53 = vpop.permute.xlu1 %1269 }
 0x185   :  { %v5002_v0 = vpop.eup %5001  ;;  %v4715_v2 = vmul.f32 -1.442695, %v348_v56  ;;  %v946_v5 = vadd.f32 %v5000_v35, %v945_v61 }
 0x186   :  { %v5004_v46 = vpop.eup %5003  ;;  %v526_v59 = vadd.f32 1.0, %v5002_v0  ;;  %4838 = vmatpush.msra.mxu3 %v6064_v62 }
 0x187   :  { %5005 = vpow2.f32 %v4715_v2  ;;  %4734 = vmatmul.msk.f32.vlgmr.msra.gmra.mxu3 %vm1617_vm7, %v1526_v63  ;;  %v950_v6 = vsel %vm949_vm8, %v5000_v35, %v946_v5  ;;  %v958_v9 = vmul.f32 %v5004_v46, %v525_v37  ;;  %vm963_vm11 = vweird.f32 %v5004_v46  ;;  %v1167_v5 = vld [vmem:[%s10005_s1 + $0xf0] sm:$0xff] }
 0x188   :  { %5007 = vrcp.f32 %v526_v59  ;;  %v955_v12 = vsel %vm952_vm9, %v954_v52, %v950_v6  ;;  %vm964_vm12 = vmor %vm962_vm10, %vm963_vm11  ;;  %v983_v29 = vand.u32 2147483648, %v526_v59  ;;  %vm977_vm14 = vweird.f32 %v526_v59 }
 0x189   :  { %1354 = vperm.xlu2 %4850, %v955_v12   ;;  %v959_v15 = vsub.f32 1.0, %v958_v9  ;;  %v981_v45 = vand.u32 2147483647, %v526_v59  ;;  %v1165_v12 = vld [vmem:[%s10005_s1 + $0xe0] sm:$0xff] }
 0x18a   :  { %v984_v51 = vor.u32 1.1754944e-38, %v983_v29 }
 0x18b   :  { %v6074_v4 = vpop.permute.xlu0 %1374  ;;  %v960_v18 = vmul.f32 %v5004_v46, %v959_v15  ;;  %vm982_vm0 = vcmp.eq.f32.partialorder %v981_v45, 8.507059e+37  ;;  %v1162_v45 = vld [vmem:[%s10005_s1 + $0xc8] sm:$0xff] }
 0x18c   :  { %v1480_v23 = vmul.f32 %v6074_v4, %v1200_v58 }
 0x18d   :  { %v5006_v28 = vpop.eup %5005  ;;  %v961_v33 = vadd.f32 %v5004_v46, %v960_v18  ;;  %v1150_v18 = vld [vmem:[%s10005_s1 + $0x68] sm:$0xff] }
 0x18e   :  { %v5008_v34 = vpop.eup %5007  ;;  %v527_v35 = vadd.f32 1.0, %v5006_v28  ;;  %2286 = vmatpush.msrb.mxu0 %v1480_v23 }
 0x18f   :  { %4735 = vmatmul.msk.f32.gmra.mxu3 %vm1617_vm7, %v1529_v25  ;;  %v965_v37 = vsel %vm964_vm12, %v5004_v46, %v961_v33  ;;  %v973_v38 = vmul.f32 %v5008_v34, %v526_v59  ;;  %vm978_vm15 = vweird.f32 %v5008_v34  ;;  %v1168_v46 = vld [vmem:[%s10005_s1 + $0xf8] sm:$0xff]  ;;  %v1285_v25 = vpop.permute.xlu1 %1284  ;;  %v1163_v33 = vld [vmem:[%s10005_s1 + $0xd0] sm:$0xff] }
 0x190   :  { %5009 = vrcp.f32 %v527_v35  ;;  %v970_v43 = vsel %vm967_vm13, %v969_v26, %v965_v37  ;;  %vm979_vm1 = vmor %vm977_vm14, %vm978_vm15  ;;  %v998_v2 = vand.u32 2147483648, %v527_v35  ;;  %vm992_vm2 = vweird.f32 %v527_v35  ;;  %v1535_v26 = vld [vmem:[%s10006_s5 + $0x130] sm:$0xff] }
 0x191   :  { %1359 = vperm.xlu0 %4848, %v970_v43   ;;  %v974_v44 = vsub.f32 1.0, %v973_v38  ;;  %v996_v6 = vand.u32 2147483647, %v527_v35  ;;  %v1446_v37 = vmul.f32 %v6051_v24, %v1166_v17  ;;  %v1161_v43 = vld [vmem:[%s10005_s1 + $0xc0] sm:$0xff] }
 0x192   :  { %v999_v23 = vor.u32 1.1754944e-38, %v998_v2  ;;  %v1538_v2 = vld [vmem:[%s10006_s5 + $0x148] sm:$0xff]  ;;  %v1149_v17 = vld [vmem:[%s10005_s1 + $0x60] sm:$0xff] }
 0x193   :  { %v975_v48 = vmul.f32 %v5008_v34, %v974_v44  ;;  %vm997_vm5 = vcmp.eq.f32.partialorder %v996_v6, 8.507059e+37  ;;  %v1443_v44 = vmul.f32 %v1285_v25, %v1163_v33  ;;  %v1430_v33 = vmul.f32 %v5960_v60, %v1150_v18 }
 0x195   :  { %v976_v56 = vadd.f32 %v5008_v34, %v975_v48 }
 0x196   :  { %v5010_v61 = vpop.eup %5009 }
 0x197   :  { %4736 = vmatmul.msk.f32.gmra.mxu3 %vm1617_vm7, %v1532_v50  ;;  %v980_v63 = vsel %vm979_vm1, %v5008_v34, %v976_v56  ;;  %v988_v52 = vmul.f32 %v5010_v61, %v527_v35  ;;  %vm993_vm3 = vweird.f32 %v5010_v61  ;;  %v1445_v34 = vmul.f32 %v6051_v24, %v1165_v12  ;;  %v1164_v35 = vld [vmem:[%s10005_s1 + $0xd8] sm:$0xff]  ;;  %v1159_v24 = vld [vmem:[%s10005_s1 + $0xb0] sm:$0xff] }
 0x198   :  { %v985_v0 = vsel %vm982_vm0, %v984_v51, %v980_v63  ;;  %vm6099_vm4 = vmor %vm992_vm2, %vm993_vm3  ;;  %v1444_v48 = vmul.f32 %v1285_v25, %v1164_v35  ;;  %v1441_v50 = vmul.f32 %v6061_v41, %v1161_v43  ;;  %v1160_v51 = vld [vmem:[%s10005_s1 + $0xb8] sm:$0xff]  ;;  %v1442_v56 = vmul.f32 %v6061_v41, %v1162_v45  ;;  %v1155_v41 = vld [vmem:[%s10005_s1 + $0x90] sm:$0xff] }
 0x199   :  { %1364 = vperm.xlu1 %4849, %v985_v0   ;;  %v989_v59 = vsub.f32 1.0, %v988_v52  ;;  %v1439_v63 = vmul.f32 %v6026_v39, %v1159_v24  ;;  %v1158_v52 = vld [vmem:[%s10005_s1 + $0xa8] sm:$0xff]  ;;  %v1440_v0 = vmul.f32 %v6026_v39, %v1160_v51  ;;  %v1153_v39 = vld [vmem:[%s10005_s1 + $0x80] sm:$0xff]  ;;  %v1435_v6 = vmul.f32 %v6049_v19, %v1155_v41  ;;  %v1144_v43 = vld [vmem:[%s10005_s1 + $0x38] sm:$0xff] }
 0x19a   :  { %v1541_v25 = vld [vmem:[%s10006_s5 + $0x160] sm:$0xff]  ;;  %v1146_v35 = vld [vmem:[%s10005_s1 + $0x48] sm:$0xff]  ;;  %v1544_v24 = vld [vmem:[%s10006_s5 + $0x178] sm:$0xff] }
 0x19b   :  { %v1295_v9 = vpop.permute.xlu0 %1294  ;;  %v990_v13 = vmul.f32 %v5010_v61, %v989_v59  ;;  %v1438_v59 = vmul.f32 %v6084_v53, %v1158_v52  ;;  %v1142_v45 = vld [vmem:[%s10005_s1 + $0x28] sm:$0xff]  ;;  %v1140_v51 = vld [vmem:[%s10005_s1 + $0x18] sm:$0xff]  ;;  %v1199_v52 = vld [vmem:[%s10005_s1 + $0x1f0] sm:$0xff] }
 0x19c   :  { %v1447_v58 = vmul.f32 %v1295_v9, %v1167_v5  ;;  %v1448_v15 = vmul.f32 %v1295_v9, %v1168_v46  ;;  %v1156_v46 = vld [vmem:[%s10005_s1 + $0x98] sm:$0xff]  ;;  %v1154_v9 = vld [vmem:[%s10005_s1 + $0x88] sm:$0xff] }
 0x19d   :  { %v991_v28 = vadd.f32 %v5010_v61, %v990_v13  ;;  %v1436_v12 = vmul.f32 %v6049_v19, %v1156_v46  ;;  %v1433_v13 = vmul.f32 %v5981_v3, %v1153_v39  ;;  %v1479_v46 = vmul.f32 %v6074_v4, %v1199_v52  ;;  %v1547_v39 = vld [vmem:[%s10006_s5 + $0x190] sm:$0xff]  ;;  %v1212_v4 = vld [vmem:[%s10005_s1 + $0x258] sm:$0xff] }
 0x19e   :  { %1738 = vmatpush.msra.mxu1 %v1447_v58  ;;  %4815 = vmatpush.msrb.mxu2 %v1447_v58  ;;  %v1152_v58 = vld [vmem:[%s10005_s1 + $0x78] sm:$0xff] }
 0x19f   :  { %2149 = vmatpush.msrb.mxu3 %v1448_v15  ;;  %v995_v38 = vsel %vm6099_vm4, %v5010_v61, %v991_v28  ;;  %v1157_v61 = vld [vmem:[%s10005_s1 + $0xa0] sm:$0xff]  ;;  %v1434_v15 = vmul.f32 %v5981_v3, %v1154_v9  ;;  %v1147_v3 = vld [vmem:[%s10005_s1 + $0x50] sm:$0xff]  ;;  %v1148_v28 = vld [vmem:[%s10005_s1 + $0x58] sm:$0xff]  ;;  %v6271_v9 = vmul.f32 %v5983_v22, %v1212_v4 }
 0x1a0   :  { %4737 = vmatmul.msk.f32.gmra.mxu3 %vm1617_vm7, %v1535_v26  ;;  %1739 = vmatpush.msra.mxu1 %v1445_v34  ;;  %v1000_v29 = vsel %vm997_vm5, %v999_v23, %v995_v38  ;;  %v1437_v5 = vmul.f32 %v6084_v53, %v1157_v61  ;;  %v1151_v53 = vld [vmem:[%s10005_s1 + $0x70] sm:$0xff]  ;;  %v1432_v23 = vmul.f32 %v5962_v40, %v1152_v58  ;;  %v1590_v22 = vld [vmem:[%s10006_s5 + $0x2e8] sm:$0xff]  ;;  %v6437_v4 = vld [vmem:[%s10006_s5 + $0xd8] sm:$0xff] }
 0x1a1   :  { %4816 = vmatpush.msrb.mxu2 %v1445_v34  ;;  %2150 = vmatpush.msrb.mxu3 %v1446_v37  ;;  %v1431_v19 = vmul.f32 %v5962_v40, %v1151_v53  ;;  %v1429_v26 = vmul.f32 %v5960_v60, %v1149_v17  ;;  %v1145_v40 = vld [vmem:[%s10005_s1 + $0x40] sm:$0xff]  ;;  %v1427_v34 = vmul.f32 %v5950_v21, %v1147_v3  ;;  %v1143_v60 = vld [vmem:[%s10005_s1 + $0x30] sm:$0xff]  ;;  %v6283_v53 = vld [vmem:[%s10006_s5 + $0x18] sm:$0xff] }
 0x1a2   :  { %1369 = vperm.xlu2 %4850, %v1000_v29   ;;  %1740 = vmatpush.msra.mxu1 %v1443_v44  ;;  %v1428_v37 = vmul.f32 %v5950_v21, %v1148_v28  ;;  %v1425_v38 = vmul.f32 %v5916_v47, %v1145_v40  ;;  %v1426_v29 = vmul.f32 %v5916_v47, %v1146_v35  ;;  %v1139_v47 = vld [vmem:[%s10005_s1 + $0x10] sm:$0xff]  ;;  %v1556_v3 = vld [vmem:[%s10006_s5 + $0x1d8] sm:$0xff]  ;;  %v6350_v28 = vpop.permute.xlu2 %1304 }
 0x1a3   :  { %4817 = vmatpush.msrb.mxu2 %v1443_v44  ;;  %2151 = vmatpush.msrb.mxu3 %v1444_v48  ;;  %v1141_v44 = vld [vmem:[%s10005_s1 + $0x20] sm:$0xff]  ;;  %v1423_v21 = vmul.f32 %v5933_v11, %v1143_v60  ;;  %v1424_v48 = vmul.f32 %v5933_v11, %v1144_v43  ;;  %v1419_v61 = vmul.f32 %v5931_v10, %v1139_v47  ;;  %v1559_v40 = vld [vmem:[%s10006_s5 + $0x1f0] sm:$0xff]  ;;  %v1562_v60 = vld [vmem:[%s10006_s5 + $0x208] sm:$0xff]  ;;  %v6377_v43 = vpop.permute.xlu1 %1299 }
 0x1a4   :  { %1741 = vmatpush.msra.mxu1 %v1441_v50  ;;  %v1137_v11 = vld [vmem:[%s10005_s1] sm:$0xff]  ;;  %v6401_v47 = vld [vmem:[%s10006_s5 + $0xa8] sm:$0xff] }
 0x1a5   :  { %4818 = vmatpush.msrb.mxu2 %v1441_v50  ;;  %2152 = vmatpush.msrb.mxu3 %v1442_v56  ;;  %v1421_v50 = vmul.f32 %v5911_v30, %v1141_v44  ;;  %v1422_v56 = vmul.f32 %v5911_v30, %v1142_v45  ;;  %v1420_v30 = vmul.f32 %v5931_v10, %v1140_v51  ;;  %v1214_v10 = vld [vmem:[%s10005_s1 + $0x268] sm:$0xff]  ;;  %v1565_v45 = vld [vmem:[%s10006_s5 + $0x220] sm:$0xff]  ;;  %v1608_v51 = vld [vmem:[%s10006_s5 + $0x378] sm:$0xff] }
 0x1a6   :  { %1742 = vmatpush.msra.mxu1 %v1439_v63 }
 0x1a7   :  { %4819 = vmatpush.msrb.mxu2 %v1439_v63  ;;  %2153 = vmatpush.msrb.mxu3 %v1440_v0  ;;  %v1138_v63 = vld [vmem:[%s10005_s1 + $0x8] sm:$0xff]  ;;  %v1417_v0 = vmul.f32 %v5918_v54, %v1137_v11  ;;  %v1197_v11 = vld [vmem:[%s10005_s1 + $0x1e0] sm:$0xff] }
 0x1a8   :  { %4738 = vmatmul.msk.f32.gmra.mxu3 %vm1617_vm7, %v1538_v2  ;;  %1743 = vmatpush.msra.mxu1 %v1437_v5  ;;  %v1216_v2 = vld [vmem:[%s10005_s1 + $0x278] sm:$0xff]  ;;  %v1418_v41 = vmul.f32 %v5918_v54, %v1138_v63 }
 0x1a9   :  { %4820 = vmatpush.msrb.mxu2 %v1437_v5  ;;  %2154 = vmatpush.msrb.mxu3 %v1438_v59  ;;  %v6242_v5 = vld [vmem:[%s10006_s5] sm:$0xff]  ;;  %v1587_v59 = vld [vmem:[%s10006_s5 + $0x2d0] sm:$0xff]  ;;  %v6252_v54 = vmul.f32 %v5973_v16, %v1216_v2  ;;  %v1210_v16 = vld [vmem:[%s10005_s1 + $0x248] sm:$0xff] }
 0x1aa   :  { %1744 = vmatpush.msra.mxu1 %v1435_v6 }
 0x1ab   :  { %4821 = vmatpush.msrb.mxu2 %v1435_v6  ;;  %2155 = vmatpush.msrb.mxu3 %v1436_v12  ;;  %v6263_v6 = vmul.f32 %v5955_v57, %v1214_v10  ;;  %v1208_v12 = vld [vmem:[%s10005_s1 + $0x238] sm:$0xff]  ;;  %v6278_v57 = vmul.f32 %v5946_v31, %v1210_v16  ;;  %v1550_v31 = vld [vmem:[%s10006_s5 + $0x1a8] sm:$0xff]  ;;  %v1611_v10 = vld [vmem:[%s10006_s5 + $0x390] sm:$0xff] }
 0x1ac   :  { %1745 = vmatpush.msra.mxu1 %v1433_v13  ;;  %v6293_v58 = vmul.f32 %v5929_v8, %v1208_v12  ;;  %v1202_v8 = vld [vmem:[%s10005_s1 + $0x208] sm:$0xff] }
 0x1ad   :  { %4822 = vmatpush.msrb.mxu2 %v1433_v13  ;;  %2156 = vmatpush.msrb.mxu3 %v1434_v15  ;;  %v1206_v13 = vld [vmem:[%s10005_s1 + $0x228] sm:$0xff]  ;;  %v1204_v15 = vld [vmem:[%s10005_s1 + $0x218] sm:$0xff]  ;;  %v6316_v18 = vmul.f32 %v6059_v49, %v1202_v8 }
 0x1ae   :  { %1746 = vmatpush.msra.mxu1 %v1431_v19  ;;  %v6304_v17 = vmul.f32 %v5944_v14, %v1206_v13  ;;  %v6321_v14 = vld [vmem:[%s10006_s5 + $0x30] sm:$0xff]  ;;  %v6335_v49 = vld [vmem:[%s10006_s5 + $0x48] sm:$0xff] }
 0x1af   :  { %4823 = vmatpush.msrb.mxu2 %v1431_v19  ;;  %2157 = vmatpush.msrb.mxu3 %v1432_v23  ;;  %v6312_v19 = vmul.f32 %v5920_v55, %v1204_v15  ;;  %v1593_v23 = vld [vmem:[%s10006_s5 + $0x300] sm:$0xff]  ;;  %v1574_v16 = vld [vmem:[%s10006_s5 + $0x268] sm:$0xff]  ;;  %v1195_v13 = vld [vmem:[%s10005_s1 + $0x1d0] sm:$0xff] }
 0x1b0   :  { %4739 = vmatmul.msk.f32.gmra.mxu3 %vm1617_vm7, %v1541_v25  ;;  %1747 = vmatpush.msra.mxu1 %v1429_v26  ;;  %v1553_v55 = vld [vmem:[%s10006_s5 + $0x1c0] sm:$0xff]  ;;  %v1596_v25 = vld [vmem:[%s10006_s5 + $0x318] sm:$0xff]  ;;  %v1614_v12 = vld [vmem:[%s10006_s5 + $0x3a8] sm:$0xff] }
 0x1b1   :  { %4824 = vmatpush.msrb.mxu2 %v1429_v26  ;;  %2158 = vmatpush.msrb.mxu3 %v1430_v33  ;;  %v6348_v26 = vld [vmem:[%s10006_s5 + $0x60] sm:$0xff]  ;;  %v1599_v33 = vld [vmem:[%s10006_s5 + $0x330] sm:$0xff] }
 0x1b2   :  { %1748 = vmatpush.msra.mxu1 %v1427_v34  ;;  %v1193_v15 = vld [vmem:[%s10005_s1 + $0x1c0] sm:$0xff] }
 0x1b3   :  { %4825 = vmatpush.msrb.mxu2 %v1427_v34  ;;  %2159 = vmatpush.msrb.mxu3 %v1428_v37  ;;  %v6363_v34 = vld [vmem:[%s10006_s5 + $0x78] sm:$0xff]  ;;  %v6365_v35 = vpop.permute.xlu2 %1324  ;;  %v1602_v37 = vld [vmem:[%s10006_s5 + $0x348] sm:$0xff] }
 0x1b4   :  { %1749 = vmatpush.msra.mxu1 %v1425_v38 }
 0x1b5   :  { %4826 = vmatpush.msrb.mxu2 %v1425_v38  ;;  %2160 = vmatpush.msrb.mxu3 %v1426_v29  ;;  %v6375_v38 = vpop.permute.xlu0 %1309  ;;  %v6382_v29 = vld [vmem:[%s10006_s5 + $0x90] sm:$0xff] }
 0x1b6   :  { %1750 = vmatpush.msra.mxu1 %v1423_v21 }
 0x1b7   :  { %4827 = vmatpush.msrb.mxu2 %v1423_v21  ;;  %2161 = vmatpush.msrb.mxu3 %v1424_v48  ;;  %v1605_v21 = vld [vmem:[%s10006_s5 + $0x360] sm:$0xff] }
 0x1b8   :  { %4740 = vmatmul.msk.f32.gmra.mxu3 %vm1617_vm7, %v1544_v24  ;;  %1751 = vmatpush.msra.mxu1 %v1421_v50 }
 0x1b9   :  { %4828 = vmatpush.msrb.mxu2 %v1421_v50  ;;  %2162 = vmatpush.msrb.mxu3 %v1422_v56  ;;  %v1568_v56 = vld [vmem:[%s10006_s5 + $0x238] sm:$0xff] }
 0x1ba   :  { %1752 = vmatpush.msra.mxu1 %v1419_v61 }
 0x1bb   :  { %4829 = vmatpush.msrb.mxu2 %v1419_v61  ;;  %2163 = vmatpush.msrb.mxu3 %v1420_v30  ;;  %v1198_v61 = vld [vmem:[%s10005_s1 + $0x1e8] sm:$0xff]  ;;  %v6424_v30 = vld [vmem:[%s10006_s5 + $0xc0] sm:$0xff] }
 0x1bc   :  { %1753 = vmatpush.msra.mxu1 %v1417_v0 }
 0x1bd   :  { %4830 = vmatpush.msrb.mxu2 %v1417_v0  ;;  %2164 = vmatpush.msrb.mxu3 %v1418_v41  ;;  %v6394_v48 = vpop.permute.xlu0 %1314 }
 0x1be   :  { %1754 = vmatmul.f32.vlgmr.msra.gmra.mxu1 %v6242_v5  ;;  %1844 = vmatmul.f32.vlgmr.msrb.gmra.mxu2 %v1587_v59 }
 0x1bf   :  { %1875 = vmatpush.msra.mxu2 %v1479_v46  ;;  %2431 = vmatpush.msrb.mxu1 %v6252_v54  ;;  %v1571_v46 = vld [vmem:[%s10006_s5 + $0x250] sm:$0xff] }
 0x1c0   :  { %4741 = vmatmul.msk.f32.gmra.mxu3 %vm1617_vm7, %v1547_v39 }
 0x1c1   :  { %2432 = vmatpush.msrb.mxu1 %v6263_v6 }
 0x1c3   :  { %2433 = vmatpush.msrb.mxu1 %v6271_v9  ;;  %v6396_v24 = vpop.permute.xlu1 %1319 }
 0x1c5   :  { %2434 = vmatpush.msrb.mxu1 %v6278_v57 }
 0x1c6   :  { %1757 = vmatmul.f32.gmra.mxu1 %v6283_v53  ;;  %1847 = vmatmul.f32.gmra.mxu2 %v1590_v22  ;;  %v1196_v22 = vld [vmem:[%s10005_s1 + $0x1d8] sm:$0xff] }
 0x1c7   :  { %2435 = vmatpush.msrb.mxu1 %v6293_v58 }
 0x1c8   :  { %4742 = vmatmul.msk.f32.gmra.mxu3 %vm1617_vm7, %v1550_v31 }
 0x1c9   :  { %2436 = vmatpush.msrb.mxu1 %v6304_v17 }
 0x1cb   :  { %2437 = vmatpush.msrb.mxu1 %v6312_v19  ;;  %v6384_v44 = vpop.permute.xlu2 %1339 }
 0x1cd   :  { %2438 = vmatpush.msrb.mxu1 %v6316_v18 }
 0x1ce   :  { %1760 = vmatmul.f32.gmra.mxu1 %v6321_v14  ;;  %1850 = vmatmul.f32.gmra.mxu2 %v1593_v23 }
 0x1d0   :  { %4743 = vmatmul.msk.f32.gmra.mxu3 %vm1617_vm7, %v1553_v55  ;;  %v6461_v55 = vld [vmem:[%s10006_s5 + $0xf0] sm:$0xff] }
 0x1d3   :  { %v6417_v63 = vpop.permute.xlu0 %1329 }
 0x1d6   :  { %1763 = vmatmul.f32.gmra.mxu1 %v6335_v49  ;;  %1853 = vmatmul.f32.gmra.mxu2 %v1596_v25 }
 0x1d8   :  { %4744 = vmatmul.msk.f32.gmra.mxu3 %vm1617_vm7, %v1556_v3 }
 0x1db   :  { %v6419_v52 = vpop.permute.xlu1 %1334 }
 0x1de   :  { %1766 = vmatmul.f32.gmra.mxu1 %v6348_v26  ;;  %1856 = vmatmul.f32.gmra.mxu2 %v1599_v33  ;;  %v1194_v33 = vld [vmem:[%s10005_s1 + $0x1c8] sm:$0xff] }
 0x1e0   :  { %4745 = vmatmul.msk.f32.gmra.mxu3 %vm1617_vm7, %v1559_v40  ;;  %v1191_v40 = vld [vmem:[%s10005_s1 + $0x1b0] sm:$0xff] }
 0x1e3   :  { %v1355_v50 = vpop.permute.xlu2 %1354 }
 0x1e6   :  { %1769 = vmatmul.f32.gmra.mxu1 %v6363_v34  ;;  %1859 = vmatmul.f32.gmra.mxu2 %v1602_v37  ;;  %v1577_v37 = vld [vmem:[%s10006_s5 + $0x280] sm:$0xff] }
 0x1e8   :  { %4746 = vmatmul.msk.f32.gmra.mxu3 %vm1617_vm7, %v1562_v60 }
 0x1eb   :  { %v1345_v59 = vpop.permute.xlu0 %1344 }
 0x1ee   :  { %1772 = vmatmul.f32.gmra.mxu1 %v6382_v29  ;;  %1862 = vmatmul.f32.gmra.mxu2 %v1605_v21  ;;  %v1192_v21 = vld [vmem:[%s10005_s1 + $0x1b8] sm:$0xff] }
 0x1f0   :  { %4747 = vmatmul.msk.f32.gmra.mxu3 %vm1617_vm7, %v1565_v45  ;;  %v1189_v45 = vld [vmem:[%s10005_s1 + $0x1a0] sm:$0xff] }
 0x1f3   :  { %v1350_v39 = vpop.permute.xlu1 %1349 }
 0x1f6   :  { %1775 = vmatmul.f32.gmra.mxu1 %v6401_v47  ;;  %1865 = vmatmul.f32.gmra.mxu2 %v1608_v51 }
 0x1f8   :  { %4748 = vmatmul.msk.f32.gmra.mxu3 %vm1617_vm7, %v1568_v56  ;;  %v1471_v56 = vmul.f32 %v1355_v50, %v1191_v40  ;;  %v1179_v40 = vld [vmem:[%s10005_s1 + $0x150] sm:$0xff] }
 0x1fc   :  { %v1370_v0 = vpop.permute.xlu2 %1369 }
 0x1fd   :  { %v1477_v2 = vmul.f32 %v1370_v0, %v1197_v11  ;;  %v1478_v41 = vmul.f32 %v1370_v0, %v1198_v61  ;;  %v1190_v11 = vld [vmem:[%s10005_s1 + $0x1a8] sm:$0xff]  ;;  %v1187_v61 = vld [vmem:[%s10005_s1 + $0x190] sm:$0xff]  ;;  %v1472_v0 = vmul.f32 %v1355_v50, %v1192_v21  ;;  %v1180_v21 = vld [vmem:[%s10005_s1 + $0x158] sm:$0xff] }
 0x1fe   :  { %1778 = vmatmul.f32.gmra.mxu1 %v6424_v30  ;;  %1868 = vmatmul.f32.gmra.mxu2 %v1611_v10  ;;  %v1185_v10 = vld [vmem:[%s10005_s1 + $0x180] sm:$0xff]  ;;  %v1467_v50 = vmul.f32 %v1345_v59, %v1187_v61  ;;  %v1175_v61 = vld [vmem:[%s10005_s1 + $0x130] sm:$0xff] }
 0x1ff   :  { %1876 = vmatpush.msra.mxu2 %v1477_v2  ;;  %2287 = vmatpush.msrb.mxu0 %v1478_v41  ;;  %v1469_v2 = vmul.f32 %v1350_v39, %v1189_v45  ;;  %v1177_v45 = vld [vmem:[%s10005_s1 + $0x140] sm:$0xff] }
 0x200   :  { %4749 = vmatmul.msk.f32.gmra.mxu3 %vm1617_vm7, %v1571_v46  ;;  %v1188_v46 = vld [vmem:[%s10005_s1 + $0x198] sm:$0xff] }
 0x203   :  { %v1360_v8 = vpop.permute.xlu0 %1359 }
 0x204   :  { %v1473_v60 = vmul.f32 %v1360_v8, %v1193_v15  ;;  %v1474_v51 = vmul.f32 %v1360_v8, %v1194_v33  ;;  %v1468_v15 = vmul.f32 %v1345_v59, %v1188_v46  ;;  %v1465_v8 = vmul.f32 %v6384_v44, %v1185_v10  ;;  %v1182_v33 = vld [vmem:[%s10005_s1 + $0x168] sm:$0xff]  ;;  %v1176_v46 = vld [vmem:[%s10005_s1 + $0x138] sm:$0xff]  ;;  %v1173_v10 = vld [vmem:[%s10005_s1 + $0x120] sm:$0xff] }
 0x206   :  { %1781 = vmatmul.f32.gmra.mxu1 %v6437_v4  ;;  %1871 = vmatmul.f32.gmra.mxu2 %v1614_v12  ;;  %v6497_v12 = vld [vmem:[%s10006_s5 + $0x108] sm:$0xff] }
 0x208   :  { %4750 = vmatmul.msk.f32.gmra.mxu3 %vm1617_vm7, %v1574_v16  ;;  %v1470_v16 = vmul.f32 %v1350_v39, %v1190_v11  ;;  %v6508_v39 = vld [vmem:[%s10006_s5 + $0x298] sm:$0xff]  ;;  %v1178_v11 = vld [vmem:[%s10005_s1 + $0x148] sm:$0xff] }
 0x20a   :  { %v6453_v31 = vpop.f32.mrf.mxu3 }
 0x20b   :  { %v1365_v23 = vpop.permute.xlu1 %1364 }
 0x20c   :  { %v1475_v25 = vmul.f32 %v1365_v23, %v1195_v13  ;;  %v1476_v3 = vmul.f32 %v1365_v23, %v1196_v22  ;;  %v1186_v13 = vld [vmem:[%s10005_s1 + $0x188] sm:$0xff]  ;;  %v1183_v22 = vld [vmem:[%s10005_s1 + $0x170] sm:$0xff]  ;;  %v1184_v23 = vld [vmem:[%s10005_s1 + $0x178] sm:$0xff] }
 0x20d   :  { %v1466_v59 = vmul.f32 %v6384_v44, %v1186_v13  ;;  %v1171_v13 = vld [vmem:[%s10005_s1 + $0x110] sm:$0xff] }
 0x20e   :  { %1784 = vmatmul.f32.gmra.mxu1 %v6461_v55  ;;  %1877 = vmatpush.msra.mxu2 %v1475_v25  ;;  %v1181_v25 = vld [vmem:[%s10005_s1 + $0x160] sm:$0xff] }
 0x20f   :  { %2288 = vmatpush.msrb.mxu0 %v1476_v3  ;;  %v1463_v3 = vmul.f32 %v6419_v52, %v1183_v22  ;;  %v1456_v22 = vmul.f32 %v6394_v48, %v1176_v46 }
 0x210   :  { %4751 = vmatmul.msk.f32.gmra.mxu3 %vm1617_vm7, %v1577_v37  ;;  %1878 = vmatpush.msra.mxu2 %v1473_v60  ;;  %v1464_v37 = vmul.f32 %v6419_v52, %v1184_v23  ;;  %v1461_v60 = vmul.f32 %v6417_v63, %v1181_v25  ;;  %v6542_v52 = vld [vmem:[%s10006_s5 + $0x120] sm:$0xff] }
 0x211   :  { %2289 = vmatpush.msrb.mxu0 %v1474_v51  ;;  %v1462_v51 = vmul.f32 %v6417_v63, %v1182_v33  ;;  %v6555_v63 = vld [vmem:[%s10006_s5 + $0x2b0] sm:$0xff] }
 0x212   :  { %1879 = vmatpush.msra.mxu2 %v1471_v56  ;;  %v6486_v41 = vpop.f32.mrf.mxu3  ;;  %v1459_v56 = vmul.f32 %v6365_v35, %v1179_v40  ;;  %v6599_v40 = vld [vmem:[%s10006_s5 + $0x2c8] sm:$0xff] }
 0x213   :  { %2290 = vmatpush.msrb.mxu0 %v1472_v0  ;;  %v1460_v0 = vmul.f32 %v6365_v35, %v1180_v21  ;;  %v1458_v35 = vmul.f32 %v6396_v24, %v1178_v11  ;;  %v6615_v21 = vld [vmem:[%s10006_s5 + $0x150] sm:$0xff] }
 0x214   :  { %1880 = vmatpush.msra.mxu2 %v1469_v2  ;;  %v1457_v2 = vmul.f32 %v6396_v24, %v1177_v45  ;;  %v1172_v24 = vld [vmem:[%s10005_s1 + $0x118] sm:$0xff]  ;;  %v6637_v45 = vld [vmem:[%s10006_s5 + $0x168] sm:$0xff]  ;;  %v6710_v11 = vld [vmem:[%s10006_s5 + $0x1b0] sm:$0xff] }
 0x215   :  { %2291 = vmatpush.msrb.mxu0 %v1470_v16  ;;  %v1455_v16 = vmul.f32 %v6394_v48, %v1175_v61  ;;  %v6589_v48 = vld [vmem:[%s10006_s5 + $0x138] sm:$0xff]  ;;  %v1452_v33 = vmul.f32 %v6350_v28, %v1172_v24  ;;  %v1513_v61 = vld [vmem:[%s10006_s5 + $0x80] sm:$0xff]  ;;  %v1607_v24 = vld [vmem:[%s10006_s5 + $0x370] sm:$0xff] }
 0x216   :  { %1787 = vmatmul.f32.gmra.mxu1 %v6497_v12  ;;  %1881 = vmatpush.msra.mxu2 %v1467_v50  ;;  %v1174_v50 = vld [vmem:[%s10005_s1 + $0x128] sm:$0xff] }
 0x217   :  { %2292 = vmatpush.msrb.mxu0 %v1468_v15  ;;  %v1453_v15 = vmul.f32 %v6375_v38, %v1173_v10  ;;  %v1454_v25 = vmul.f32 %v6375_v38, %v1174_v50  ;;  %v6729_v10 = vld [vmem:[%s10006_s5 + $0x1c8] sm:$0xff] }
 0x218   :  { %4752 = vmatmul.msk.f32.gmra.mxu3 %vm1617_vm7, %v6508_v39  ;;  %1882 = vmatpush.msra.mxu2 %v1465_v8  ;;  %v1169_v8 = vld [vmem:[%s10005_s1 + $0x100] sm:$0xff] }
 0x219   :  { %2293 = vmatpush.msrb.mxu0 %v1466_v59  ;;  %v1451_v59 = vmul.f32 %v6350_v28, %v1171_v13  ;;  %v1449_v38 = vmul.f32 %v6377_v43, %v1169_v8  ;;  %v1519_v8 = vld [vmem:[%s10006_s5 + $0xb0] sm:$0xff] }
 0x21a   :  { %1883 = vmatpush.msra.mxu2 %v1463_v3  ;;  %v6530_v44 = vpop.f32.mrf.mxu3  ;;  %v1170_v3 = vld [vmem:[%s10005_s1 + $0x108] sm:$0xff] }
 0x21b   :  { %2294 = vmatpush.msrb.mxu0 %v1464_v37  ;;  %v1498_v37 = vld [vmem:[%s10006_s5 + $0x8] sm:$0xff] }
 0x21c   :  { %1884 = vmatpush.msra.mxu2 %v1461_v60  ;;  %v1450_v60 = vmul.f32 %v6377_v43, %v1170_v3  ;;  %v6621_v43 = vld [vmem:[%s10006_s5 + $0x2e0] sm:$0xff]  ;;  %v6765_v3 = vld [vmem:[%s10006_s5 + $0x1f8] sm:$0xff] }
 0x21d   :  { %2295 = vmatpush.msrb.mxu0 %v1462_v51  ;;  %v6692_v51 = vld [vmem:[%s10006_s5 + $0x328] sm:$0xff] }
 0x21e   :  { %1790 = vmatmul.f32.gmra.mxu1 %v6542_v52  ;;  %1885 = vmatpush.msra.mxu2 %v1459_v56  ;;  %10170 = vst [vmem:[#allocation4_spill] sm:$0xff] %v6692_v51 }
 0x21f   :  { %2296 = vmatpush.msrb.mxu0 %v1460_v0 }
 0x220   :  { %4753 = vmatmul.msk.f32.gmra.mxu3 %vm1617_vm7, %v6555_v63  ;;  %1886 = vmatpush.msra.mxu2 %v1457_v2 }
 0x221   :  { %2297 = vmatpush.msrb.mxu0 %v1458_v35  ;;  %v1604_v35 = vld [vmem:[%s10006_s5 + $0x358] sm:$0xff] }
 0x222   :  { %1887 = vmatpush.msra.mxu2 %v1455_v16  ;;  %v1516_v16 = vld [vmem:[%s10006_s5 + $0x98] sm:$0xff] }
 0x223   :  { %v6583_v23 = vpop.f32.mrf.mxu3  ;;  %2298 = vmatpush.msrb.mxu0 %v1456_v22  ;;  %v6746_v22 = vld [vmem:[%s10006_s5 + $0x1e0] sm:$0xff] }
 0x224   :  { %1888 = vmatpush.msra.mxu2 %v1453_v15 }
 0x225   :  { %2299 = vmatpush.msrb.mxu0 %v1454_v25 }
 0x226   :  { %1793 = vmatmul.f32.gmra.mxu1 %v6589_v48  ;;  %1889 = vmatpush.msra.mxu2 %v1451_v59 }
 0x227   :  { %2300 = vmatpush.msrb.mxu0 %v1452_v33  ;;  %v1610_v33 = vld [vmem:[%s10006_s5 + $0x388] sm:$0xff] }
 0x228   :  { %4754 = vmatmul.msk.f32.gmra.mxu3 %vm1617_vm7, %v6599_v40  ;;  %1890 = vmatpush.msra.mxu2 %v1449_v38 }
 0x229   :  { %2301 = vmatpush.msrb.mxu0 %v1450_v60  ;;  %1891 = vmatmul.f32.vlgmr.msra.gmra.mxu2 %v1498_v37 }
 0x22a   :  { %2020 = vmatpush.msrb.mxu2 %v5979_v20  ;;  %2302 = vmatmul.f32.vlgmr.msrb.gmra.mxu0 %v1498_v37  ;;  %v1501_v20 = vld [vmem:[%s10006_s5 + $0x20] sm:$0xff]  ;;  %v1522_v37 = vld [vmem:[%s10006_s5 + $0xc8] sm:$0xff] }
 0x22b   :  { %v6610_v28 = vpop.f32.mrf.mxu3 }
 0x22c   :  { %2021 = vmatpush.msrb.mxu2 %v5994_v32 }
 0x22e   :  { %1796 = vmatmul.f32.gmra.mxu1 %v6615_v21  ;;  %2022 = vmatpush.msrb.mxu2 %v6001_v42  ;;  %v6643_v42 = vld [vmem:[%s10006_s5 + $0x2f8] sm:$0xff] }
 0x230   :  { %2023 = vmatpush.msrb.mxu2 %v6015_v27  ;;  %4755 = vmatmul.msk.f32.gmra.mxu3 %vm1617_vm7, %v6621_v43  ;;  %v1504_v27 = vld [vmem:[%s10006_s5 + $0x38] sm:$0xff] }
 0x231   :  { %1894 = vmatmul.f32.gmra.mxu2 %v1501_v20 }
 0x232   :  { %2024 = vmatpush.msrb.mxu2 %v6024_v36  ;;  %2305 = vmatmul.f32.gmra.mxu0 %v1501_v20 }
 0x233   :  { %v6632_v32 = vpop.f32.mrf.mxu3 }
 0x234   :  { %2025 = vmatpush.msrb.mxu2 %v6037_v1 }
 0x236   :  { %1799 = vmatmul.f32.gmra.mxu1 %v6637_v45  ;;  %2026 = vmatpush.msrb.mxu2 %v6041_v7  ;;  %v6662_v7 = vld [vmem:[%s10006_s5 + $0x180] sm:$0xff] }
 0x238   :  { %2027 = vmatpush.msrb.mxu2 %v6064_v62  ;;  %4756 = vmatmul.msk.f32.gmra.mxu3 %vm1617_vm7, %v6643_v42  ;;  %v6668_v62 = vld [vmem:[%s10006_s5 + $0x310] sm:$0xff] }
 0x239   :  { %1897 = vmatmul.f32.gmra.mxu2 %v1504_v27 }
 0x23a   :  { %4839 = vmatpush.msra.mxu2 %v6252_v54  ;;  %2308 = vmatmul.f32.gmra.mxu0 %v1504_v27  ;;  %v1507_v54 = vld [vmem:[%s10006_s5 + $0x50] sm:$0xff] }
 0x23b   :  { %v6654_v36 = vpop.f32.mrf.mxu1  ;;  %v6656_v1 = vpop.f32.mrf.mxu3  ;;  %v6784_v27 = vld [vmem:[%s10006_s5 + $0x210] sm:$0xff] }
 0x23c   :  { %10168 = vst [vmem:[#allocation2_spill] sm:$0xff] %v6654_v36  ;;  %4840 = vmatpush.msra.mxu2 %v6263_v6  ;;  %v6968_v36 = vld [vmem:[%s10006_s5 + $0x58] sm:$0xff] }
 0x23e   :  { %4841 = vmatpush.msra.mxu2 %v6271_v9  ;;  %1802 = vmatmul.f32.gmra.mxu1 %v6662_v7 }
 0x240   :  { %4842 = vmatpush.msra.mxu2 %v6278_v57  ;;  %4757 = vmatmul.msk.f32.gmra.mxu3 %vm1617_vm7, %v6668_v62  ;;  %v6686_v57 = vld [vmem:[%s10006_s5 + $0x198] sm:$0xff] }
 0x241   :  { %1900 = vmatmul.f32.gmra.mxu2 %v1507_v54 }
 0x242   :  { %4843 = vmatpush.msra.mxu2 %v6293_v58  ;;  %2311 = vmatmul.f32.gmra.mxu0 %v1507_v54  ;;  %v1510_v58 = vld [vmem:[%s10006_s5 + $0x68] sm:$0xff]  ;;  %v1613_v54 = vld [vmem:[%s10006_s5 + $0x3a0] sm:$0xff] }
 0x243   :  { %v6678_v6 = vpop.f32.mrf.mxu1  ;;  %v6680_v9 = vpop.f32.mrf.mxu3 }
 0x244   :  { %10169 = vst [vmem:[#allocation3_spill] sm:$0xff] %v6678_v6  ;;  %4844 = vmatpush.msra.mxu2 %v6304_v17  ;;  %v6701_v17 = vpop.f32.mrf.mxu2 }
 0x245   :  { %10171 = vst [vmem:[#allocation5_spill] sm:$0xff] %v6701_v17 }
 0x246   :  { %4845 = vmatpush.msra.mxu2 %v6312_v19  ;;  %1805 = vmatmul.f32.gmra.mxu1 %v6686_v57 }
 0x248   :  { %4846 = vmatpush.msra.mxu2 %v6316_v18  ;;  %4758 = vmatmul.msk.f32.gmra.mxu3 %vm1617_vm7, %v6692_v51  ;;  %v1601_v18 = vld [vmem:[%s10006_s5 + $0x340] sm:$0xff] }
 0x249   :  { %1903 = vmatmul.f32.gmra.mxu2 %v1510_v58 }
 0x24a   :  { %2314 = vmatmul.f32.gmra.mxu0 %v1510_v58  ;;  %v1525_v58 = vld [vmem:[%s10006_s5 + $0xe0] sm:$0xff] }
 0x24b   :  { %v6703_v19 = vpop.f32.mrf.mxu1  ;;  %v6705_v56 = vpop.f32.mrf.mxu3 }
 0x24c   :  { %10172 = vst [vmem:[#allocation6_spill] sm:$0xff] %v6703_v19  ;;  %v6720_v0 = vpop.f32.mrf.mxu2  ;;  %v1546_v19 = vld [vmem:[%s10006_s5 + $0x188] sm:$0xff] }
 0x24d   :  { %10173 = vst [vmem:[#allocation7_spill] sm:$0xff] %v6720_v0  ;;  %v6871_v0 = vld [vmem:[%s10006_s5 + $0x288] sm:$0xff] }
 0x24e   :  { %1808 = vmatmul.f32.gmra.mxu1 %v6710_v11 }
 0x250   :  { %4759 = vmatmul.msk.f32.gmra.mxu3 %vm1617_vm7, %v1601_v18 }
 0x251   :  { %1906 = vmatmul.f32.gmra.mxu2 %v1513_v61 }
 0x252   :  { %2317 = vmatmul.f32.gmra.mxu0 %v1513_v61 }
 0x253   :  { %v6722_v2 = vpop.f32.mrf.mxu1  ;;  %v6724_v46 = vpop.f32.mrf.mxu3 }
 0x254   :  { %10174 = vst [vmem:[#allocation8_spill] sm:$0xff] %v6722_v2  ;;  %v6748_v15 = vpop.f32.mrf.mxu2  ;;  %v6903_v2 = vld [vmem:[%s10006_s5 + $0x2b8] sm:$0xff] }
 0x255   :  { %10175 = vst [vmem:[#allocation9_spill] sm:$0xff] %v6724_v46 }
 0x256   :  { %1811 = vmatmul.f32.gmra.mxu1 %v6729_v10  ;;  %10178 = vst [vmem:[#allocation12_spill] sm:$0xff] %v6748_v15  ;;  %v1537_v15 = vld [vmem:[%s10006_s5 + $0x140] sm:$0xff] }
 0x258   :  { %4760 = vmatmul.msk.f32.gmra.mxu3 %vm1617_vm7, %v1604_v35 }
 0x259   :  { %1909 = vmatmul.f32.gmra.mxu2 %v1516_v16 }
 0x25a   :  { %2320 = vmatmul.f32.gmra.mxu0 %v1516_v16  ;;  %v6803_v16 = vld [vmem:[%s10006_s5 + $0x228] sm:$0xff] }
 0x25b   :  { %v6739_v50 = vpop.f32.mrf.mxu1  ;;  %v6741_v13 = vpop.f32.mrf.mxu3 }
 0x25c   :  { %10176 = vst [vmem:[#allocation10_spill] sm:$0xff] %v6739_v50  ;;  %v6771_v38 = vpop.f32.mrf.mxu2  ;;  %v1543_v50 = vld [vmem:[%s10006_s5 + $0x170] sm:$0xff] }
 0x25d   :  { %10177 = vst [vmem:[#allocation11_spill] sm:$0xff] %v6741_v13  ;;  %v5092_v13 = vld [vmem:[%s10006_s5 + $0x100] sm:$0xff] }
 0x25e   :  { %1814 = vmatmul.f32.gmra.mxu1 %v6746_v22  ;;  %10181 = vst [vmem:[#allocation15_spill] sm:$0xff] %v6771_v38  ;;  %v1531_v38 = vld [vmem:[%s10006_s5 + $0x110] sm:$0xff] }
 0x260   :  { %4761 = vmatmul.msk.f32.gmra.mxu3 %vm1617_vm7, %v1607_v24  ;;  %v6808_v24 = vld [vmem:[%s10006_s5 + $0x3b8] sm:$0xff] }
 0x261   :  { %1912 = vmatmul.f32.gmra.mxu2 %v1519_v8 }
 0x262   :  { %2323 = vmatmul.f32.gmra.mxu0 %v1519_v8  ;;  %v1528_v8 = vld [vmem:[%s10006_s5 + $0xf8] sm:$0xff] }
 0x263   :  { %v6758_v25 = vpop.f32.mrf.mxu1  ;;  %v6760_v59 = vpop.f32.mrf.mxu3 }
 0x264   :  { %10179 = vst [vmem:[#allocation13_spill] sm:$0xff] %v6758_v25  ;;  %v6794_v18 = vpop.f32.mrf.mxu2  ;;  %v6887_v25 = vld [vmem:[%s10006_s5 + $0x2a0] sm:$0xff] }
 0x265   :  { %10180 = vst [vmem:[#allocation14_spill] sm:$0xff] %v6760_v59 }
 0x266   :  { %1817 = vmatmul.f32.gmra.mxu1 %v6765_v3  ;;  %10184 = vst [vmem:[#allocation18_spill] sm:$0xff] %v6794_v18  ;;  %v6839_v18 = vld [vmem:[%s10006_s5 + $0x258] sm:$0xff] }
 0x268   :  { %4762 = vmatmul.msk.f32.gmra.mxu3 %vm1617_vm7, %v1610_v33 }
 0x269   :  { %1915 = vmatmul.f32.gmra.mxu2 %v1522_v37 }
 0x26a   :  { %2326 = vmatmul.f32.gmra.mxu0 %v1522_v37 }
 0x26b   :  { %v6777_v60 = vpop.f32.mrf.mxu1  ;;  %v6779_v20 = vpop.f32.mrf.mxu3 }
 0x26c   :  { %10182 = vst [vmem:[#allocation16_spill] sm:$0xff] %v6777_v60  ;;  %v6816_v33 = vpop.f32.mrf.mxu2  ;;  %v1534_v60 = vld [vmem:[%s10006_s5 + $0x128] sm:$0xff] }
 0x26d   :  { %10183 = vst [vmem:[#allocation17_spill] sm:$0xff] %v6779_v20  ;;  %v7053_v20 = vld [vmem:[%s10006_s5 + $0xd0] sm:$0xff] }
 0x26e   :  { %1820 = vmatmul.f32.gmra.mxu1 %v6784_v27  ;;  %10187 = vst [vmem:[#allocation21_spill] sm:$0xff] %v6816_v33 }
 0x270   :  { %4763 = vmatmul.msk.f32.gmra.mxu3 %vm1617_vm7, %v1613_v54 }
 0x271   :  { %1918 = vmatmul.f32.gmra.mxu2 %v1525_v58 }
 0x272   :  { %2329 = vmatmul.f32.gmra.mxu0 %v1525_v58  ;;  %v6825_v58 = vld [vmem:[%s10006_s5 + $0x240] sm:$0xff] }
 0x273   :  { %v6796_v61 = vpop.f32.mrf.mxu1  ;;  %v6798_v35 = vpop.f32.mrf.mxu3 }
 0x274   :  { %10185 = vst [vmem:[#allocation19_spill] sm:$0xff] %v6796_v61  ;;  %v6855_v61 = vld [vmem:[%s10006_s5 + $0x270] sm:$0xff] }
 0x275   :  { %10186 = vst [vmem:[#allocation20_spill] sm:$0xff] %v6798_v35 }
 0x276   :  { %1823 = vmatmul.f32.gmra.mxu1 %v6803_v16 }
 0x278   :  { %4764 = vmatmul.msk.f32.gmra.mxu3 %vm1617_vm7, %v6808_v24 }
 0x279   :  { %1921 = vmatmul.f32.gmra.mxu2 %v1528_v8 }
 0x27a   :  { %2332 = vmatmul.f32.gmra.mxu0 %v1528_v8 }
 0x27b   :  { %v6818_v37 = vpop.f32.mrf.mxu1  ;;  %v6820_v54 = vpop.f32.mrf.mxu3 }
 0x27c   :  { %10188 = vst [vmem:[#allocation22_spill] sm:$0xff] %v6818_v37  ;;  %v6841_v37 = vpop.f32.mrf.mxu2 }
 0x27d   :  { %10189 = vst [vmem:[#allocation23_spill] sm:$0xff] %v6820_v54  ;;  %v7036_v54 = vld [vmem:[%s10006_s5 + $0xb8] sm:$0xff] }
 0x27e   :  { %1826 = vmatmul.f32.gmra.mxu1 %v6825_v58  ;;  %10191 = vst [vmem:[#allocation25_spill] sm:$0xff] %v6841_v37 }
 0x280   :  { %2165 = vmatmul.f32.vlgmr.msrb.gmra.mxu3 %v6242_v5 }
 0x281   :  { %1924 = vmatmul.f32.gmra.mxu2 %v1531_v38 }
 0x282   :  { %2335 = vmatmul.f32.gmra.mxu0 %v1531_v38 }
 0x283   :  { %v6832_v8 = vpop.f32.mrf.mxu1  ;;  %v6834_v33 = vpop.f32.mrf.mxu3 }
 0x284   :  { %10190 = vst [vmem:[#allocation24_spill] sm:$0xff] %v6834_v33  ;;  %v6858_v37 = vpop.f32.mrf.mxu2  ;;  %v7019_v33 = vld [vmem:[%s10006_s5 + $0xa0] sm:$0xff] }
 0x285   :  { %10193 = vst [vmem:[#allocation27_spill] sm:$0xff] %v6858_v37  ;;  %v1540_v37 = vld [vmem:[%s10006_s5 + $0x158] sm:$0xff] }
 0x286   :  { %1829 = vmatmul.f32.gmra.mxu1 %v6839_v18 }
 0x288   :  { %2168 = vmatmul.f32.gmra.mxu3 %v6283_v53 }
 0x289   :  { %1927 = vmatmul.f32.gmra.mxu2 %v1534_v60 }
 0x28a   :  { %2338 = vmatmul.f32.gmra.mxu0 %v1534_v60 }
 0x28b   :  { %v6848_v5 = vpop.f32.mrf.mxu1  ;;  %v6850_v38 = vpop.f32.mrf.mxu3 }
 0x28c   :  { %10192 = vst [vmem:[#allocation26_spill] sm:$0xff] %v6850_v38  ;;  %v7002_v38 = vld [vmem:[%s10006_s5 + $0x88] sm:$0xff] }
 0x28e   :  { %1832 = vmatmul.f32.gmra.mxu1 %v6855_v61 }
 0x290   :  { %2171 = vmatmul.f32.gmra.mxu3 %v6321_v14  ;;  %v6878_v14 = vpop.f32.mrf.mxu2 }
 0x291   :  { %1930 = vmatmul.f32.gmra.mxu2 %v1537_v15  ;;  %10195 = vst [vmem:[#allocation29_spill] sm:$0xff] %v6878_v14 }
 0x292   :  { %2341 = vmatmul.f32.gmra.mxu0 %v1537_v15 }
 0x293   :  { %v6864_v53 = vpop.f32.mrf.mxu1  ;;  %v6866_v60 = vpop.f32.mrf.mxu3 }
 0x294   :  { %10194 = vst [vmem:[#allocation28_spill] sm:$0xff] %v6866_v60  ;;  %v6985_v60 = vld [vmem:[%s10006_s5 + $0x70] sm:$0xff] }
 0x296   :  { %1835 = vmatmul.f32.gmra.mxu1 %v6871_v0 }
 0x298   :  { %2174 = vmatmul.f32.gmra.mxu3 %v6335_v49  ;;  %v6894_v49 = vpop.f32.mrf.mxu2 }
 0x299   :  { %1933 = vmatmul.f32.gmra.mxu2 %v1540_v37  ;;  %10197 = vst [vmem:[#allocation31_spill] sm:$0xff] %v6894_v49  ;;  %v6917_v49 = vld [vmem:[%s10006_s5 + $0x10] sm:$0xff] }
 0x29a   :  { %2344 = vmatmul.f32.gmra.mxu0 %v1540_v37 }
 0x29b   :  { %v6880_v15 = vpop.f32.mrf.mxu1  ;;  %v6882_v17 = vpop.f32.mrf.mxu3 }
 0x29c   :  { %10196 = vst [vmem:[#allocation30_spill] sm:$0xff] %v6882_v17  ;;  %v6934_v17 = vld [vmem:[%s10006_s5 + $0x28] sm:$0xff] }
 0x29e   :  { %1838 = vmatmul.f32.gmra.mxu1 %v6887_v25 }
 0x2a0   :  { %2177 = vmatmul.f32.gmra.mxu3 %v6348_v26 }
 0x2a1   :  { %1936 = vmatmul.f32.gmra.mxu2 %v1543_v50 }
 0x2a2   :  { %2347 = vmatmul.f32.gmra.mxu0 %v1543_v50 }
 0x2a3   :  { %v6896_v37 = vpop.f32.mrf.mxu1  ;;  %v6898_v14 = vpop.f32.mrf.mxu3 }
 0x2a4   :  { %10198 = vst [vmem:[#allocation32_spill] sm:$0xff] %v6898_v14 }
 0x2a6   :  { %1841 = vmatmul.f32.gmra.mxu1 %v6903_v2 }
 0x2a8   :  { %2180 = vmatmul.f32.gmra.mxu3 %v6363_v34  ;;  %v1549_v34 = vld [vmem:[%s10006_s5 + $0x1a0] sm:$0xff] }
 0x2a9   :  { %1939 = vmatmul.f32.gmra.mxu2 %v1546_v19 }
 0x2aa   :  { %2350 = vmatmul.f32.gmra.mxu0 %v1546_v19 }
 0x2ab   :  { %v6910_v26 = vpop.f32.mrf.mxu1  ;;  %v6912_v50 = vpop.f32.mrf.mxu3 }
 0x2ac   :  { %10199 = vst [vmem:[#allocation33_spill] sm:$0xff] %v6912_v50  ;;  %v6919_v14 = vpop.f32.mrf.mxu2 }
 0x2ad   :  { %10200 = vst [vmem:[#allocation34_spill] sm:$0xff] %v6919_v14  ;;  %v6951_v14 = vld [vmem:[%s10006_s5 + $0x40] sm:$0xff] }
 0x2ae   :  { %4765 = vmatmul.msk.f32.vlgmr.msrb.gmra.mxu1 %vm1617_vm7, %v6917_v49 }
 0x2b0   :  { %2183 = vmatmul.f32.gmra.mxu3 %v6382_v29  ;;  %v1552_v29 = vld [vmem:[%s10006_s5 + $0x1b8] sm:$0xff] }
 0x2b1   :  { %1942 = vmatmul.f32.gmra.mxu2 %v1549_v34 }
 0x2b2   :  { %2353 = vmatmul.f32.gmra.mxu0 %v1549_v34 }
 0x2b3   :  { %v6927_v19 = vpop.f32.mrf.mxu1  ;;  %v6929_v50 = vpop.f32.mrf.mxu3 }
 0x2b4   :  { %10201 = vst [vmem:[#allocation35_spill] sm:$0xff] %v6929_v50  ;;  %v6936_v6 = vpop.f32.mrf.mxu2 }
 0x2b5   :  { %10202 = vst [vmem:[#allocation36_spill] sm:$0xff] %v6936_v6 }
 0x2b6   :  { %4766 = vmatmul.msk.f32.gmra.mxu1 %vm1617_vm7, %v6934_v17 }
 0x2b8   :  { %2186 = vmatmul.f32.gmra.mxu3 %v6401_v47  ;;  %v1555_v47 = vld [vmem:[%s10006_s5 + $0x1d0] sm:$0xff] }
 0x2b9   :  { %1945 = vmatmul.f32.gmra.mxu2 %v1552_v29 }
 0x2ba   :  { %2356 = vmatmul.f32.gmra.mxu0 %v1552_v29 }
 0x2bb   :  { %v6944_v34 = vpop.f32.mrf.mxu1  ;;  %v6946_v50 = vpop.f32.mrf.mxu3 }
 0x2bc   :  { %10203 = vst [vmem:[#allocation37_spill] sm:$0xff] %v6946_v50  ;;  %v6953_v6 = vpop.f32.mrf.mxu2 }
 0x2bd   :  { %10204 = vst [vmem:[#allocation38_spill] sm:$0xff] %v6953_v6 }
 0x2be   :  { %4767 = vmatmul.msk.f32.gmra.mxu1 %vm1617_vm7, %v6951_v14 }
 0x2c0   :  { %2189 = vmatmul.f32.gmra.mxu3 %v6424_v30  ;;  %v1558_v30 = vld [vmem:[%s10006_s5 + $0x1e8] sm:$0xff] }
 0x2c1   :  { %1948 = vmatmul.f32.gmra.mxu2 %v1555_v47 }
 0x2c2   :  { %2359 = vmatmul.f32.gmra.mxu0 %v1555_v47 }
 0x2c3   :  { %v6961_v29 = vpop.f32.mrf.mxu1  ;;  %v6963_v50 = vpop.f32.mrf.mxu3 }
 0x2c4   :  { %10205 = vst [vmem:[#allocation39_spill] sm:$0xff] %v6963_v50  ;;  %v6970_v6 = vpop.f32.mrf.mxu2 }
 0x2c5   :  { %10206 = vst [vmem:[#allocation40_spill] sm:$0xff] %v6970_v6 }
 0x2c6   :  { %4768 = vmatmul.msk.f32.gmra.mxu1 %vm1617_vm7, %v6968_v36 }
 0x2c8   :  { %2192 = vmatmul.f32.gmra.mxu3 %v6437_v4  ;;  %v1561_v4 = vld [vmem:[%s10006_s5 + $0x200] sm:$0xff] }
 0x2c9   :  { %1951 = vmatmul.f32.gmra.mxu2 %v1558_v30 }
 0x2ca   :  { %2362 = vmatmul.f32.gmra.mxu0 %v1558_v30 }
 0x2cb   :  { %v6978_v47 = vpop.f32.mrf.mxu1  ;;  %v6980_v50 = vpop.f32.mrf.mxu3 }
 0x2cc   :  { %10207 = vst [vmem:[#allocation41_spill] sm:$0xff] %v6978_v47  ;;  %v6987_v6 = vpop.f32.mrf.mxu2 }
 0x2cd   :  { %10208 = vst [vmem:[#allocation42_spill] sm:$0xff] %v6980_v50 }
 0x2ce   :  { %10209 = vst [vmem:[#allocation43_spill] sm:$0xff] %v6987_v6  ;;  %4769 = vmatmul.msk.f32.gmra.mxu1 %vm1617_vm7, %v6985_v60 }
 0x2d0   :  { %2195 = vmatmul.f32.gmra.mxu3 %v6461_v55  ;;  %v1564_v55 = vld [vmem:[%s10006_s5 + $0x218] sm:$0xff] }
 0x2d1   :  { %1954 = vmatmul.f32.gmra.mxu2 %v1561_v4 }
 0x2d2   :  { %2365 = vmatmul.f32.gmra.mxu0 %v1561_v4 }
 0x2d3   :  { %v6995_v30 = vpop.f32.mrf.mxu1  ;;  %v6997_v50 = vpop.f32.mrf.mxu3 }
 0x2d4   :  { %10210 = vst [vmem:[#allocation44_spill] sm:$0xff] %v6995_v30  ;;  %v7004_v6 = vpop.f32.mrf.mxu2 }
 0x2d5   :  { %10211 = vst [vmem:[#allocation45_spill] sm:$0xff] %v6997_v50 }
 0x2d6   :  { %10212 = vst [vmem:[#allocation46_spill] sm:$0xff] %v7004_v6  ;;  %4770 = vmatmul.msk.f32.gmra.mxu1 %vm1617_vm7, %v7002_v38 }
 0x2d8   :  { %2198 = vmatmul.f32.gmra.mxu3 %v6497_v12  ;;  %v1567_v12 = vld [vmem:[%s10006_s5 + $0x230] sm:$0xff] }
 0x2d9   :  { %1957 = vmatmul.f32.gmra.mxu2 %v1564_v55 }
 0x2da   :  { %2368 = vmatmul.f32.gmra.mxu0 %v1564_v55 }
 0x2db   :  { %v7012_v4 = vpop.f32.mrf.mxu1  ;;  %v7014_v50 = vpop.f32.mrf.mxu3 }
 0x2dc   :  { %10213 = vst [vmem:[#allocation47_spill] sm:$0xff] %v7012_v4  ;;  %v7021_v6 = vpop.f32.mrf.mxu2  ;;  %v1576_v4 = vld [vmem:[%s10006_s5 + $0x278] sm:$0xff] }
 0x2dd   :  { %10214 = vst [vmem:[#allocation48_spill] sm:$0xff] %v7014_v50 }
 0x2de   :  { %10215 = vst [vmem:[#allocation49_spill] sm:$0xff] %v7021_v6  ;;  %4771 = vmatmul.msk.f32.gmra.mxu1 %vm1617_vm7, %v7019_v33  ;;  %v2303_v6 = vpop.f32.mrf.mxu0 }
 0x2e0   :  { %2201 = vmatmul.f32.gmra.mxu3 %v6542_v52  ;;  %v1570_v52 = vld [vmem:[%s10006_s5 + $0x248] sm:$0xff] }
 0x2e1   :  { %1960 = vmatmul.f32.gmra.mxu2 %v1567_v12 }
 0x2e2   :  { %2371 = vmatmul.f32.gmra.mxu0 %v1567_v12 }
 0x2e3   :  { %v7029_v55 = vpop.f32.mrf.mxu1  ;;  %v7031_v50 = vpop.f32.mrf.mxu3 }
 0x2e4   :  { %10216 = vst [vmem:[#allocation50_spill] sm:$0xff] %v7029_v55  ;;  %v7038_v35 = vpop.f32.mrf.mxu2 }
 0x2e5   :  { %10217 = vst [vmem:[#allocation51_spill] sm:$0xff] %v7031_v50 }
 0x2e6   :  { %10218 = vst [vmem:[#allocation52_spill] sm:$0xff] %v7038_v35  ;;  %4772 = vmatmul.msk.f32.gmra.mxu1 %vm1617_vm7, %v7036_v54  ;;  %v2306_v35 = vpop.f32.mrf.mxu0 }
 0x2e8   :  { %2204 = vmatmul.f32.gmra.mxu3 %v6589_v48  ;;  %v1573_v48 = vld [vmem:[%s10006_s5 + $0x260] sm:$0xff] }
 0x2e9   :  { %1963 = vmatmul.f32.gmra.mxu2 %v1570_v52 }
 0x2ea   :  { %2374 = vmatmul.f32.gmra.mxu0 %v1570_v52 }
 0x2eb   :  { %v7046_v12 = vpop.f32.mrf.mxu1  ;;  %v7048_v50 = vpop.f32.mrf.mxu3 }
 0x2ec   :  { %10219 = vst [vmem:[#allocation53_spill] sm:$0xff] %v7046_v12  ;;  %v7055_v55 = vpop.f32.mrf.mxu2 }
 0x2ed   :  { %10220 = vst [vmem:[#allocation54_spill] sm:$0xff] %v7048_v50 }
 0x2ee   :  { %10221 = vst [vmem:[#allocation55_spill] sm:$0xff] %v7055_v55  ;;  %4773 = vmatmul.msk.f32.gmra.mxu1 %vm1617_vm7, %v7053_v20  ;;  %v2309_v12 = vpop.f32.mrf.mxu0  ;;  %v5091_v55 = vld [vmem:[%s10006_s5 + $0xe8] sm:$0xff] }
 0x2f0   :  { %2207 = vmatmul.f32.gmra.mxu3 %v6615_v21 }
 0x2f1   :  { %1966 = vmatmul.f32.gmra.mxu2 %v1573_v48 }
 0x2f2   :  { %2377 = vmatmul.f32.gmra.mxu0 %v1573_v48 }
 0x2f3   :  { %v7063_v52 = vpop.f32.mrf.mxu1  ;;  %v7065_v50 = vpop.f32.mrf.mxu3 }
 0x2f4   :  { %10222 = vst [vmem:[#allocation56_spill] sm:$0xff] %v7063_v52  ;;  %v7067_v59 = vpop.f32.mrf.mxu2 }
 0x2f5   :  { %10223 = vst [vmem:[#allocation57_spill] sm:$0xff] %v7065_v50 }
 0x2f6   :  { %4774 = vmatmul.msk.f32.gmra.mxu1 %vm1617_vm7, %v5091_v55  ;;  %v2312_v50 = vpop.f32.mrf.mxu0  ;;  %v1579_v55 = vld [vmem:[%s10006_s5 + $0x290] sm:$0xff] }
 0x2f8   :  { %2210 = vmatmul.f32.gmra.mxu3 %v6637_v45 }
 0x2f9   :  { %1969 = vmatmul.f32.gmra.mxu2 %v1576_v4 }
 0x2fa   :  { %2380 = vmatmul.f32.gmra.mxu0 %v1576_v4 }
 0x2fb   :  { %v7077_v21 = vpop.f32.mrf.mxu1  ;;  %v7079_v48 = vpop.f32.mrf.mxu3 }
 0x2fc   :  { %10224 = vst [vmem:[#allocation58_spill] sm:$0xff] %v7077_v21  ;;  %v7081_v52 = vpop.f32.mrf.mxu2 }
 0x2fd   :  { %10225 = vst [vmem:[#allocation59_spill] sm:$0xff] %v7079_v48 }
 0x2fe   :  { %4775 = vmatmul.msk.f32.gmra.mxu1 %vm1617_vm7, %v5092_v13  ;;  %v2315_v21 = vpop.f32.mrf.mxu0  ;;  %v5093_v13 = vld [vmem:[%s10006_s5 + $0x118] sm:$0xff] }
 0x300   :  { %2213 = vmatmul.f32.gmra.mxu3 %v6662_v7  ;;  %v1582_v7 = vld [vmem:[%s10006_s5 + $0x2a8] sm:$0xff] }
 0x301   :  { %1972 = vmatmul.f32.gmra.mxu2 %v1579_v55 }
 0x302   :  { %2383 = vmatmul.f32.gmra.mxu0 %v1579_v55 }
 0x303   :  { %v7091_v45 = vpop.f32.mrf.mxu1  ;;  %v2166_v4 = vpop.f32.mrf.mxu3 }
 0x304   :  { %10226 = vst [vmem:[#allocation60_spill] sm:$0xff] %v7091_v45  ;;  %v7093_v48 = vadd.f32 %v2303_v6, %v2166_v4  ;;  %v7095_v30 = vpop.f32.mrf.mxu2 }
 0x306   :  { %10227 = vst [vmem:[#allocation61_spill] sm:$0xff] %v7093_v48  ;;  %4776 = vmatmul.msk.f32.gmra.mxu1 %vm1617_vm7, %v5093_v13  ;;  %v2318_v48 = vpop.f32.mrf.mxu0  ;;  %v5094_v13 = vld [vmem:[%s10006_s5 + $0x130] sm:$0xff] }
 0x308   :  { %2216 = vmatmul.f32.gmra.mxu3 %v6686_v57  ;;  %v1585_v57 = vld [vmem:[%s10006_s5 + $0x2c0] sm:$0xff] }
 0x309   :  { %1975 = vmatmul.f32.gmra.mxu2 %v1582_v7 }
 0x30a   :  { %2386 = vmatmul.f32.gmra.mxu0 %v1582_v7 }
 0x30b   :  { %v7105_v55 = vpop.f32.mrf.mxu1  ;;  %v2169_v6 = vpop.f32.mrf.mxu3 }
 0x30c   :  { %10228 = vst [vmem:[#allocation62_spill] sm:$0xff] %v7105_v55  ;;  %v7107_v4 = vadd.f32 %v2306_v35, %v2169_v6  ;;  %v7109_v45 = vpop.f32.mrf.mxu2 }
 0x30e   :  { %10229 = vst [vmem:[#allocation63_spill] sm:$0xff] %v7107_v4  ;;  %4777 = vmatmul.msk.f32.gmra.mxu1 %vm1617_vm7, %v5094_v13  ;;  %v2321_v4 = vpop.f32.mrf.mxu0  ;;  %v5095_v13 = vld [vmem:[%s10006_s5 + $0x148] sm:$0xff] }
 0x310   :  { %2219 = vmatmul.f32.gmra.mxu3 %v6710_v11  ;;  %v1588_v11 = vld [vmem:[%s10006_s5 + $0x2d8] sm:$0xff] }
 0x311   :  { %1978 = vmatmul.f32.gmra.mxu2 %v1585_v57 }
 0x312   :  { %2389 = vmatmul.f32.gmra.mxu0 %v1585_v57 }
 0x313   :  { %v7119_v7 = vpop.f32.mrf.mxu1  ;;  %v2172_v35 = vpop.f32.mrf.mxu3 }
 0x314   :  { %10230 = vst [vmem:[#allocation64_spill] sm:$0xff] %v7119_v7  ;;  %v7121_v6 = vadd.f32 %v2309_v12, %v2172_v35  ;;  %v7123_v55 = vpop.f32.mrf.mxu2 }
 0x316   :  { %10231 = vst [vmem:[#allocation65_spill] sm:$0xff] %v7121_v6  ;;  %4778 = vmatmul.msk.f32.gmra.mxu1 %vm1617_vm7, %v5095_v13  ;;  %v2324_v6 = vpop.f32.mrf.mxu0  ;;  %v5096_v13 = vld [vmem:[%s10006_s5 + $0x160] sm:$0xff] }
 0x318   :  { %2222 = vmatmul.f32.gmra.mxu3 %v6729_v10  ;;  %v1591_v10 = vld [vmem:[%s10006_s5 + $0x2f0] sm:$0xff] }
 0x319   :  { %1981 = vmatmul.f32.gmra.mxu2 %v1588_v11 }
 0x31a   :  { %2392 = vmatmul.f32.gmra.mxu0 %v1588_v11 }
 0x31b   :  { %v7133_v57 = vpop.f32.mrf.mxu1  ;;  %v2175_v12 = vpop.f32.mrf.mxu3 }
 0x31c   :  { %10232 = vst [vmem:[#allocation66_spill] sm:$0xff] %v7133_v57  ;;  %v7135_v35 = vadd.f32 %v2312_v50, %v2175_v12  ;;  %v7137_v7 = vpop.f32.mrf.mxu2 }
 0x31e   :  { %10233 = vst [vmem:[#allocation67_spill] sm:$0xff] %v7135_v35  ;;  %4779 = vmatmul.msk.f32.gmra.mxu1 %vm1617_vm7, %v5096_v13  ;;  %v2327_v35 = vpop.f32.mrf.mxu0  ;;  %v5097_v13 = vld [vmem:[%s10006_s5 + $0x178] sm:$0xff] }
 0x320   :  { %2225 = vmatmul.f32.gmra.mxu3 %v6746_v22  ;;  %v1594_v22 = vld [vmem:[%s10006_s5 + $0x308] sm:$0xff] }
 0x321   :  { %1984 = vmatmul.f32.gmra.mxu2 %v1591_v10 }
 0x322   :  { %2395 = vmatmul.f32.gmra.mxu0 %v1591_v10 }
 0x323   :  { %v7147_v11 = vpop.f32.mrf.mxu1  ;;  %v2178_v50 = vpop.f32.mrf.mxu3 }
 0x324   :  { %10234 = vst [vmem:[#allocation68_spill] sm:$0xff] %v7147_v11  ;;  %v7149_v12 = vadd.f32 %v2315_v21, %v2178_v50  ;;  %v7151_v57 = vpop.f32.mrf.mxu2 }
 0x326   :  { %10235 = vst [vmem:[#allocation69_spill] sm:$0xff] %v7149_v12  ;;  %4780 = vmatmul.msk.f32.gmra.mxu1 %vm1617_vm7, %v5097_v13  ;;  %v7165_v12 = vpop.f32.mrf.mxu0  ;;  %v5098_v13 = vld [vmem:[%s10006_s5 + $0x190] sm:$0xff] }
 0x328   :  { %2228 = vmatmul.f32.gmra.mxu3 %v6765_v3  ;;  %v1597_v3 = vld [vmem:[%s10006_s5 + $0x320] sm:$0xff] }
 0x329   :  { %1987 = vmatmul.f32.gmra.mxu2 %v1594_v22 }
 0x32a   :  { %2398 = vmatmul.f32.gmra.mxu0 %v1594_v22 }
 0x32b   :  { %v2181_v10 = vpop.f32.mrf.mxu3  ;;  %v7161_v21 = vpop.f32.mrf.mxu1 }
 0x32c   :  { %10236 = vst [vmem:[#allocation70_spill] sm:$0xff] %v7161_v21  ;;  %v7163_v50 = vadd.f32 %v2318_v48, %v2181_v10  ;;  %v7167_v11 = vpop.f32.mrf.mxu2 }
 0x32e   :  { %10237 = vst [vmem:[#allocation71_spill] sm:$0xff] %v7163_v50  ;;  %4781 = vmatmul.msk.f32.gmra.mxu1 %vm1617_vm7, %v5098_v13  ;;  %v7181_v50 = vpop.f32.mrf.mxu0  ;;  %v5099_v13 = vld [vmem:[%s10006_s5 + $0x1a8] sm:$0xff] }
 0x330   :  { %2231 = vmatmul.f32.gmra.mxu3 %v6784_v27  ;;  %v1600_v27 = vld [vmem:[%s10006_s5 + $0x338] sm:$0xff] }
 0x331   :  { %1990 = vmatmul.f32.gmra.mxu2 %v1597_v3 }
 0x332   :  { %2401 = vmatmul.f32.gmra.mxu0 %v1597_v3 }
 0x333   :  { %v2184_v48 = vpop.f32.mrf.mxu3  ;;  %v7177_v22 = vpop.f32.mrf.mxu1 }
 0x334   :  { %10238 = vst [vmem:[#allocation72_spill] sm:$0xff] %v7177_v22  ;;  %v7179_v10 = vadd.f32 %v2321_v4, %v2184_v48  ;;  %v7183_v21 = vpop.f32.mrf.mxu2 }
 0x336   :  { %10239 = vst [vmem:[#allocation73_spill] sm:$0xff] %v7179_v10  ;;  %4782 = vmatmul.msk.f32.gmra.mxu1 %vm1617_vm7, %v5099_v13  ;;  %v7197_v10 = vpop.f32.mrf.mxu0  ;;  %v5100_v13 = vld [vmem:[%s10006_s5 + $0x1c0] sm:$0xff] }
 0x338   :  { %2234 = vmatmul.f32.gmra.mxu3 %v6803_v16  ;;  %v1603_v16 = vld [vmem:[%s10006_s5 + $0x350] sm:$0xff] }
 0x339   :  { %1993 = vmatmul.f32.gmra.mxu2 %v1600_v27 }
 0x33a   :  { %2404 = vmatmul.f32.gmra.mxu0 %v1600_v27 }
 0x33b   :  { %v2187_v4 = vpop.f32.mrf.mxu3  ;;  %v7193_v3 = vpop.f32.mrf.mxu1 }
 0x33c   :  { %10240 = vst [vmem:[#allocation74_spill] sm:$0xff] %v7193_v3  ;;  %v7195_v48 = vadd.f32 %v2324_v6, %v2187_v4  ;;  %v7199_v22 = vpop.f32.mrf.mxu2 }
 0x33d   :  { %10242 = vst [vmem:[#allocation76_spill] sm:$0xff] %v7199_v22 }
 0x33e   :  { %10241 = vst [vmem:[#allocation75_spill] sm:$0xff] %v7195_v48  ;;  %4783 = vmatmul.msk.f32.gmra.mxu1 %vm1617_vm7, %v5100_v13  ;;  %v7213_v48 = vpop.f32.mrf.mxu0  ;;  %v5101_v13 = vld [vmem:[%s10006_s5 + $0x1d8] sm:$0xff] }
 0x340   :  { %2237 = vmatmul.f32.gmra.mxu3 %v6825_v58  ;;  %v1606_v58 = vld [vmem:[%s10006_s5 + $0x368] sm:$0xff] }
 0x341   :  { %1996 = vmatmul.f32.gmra.mxu2 %v1603_v16 }
 0x342   :  { %2407 = vmatmul.f32.gmra.mxu0 %v1603_v16 }
 0x343   :  { %v2190_v6 = vpop.f32.mrf.mxu3  ;;  %v7209_v27 = vpop.f32.mrf.mxu1 }
 0x344   :  { %10243 = vst [vmem:[#allocation77_spill] sm:$0xff] %v7209_v27  ;;  %v7211_v4 = vadd.f32 %v2327_v35, %v2190_v6  ;;  %v7215_v3 = vpop.f32.mrf.mxu2  ;;  %v5102_v27 = vld [vmem:[%s10006_s5 + $0x1f0] sm:$0xff] }
 0x345   :  { %10245 = vst [vmem:[#allocation79_spill] sm:$0xff] %v7215_v3  ;;  %v5103_v3 = vld [vmem:[%s10006_s5 + $0x208] sm:$0xff] }
 0x346   :  { %10244 = vst [vmem:[#allocation78_spill] sm:$0xff] %v7211_v4  ;;  %4784 = vmatmul.msk.f32.gmra.mxu1 %vm1617_vm7, %v5101_v13  ;;  %v7227_v6 = vpop.f32.mrf.mxu0  ;;  %v1609_v13 = vld [vmem:[%s10006_s5 + $0x380] sm:$0xff] }
 0x348   :  { %2240 = vmatmul.f32.gmra.mxu3 %v6839_v18 }
 0x349   :  { %1999 = vmatmul.f32.gmra.mxu2 %v1606_v58 }
 0x34a   :  { %2410 = vmatmul.f32.gmra.mxu0 %v1606_v58 }
 0x34b   :  { %v2193_v35 = vpop.f32.mrf.mxu3  ;;  %v7225_v16 = vpop.f32.mrf.mxu1 }
 0x34c   :  { %10246 = vst [vmem:[#allocation80_spill] sm:$0xff] %v7225_v16  ;;  %v7229_v4 = vpop.f32.mrf.mxu2 }
 0x34d   :  { %10247 = vst [vmem:[#allocation81_spill] sm:$0xff] %v7229_v4 }
 0x34e   :  { %4785 = vmatmul.msk.f32.gmra.mxu1 %vm1617_vm7, %v5102_v27  ;;  %v7241_v16 = vpop.f32.mrf.mxu0  ;;  %v1612_v27 = vld [vmem:[%s10006_s5 + $0x398] sm:$0xff] }
 0x350   :  { %2243 = vmatmul.f32.gmra.mxu3 %v6855_v61 }
 0x351   :  { %2002 = vmatmul.f32.gmra.mxu2 %v1609_v13 }
 0x352   :  { %2413 = vmatmul.f32.gmra.mxu0 %v1609_v13 }
 0x353   :  { %v2196_v18 = vpop.f32.mrf.mxu3  ;;  %v7239_v58 = vpop.f32.mrf.mxu1 }
 0x354   :  { %10248 = vst [vmem:[#allocation82_spill] sm:$0xff] %v7239_v58  ;;  %v7243_v4 = vpop.f32.mrf.mxu2 }
 0x355   :  { %10249 = vst [vmem:[#allocation83_spill] sm:$0xff] %v7243_v4 }
 0x356   :  { %4786 = vmatmul.msk.f32.gmra.mxu1 %vm1617_vm7, %v5103_v3  ;;  %v7257_v58 = vpop.f32.mrf.mxu0  ;;  %v5104_v3 = vld [vmem:[%s10006_s5 + $0x220] sm:$0xff] }
 0x358   :  { %2246 = vmatmul.f32.gmra.mxu3 %v6871_v0  ;;  %v1615_v0 = vld [vmem:[%s10006_s5 + $0x3b0] sm:$0xff] }
 0x359   :  { %2005 = vmatmul.f32.gmra.mxu2 %v1612_v27 }
 0x35a   :  { %2416 = vmatmul.f32.gmra.mxu0 %v1612_v27 }
 0x35b   :  { %v7253_v61 = vpop.f32.mrf.mxu3  ;;  %v7255_v13 = vpop.f32.mrf.mxu1 }
 0x35c   :  { %10250 = vst [vmem:[#allocation84_spill] sm:$0xff] %v7255_v13  ;;  %v7259_v4 = vpop.f32.mrf.mxu2 }
 0x35d   :  { %10251 = vst [vmem:[#allocation85_spill] sm:$0xff] %v7259_v4 }
 0x35e   :  { %4787 = vmatmul.msk.f32.gmra.mxu1 %vm1617_vm7, %v5104_v3  ;;  %v7273_v46 = vpop.f32.mrf.mxu0  ;;  %v5105_v3 = vld [vmem:[%s10006_s5 + $0x238] sm:$0xff] }
 0x360   :  { %2249 = vmatmul.f32.gmra.mxu3 %v6887_v25 }
 0x361   :  { %2008 = vmatmul.f32.gmra.mxu2 %v1615_v0 }
 0x362   :  { %2419 = vmatmul.f32.gmra.mxu0 %v1615_v0 }
 0x363   :  { %v7269_v27 = vpop.f32.mrf.mxu3  ;;  %v7271_v13 = vpop.f32.mrf.mxu1 }
 0x364   :  { %10252 = vst [vmem:[#allocation86_spill] sm:$0xff] %v7271_v13  ;;  %v7275_v4 = vpop.f32.mrf.mxu2 }
 0x365   :  { %10253 = vst [vmem:[#allocation87_spill] sm:$0xff] %v7275_v4  ;;  %v5106_v4 = vld [vmem:[%s10006_s5 + $0x250] sm:$0xff] }
 0x366   :  { %4788 = vmatmul.msk.f32.gmra.mxu1 %vm1617_vm7, %v5105_v3  ;;  %v7288_v13 = vpop.f32.mrf.mxu0  ;;  %v2331_v3 = vadd.f32 %v7165_v12, %v2193_v35 }
 0x368   :  { %2252 = vmatmul.f32.gmra.mxu3 %v6903_v2  ;;  %v1920_v2 = vadd.f32 %v7067_v59, %v6832_v8  ;;  %v5108_v8 = vld [vmem:[%s10006_s5 + $0x268] sm:$0xff] }
 0x369   :  { %4725 = vmatmul.msk.f32.vlgmr.msrb.gmra.mxu2 %vm1617_vm7, %v6917_v49  ;;  %v5107_v49 = vld [vmem:[%s10006_s5 + $0x2d0] sm:$0xff] }
 0x36b   :  { %v7284_v25 = vpop.f32.mrf.mxu3  ;;  %v7286_v0 = vpop.f32.mrf.mxu1 }
 0x36c   :  { %10254 = vst [vmem:[#allocation88_spill] sm:$0xff] %v7286_v0  ;;  %v7290_v22 = vpop.f32.mrf.mxu2  ;;  %v7305_v0 = vadd.f32 %v6453_v31, %v1920_v2  ;;  %v2334_v2 = vadd.f32 %v7181_v50, %v2196_v18 }
 0x36d   :  { %10255 = vst [vmem:[#allocation89_spill] sm:$0xff] %v7290_v22 }
 0x36e   :  { %4789 = vmatmul.msk.f32.gmra.mxu1 %vm1617_vm7, %v5106_v4  ;;  %v7311_v51 = vpop.f32.mrf.mxu0  ;;  %v2779_v35 = vmul.f32 %v7305_v0, %v7305_v0 }
 0x370   :  { %2255 = vmatmul.f32.gmra.mxu3 %v5107_v49 }
 0x371   :  { %4726 = vmatmul.msk.f32.gmra.mxu2 %vm1617_vm7, %v6934_v17 }
 0x373   :  { %v7307_v22 = vpop.f32.mrf.mxu3  ;;  %v2467_v47 = vpop.f32.mrf.mxu1 }
 0x374   :  { %v7309_v4 = vadd.f32 %v2467_v47, %v2331_v3  ;;  %v7313_v59 = vpop.f32.mrf.mxu2  ;;  %v1923_v47 = vadd.f32 %v7081_v52, %v6848_v5  ;;  %v5109_v3 = vld [vmem:[%s10006_s5 + $0x2e8] sm:$0xff] }
 0x376   :  { %10256 = vst [vmem:[#allocation90_spill] sm:$0xff] %v7309_v4  ;;  %4790 = vmatmul.msk.f32.gmra.mxu1 %vm1617_vm7, %v5108_v8  ;;  %v2597_v31 = vsel %vm2560_vm6, %v7309_v4, 0.0  ;;  %v2780_v17 = vmul.f32 %v7309_v4, %v7309_v4  ;;  %v7336_v5 = vadd.f32 %v6486_v41, %v1923_v47  ;;  %v7342_v18 = vpop.f32.mrf.mxu0  ;;  %v1926_v47 = vadd.f32 %v7095_v30, %v6864_v53 }
 0x377   :  { %v2598_v12 = vadd.f32 %v2597_v31, %v7305_v0 }
 0x378   :  { %2258 = vmatmul.f32.gmra.mxu3 %v5109_v3  ;;  %v2877_v49 = vsel %vm2560_vm6, %v2780_v17, 0.0  ;;  %v5110_v17 = vld [vmem:[%s10006_s5 + $0x280] sm:$0xff]  ;;  %v7368_v53 = vadd.f32 %v6530_v44, %v1926_v47  ;;  %v2340_v47 = vadd.f32 %v7213_v48, %v7269_v27 }
 0x379   :  { %2599 = vadd.xlane.f32.xlu0 %v2598_v12  ;;  %v2878_v8 = vadd.f32 %v2877_v49, %v2779_v35  ;;  %4727 = vmatmul.msk.f32.gmra.mxu2 %vm1617_vm7, %v6951_v14  ;;  %v2781_v12 = vmul.f32 %v7336_v5, %v7336_v5  ;;  %v2337_v35 = vadd.f32 %v7197_v10, %v7253_v61 }
 0x37b   :  { %v7338_v52 = vpop.f32.mrf.mxu3  ;;  %v2470_v31 = vpop.f32.mrf.mxu1  ;;  %2879 = vadd.xlane.f32.xlu1 %v2878_v8 }
 0x37c   :  { %v7340_v50 = vadd.f32 %v2470_v31, %v2334_v2  ;;  %v7344_v4 = vpop.f32.mrf.mxu2  ;;  %v5111_v2 = vld [vmem:[%s10006_s5 + $0x300] sm:$0xff] }
 0x37e   :  { %4791 = vmatmul.msk.f32.gmra.mxu1 %vm1617_vm7, %v5110_v17  ;;  %v2782_v41 = vmul.f32 %v7340_v50, %v7340_v50  ;;  %v2601_v14 = vsel %vm2560_vm6, %v7340_v50, 0.0  ;;  %v7382_v44 = vpop.f32.mrf.mxu0 }
 0x37f   :  { %v2602_v8 = vadd.f32 %v2601_v14, %v7336_v5  ;;  %v2783_v14 = vmul.f32 %v7368_v53, %v7368_v53 }
 0x380   :  { %2261 = vmatmul.f32.gmra.mxu3 %v5111_v2  ;;  %v2881_v3 = vsel %vm2560_vm6, %v2782_v41, 0.0  ;;  %v1929_v41 = vadd.f32 %v7109_v45, %v6880_v15 }
 0x381   :  { %v2882_v49 = vadd.f32 %v2881_v3, %v2781_v12  ;;  %4728 = vmatmul.msk.f32.gmra.mxu2 %vm1617_vm7, %v6968_v36 }
 0x382   :  { %v7398_v15 = vadd.f32 %v6583_v23, %v1929_v41  ;;  %v1932_v23 = vadd.f32 %v7123_v55, %v6896_v37 }
 0x383   :  { %v7370_v30 = vpop.f32.mrf.mxu3  ;;  %v2473_v31 = vpop.f32.mrf.mxu1  ;;  %2883 = vadd.xlane.f32.xlu2 %v2882_v49  ;;  %2603 = vadd.xlane.f32.xlu1 %v2602_v8 }
 0x384   :  { %v7372_v10 = vadd.f32 %v2473_v31, %v2337_v35  ;;  %v7374_v61 = vpop.f32.mrf.mxu2  ;;  %10257 = vst [vmem:[#allocation91_spill] sm:$0xff] %v7398_v15  ;;  %v2785_v8 = vmul.f32 %v7398_v15, %v7398_v15  ;;  %v2343_v31 = vadd.f32 %v7227_v6, %v7284_v25  ;;  %v7428_v37 = vadd.f32 %v6610_v28, %v1932_v23 }
 0x385   :  { %v1935_v28 = vadd.f32 %v7137_v7, %v6910_v26 }
 0x386   :  { %4792 = vmatmul.msk.f32.gmra.mxu1 %vm1617_vm7, %v6508_v39  ;;  %v2605_v17 = vsel %vm2560_vm6, %v7372_v10, 0.0  ;;  %v2784_v36 = vmul.f32 %v7372_v10, %v7372_v10  ;;  %v5112_v39 = vld [vmem:[%s10006_s5 + $0x318] sm:$0xff]  ;;  %10259 = vst [vmem:[#allocation93_spill] sm:$0xff] %v7428_v37 }
 0x387   :  { %v2606_v35 = vadd.f32 %v2605_v17, %v7368_v53  ;;  %v5113_v17 = vld [vmem:[%s10006_s5 + $0x330] sm:$0xff]  ;;  %v7458_v7 = vadd.f32 %v6632_v32, %v1935_v28  ;;  %v1938_v32 = vadd.f32 %v7151_v57, %v6927_v19 }
 0x388   :  { %2264 = vmatmul.f32.gmra.mxu3 %v5112_v39  ;;  %v2885_v12 = vsel %vm2560_vm6, %v2784_v36, 0.0  ;;  %v7422_v36 = vpop.f32.mrf.mxu0 }
 0x389   :  { %v2886_v2 = vadd.f32 %v2885_v12, %v2783_v14  ;;  %4729 = vmatmul.msk.f32.gmra.mxu2 %vm1617_vm7, %v6985_v60  ;;  %v2787_v12 = vmul.f32 %v7428_v37, %v7428_v37  ;;  %10261 = vst [vmem:[#allocation95_spill] sm:$0xff] %v7458_v7  ;;  %v7486_v19 = vadd.f32 %v6656_v1, %v1938_v32 }
 0x38b   :  { %v7400_v45 = vpop.f32.mrf.mxu3  ;;  %v2476_v3 = vpop.f32.mrf.mxu1  ;;  %2607 = vadd.xlane.f32.xlu2 %v2606_v35  ;;  %2887 = vadd.xlane.f32.xlu0 %v2886_v2  ;;  %v2346_v35 = vadd.f32 %v7241_v16, %v7307_v22  ;;  %v5114_v2 = vld [vmem:[%s10006_s5 + $0x348] sm:$0xff]  ;;  %10263 = vst [vmem:[#allocation97_spill] sm:$0xff] %v7486_v19  ;;  %v2791_v28 = vmul.f32 %v7486_v19, %v7486_v19 }
 0x38c   :  { %v7402_v48 = vadd.f32 %v2476_v3, %v2340_v47  ;;  %v7404_v27 = vpop.f32.mrf.mxu2 }
 0x38e   :  { %10258 = vst [vmem:[#allocation92_spill] sm:$0xff] %v7402_v48  ;;  %4793 = vmatmul.msk.f32.gmra.mxu1 %vm1617_vm7, %v6555_v63  ;;  %v2786_v49 = vmul.f32 %v7402_v48, %v7402_v48  ;;  %v2609_v60 = vsel %vm2560_vm6, %v7402_v48, 0.0 }
 0x38f   :  { %v2610_v14 = vadd.f32 %v2609_v60, %v7398_v15 }
 0x390   :  { %2267 = vmatmul.f32.gmra.mxu3 %v5113_v17  ;;  %v2889_v63 = vsel %vm2560_vm6, %v2786_v49, 0.0  ;;  %v7455_v26 = vpop.f32.mrf.mxu0  ;;  %v2349_v17 = vadd.f32 %v7257_v58, %v7338_v52 }
 0x391   :  { %v2890_v41 = vadd.f32 %v2889_v63, %v2785_v8  ;;  %4730 = vmatmul.msk.f32.gmra.mxu2 %vm1617_vm7, %v7002_v38  ;;  %v5115_v63 = vld [vmem:[%s10006_s5 + $0x360] sm:$0xff] }
 0x393   :  { %v7430_v55 = vpop.f32.mrf.mxu3  ;;  %v2479_v6 = vpop.f32.mrf.mxu1  ;;  %2891 = vadd.xlane.f32.xlu1 %v2890_v41  ;;  %2611 = vadd.xlane.f32.xlu0 %v2610_v14 }
 0x394   :  { %v7432_v25 = vadd.f32 %v2479_v6, %v2343_v31  ;;  %v7434_v47 = vpop.f32.mrf.mxu2  ;;  %v2789_v31 = vmul.f32 %v7458_v7, %v7458_v7 }
 0x396   :  { %10260 = vst [vmem:[#allocation94_spill] sm:$0xff] %v7432_v25  ;;  %4794 = vmatmul.msk.f32.gmra.mxu1 %vm1617_vm7, %v6599_v40  ;;  %v2788_v39 = vmul.f32 %v7432_v25, %v7432_v25  ;;  %v2613_v38 = vsel %vm2560_vm6, %v7432_v25, 0.0 }
 0x397   :  { %v2614_v49 = vadd.f32 %v2613_v38, %v7428_v37  ;;  %v1941_v38 = vadd.f32 %v7167_v11, %v6944_v34 }
 0x398   :  { %2270 = vmatmul.f32.gmra.mxu3 %v5114_v2  ;;  %v2893_v40 = vsel %vm2560_vm6, %v2788_v39, 0.0  ;;  %v7492_v52 = vpop.f32.mrf.mxu0 }
 0x399   :  { %v2894_v3 = vadd.f32 %v2893_v40, %v2787_v12  ;;  %4731 = vmatmul.msk.f32.gmra.mxu2 %vm1617_vm7, %v7019_v33  ;;  %v2352_v12 = vadd.f32 %v7273_v46, %v7370_v30  ;;  %v7516_v34 = vadd.f32 %v6680_v9, %v1941_v38  ;;  %v5118_v38 = vld [vmem:[%s10006_s5 + $0x3a8] sm:$0xff] }
 0x39b   :  { %v7460_v60 = vpop.f32.mrf.mxu3  ;;  %v2482_v22 = vpop.f32.mrf.mxu1  ;;  %2895 = vadd.xlane.f32.xlu2 %v2894_v3  ;;  %2615 = vadd.xlane.f32.xlu1 %v2614_v49  ;;  %10265 = vst [vmem:[#allocation99_spill] sm:$0xff] %v7516_v34 }
 0x39c   :  { %v7462_v16 = vadd.f32 %v2482_v22, %v2346_v35  ;;  %v7464_v23 = vpop.f32.mrf.mxu2  ;;  %v5116_v35 = vld [vmem:[%s10006_s5 + $0x378] sm:$0xff]  ;;  %v1944_v22 = vadd.f32 %v7183_v21, %v6961_v29 }
 0x39e   :  { %10262 = vst [vmem:[#allocation96_spill] sm:$0xff] %v7462_v16  ;;  %4795 = vmatmul.msk.f32.gmra.mxu1 %vm1617_vm7, %v6621_v43  ;;  %v2617_v33 = vsel %vm2560_vm6, %v7462_v16, 0.0  ;;  %v2790_v8 = vmul.f32 %v7462_v16, %v7462_v16  ;;  %v7546_v29 = vadd.f32 %v6705_v56, %v1944_v22  ;;  %v10271_v56 = vld [vmem:[#allocation41_spill] sm:$0xff] }
 0x39f   :  { %v2618_v41 = vadd.f32 %v2617_v33, %v7458_v7  ;;  %v2793_v33 = vmul.f32 %v7516_v34, %v7516_v34 }
 0x3a0   :  { %2273 = vmatmul.f32.gmra.mxu3 %v5115_v63  ;;  %v2897_v43 = vsel %vm2560_vm6, %v2790_v8, 0.0  ;;  %v7530_v9 = vpop.f32.mrf.mxu0  ;;  %v2355_v8 = vadd.f32 %v7288_v13, %v7400_v45  ;;  %10267 = vst [vmem:[#allocation101_spill] sm:$0xff] %v7546_v29 }
 0x3a1   :  { %v2898_v14 = vadd.f32 %v2897_v43, %v2789_v31  ;;  %4732 = vmatmul.msk.f32.gmra.mxu2 %vm1617_vm7, %v7036_v54  ;;  %v10270_v43 = vld [vmem:[#allocation4_spill] sm:$0xff] }
 0x3a3   :  { %v7488_v57 = vpop.f32.mrf.mxu3  ;;  %v2485_v6 = vpop.f32.mrf.mxu1  ;;  %2619 = vadd.xlane.f32.xlu2 %v2618_v41  ;;  %2899 = vadd.xlane.f32.xlu0 %v2898_v14  ;;  %v10272_v14 = vld [vmem:[#allocation76_spill] sm:$0xff] }
 0x3a4   :  { %v7490_v58 = vadd.f32 %v2485_v6, %v2349_v17  ;;  %v7494_v39 = vpop.f32.mrf.mxu2  ;;  %v1947_v6 = vadd.f32 %v10272_v14, %v10271_v56  ;;  %v10279_v56 = vld [vmem:[#allocation11_spill] sm:$0xff] }
 0x3a6   :  { %10264 = vst [vmem:[#allocation98_spill] sm:$0xff] %v7490_v58  ;;  %4796 = vmatmul.msk.f32.gmra.mxu1 %vm1617_vm7, %v6643_v42  ;;  %v2792_v54 = vmul.f32 %v7490_v58, %v7490_v58  ;;  %v2621_v1 = vsel %vm2560_vm6, %v7490_v58, 0.0 }
 0x3a7   :  { %v2622_v40 = vadd.f32 %v2621_v1, %v7486_v19  ;;  %v2358_v1 = vadd.f32 %v7311_v51, %v7430_v55 }
 0x3a8   :  { %2276 = vmatmul.f32.gmra.mxu3 %v5116_v35  ;;  %v2901_v42 = vsel %vm2560_vm6, %v2792_v54, 0.0  ;;  %v2795_v54 = vmul.f32 %v7546_v29, %v7546_v29 }
 0x3a9   :  { %v2902_v2 = vadd.f32 %v2901_v42, %v2791_v28  ;;  %4733 = vmatmul.msk.f32.gmra.mxu2 %vm1617_vm7, %v7053_v20 }
 0x3ab   :  { %v7518_v11 = vpop.f32.mrf.mxu3  ;;  %v2488_v3 = vpop.f32.mrf.mxu1  ;;  %2903 = vadd.xlane.f32.xlu1 %v2902_v2  ;;  %2623 = vadd.xlane.f32.xlu0 %v2622_v40  ;;  %v10273_v2 = vld [vmem:[#allocation9_spill] sm:$0xff] }
 0x3ac   :  { %v7520_v46 = vadd.f32 %v2488_v3, %v2352_v12  ;;  %v7522_v30 = vpop.f32.mrf.mxu2  ;;  %v7570_v12 = vpop.f32.mrf.mxu0  ;;  %v7574_v40 = vadd.f32 %v10273_v2, %v1947_v6 }
 0x3ae   :  { %10266 = vst [vmem:[#allocation100_spill] sm:$0xff] %v7520_v46  ;;  %4797 = vmatmul.msk.f32.gmra.mxu1 %vm1617_vm7, %v6668_v62  ;;  %v2794_v49 = vmul.f32 %v7520_v46, %v7520_v46  ;;  %v2625_v20 = vsel %vm2560_vm6, %v7520_v46, 0.0  ;;  %v5117_v62 = vld [vmem:[%s10006_s5 + $0x390] sm:$0xff] }
 0x3af   :  { %v2626_v17 = vadd.f32 %v2625_v20, %v7516_v34  ;;  %10274 = vst [vmem:[#allocation4_spill] sm:$0xff] %v7574_v40  ;;  %v5119_v20 = vld [vmem:[%s10006_s5 + $0x340] sm:$0xff] }
 0x3b0   :  { %2279 = vmatmul.f32.gmra.mxu3 %v5117_v62  ;;  %v2905_v32 = vsel %vm2560_vm6, %v2794_v49, 0.0  ;;  %v10278_v62 = vld [vmem:[#allocation79_spill] sm:$0xff] }
 0x3b1   :  { %v2906_v31 = vadd.f32 %v2905_v32, %v2793_v33  ;;  %4804 = vmatmul.msk.f32.vlgmr.msra.gmra.mxu2 %vm1617_vm7, %v6808_v24 }
 0x3b3   :  { %v7548_v21 = vpop.f32.mrf.mxu3  ;;  %v2491_v63 = vpop.f32.mrf.mxu1  ;;  %2907 = vadd.xlane.f32.xlu2 %v2906_v31  ;;  %2627 = vadd.xlane.f32.xlu1 %v2626_v17  ;;  %v2797_v31 = vmul.f32 %v7574_v40, %v7574_v40  ;;  %v2361_v17 = vadd.f32 %v7342_v18, %v7460_v60  ;;  %v5120_v18 = vld [vmem:[%s10006_s5 + $0x358] sm:$0xff] }
 0x3b4   :  { %v7550_v13 = vadd.f32 %v2491_v63, %v2355_v8  ;;  %v7552_v45 = vpop.f32.mrf.mxu2  ;;  %v10277_v8 = vld [vmem:[#allocation44_spill] sm:$0xff] }
 0x3b5   :  { %10269 = vst [vmem:[#allocation103_spill] sm:$0xff] %v7552_v45  ;;  %v1950_v32 = vadd.f32 %v10278_v62, %v10277_v8  ;;  %v10285_v62 = vld [vmem:[#allocation14_spill] sm:$0xff] }
 0x3b6   :  { %10268 = vst [vmem:[#allocation102_spill] sm:$0xff] %v7550_v13  ;;  %4798 = vmatmul.msk.f32.gmra.mxu1 %vm1617_vm7, %v10270_v43  ;;  %v2629_v41 = vsel %vm2560_vm6, %v7550_v13, 0.0  ;;  %v2796_v24 = vmul.f32 %v7550_v13, %v7550_v13  ;;  %v10328_v13 = vld [vmem:[#allocation64_spill] sm:$0xff] }
 0x3b7   :  { %v2630_v35 = vadd.f32 %v2629_v41, %v7546_v29  ;;  %v7601_v14 = vadd.f32 %v10279_v56, %v1950_v32  ;;  %v10288_v56 = vld [vmem:[#allocation50_spill] sm:$0xff] }
 0x3b8   :  { %2282 = vmatmul.f32.gmra.mxu3 %v5118_v38  ;;  %v2909_v28 = vsel %vm2560_vm6, %v2796_v24, 0.0  ;;  %v7598_v24 = vpop.f32.mrf.mxu0 }
 0x3b9   :  { %v2910_v42 = vadd.f32 %v2909_v28, %v2795_v54  ;;  %10280 = vst [vmem:[#allocation9_spill] sm:$0xff] %v7601_v14 }
 0x3bb   :  { %v7576_v3 = vpop.f32.mrf.mxu3  ;;  %v2494_v49 = vpop.f32.mrf.mxu1  ;;  %2631 = vadd.xlane.f32.xlu2 %v2630_v35  ;;  %2911 = vadd.xlane.f32.xlu0 %v2910_v42  ;;  %v10283_v35 = vld [vmem:[#allocation47_spill] sm:$0xff]  ;;  %v10284_v42 = vld [vmem:[#allocation81_spill] sm:$0xff] }
 0x3bc   :  { %v7578_v51 = vadd.f32 %v2494_v49, %v2358_v1  ;;  %v7580_v55 = vpop.f32.mrf.mxu2  ;;  %v1953_v2 = vadd.f32 %v10284_v42, %v10283_v35  ;;  %v2799_v49 = vmul.f32 %v7601_v14, %v7601_v14 }
 0x3bd   :  { %10276 = vst [vmem:[#allocation76_spill] sm:$0xff] %v7580_v55 }
 0x3be   :  { %10275 = vst [vmem:[#allocation41_spill] sm:$0xff] %v7578_v51  ;;  %4799 = vmatmul.msk.f32.gmra.mxu1 %vm1617_vm7, %v5119_v20  ;;  %v2798_v22 = vmul.f32 %v7578_v51, %v7578_v51  ;;  %v2633_v33 = vsel %vm2560_vm6, %v7578_v51, 0.0  ;;  %v2364_v20 = vadd.f32 %v7382_v44, %v7488_v57  ;;  %v7626_v32 = vadd.f32 %v10285_v62, %v1953_v2  ;;  %v5121_v44 = vld [vmem:[%s10006_s5 + $0x370] sm:$0xff] }
 0x3bf   :  { %v2634_v41 = vadd.f32 %v2633_v33, %v7574_v40  ;;  %v10327_v51 = vld [vmem:[#allocation36_spill] sm:$0xff] }
 0x3c0   :  { %v2913_v63 = vsel %vm2560_vm6, %v2798_v22, 0.0  ;;  %10286 = vst [vmem:[#allocation11_spill] sm:$0xff] %v7626_v32 }
 0x3c1   :  { %v2914_v43 = vadd.f32 %v2913_v63, %v2797_v31 }
 0x3c3   :  { %v7603_v6 = vpop.f32.mrf.mxu3  ;;  %v2497_v54 = vpop.f32.mrf.mxu1  ;;  %2915 = vadd.xlane.f32.xlu1 %v2914_v43  ;;  %2635 = vadd.xlane.f32.xlu0 %v2634_v41 }
 0x3c4   :  { %v7605_v1 = vadd.f32 %v2497_v54, %v2361_v17  ;;  %v7607_v38 = vpop.f32.mrf.mxu2  ;;  %v7632_v43 = vpop.f32.mrf.mxu0  ;;  %v10289_v54 = vld [vmem:[#allocation83_spill] sm:$0xff] }
 0x3c5   :  { %10282 = vst [vmem:[#allocation79_spill] sm:$0xff] %v7607_v38 }
 0x3c6   :  { %10281 = vst [vmem:[#allocation44_spill] sm:$0xff] %v7605_v1  ;;  %4800 = vmatmul.msk.f32.gmra.mxu1 %vm1617_vm7, %v5120_v18  ;;  %v2800_v60 = vmul.f32 %v7605_v1, %v7605_v1  ;;  %v2637_v28 = vsel %vm2560_vm6, %v7605_v1, 0.0  ;;  %v1956_v18 = vadd.f32 %v10289_v54, %v10288_v56 }
 0x3c7   :  { %v2638_v8 = vadd.f32 %v2637_v28, %v7601_v14  ;;  %v2367_v28 = vadd.f32 %v7422_v36, %v7518_v11  ;;  %v5122_v36 = vld [vmem:[%s10006_s5 + $0x388] sm:$0xff] }
 0x3c8   :  { %v2917_v22 = vsel %vm2560_vm6, %v2800_v60, 0.0  ;;  %v2801_v60 = vmul.f32 %v7626_v32, %v7626_v32 }
 0x3c9   :  { %v2918_v33 = vadd.f32 %v2917_v22, %v2799_v49 }
 0x3cb   :  { %v7628_v31 = vpop.f32.mrf.mxu3  ;;  %v2500_v17 = vpop.f32.mrf.mxu1  ;;  %2919 = vadd.xlane.f32.xlu2 %v2918_v33  ;;  %2639 = vadd.xlane.f32.xlu1 %v2638_v8 }
 0x3cc   :  { %v7630_v63 = vadd.f32 %v2500_v17, %v2364_v20  ;;  %v7648_v35 = vpop.f32.mrf.mxu2  ;;  %v10291_v20 = vld [vmem:[#allocation17_spill] sm:$0xff] }
 0x3cd   :  { %10290 = vst [vmem:[#allocation81_spill] sm:$0xff] %v7648_v35  ;;  %v7653_v22 = vadd.f32 %v10291_v20, %v1956_v18  ;;  %v2370_v18 = vadd.f32 %v7455_v26, %v7548_v21  ;;  %v5123_v26 = vld [vmem:[%s10006_s5 + $0x3a0] sm:$0xff] }
 0x3ce   :  { %10287 = vst [vmem:[#allocation47_spill] sm:$0xff] %v7630_v63  ;;  %4801 = vmatmul.msk.f32.gmra.mxu1 %vm1617_vm7, %v5121_v44  ;;  %v2641_v57 = vsel %vm2560_vm6, %v7630_v63, 0.0  ;;  %v2802_v41 = vmul.f32 %v7630_v63, %v7630_v63  ;;  %v7667_v44 = vpop.f32.mrf.mxu0 }
 0x3cf   :  { %v2642_v2 = vadd.f32 %v2641_v57, %v7626_v32  ;;  %10292 = vst [vmem:[#allocation14_spill] sm:$0xff] %v7653_v22  ;;  %v10294_v57 = vld [vmem:[#allocation53_spill] sm:$0xff]  ;;  %v2803_v54 = vmul.f32 %v7653_v22, %v7653_v22 }
 0x3d0   :  { %v2921_v42 = vsel %vm2560_vm6, %v2802_v41, 0.0  ;;  %v10295_v41 = vld [vmem:[#allocation85_spill] sm:$0xff] }
 0x3d1   :  { %v2922_v49 = vadd.f32 %v2921_v42, %v2801_v60  ;;  %v1959_v56 = vadd.f32 %v10295_v41, %v10294_v57  ;;  %v10301_v41 = vld [vmem:[#allocation87_spill] sm:$0xff] }
 0x3d3   :  { %v7655_v33 = vpop.f32.mrf.mxu3  ;;  %v2503_v8 = vpop.f32.mrf.mxu1  ;;  %2643 = vadd.xlane.f32.xlu2 %v2642_v2  ;;  %2923 = vadd.xlane.f32.xlu0 %v2922_v49  ;;  %v10297_v49 = vld [vmem:[#allocation20_spill] sm:$0xff] }
 0x3d4   :  { %v7657_v62 = vadd.f32 %v2503_v8, %v2367_v28  ;;  %v7677_v2 = vpop.f32.mrf.mxu2  ;;  %v7680_v20 = vadd.f32 %v10297_v49, %v1959_v56 }
 0x3d5   :  { %10296 = vst [vmem:[#allocation83_spill] sm:$0xff] %v7677_v2 }
 0x3d6   :  { %10293 = vst [vmem:[#allocation50_spill] sm:$0xff] %v7657_v62  ;;  %4802 = vmatmul.msk.f32.gmra.mxu1 %vm1617_vm7, %v5122_v36  ;;  %v2804_v11 = vmul.f32 %v7657_v62, %v7657_v62  ;;  %v2645_v17 = vsel %vm2560_vm6, %v7657_v62, 0.0 }
 0x3d7   :  { %v2646_v42 = vadd.f32 %v2645_v17, %v7653_v22  ;;  %10298 = vst [vmem:[#allocation17_spill] sm:$0xff] %v7680_v20  ;;  %v10300_v17 = vld [vmem:[#allocation56_spill] sm:$0xff] }
 0x3d8   :  { %v2925_v60 = vsel %vm2560_vm6, %v2804_v11, 0.0  ;;  %v1962_v56 = vadd.f32 %v10301_v41, %v10300_v17 }
 0x3d9   :  { %v2926_v28 = vadd.f32 %v2925_v60, %v2803_v54  ;;  %v2805_v54 = vmul.f32 %v7680_v20, %v7680_v20 }
 0x3db   :  { %v7682_v8 = vpop.f32.mrf.mxu3  ;;  %v2506_v36 = vpop.f32.mrf.mxu1  ;;  %2927 = vadd.xlane.f32.xlu1 %v2926_v28  ;;  %2647 = vadd.xlane.f32.xlu0 %v2646_v42 }
 0x3dc   :  { %v7684_v57 = vadd.f32 %v2506_v36, %v2370_v18  ;;  %v2373_v18 = vadd.f32 %v7492_v52, %v7576_v3  ;;  %v7701_v28 = vpop.f32.mrf.mxu0  ;;  %v10302_v36 = vld [vmem:[#allocation23_spill] sm:$0xff]  ;;  %v7709_v17 = vpop.f32.mrf.mxu2 }
 0x3dd   :  { %10304 = vst [vmem:[#allocation20_spill] sm:$0xff] %v7709_v17 }
 0x3de   :  { %10299 = vst [vmem:[#allocation53_spill] sm:$0xff] %v7684_v57  ;;  %4803 = vmatmul.msk.f32.gmra.mxu1 %vm1617_vm7, %v5123_v26  ;;  %v2806_v21 = vmul.f32 %v7684_v57, %v7684_v57  ;;  %v2649_v11 = vsel %vm2560_vm6, %v7684_v57, 0.0  ;;  %v7705_v26 = vadd.f32 %v10302_v36, %v1962_v56  ;;  %v10308_v36 = vld [vmem:[#allocation24_spill] sm:$0xff] }
 0x3df   :  { %v2650_v49 = vadd.f32 %v2649_v11, %v7680_v20  ;;  %v10307_v11 = vld [vmem:[#allocation89_spill] sm:$0xff] }
 0x3e0   :  { %v2929_v60 = vsel %vm2560_vm6, %v2806_v21, 0.0  ;;  %10303 = vst [vmem:[#allocation85_spill] sm:$0xff] %v7705_v26  ;;  %v10306_v21 = vld [vmem:[#allocation58_spill] sm:$0xff]  ;;  %v2807_v56 = vmul.f32 %v7705_v26, %v7705_v26 }
 0x3e1   :  { %v2930_v42 = vadd.f32 %v2929_v60, %v2805_v54  ;;  %v1965_v54 = vadd.f32 %v10307_v11, %v10306_v21  ;;  %v2376_v60 = vadd.f32 %v7530_v9, %v7603_v6 }
 0x3e3   :  { %v7707_v62 = vpop.f32.mrf.mxu3  ;;  %v2509_v22 = vpop.f32.mrf.mxu1  ;;  %2931 = vadd.xlane.f32.xlu2 %v2930_v42  ;;  %2651 = vadd.xlane.f32.xlu1 %v2650_v49  ;;  %v7728_v63 = vadd.f32 %v10308_v36, %v1965_v54  ;;  %v10312_v54 = vld [vmem:[#allocation60_spill] sm:$0xff] }
 0x3e4   :  { %v7711_v41 = vadd.f32 %v2509_v22, %v2373_v18  ;;  %v7725_v49 = vpop.f32.mrf.mxu0  ;;  %v7736_v9 = vpop.f32.mrf.mxu2 }
 0x3e5   :  { %10309 = vst [vmem:[#allocation87_spill] sm:$0xff] %v7728_v63 }
 0x3e6   :  { %10305 = vst [vmem:[#allocation56_spill] sm:$0xff] %v7711_v41  ;;  %v2653_v52 = vsel %vm2560_vm6, %v7711_v41, 0.0  ;;  %v2808_v3 = vmul.f32 %v7711_v41, %v7711_v41 }
 0x3e7   :  { %v2654_v22 = vadd.f32 %v2653_v52, %v7705_v26  ;;  %10311 = vst [vmem:[#allocation58_spill] sm:$0xff] %v7736_v9  ;;  %v10313_v26 = vld [vmem:[#allocation26_spill] sm:$0xff]  ;;  %v3651_v9 = vld [vmem:[%s10008_s7 + $0x50] sm:$0xff] }
 0x3e8   :  { %v2933_v42 = vsel %vm2560_vm6, %v2808_v3, 0.0 }
 0x3e9   :  { %v2934_v18 = vadd.f32 %v2933_v42, %v2807_v56  ;;  %v1968_v56 = vadd.f32 %v7313_v59, %v10312_v54  ;;  %v2809_v42 = vmul.f32 %v7728_v63, %v7728_v63 }
 0x3eb   :  { %v7730_v41 = vpop.f32.mrf.mxu3  ;;  %v2512_v32 = vpop.f32.mrf.mxu1  ;;  %2655 = vadd.xlane.f32.xlu2 %v2654_v22  ;;  %2935 = vadd.xlane.f32.xlu0 %v2934_v18 }
 0x3ec   :  { %v7732_v21 = vadd.f32 %v2512_v32, %v2376_v60  ;;  %v2600_v11 = vpop.xlane.xlu0 %2599  ;;  %v2379_v32 = vadd.f32 %v7570_v12, %v7628_v31  ;;  %v7759_v12 = vpop.f32.mrf.mxu0 }
 0x3ed   :  { %v7734_v57 = vmul.f32 0.0051020407, %v2600_v11 }
 0x3ee   :  { %10310 = vst [vmem:[#allocation23_spill] sm:$0xff] %v7732_v21  ;;  %v2880_v6 = vpop.xlane.xlu1 %2879  ;;  %v2810_v52 = vmul.f32 %v7732_v21, %v7732_v21  ;;  %v2657_v3 = vsel %vm2560_vm6, %v7732_v21, 0.0  ;;  %v7753_v21 = vadd.f32 %v10313_v26, %v1968_v56 }
 0x3ef   :  { %v3050_v22 = vmul.f32 %v7734_v57, %v7734_v57  ;;  %v3010_v18 = vmul.f32 0.0051020407, %v2880_v6  ;;  %v2658_v11 = vadd.f32 %v2657_v3, %v7728_v63  ;;  %v10316_v3 = vld [vmem:[#allocation62_spill] sm:$0xff] }
 0x3f0   :  { %v2937_v60 = vsel %vm2560_vm6, %v2810_v52, 0.0  ;;  %10314 = vst [vmem:[#allocation89_spill] sm:$0xff] %v7753_v21  ;;  %v1971_v26 = vadd.f32 %v7344_v4, %v10316_v3  ;;  %v2811_v56 = vmul.f32 %v7753_v21, %v7753_v21 }
 0x3f1   :  { %v2938_v36 = vadd.f32 %v2937_v60, %v2809_v42  ;;  %v3090_v31 = vsub.f32 %v3010_v18, %v3050_v22  ;;  %v2382_v42 = vadd.f32 %v7598_v24, %v7655_v33  ;;  %v10319_v24 = vld [vmem:[#allocation2_spill] sm:$0xff] }
 0x3f2   :  { %v10320_v33 = vld [vmem:[#allocation34_spill] sm:$0xff] }
 0x3f3   :  { %v7755_v20 = vpop.f32.mrf.mxu3  ;;  %v2515_v59 = vpop.f32.mrf.mxu1  ;;  %2939 = vadd.xlane.f32.xlu1 %v2938_v36  ;;  %2659 = vadd.xlane.f32.xlu0 %v2658_v11  ;;  %v7772_v22 = vadd.f32 1e-05, %v3090_v31  ;;  %v1893_v1 = vadd.f32 %v10320_v33, %v10319_v24 }
 0x3f4   :  { %v7757_v54 = vadd.f32 %v2515_v59, %v2379_v32  ;;  %v2029_v32 = vpop.f32.mrf.mxu2  ;;  %v10317_v59 = vld [vmem:[#allocation28_spill] sm:$0xff]  ;;  %v7786_v31 = vpop.f32.mrf.mxu0 }
 0x3f5   :  { %v7776_v63 = vadd.f32 %v10317_v59, %v1971_v26  ;;  %5011 = vrsqrt.f32 %v7772_v22  ;;  %v7793_v26 = vadd.f32 %v2029_v32, %v1893_v1  ;;  %v2385_v59 = vadd.f32 %v7632_v43, %v7682_v8 }
 0x3f6   :  { %10315 = vst [vmem:[#allocation24_spill] sm:$0xff] %v7757_v54  ;;  %v2812_v52 = vmul.f32 %v7757_v54, %v7757_v54  ;;  %v2661_v6 = vsel %vm2560_vm6, %v7757_v54, 0.0  ;;  %v2604_v60 = vpop.xlane.xlu1 %2603  ;;  %v1974_v43 = vadd.f32 %v7374_v61, %v10328_v13  ;;  %vm3297_vm8 = vweird.f32 %v7772_v22 }
 0x3f7   :  { %v2662_v11 = vadd.f32 %v2661_v6, %v7753_v21  ;;  %10318 = vst [vmem:[#allocation60_spill] sm:$0xff] %v7776_v63  ;;  %v7778_v54 = vmul.f32 0.0051020407, %v2604_v60  ;;  %v2884_v60 = vpop.xlane.xlu2 %2883  ;;  %v10326_v21 = vld [vmem:[#allocation3_spill] sm:$0xff] }
 0x3f8   :  { %v2941_v36 = vsel %vm2560_vm6, %v2812_v52, 0.0  ;;  %v10322_v52 = vld [vmem:[#allocation61_spill] sm:$0xff]  ;;  %10325 = vst [vmem:[#allocation28_spill] sm:$0xff] %v7793_v26  ;;  %v3011_v1 = vmul.f32 0.0051020407, %v2884_v60  ;;  %v1896_v40 = vadd.f32 %v10327_v51, %v10326_v21 }
 0x3f9   :  { %v2942_v18 = vadd.f32 %v2941_v36, %v2811_v56  ;;  %v10323_v56 = vld [vmem:[#allocation70_spill] sm:$0xff] }
 0x3fa   :  { %v7790_v6 = vadd.f32 %v10323_v56, %v10322_v52 }
 0x3fb   :  { %v7780_v4 = vpop.f32.mrf.mxu3  ;;  %v2518_v3 = vpop.f32.mrf.mxu1  ;;  %2943 = vadd.xlane.f32.xlu2 %v2942_v18  ;;  %2663 = vadd.xlane.f32.xlu1 %v2662_v11  ;;  %v2813_v11 = vmul.f32 %v7776_v63, %v7776_v63 }
 0x3fc   :  { %v7784_v14 = vadd.f32 %v2518_v3, %v2382_v42  ;;  %10324 = vst [vmem:[#allocation62_spill] sm:$0xff] %v7790_v6  ;;  %v3051_v42 = vmul.f32 %v7778_v54, %v7778_v54  ;;  %v2561_v33 = vsel %vm2560_vm6, %v7790_v6, 0.0  ;;  %v2032_v52 = vpop.f32.mrf.mxu2  ;;  %v7826_v29 = vpop.f32.mrf.mxu0  ;;  %v2762_v61 = vmul.f32 %v7790_v6, %v7790_v6 }
 0x3fd   :  { %v2562_v56 = vadd.f32 %v2561_v33, %v7793_v26  ;;  %v7828_v51 = vadd.f32 %v2032_v52, %v1896_v40 }
 0x3fe   :  { %10321 = vst [vmem:[#allocation26_spill] sm:$0xff] %v7784_v14  ;;  %v2665_v36 = vsel %vm2560_vm6, %v7784_v14, 0.0  ;;  %v2814_v18 = vmul.f32 %v7784_v14, %v7784_v14  ;;  %v7810_v14 = vpop.eup %5011  ;;  %v3091_v8 = vsub.f32 %v3011_v1, %v3051_v42  ;;  %v2761_v42 = vmul.f32 %v7793_v26, %v7793_v26  ;;  %v10334_v1 = vld [vmem:[#allocation30_spill] sm:$0xff] }
 0x3ff   :  { %v2666_v32 = vadd.f32 %v2665_v36, %v7776_v63  ;;  %v10329_v36 = vld [vmem:[#allocation63_spill] sm:$0xff]  ;;  %v7822_v63 = vpop.xlane.xlu0 %2887  ;;  %10333 = vst [vmem:[#allocation61_spill] sm:$0xff] %v7828_v51  ;;  %v3292_v13 = vmul.f32 %v7810_v14, %v7772_v22  ;;  %vm3298_vm7 = vweird.f32 %v7810_v14 }
 0x400   :  { %v2945_v3 = vsel %vm2560_vm6, %v2814_v18, 0.0  ;;  %vm3299_vm9 = vmor %vm3297_vm8, %vm3298_vm7 }
 0x401   :  { %v2946_v24 = vadd.f32 %v2945_v3, %v2813_v11  ;;  %v10330_v11 = vld [vmem:[#allocation72_spill] sm:$0xff] }
 0x402   :  { %v7820_v3 = vadd.f32 %v10330_v11, %v10329_v36  ;;  %v7849_v36 = vpop.xlane.xlu2 %2607 }
 0x403   :  { %v7816_v18 = vpop.f32.mrf.mxu3  ;;  %v2521_v60 = vpop.f32.mrf.mxu1  ;;  %2667 = vadd.xlane.f32.xlu2 %v2666_v32  ;;  %2947 = vadd.xlane.f32.xlu0 %v2946_v24  ;;  %v7841_v32 = vadd.f32 1e-05, %v3091_v8 }
 0x404   :  { %10331 = vst [vmem:[#allocation2_spill] sm:$0xff] %v7820_v3  ;;  %v7824_v33 = vadd.f32 %v2521_v60, %v2385_v59  ;;  %2563 = vadd.xlane.f32.xlu1 %v2562_v56  ;;  %v7839_v59 = vadd.f32 %v10334_v1, %v1974_v43  ;;  %v2565_v40 = vsel %vm2560_vm6, %v7820_v3, 0.0  ;;  %v2841_v56 = vsel %vm2560_vm6, %v2762_v61, 0.0 }
 0x405   :  { %v2566_v52 = vadd.f32 %v2565_v40, %v7828_v51  ;;  %v3293_v60 = vmul.f32 %v7810_v14, %v3292_v13  ;;  %v2842_v11 = vadd.f32 %v2841_v56, %v2761_v42  ;;  %5013 = vrsqrt.f32 %v7841_v32  ;;  %v7864_v56 = vpop.f32.mrf.mxu0 }
 0x406   :  { %10332 = vst [vmem:[#allocation34_spill] sm:$0xff] %v7824_v33  ;;  %v2669_v21 = vsel %vm2560_vm6, %v7824_v33, 0.0  ;;  %v2816_v1 = vmul.f32 %v7824_v33, %v7824_v33  ;;  %v2764_v61 = vmul.f32 %v7820_v3, %v7820_v3  ;;  %v2763_v13 = vmul.f32 %v7828_v51, %v7828_v51 }
 0x407   :  { %10335 = vst [vmem:[#allocation70_spill] sm:$0xff] %v7839_v59  ;;  %v2670_v24 = vadd.f32 %v2669_v21, %v7839_v59  ;;  %v7856_v21 = vpop.xlane.xlu1 %2891  ;;  %v3294_v42 = vmul.f32 0.5, %v3293_v60  ;;  %v7862_v40 = vpop.xlane.xlu0 %2611  ;;  %vm3307_vm11 = vweird.f32 %v7841_v32 }
 0x408   :  { %v2845_v33 = vsel %vm2560_vm6, %v2764_v61, 0.0 }
 0x409   :  { %v2846_v3 = vadd.f32 %v2845_v33, %v2763_v13  ;;  %v3295_v60 = vsub.f32 1.5, %v3294_v42  ;;  %v10338_v42 = vld [vmem:[#allocation32_spill] sm:$0xff] }
 0x40b   :  { %v7852_v43 = vpop.f32.mrf.mxu3  ;;  %v2524_v8 = vpop.f32.mrf.mxu1  ;;  %2671 = vadd.xlane.f32.xlu0 %v2670_v24  ;;  %2567 = vadd.xlane.f32.xlu2 %v2566_v52  ;;  %v2388_v24 = vadd.f32 %v7667_v44, %v7707_v62  ;;  %v2949_v52 = vsel %vm2560_vm6, %v2816_v1, 0.0  ;;  %v10337_v62 = vld [vmem:[#allocation66_spill] sm:$0xff]  ;;  %v3296_v13 = vmul.f32 %v7810_v14, %v3295_v60 }
 0x40c   :  { %2843 = vadd.xlane.f32.xlu1 %v2842_v11  ;;  %v2815_v11 = vmul.f32 %v7839_v59, %v7839_v59  ;;  %v5014_v6 = vpop.eup %5013  ;;  %v1977_v44 = vadd.f32 %v7404_v27, %v10337_v62 }
 0x40d   :  { %v7874_v46 = vadd.f32 %v2524_v8, %v2388_v24  ;;  %v3302_v1 = vmul.f32 %v5014_v6, %v7841_v32  ;;  %vm3308_vm10 = vweird.f32 %v5014_v6 }
 0x40e   :  { %v7872_v26 = vpop.xlane.xlu2 %2895  ;;  %v2950_v51 = vadd.f32 %v2949_v52, %v2815_v11  ;;  %v7892_v24 = vadd.f32 %v10338_v42, %v1977_v44  ;;  %v7894_v52 = vpop.f32.mrf.mxu0  ;;  %v3300_v11 = vsel %vm3299_vm9, %v7810_v14, %v3296_v13  ;;  %vm3309_vm12 = vmor %vm3307_vm11, %vm3308_vm10 }
 0x40f   :  { %10336 = vst [vmem:[#allocation3_spill] sm:$0xff] %v7874_v46  ;;  %v7883_v61 = vpop.xlane.xlu1 %2615  ;;  %v2673_v8 = vsel %vm2560_vm6, %v7874_v46, 0.0 }
 0x410   :  { %10339 = vst [vmem:[#allocation36_spill] sm:$0xff] %v7892_v24  ;;  %v2674_v27 = vadd.f32 %v2673_v8, %v7892_v24 }
 0x411   :  { %10340 = vst [vmem:[#allocation64_spill] sm:$0xff] %v7894_v52 }
 0x413   :  { %v7876_v34 = vpop.f32.mrf.mxu3  ;;  %v7878_v58 = vpop.f32.mrf.mxu1  ;;  %2847 = vadd.xlane.f32.xlu2 %v2846_v3  ;;  %v3303_v3 = vmul.f32 %v5014_v6, %v3302_v1 }
 0x414   :  { %2951 = vadd.xlane.f32.xlu1 %v2950_v51  ;;  %v3130_v51 = vld [vmem:[%s10007_s6 + $0x48] sm:$0xff] }
 0x415   :  { %v3304_v44 = vmul.f32 0.5, %v3303_v3  ;;  %v3610_v42 = vmul.f32 %v3300_v11, %v3130_v51  ;;  %v3131_v3 = vld [vmem:[%s10007_s6 + $0x50] sm:$0xff] }
 0x416   :  { %v7885_v33 = vpop.xlane.xlu0 %2899  ;;  %v7906_v1 = vpop.xlane.xlu2 %2619 }
 0x417   :  { %v3305_v8 = vsub.f32 1.5, %v3304_v44  ;;  %v2411_v13 = vpop.f32.mrf.mxu0  ;;  %v3650_v44 = vld [vmem:[%s10008_s7 + $0x48] sm:$0xff] }
 0x419   :  { %v3306_v51 = vmul.f32 %v5014_v6, %v3305_v8 }
 0x41b   :  { %v7902_v60 = vpop.f32.mrf.mxu3  ;;  %v7904_v62 = vpop.f32.mrf.mxu1  ;;  %v3310_v7 = vsel %vm3309_vm12, %v5014_v6, %v3306_v51 }
 0x41c   :  { %10341 = vst [vmem:[#allocation63_spill] sm:$0xff] %v7902_v60  ;;  %2675 = vadd.xlane.f32.xlu1 %v2674_v27  ;;  %v3611_v17 = vmul.f32 %v3310_v7, %v3131_v3  ;;  %v7945_v7 = vmul.f32 0.0051020407, %v7849_v36  ;;  %v10347_v60 = vld [vmem:[#allocation38_spill] sm:$0xff] }
 0x41e   :  { %v2904_v59 = vpop.xlane.xlu1 %2903  ;;  %v2624_v22 = vpop.xlane.xlu0 %2623  ;;  %v3052_v25 = vmul.f32 %v7945_v7, %v7945_v7 }
 0x41f   :  { %v7908_v19 = vmul.f32 0.0051020407, %v2624_v22  ;;  %3888 = vperm.xlu0 %4848, %v3610_v42   ;;  %v7910_v35 = vmul.f32 0.0051020407, %v2904_v59  ;;  %v3690_v22 = vmul.f32 %v3610_v42, %v7734_v57 }
 0x421   :  { %v7914_v14 = vmul.f32 %v7908_v19, %v7908_v19  ;;  %v3730_v8 = vsub.f32 %v3650_v44, %v3690_v22 }
 0x423   :  { %v2274_v27 = vpop.f32.mrf.mxu3  ;;  %v7918_v16 = vpop.f32.mrf.mxu1 }
 0x424   :  { %v7920_v11 = vadd.f32 %v2411_v13, %v2274_v27  ;;  %v3691_v27 = vmul.f32 %v3611_v17, %v7778_v54 }
 0x426   :  { %v7924_v59 = vpop.xlane.xlu2 %2907  ;;  %v7934_v57 = vpop.xlane.xlu1 %2627  ;;  %v3731_v44 = vsub.f32 %v3651_v9, %v3691_v27  ;;  %v10351_v9 = vld [vmem:[#allocation74_spill] sm:$0xff] }
 0x42b   :  { %v7932_v13 = vpop.f32.mrf.mxu1  ;;  %4248 = vperm.xlu2 %4850, %v3730_v8  }
 0x42e   :  { %v2632_v32 = vpop.xlane.xlu2 %2631  ;;  %v2912_v42 = vpop.xlane.xlu0 %2911 }
 0x42f   :  { %v7937_v2 = vmul.f32 0.0051020407, %v2632_v32  ;;  %v3018_v51 = vmul.f32 0.0051020407, %v2912_v42  ;;  %v3012_v42 = vmul.f32 0.0051020407, %v7822_v63  ;;  %v2035_v63 = vpop.f32.mrf.mxu2 }
 0x431   :  { %v3058_v6 = vmul.f32 %v7937_v2, %v7937_v2 }
 0x433   :  { %v3098_v3 = vsub.f32 %v3018_v51, %v3058_v6  ;;  %v7947_v22 = vpop.f32.mrf.mxu1  ;;  %3893 = vperm.xlu2 %4850, %v3611_v17   ;;  %v3092_v17 = vsub.f32 %v3012_v42, %v3052_v25  ;;  %v10350_v42 = vld [vmem:[#allocation65_spill] sm:$0xff] }
 0x434   :  { %10342 = vst [vmem:[#allocation72_spill] sm:$0xff] %v7947_v22  ;;  %v7978_v45 = vadd.f32 %v10351_v9, %v10350_v42 }
 0x435   :  { %v3178_v8 = vadd.f32 1e-05, %v3098_v3  ;;  %4253 = vperm.xlu1 %4849, %v3731_v44  }
 0x436   :  { %v2916_v54 = vpop.xlane.xlu1 %2915  ;;  %v2636_v32 = vpop.xlane.xlu0 %2635  ;;  %10352 = vst [vmem:[#allocation65_spill] sm:$0xff] %v7978_v45 }
 0x437   :  { %5015 = vrsqrt.f32 %v3178_v8  ;;  %v7951_v37 = vmul.f32 0.0051020407, %v2636_v32  ;;  %v7954_v38 = vmul.f32 0.0051020407, %v2916_v54  ;;  %v7964_v32 = vadd.f32 1e-05, %v3092_v17 }
 0x438   :  { %v10346_v54 = vld [vmem:[#allocation6_spill] sm:$0xff]  ;;  %vm3377_vm14 = vweird.f32 %v3178_v8 }
 0x439   :  { %10343 = vst [vmem:[#allocation30_spill] sm:$0xff] %v7951_v37  ;;  %v7958_v36 = vmul.f32 %v7951_v37, %v7951_v37  ;;  %v1899_v48 = vadd.f32 %v10347_v60, %v10346_v54  ;;  %5017 = vrsqrt.f32 %v7964_v32  ;;  %v2569_v54 = vsel %vm2560_vm6, %v7978_v45, 0.0 }
 0x43a   :  { %vm3317_vm0 = vweird.f32 %v7964_v32 }
 0x43b   :  { %v7962_v27 = vpop.f32.mrf.mxu1  ;;  %v7980_v22 = vadd.f32 %v2035_v63, %v1899_v48  ;;  %v2391_v48 = vadd.f32 %v7701_v28, %v7730_v41 }
 0x43c   :  { %10344 = vst [vmem:[#allocation66_spill] sm:$0xff] %v7962_v27 }
 0x43d   :  { %v5016_v6 = vpop.eup %5015  ;;  %10353 = vst [vmem:[#allocation74_spill] sm:$0xff] %v7980_v22  ;;  %v2570_v9 = vadd.f32 %v2569_v54, %v7980_v22  ;;  %v8005_v28 = vadd.f32 %v7878_v58, %v2391_v48 }
 0x43e   :  { %v3372_v51 = vmul.f32 %v5016_v6, %v3178_v8  ;;  %v2920_v3 = vpop.xlane.xlu2 %2919  ;;  %v2640_v44 = vpop.xlane.xlu1 %2639  ;;  %vm3378_vm13 = vweird.f32 %v5016_v6 }
 0x43f   :  { %v7966_v52 = vmul.f32 0.0051020407, %v2640_v44  ;;  %v7970_v15 = vmul.f32 0.0051020407, %v2920_v3  ;;  %v7994_v63 = vpop.eup %5017  ;;  %10355 = vst [vmem:[#allocation105_spill] sm:$0xff] %v8005_v28  ;;  %vm3379_vm15 = vmor %vm3377_vm14, %vm3378_vm13 }
 0x440   :  { %v3373_v37 = vmul.f32 %v5016_v6, %v3372_v51  ;;  %v3312_v54 = vmul.f32 %v7994_v63, %v7964_v32  ;;  %vm3318_vm1 = vweird.f32 %v7994_v63 }
 0x441   :  { %10345 = vst [vmem:[#allocation32_spill] sm:$0xff] %v7966_v52  ;;  %v7974_v25 = vmul.f32 %v7966_v52, %v7966_v52  ;;  %vm3319_vm2 = vmor %vm3317_vm0, %vm3318_vm1 }
 0x442   :  { %10348 = vst [vmem:[#allocation6_spill] sm:$0xff] %v7970_v15  ;;  %v3374_v60 = vmul.f32 0.5, %v3373_v37  ;;  %v2766_v37 = vmul.f32 %v7978_v45, %v7978_v45  ;;  %v3313_v58 = vmul.f32 %v7994_v63, %v3312_v54  ;;  %v10365_v54 = vld [vmem:[#allocation40_spill] sm:$0xff] }
 0x443   :  { %10349 = vst [vmem:[#allocation38_spill] sm:$0xff] %v7974_v25  ;;  %v7985_v44 = vpop.f32.mrf.mxu1 }
 0x444   :  { %10354 = vst [vmem:[#allocation104_spill] sm:$0xff] %v7985_v44  ;;  %v3375_v42 = vsub.f32 1.5, %v3374_v60  ;;  %v10357_v60 = vld [vmem:[#allocation68_spill] sm:$0xff] }
 0x446   :  { %v2644_v51 = vpop.xlane.xlu2 %2643  ;;  %v2924_v3 = vpop.xlane.xlu0 %2923 }
 0x447   :  { %v7989_v52 = vmul.f32 0.0051020407, %v2644_v51  ;;  %v3021_v25 = vmul.f32 0.0051020407, %v2924_v3  ;;  %v2765_v51 = vmul.f32 %v7980_v22, %v7980_v22  ;;  %v1980_v3 = vadd.f32 %v7434_v47, %v10357_v60 }
 0x448   :  { %v2849_v22 = vsel %vm2560_vm6, %v2766_v37, 0.0  ;;  %v2820_v47 = vmul.f32 %v8005_v28, %v8005_v28 }
 0x449   :  { %v3061_v17 = vmul.f32 %v7989_v52, %v7989_v52  ;;  %2571 = vadd.xlane.f32.xlu0 %v2570_v9  ;;  %v3376_v9 = vmul.f32 %v5016_v6, %v3375_v42  ;;  %v2850_v55 = vadd.f32 %v2849_v22, %v2765_v51  ;;  %v2038_v42 = vpop.f32.mrf.mxu2  ;;  %v10364_v51 = vld [vmem:[#allocation8_spill] sm:$0xff] }
 0x44a   :  { %v1902_v60 = vadd.f32 %v10365_v54, %v10364_v51 }
 0x44b   :  { %v3101_v15 = vsub.f32 %v3021_v25, %v3061_v17  ;;  %v2548_v44 = vpop.f32.mrf.mxu1  ;;  %v3380_v8 = vsel %vm3379_vm15, %v5016_v6, %v3376_v9 }
 0x44c   :  { %v8008_v41 = vadd.f32 %v2548_v44, %v7920_v11  ;;  %v10359_v11 = vld [vmem:[#allocation33_spill] sm:$0xff]  ;;  %v8050_v9 = vadd.f32 %v2038_v42, %v1902_v60 }
 0x44d   :  { %v8012_v45 = vadd.f32 1e-05, %v3101_v15  ;;  %v3138_v15 = vld [vmem:[%s10007_s6 + $0x88] sm:$0xff]  ;;  %v8025_v44 = vadd.f32 %v10359_v11, %v1980_v3  ;;  %v2818_v3 = vmul.f32 %v7874_v46, %v7874_v46  ;;  %v10367_v11 = vld [vmem:[#allocation77_spill] sm:$0xff] }
 0x44e   :  { %10356 = vst [vmem:[#allocation106_spill] sm:$0xff] %v8008_v41  ;;  %v2928_v25 = vpop.xlane.xlu1 %2927  ;;  %v2648_v17 = vpop.xlane.xlu0 %2647  ;;  %v8033_v37 = vmul.f32 %v3380_v8, %v3138_v15 }
 0x44f   :  { %v8015_v27 = vmul.f32 0.0051020407, %v2648_v17  ;;  %5019 = vrsqrt.f32 %v8012_v45  ;;  %10360 = vst [vmem:[#allocation33_spill] sm:$0xff] %v8025_v44  ;;  %v8027_v48 = vmul.f32 0.0051020407, %v2928_v25  ;;  %v10366_v25 = vld [vmem:[#allocation67_spill] sm:$0xff]  ;;  %v2819_v15 = vmul.f32 %v8025_v44, %v8025_v44 }
 0x450   :  { %10363 = vst [vmem:[#allocation109_spill] sm:$0xff] %v8033_v37  ;;  %v8043_v41 = vadd.f32 %v10367_v11, %v10366_v25  ;;  %v8048_v6 = vmul.f32 %v8033_v37, %v7937_v2  ;;  %vm3407_vm4 = vweird.f32 %v8012_v45 }
 0x451   :  { %10358 = vst [vmem:[#allocation68_spill] sm:$0xff] %v8015_v27  ;;  %v8031_v22 = vmul.f32 %v8015_v27, %v8015_v27  ;;  %2851 = vadd.xlane.f32.xlu0 %v2850_v55  ;;  %v3314_v27 = vmul.f32 0.5, %v3313_v58  ;;  %v2957_v55 = vsel %vm2560_vm6, %v2820_v47, 0.0  ;;  %v2953_v58 = vsel %vm2560_vm6, %v2818_v3, 0.0 }
 0x452   :  { %10361 = vst [vmem:[#allocation107_spill] sm:$0xff] %v8027_v48  ;;  %v2958_v25 = vadd.f32 %v2957_v55, %v2819_v15  ;;  %v2817_v47 = vmul.f32 %v7892_v24, %v7892_v24  ;;  %v2768_v2 = vmul.f32 %v8043_v41, %v8043_v41  ;;  %v2767_v3 = vmul.f32 %v8050_v9, %v8050_v9 }
 0x453   :  { %10362 = vst [vmem:[#allocation108_spill] sm:$0xff] %v8031_v22  ;;  %v3315_v11 = vsub.f32 1.5, %v3314_v27  ;;  %v8074_v27 = vmul.f32 0.0051020407, %v7862_v40 }
 0x454   :  { %10368 = vst [vmem:[#allocation8_spill] sm:$0xff] %v8043_v41  ;;  %v2954_v55 = vadd.f32 %v2953_v58, %v2817_v47 }
 0x455   :  { %10369 = vst [vmem:[#allocation40_spill] sm:$0xff] %v8048_v6  ;;  %v8054_v8 = vpop.eup %5019  ;;  %v3053_v40 = vmul.f32 %v8074_v27, %v8074_v27 }
 0x456   :  { %10370 = vst [vmem:[#allocation67_spill] sm:$0xff] %v8050_v9  ;;  %v2932_v51 = vpop.xlane.xlu2 %2931  ;;  %v2652_v54 = vpop.xlane.xlu1 %2651  ;;  %v3402_v42 = vmul.f32 %v8054_v8, %v8012_v45  ;;  %vm3408_vm3 = vweird.f32 %v8054_v8 }
 0x457   :  { %v8056_v17 = vmul.f32 0.0051020407, %v2652_v54  ;;  %v8065_v60 = vmul.f32 0.0051020407, %v2932_v51  ;;  %v2853_v51 = vsel %vm2560_vm6, %v2768_v2, 0.0  ;;  %v3316_v54 = vmul.f32 %v7994_v63, %v3315_v11  ;;  %v3132_v11 = vld [vmem:[%s10007_s6 + $0x58] sm:$0xff]  ;;  %vm3409_vm5 = vmor %vm3407_vm4, %vm3408_vm3 }
 0x458   :  { %v3403_v24 = vmul.f32 %v8054_v8, %v3402_v42 }
 0x459   :  { %10371 = vst [vmem:[#allocation77_spill] sm:$0xff] %v8056_v17  ;;  %v8069_v46 = vmul.f32 %v8056_v17, %v8056_v17  ;;  %2959 = vadd.xlane.f32.xlu0 %v2958_v25  ;;  %v2854_v25 = vadd.f32 %v2853_v51, %v2767_v3  ;;  %v3320_v2 = vsel %vm3319_vm2, %v7994_v63, %v3316_v54  ;;  %v2573_v51 = vsel %vm2560_vm6, %v8043_v41, 0.0 }
 0x45a   :  { %10372 = vst [vmem:[#allocation110_spill] sm:$0xff] %v8065_v60  ;;  %v3404_v42 = vmul.f32 0.5, %v3403_v24  ;;  %v8097_v37 = vmul.f32 %v3320_v2, %v3132_v11  ;;  %v2677_v54 = vsel %vm2560_vm6, %v8005_v28, 0.0  ;;  %v10375_v11 = vld [vmem:[#allocation10_spill] sm:$0xff]  ;;  %v10376_v2 = vld [vmem:[#allocation43_spill] sm:$0xff] }
 0x45b   :  { %10373 = vst [vmem:[#allocation111_spill] sm:$0xff] %v8069_v46  ;;  %v2678_v45 = vadd.f32 %v2677_v54, %v8025_v44 }
 0x45c   :  { %2955 = vadd.xlane.f32.xlu2 %v2954_v55  ;;  %v3013_v55 = vmul.f32 0.0051020407, %v7856_v21  ;;  %v3405_v21 = vsub.f32 1.5, %v3404_v42  ;;  %v1905_v42 = vadd.f32 %v10376_v2, %v10375_v11  ;;  %v8135_v2 = vmul.f32 0.0051020407, %v7883_v61 }
 0x45e   :  { %v2656_v17 = vpop.xlane.xlu2 %2655  ;;  %v2936_v58 = vpop.xlane.xlu0 %2935  ;;  %v3093_v15 = vsub.f32 %v3013_v55, %v3053_v40  ;;  %v3692_v55 = vmul.f32 %v8097_v37, %v7945_v7  ;;  %v3054_v61 = vmul.f32 %v8135_v2, %v8135_v2 }
 0x45f   :  { %v8085_v47 = vmul.f32 0.0051020407, %v2656_v17  ;;  %2855 = vadd.xlane.f32.xlu1 %v2854_v25  ;;  %v3024_v3 = vmul.f32 0.0051020407, %v2936_v58  ;;  %v2574_v17 = vadd.f32 %v2573_v51, %v8050_v9  ;;  %v2041_v58 = vpop.f32.mrf.mxu2  ;;  %v3652_v51 = vld [vmem:[%s10008_s7 + $0x58] sm:$0xff] }
 0x460   :  { %v8101_v46 = vadd.f32 1e-05, %v3093_v15  ;;  %v10377_v15 = vld [vmem:[#allocation69_spill] sm:$0xff]  ;;  %v8132_v11 = vadd.f32 %v2041_v58, %v1905_v42 }
 0x461   :  { %v3064_v32 = vmul.f32 %v8085_v47, %v8085_v47 }
 0x462   :  { %vm3327_vm11 = vweird.f32 %v8101_v46 }
 0x463   :  { %v3104_v25 = vsub.f32 %v3024_v3, %v3064_v32  ;;  %v10378_v32 = vld [vmem:[#allocation80_spill] sm:$0xff] }
 0x464   :  { %2575 = vadd.xlane.f32.xlu2 %v2574_v17  ;;  %v8115_v3 = vadd.f32 %v10378_v32, %v10377_v15  ;;  %10382 = vst [vmem:[#allocation80_spill] sm:$0xff] %v8132_v11  ;;  %v3732_v15 = vsub.f32 %v3652_v51, %v3692_v55  ;;  %v2769_v55 = vmul.f32 %v8132_v11, %v8132_v11 }
 0x465   :  { %v8099_v6 = vadd.f32 1e-05, %v3104_v25  ;;  %v3141_v25 = vld [vmem:[%s10007_s6 + $0xa0] sm:$0xff] }
 0x466   :  { %v2940_v24 = vpop.xlane.xlu1 %2939  ;;  %v2660_v63 = vpop.xlane.xlu0 %2659  ;;  %10379 = vst [vmem:[#allocation10_spill] sm:$0xff] %v8115_v3  ;;  %v2770_v58 = vmul.f32 %v8115_v3, %v8115_v3 }
 0x467   :  { %5021 = vrsqrt.f32 %v8099_v6  ;;  %v8106_v40 = vmul.f32 0.0051020407, %v2660_v63  ;;  %v8121_v17 = vmul.f32 0.0051020407, %v2940_v24  ;;  %v3406_v63 = vmul.f32 %v8054_v8, %v3405_v21 }
 0x468   :  { %5023 = vrsqrt.f32 %v8101_v46  ;;  %v2857_v24 = vsel %vm2560_vm6, %v2770_v58, 0.0  ;;  %vm3437_vm8 = vweird.f32 %v8099_v6 }
 0x469   :  { %10374 = vst [vmem:[#allocation112_spill] sm:$0xff] %v8106_v40  ;;  %v8125_v7 = vmul.f32 %v8106_v40, %v8106_v40  ;;  %v3410_v32 = vsel %vm3409_vm5, %v8054_v8, %v3406_v63  ;;  %v3014_v63 = vmul.f32 0.0051020407, %v7872_v26  ;;  %v2858_v9 = vadd.f32 %v2857_v24, %v2769_v55  ;;  %v10389_v26 = vld [vmem:[#allocation46_spill] sm:$0xff]  ;;  %v10390_v40 = vld [vmem:[#allocation71_spill] sm:$0xff] }
 0x46a   :  { %10380 = vst [vmem:[#allocation43_spill] sm:$0xff] %v8121_v17  ;;  %v8141_v28 = vmul.f32 %v3410_v32, %v3141_v25 }
 0x46b   :  { %10381 = vst [vmem:[#allocation69_spill] sm:$0xff] %v8125_v7  ;;  %v3094_v41 = vsub.f32 %v3014_v63, %v3054_v61  ;;  %v10391_v7 = vld [vmem:[#allocation82_spill] sm:$0xff] }
 0x46c   :  { %2679 = vadd.xlane.f32.xlu2 %v2678_v45  ;;  %10383 = vst [vmem:[#allocation113_spill] sm:$0xff] %v8141_v28  ;;  %v8152_v8 = vmul.f32 %v8141_v28, %v7989_v52  ;;  %v10388_v28 = vld [vmem:[#allocation13_spill] sm:$0xff] }
 0x46d   :  { %v5022_v21 = vpop.eup %5021  ;;  %4258 = vperm.xlu0 %4848, %v3732_v15   ;;  %v8176_v17 = vadd.f32 1e-05, %v3094_v41 }
 0x46e   :  { %v3432_v54 = vmul.f32 %v5022_v21, %v8099_v6  ;;  %v2944_v42 = vpop.xlane.xlu2 %2943  ;;  %v2664_v44 = vpop.xlane.xlu1 %2663  ;;  %10384 = vst [vmem:[#allocation114_spill] sm:$0xff] %v8152_v8  ;;  %vm3438_vm7 = vweird.f32 %v5022_v21 }
 0x46f   :  { %v8154_v51 = vmul.f32 0.0051020407, %v2664_v44  ;;  %v8156_v25 = vpop.eup %5023  ;;  %v8159_v15 = vmul.f32 0.0051020407, %v2944_v42  ;;  %v2044_v44 = vpop.f32.mrf.mxu2  ;;  %5025 = vrsqrt.f32 %v8176_v17  ;;  %vm3439_vm9 = vmor %vm3437_vm8, %vm3438_vm7  ;;  %vm3337_vm15 = vweird.f32 %v8176_v17 }
 0x470   :  { %v3433_v45 = vmul.f32 %v5022_v21, %v3432_v54  ;;  %v3322_v52 = vmul.f32 %v8156_v25, %v8101_v46  ;;  %v1908_v54 = vadd.f32 %v10389_v26, %v10388_v28  ;;  %vm3328_vm10 = vweird.f32 %v8156_v25 }
 0x471   :  { %10385 = vst [vmem:[#allocation115_spill] sm:$0xff] %v8154_v51  ;;  %v8163_v32 = vmul.f32 %v8154_v51, %v8154_v51  ;;  %v8174_v51 = vadd.f32 %v10391_v7, %v10390_v40  ;;  %vm3329_vm12 = vmor %vm3327_vm11, %vm3328_vm10 }
 0x472   :  { %10386 = vst [vmem:[#allocation116_spill] sm:$0xff] %v8159_v15  ;;  %v3434_v42 = vmul.f32 0.5, %v3433_v45  ;;  %v8178_v58 = vadd.f32 %v2044_v44, %v1908_v54  ;;  %v3323_v55 = vmul.f32 %v8156_v25, %v3322_v52 }
 0x473   :  { %10387 = vst [vmem:[#allocation117_spill] sm:$0xff] %v8163_v32  ;;  %v2581_v41 = vsel %vm2560_vm6, %v8174_v51, 0.0 }
 0x474   :  { %2859 = vadd.xlane.f32.xlu2 %v2858_v9  ;;  %10392 = vst [vmem:[#allocation13_spill] sm:$0xff] %v8174_v51  ;;  %v3435_v32 = vsub.f32 1.5, %v3434_v42  ;;  %v2582_v40 = vadd.f32 %v2581_v41, %v8178_v58  ;;  %v3324_v7 = vmul.f32 0.5, %v3323_v55 }
 0x475   :  { %10393 = vst [vmem:[#allocation46_spill] sm:$0xff] %v8178_v58 }
 0x476   :  { %v2668_v24 = vpop.xlane.xlu2 %2667  ;;  %v2948_v61 = vpop.xlane.xlu0 %2947  ;;  %v3436_v52 = vmul.f32 %v5022_v21, %v3435_v32  ;;  %v3325_v54 = vsub.f32 1.5, %v3324_v7 }
 0x477   :  { %v8181_v63 = vmul.f32 0.0051020407, %v2668_v24  ;;  %v2564_v8 = vpop.xlane.xlu1 %2563  ;;  %v3027_v9 = vmul.f32 0.0051020407, %v2948_v61  ;;  %v8196_v24 = vpop.eup %5025 }
 0x478   :  { %3898 = vperm.xlu1 %4849, %v8097_v37   ;;  %v8190_v44 = vmul.f32 0.0051020407, %v2564_v8  ;;  %v3144_v8 = vld [vmem:[%s10007_s6 + $0xb8] sm:$0xff]  ;;  %v3440_v55 = vsel %vm3439_vm9, %v5022_v21, %v3436_v52  ;;  %v3326_v41 = vmul.f32 %v8156_v25, %v3325_v54  ;;  %vm3338_vm13 = vweird.f32 %v8196_v24 }
 0x479   :  { %v3067_v28 = vmul.f32 %v8181_v63, %v8181_v63  ;;  %vm8287_vm0 = vmor %vm3337_vm15, %vm3338_vm13 }
 0x47a   :  { %v3041_v61 = vmul.f32 %v8190_v44, %v8190_v44 }
 0x47b   :  { %v3107_v45 = vsub.f32 %v3027_v9, %v3067_v28  ;;  %v8203_v9 = vmul.f32 %v3440_v55, %v3144_v8 }
 0x47c   :  { %2583 = vadd.xlane.f32.xlu2 %v2582_v40  ;;  %v3332_v40 = vmul.f32 %v8196_v24, %v8176_v17 }
 0x47d   :  { %v8192_v26 = vadd.f32 1e-05, %v3107_v45  ;;  %10394 = vst [vmem:[#allocation71_spill] sm:$0xff] %v8203_v9  ;;  %v8213_v45 = vmul.f32 %v8203_v9, %v8085_v47  ;;  %v3133_v47 = vld [vmem:[%s10007_s6 + $0x60] sm:$0xff]  ;;  %v2394_v9 = vadd.f32 %v7725_v49, %v7755_v20  ;;  %v10400_v49 = vld [vmem:[#allocation5_spill] sm:$0xff] }
 0x47e   :  { %v2568_v37 = vpop.xlane.xlu2 %2567  ;;  %v2672_v28 = vpop.xlane.xlu0 %2671 }
 0x47f   :  { %5027 = vrsqrt.f32 %v8192_v26  ;;  %v2844_v42 = vpop.xlane.xlu1 %2843  ;;  %v8209_v7 = vmul.f32 0.0051020407, %v2568_v37  ;;  %10395 = vst [vmem:[#allocation82_spill] sm:$0xff] %v8213_v45  ;;  %vm3467_vm1 = vweird.f32 %v8192_v26 }
 0x480   :  { %v3001_v32 = vmul.f32 0.0051020407, %v2844_v42  ;;  %v8215_v42 = vmul.f32 0.0051020407, %v2672_v28 }
 0x481   :  { %v3042_v8 = vmul.f32 %v8209_v7, %v8209_v7 }
 0x482   :  { %v3081_v6 = vsub.f32 %v3001_v32, %v3041_v61  ;;  %10396 = vst [vmem:[#allocation118_spill] sm:$0xff] %v8215_v42  ;;  %v3330_v61 = vsel %vm3329_vm12, %v8156_v25, %v3326_v41  ;;  %v3333_v32 = vmul.f32 %v8196_v24, %v3332_v40 }
 0x483   :  { %v8241_v25 = vmul.f32 %v3330_v61, %v3133_v47  ;;  %v1983_v47 = vadd.f32 %v7464_v23, %v10400_v49 }
 0x484   :  { %v8217_v21 = vadd.f32 1e-05, %v3081_v6  ;;  %v8235_v6 = vmul.f32 %v8215_v42, %v8215_v42  ;;  %v3334_v40 = vmul.f32 0.5, %v3333_v32  ;;  %v8250_v42 = vadd.f32 %v7904_v62, %v2394_v9  ;;  %v3653_v32 = vld [vmem:[%s10008_s7 + $0x60] sm:$0xff]  ;;  %v3779_v9 = vld [vmem:[%s10009_s2 + $0x90] sm:$0xff] }
 0x485   :  { %v8219_v52 = vpop.eup %5027  ;;  %v3693_v20 = vmul.f32 %v8241_v25, %v8074_v27 }
 0x486   :  { %v3462_v54 = vmul.f32 %v8219_v52, %v8192_v26  ;;  %5029 = vrsqrt.f32 %v8217_v21  ;;  %v2848_v37 = vpop.xlane.xlu2 %2847  ;;  %10397 = vst [vmem:[#allocation119_spill] sm:$0xff] %v8235_v6  ;;  %v3335_v61 = vsub.f32 1.5, %v3334_v40  ;;  %v2681_v23 = vsel %vm2560_vm6, %v8250_v42, 0.0  ;;  %v10401_v40 = vld [vmem:[#allocation90_spill] sm:$0xff] }
 0x487   :  { %v3002_v55 = vmul.f32 0.0051020407, %v2848_v37  ;;  %v2952_v46 = vpop.xlane.xlu1 %2951  ;;  %10399 = vst [vmem:[#allocation121_spill] sm:$0xff] %v8250_v42  ;;  %v3733_v49 = vsub.f32 %v3653_v32, %v3693_v20  ;;  %vm3468_vm14 = vweird.f32 %v8219_v52  ;;  %vm3207_vm4 = vweird.f32 %v8217_v21 }
 0x488   :  { %v3463_v28 = vmul.f32 %v8219_v52, %v3462_v54  ;;  %v8237_v45 = vmul.f32 0.0051020407, %v2952_v46  ;;  %vm3469_vm2 = vmor %vm3467_vm1, %vm3468_vm14 }
 0x489   :  { %v3082_v15 = vsub.f32 %v3002_v55, %v3042_v8  ;;  %v3780_v8 = vld [vmem:[%s10009_s2 + $0x98] sm:$0xff] }
 0x48a   :  { %10398 = vst [vmem:[#allocation120_spill] sm:$0xff] %v8237_v45  ;;  %v3464_v54 = vmul.f32 0.5, %v3463_v28  ;;  %v3336_v45 = vmul.f32 %v8196_v24, %v3335_v61 }
 0x48b   :  { %v8245_v37 = vadd.f32 1e-05, %v3082_v15 }
 0x48c   :  { %v8247_v60 = vpop.eup %5029  ;;  %v3465_v62 = vsub.f32 1.5, %v3464_v54  ;;  %v10402_v54 = vld [vmem:[#allocation35_spill] sm:$0xff]  ;;  %v3340_v17 = vsel %vm8287_vm0, %v8196_v24, %v3336_v45  ;;  %v3121_v45 = vld [vmem:[%s10007_s6] sm:$0xff] }
 0x48d   :  { %v3202_v46 = vmul.f32 %v8247_v60, %v8217_v21  ;;  %5031 = vrsqrt.f32 %v8245_v37  ;;  %v8276_v6 = vadd.f32 %v10402_v54, %v1983_v47  ;;  %vm3208_vm3 = vweird.f32 %v8247_v60 }
 0x48e   :  { %v3466_v22 = vmul.f32 %v8219_v52, %v3465_v62  ;;  %v4249_v20 = vpop.permute.xlu2 %4248  ;;  %vm3209_vm5 = vmor %vm3207_vm4, %vm3208_vm3  ;;  %vm3217_vm8 = vweird.f32 %v8245_v37 }
 0x48f   :  { %v3203_v15 = vmul.f32 %v8247_v60, %v3202_v46  ;;  %10403 = vst [vmem:[#allocation5_spill] sm:$0xff] %v8276_v6  ;;  %v2682_v47 = vadd.f32 %v2681_v23, %v8276_v6  ;;  %v8327_v54 = vpop.xlane.xlu1 %2675 }
 0x491   :  { %v3889_v27 = vpop.permute.xlu0 %3888  ;;  %v3204_v55 = vmul.f32 0.5, %v3203_v15 }
 0x492   :  { %v4059_v28 = vmul.f32 %v3889_v27, %v7305_v0  ;;  %v4060_v46 = vmul.f32 %v3889_v27, %v10401_v40 }
 0x493   :  { %v8273_v41 = vpop.eup %5031  ;;  %v3205_v32 = vsub.f32 1.5, %v3204_v55  ;;  %v3147_v55 = vld [vmem:[%s10007_s6 + $0xd0] sm:$0xff] }
 0x494   :  { %v3212_v15 = vmul.f32 %v8273_v41, %v8245_v37  ;;  %v4139_v0 = vadd.f32 %v4059_v28, %v3779_v9  ;;  %v4140_v48 = vadd.f32 %v4060_v46, %v3780_v8  ;;  %4263 = vperm.xlu2 %4850, %v3733_v49   ;;  %v3134_v9 = vld [vmem:[%s10007_s6 + $0x68] sm:$0xff]  ;;  %vm3218_vm7 = vweird.f32 %v8273_v41 }
 0x495   :  { %v8306_v46 = vmul.f32 %v3340_v17, %v3134_v9  ;;  %v3206_v49 = vmul.f32 %v8247_v60, %v3205_v32  ;;  %vm3219_vm9 = vmor %vm3217_vm8, %vm3218_vm7  ;;  %v3122_v17 = vld [vmem:[%s10007_s6 + $0x8] sm:$0xff] }
 0x496   :  { %v3213_v62 = vmul.f32 %v8273_v41, %v3212_v15  ;;  %v4419_v27 = vadd.f32 %v4249_v20, %v4139_v0  ;;  %v4420_v40 = vadd.f32 %v4249_v20, %v4140_v48  ;;  %v3470_v48 = vsel %vm3469_vm2, %v8219_v52, %v3466_v22  ;;  %v3894_v15 = vpop.permute.xlu2 %3893 }
 0x497   :  { %2683 = vadd.xlane.f32.xlu0 %v2682_v47  ;;  %v8304_v28 = vmul.f32 %v3470_v48, %v3147_v55  ;;  %v3210_v52 = vsel %vm3209_vm5, %v8247_v60, %v3206_v49  ;;  %v2577_v0 = vsel %vm2560_vm6, %v8115_v3, 0.0  ;;  %v2822_v47 = vmul.f32 %v8250_v42, %v8250_v42 }
 0x498   :  { %v3214_v26 = vmul.f32 0.5, %v3213_v62  ;;  %v4499_v8 = vmax.f32 %v4419_v27, 0.0  ;;  %v4500_v23 = vmax.f32 %v4420_v40, 0.0  ;;  %v2578_v20 = vadd.f32 %v2577_v0, %v8132_v11  ;;  %v3781_v62 = vld [vmem:[%s10009_s2 + $0xa0] sm:$0xff]  ;;  %v3782_v27 = vld [vmem:[%s10009_s2 + $0xa8] sm:$0xff] }
 0x499   :  { %v8319_v22 = vmul.f32 %v8304_v28, %v8181_v63  ;;  %v8331_v63 = vmul.f32 %v3210_v52, %v3121_v45  ;;  %v4061_v61 = vmul.f32 %v3894_v15, %v7336_v5  ;;  %v4062_v32 = vmul.f32 %v3894_v15, %v7340_v50 }
 0x49a   :  { %4579 = vst [vmem:[%s10010_s8 + $0x90] sm:$0xff] %v4499_v8  ;;  %v3215_v24 = vsub.f32 1.5, %v3214_v26  ;;  %v2961_v37 = vsel %vm2560_vm6, %v2822_v47, 0.0  ;;  %v2821_v50 = vmul.f32 %v8276_v6, %v8276_v6  ;;  %v8388_v0 = vmul.f32 0.0051020407, %v7906_v1 }
 0x49b   :  { %4580 = vst.msk [vmem:[%s10010_s8 + $0x98] sm:$0xff] %vm2560_vm6, %v4500_v23  ;;  %v8340_v60 = vmul.f32 %v8331_v63, %v8190_v44  ;;  %v2397_v44 = vadd.f32 %v7759_v12, %v7780_v4  ;;  %v4141_v5 = vadd.f32 %v4061_v61, %v3781_v62  ;;  %v4142_v9 = vadd.f32 %v4062_v32, %v3782_v27  ;;  %v10407_v4 = vld [vmem:[#allocation7_spill] sm:$0xff] }
 0x49c   :  { %3908 = vperm.xlu2 %4850, %v8306_v46   ;;  %v3216_v21 = vmul.f32 %v8273_v41, %v3215_v24  ;;  %v1986_v49 = vadd.f32 %v7494_v39, %v10407_v4  ;;  %v3055_v61 = vmul.f32 %v8388_v0, %v8388_v0  ;;  %v3015_v27 = vmul.f32 0.0051020407, %v7885_v33 }
 0x49d   :  { %v8363_v48 = vadd.f32 %v7918_v16, %v2397_v44  ;;  %v10410_v44 = vld [vmem:[#allocation12_spill] sm:$0xff]  ;;  %v10412_v33 = vsub.f32 %v7910_v35, %v7914_v14 }
 0x49e   :  { %v3220_v40 = vsel %vm3219_vm9, %v8273_v41, %v3216_v21  ;;  %v2962_v41 = vadd.f32 %v2961_v37, %v2821_v50  ;;  %v2047_v21 = vpop.f32.mrf.mxu2  ;;  %v1989_v1 = vadd.f32 %v7522_v30, %v10410_v44  ;;  %v3654_v30 = vld [vmem:[%s10008_s7 + $0x68] sm:$0xff]  ;;  %v3017_v44 = vmul.f32 0.0051020407, %v7924_v59  ;;  %v10422_v59 = vld [vmem:[#allocation49_spill] sm:$0xff] }
 0x49f   :  { %v8360_v8 = vmul.f32 %v3220_v40, %v3122_v17  ;;  %10406 = vst [vmem:[#allocation90_spill] sm:$0xff] %v8363_v48  ;;  %v2685_v16 = vsel %vm2560_vm6, %v8363_v48, 0.0  ;;  %v8412_v17 = vadd.f32 1e-05, %v10412_v33 }
 0x4a1   :  { %v8367_v12 = vmul.f32 %v8360_v8, %v8209_v7  ;;  %v10408_v7 = vld [vmem:[#allocation37_spill] sm:$0xff]  ;;  %5033 = vrsqrt.f32 %v8412_v17  ;;  %vm3357_vm14 = vweird.f32 %v8412_v17 }
 0x4a2   :  { %2579 = vadd.xlane.f32.xlu1 %v2578_v20  ;;  %v8382_v52 = vadd.f32 %v10408_v7, %v1986_v49  ;;  %v2400_v20 = vadd.f32 %v7786_v31, %v7816_v18  ;;  %v3694_v18 = vmul.f32 %v8306_v46, %v8135_v2 }
 0x4a4   :  { %10409 = vst [vmem:[#allocation35_spill] sm:$0xff] %v8382_v52  ;;  %v2686_v39 = vadd.f32 %v2685_v16, %v8382_v52  ;;  %v2823_v62 = vmul.f32 %v8382_v52, %v8382_v52  ;;  %v8403_v37 = vadd.f32 %v7932_v13, %v2400_v20  ;;  %v3734_v14 = vsub.f32 %v3654_v30, %v3694_v18 }
 0x4a6   :  { %10411 = vst [vmem:[#allocation7_spill] sm:$0xff] %v8403_v37  ;;  %v2050_v2 = vpop.f32.mrf.mxu2  ;;  %v2689_v46 = vsel %vm2560_vm6, %v8403_v37, 0.0 }
 0x4a7   :  { %v4254_v26 = vpop.permute.xlu1 %4253 }
 0x4a8   :  { %v4421_v23 = vadd.f32 %v4254_v26, %v4141_v5  ;;  %v4422_v55 = vadd.f32 %v4254_v26, %v4142_v9  ;;  %v3095_v5 = vsub.f32 %v3015_v27, %v3055_v61  ;;  %v10413_v26 = vld [vmem:[#allocation19_spill] sm:$0xff]  ;;  %v8453_v27 = vpop.eup %5033 }
 0x4a9   :  { %vm3358_vm12 = vweird.f32 %v8453_v27 }
 0x4aa   :  { %v4501_v24 = vmax.f32 %v4421_v23, 0.0  ;;  %v4502_v45 = vmax.f32 %v4422_v55, 0.0  ;;  %2963 = vadd.xlane.f32.xlu1 %v2962_v41  ;;  %v10414_v23 = vld [vmem:[#allocation52_spill] sm:$0xff]  ;;  %v10415_v41 = vld [vmem:[#allocation39_spill] sm:$0xff]  ;;  %v8424_v49 = vadd.f32 1e-05, %v3095_v5  ;;  %vm3359_vm1 = vmor %vm3357_vm14, %vm3358_vm12 }
 0x4ab   :  { %3903 = vperm.xlu0 %4848, %v8241_v25   ;;  %v2824_v25 = vmul.f32 %v8363_v48, %v8363_v48  ;;  %v1914_v55 = vadd.f32 %v10414_v23, %v10413_v26  ;;  %v8422_v4 = vadd.f32 %v10415_v41, %v1989_v1  ;;  %v10421_v23 = vld [vmem:[#allocation16_spill] sm:$0xff] }
 0x4ac   :  { %4581 = vst [vmem:[%s10010_s8 + $0xa0] sm:$0xff] %v4501_v24  ;;  %v10417_v24 = vld [vmem:[#allocation75_spill] sm:$0xff]  ;;  %vm3347_vm0 = vweird.f32 %v8424_v49 }
 0x4ad   :  { %4582 = vst.msk [vmem:[%s10010_s8 + $0xa8] sm:$0xff] %vm2560_vm6, %v4502_v45  ;;  %v2965_v47 = vsel %vm2560_vm6, %v2824_v25, 0.0  ;;  %v10418_v45 = vld [vmem:[#allocation86_spill] sm:$0xff]  ;;  %v8433_v7 = vadd.f32 %v2050_v2, %v1914_v55  ;;  %v2772_v25 = vmul.f32 %v8174_v51, %v8174_v51  ;;  %v1911_v55 = vadd.f32 %v10422_v59, %v10421_v23 }
 0x4ae   :  { %v2966_v40 = vadd.f32 %v2965_v47, %v2823_v62  ;;  %10416 = vst [vmem:[#allocation37_spill] sm:$0xff] %v8422_v4  ;;  %v8430_v16 = vadd.f32 %v10418_v45, %v10417_v24  ;;  %v10423_v2 = vld [vmem:[#allocation22_spill] sm:$0xff]  ;;  %v10426_v24 = vld [vmem:[#allocation84_spill] sm:$0xff] }
 0x4af   :  { %10420 = vst [vmem:[#allocation19_spill] sm:$0xff] %v8433_v7  ;;  %v2775_v62 = vmul.f32 %v8433_v7, %v8433_v7 }
 0x4b0   :  { %10419 = vst [vmem:[#allocation12_spill] sm:$0xff] %v8430_v16  ;;  %v2776_v20 = vmul.f32 %v8430_v16, %v8430_v16 }
 0x4b2   :  { %2687 = vadd.xlane.f32.xlu1 %v2686_v39  ;;  %v8436_v39 = vmul.f32 0.0051020407, %v7934_v57  ;;  %v2771_v57 = vmul.f32 %v8178_v58, %v8178_v58  ;;  %v2869_v18 = vsel %vm2560_vm6, %v2776_v20, 0.0 }
 0x4b3   :  { %v2870_v30 = vadd.f32 %v2869_v18, %v2775_v62 }
 0x4b4   :  { %v3057_v47 = vmul.f32 %v8436_v39, %v8436_v39 }
 0x4bc   :  { %v2572_v15 = vpop.xlane.xlu0 %2571 }
 0x4bd   :  { %v8395_v32 = vmul.f32 0.0051020407, %v2572_v15  ;;  %v2690_v15 = vadd.f32 %v2689_v46, %v8422_v4  ;;  %v10424_v46 = vld [vmem:[#allocation55_spill] sm:$0xff] }
 0x4be   :  { %v1917_v41 = vadd.f32 %v10424_v46, %v10423_v2 }
 0x4bf   :  { %v3043_v9 = vmul.f32 %v8395_v32, %v8395_v32 }
 0x4c4   :  { %v2852_v31 = vpop.xlane.xlu0 %2851 }
 0x4c5   :  { %v3003_v50 = vmul.f32 0.0051020407, %v2852_v31  ;;  %2967 = vadd.xlane.f32.xlu2 %v2966_v40  ;;  %v2861_v31 = vsel %vm2560_vm6, %v2772_v25, 0.0  ;;  %v10429_v25 = vld [vmem:[#allocation88_spill] sm:$0xff] }
 0x4c6   :  { %v2862_v33 = vadd.f32 %v2861_v31, %v2771_v57  ;;  %v8481_v57 = vadd.f32 %v2047_v21, %v1911_v55 }
 0x4c7   :  { %v3083_v13 = vsub.f32 %v3003_v50, %v3043_v9  ;;  %v3352_v9 = vmul.f32 %v8453_v27, %v8412_v17  ;;  %v3097_v50 = vsub.f32 %v3017_v44, %v3057_v47  ;;  %v3783_v17 = vld [vmem:[%s10009_s2 + $0xb0] sm:$0xff] }
 0x4c8   :  { %10431 = vst [vmem:[#allocation75_spill] sm:$0xff] %v8481_v57 }
 0x4c9   :  { %v8426_v35 = vadd.f32 1e-05, %v3083_v13  ;;  %v2053_v13 = vpop.f32.mrf.mxu2  ;;  %v3353_v62 = vmul.f32 %v8453_v27, %v3352_v9  ;;  %v8484_v44 = vadd.f32 1e-05, %v3097_v50 }
 0x4cb   :  { %5035 = vrsqrt.f32 %v8426_v35  ;;  %4268 = vperm.xlu1 %4849, %v3734_v14   ;;  %v10425_v14 = vld [vmem:[#allocation73_spill] sm:$0xff]  ;;  %v3354_v50 = vmul.f32 0.5, %v3353_v62  ;;  %vm3227_vm11 = vweird.f32 %v8426_v35  ;;  %vm3367_vm5 = vweird.f32 %v8484_v44 }
 0x4cc   :  { %5037 = vrsqrt.f32 %v8424_v49  ;;  %v8473_v45 = vadd.f32 %v10426_v24, %v10425_v14 }
 0x4cd   :  { %2691 = vadd.xlane.f32.xlu2 %v2690_v15  ;;  %v10428_v15 = vld [vmem:[#allocation78_spill] sm:$0xff]  ;;  %5039 = vrsqrt.f32 %v8484_v44  ;;  %v3355_v24 = vsub.f32 1.5, %v3354_v50 }
 0x4ce   :  { %10427 = vst [vmem:[#allocation52_spill] sm:$0xff] %v8473_v45  ;;  %v8477_v20 = vadd.f32 %v10429_v25, %v10428_v15  ;;  %v2960_v15 = vpop.xlane.xlu0 %2959 }
 0x4cf   :  { %v8447_v61 = vpop.xlane.xlu2 %2955 }
 0x4d0   :  { %10430 = vst [vmem:[#allocation39_spill] sm:$0xff] %v8477_v20  ;;  %v2593_v9 = vsel %vm2560_vm6, %v8477_v20, 0.0 }
 0x4d1   :  { %v8455_v40 = vpop.eup %5035 }
 0x4d2   :  { %v3222_v1 = vmul.f32 %v8455_v40, %v8426_v35  ;;  %v8462_v5 = vpop.eup %5037  ;;  %v2856_v31 = vpop.xlane.xlu1 %2855  ;;  %vm3228_vm10 = vweird.f32 %v8455_v40 }
 0x4d3   :  { %v3342_v47 = vmul.f32 %v8462_v5, %v8424_v49  ;;  %v8493_v2 = vmul.f32 0.0051020407, %v2856_v31  ;;  %vm3229_vm13 = vmor %vm3227_vm11, %vm3228_vm10  ;;  %vm3348_vm15 = vweird.f32 %v8462_v5 }
 0x4d4   :  { %v3223_v26 = vmul.f32 %v8455_v40, %v3222_v1  ;;  %v8486_v1 = vadd.f32 %v2053_v13, %v1917_v41  ;;  %v2826_v41 = vmul.f32 %v8403_v37, %v8403_v37  ;;  %vm8549_vm2 = vmor %vm3347_vm0, %vm3348_vm15 }
 0x4d5   :  { %2863 = vadd.xlane.f32.xlu0 %v2862_v33  ;;  %2871 = vadd.xlane.f32.xlu2 %v2870_v30  ;;  %v2585_v30 = vsel %vm2560_vm6, %v8473_v45, 0.0  ;;  %v3343_v59 = vmul.f32 %v8462_v5, %v3342_v47 }
 0x4d6   :  { %10432 = vst [vmem:[#allocation86_spill] sm:$0xff] %v8486_v1  ;;  %v3224_v23 = vmul.f32 0.5, %v3223_v26  ;;  %v2586_v13 = vadd.f32 %v2585_v30, %v8481_v57  ;;  %v2594_v26 = vadd.f32 %v2593_v9, %v8486_v1  ;;  %v2969_v31 = vsel %vm2560_vm6, %v2826_v41, 0.0  ;;  %v3123_v41 = vld [vmem:[%s10007_s6 + $0x10] sm:$0xff] }
 0x4d7   :  { %v2576_v18 = vpop.xlane.xlu2 %2575  ;;  %v3344_v14 = vmul.f32 0.5, %v3343_v59  ;;  %v3030_v30 = vmul.f32 0.0051020407, %v2960_v15 }
 0x4d8   :  { %v8488_v33 = vmul.f32 0.0051020407, %v2576_v18  ;;  %v3225_v55 = vsub.f32 1.5, %v3224_v23  ;;  %v8513_v18 = vpop.eup %5039  ;;  %v2825_v23 = vmul.f32 %v8422_v4, %v8422_v4 }
 0x4d9   :  { %v3345_v9 = vsub.f32 1.5, %v3344_v14  ;;  %vm3368_vm3 = vweird.f32 %v8513_v18 }
 0x4da   :  { %v8497_v21 = vmul.f32 %v8488_v33, %v8488_v33  ;;  %v3226_v47 = vmul.f32 %v8455_v40, %v3225_v55  ;;  %v2970_v50 = vadd.f32 %v2969_v31, %v2825_v23  ;;  %vm3369_vm7 = vmor %vm3367_vm5, %vm3368_vm3 }
 0x4dc   :  { %v3230_v35 = vsel %vm3229_vm13, %v8455_v40, %v3226_v47  ;;  %v3346_v47 = vmul.f32 %v8462_v5, %v3345_v9 }
 0x4dd   :  { %2587 = vadd.xlane.f32.xlu0 %v2586_v13  ;;  %2595 = vadd.xlane.f32.xlu2 %v2594_v26  ;;  %v3356_v13 = vmul.f32 %v8453_v27, %v3355_v24  ;;  %v3362_v26 = vmul.f32 %v8513_v18, %v8484_v44  ;;  %v8528_v15 = vmul.f32 %v3230_v35, %v3123_v41 }
 0x4df   :  { %v2680_v25 = vpop.xlane.xlu2 %2679  ;;  %v8534_v24 = vmul.f32 %v8528_v15, %v8395_v32  ;;  %v3360_v31 = vsel %vm3359_vm1, %v8453_v27, %v3356_v13  ;;  %v3363_v40 = vmul.f32 %v8513_v18, %v3362_v26  ;;  %v3784_v32 = vld [vmem:[%s10009_s2 + $0xb8] sm:$0xff]  ;;  %v3350_v13 = vsel %vm8549_vm2, %v8462_v5, %v3346_v47  ;;  %v4259_v35 = vpop.permute.xlu0 %4258 }
 0x4e0   :  { %v8510_v62 = vmul.f32 0.0051020407, %v2680_v25  ;;  %v3136_v25 = vld [vmem:[%s10007_s6 + $0x78] sm:$0xff] }
 0x4e1   :  { %v8553_v27 = vmul.f32 %v3360_v31, %v3136_v25  ;;  %v3364_v49 = vmul.f32 0.5, %v3363_v40  ;;  %v2773_v25 = vmul.f32 %v8481_v57, %v8481_v57  ;;  %v3656_v5 = vld [vmem:[%s10008_s7 + $0x78] sm:$0xff] }
 0x4e2   :  { %v3070_v59 = vmul.f32 %v8510_v62, %v8510_v62 }
 0x4e3   :  { %v3365_v46 = vsub.f32 1.5, %v3364_v49 }
 0x4e4   :  { %v3110_v55 = vsub.f32 %v3030_v30, %v3070_v59 }
 0x4e5   :  { %2971 = vadd.xlane.f32.xlu0 %v2970_v50  ;;  %v3135_v50 = vld [vmem:[%s10007_s6 + $0x70] sm:$0xff]  ;;  %v3366_v49 = vmul.f32 %v8513_v18, %v3365_v46 }
 0x4e6   :  { %v3190_v14 = vadd.f32 1e-05, %v3110_v55 }
 0x4e8   :  { %5041 = vrsqrt.f32 %v3190_v14  ;;  %vm3497_vm8 = vweird.f32 %v3190_v14 }
 0x4ea   :  { %v3899_v23 = vpop.permute.xlu1 %3898 }
 0x4eb   :  { %v4063_v59 = vmul.f32 %v3899_v23, %v7368_v53  ;;  %v4064_v9 = vmul.f32 %v3899_v23, %v7372_v10  ;;  %v2774_v53 = vmul.f32 %v8473_v45, %v8473_v45  ;;  %v3696_v10 = vmul.f32 %v8553_v27, %v7908_v19 }
 0x4ec   :  { %v3615_v23 = vmul.f32 %v3350_v13, %v3135_v50 }
 0x4ed   :  { %v4143_v26 = vadd.f32 %v4063_v59, %v3783_v17  ;;  %v4144_v55 = vadd.f32 %v4064_v9, %v3784_v32  ;;  %v2865_v30 = vsel %vm2560_vm6, %v2774_v53, 0.0  ;;  %v3736_v9 = vsub.f32 %v3656_v5, %v3696_v10 }
 0x4ee   :  { %v5042_v41 = vpop.eup %5041  ;;  %v2866_v19 = vadd.f32 %v2865_v30, %v2773_v25  ;;  %v3695_v50 = vmul.f32 %v3615_v23, %v8388_v0  ;;  %v3150_v0 = vld [vmem:[%s10007_s6 + $0xe8] sm:$0xff] }
 0x4ef   :  { %v3492_v31 = vmul.f32 %v5042_v41, %v3190_v14  ;;  %v4423_v40 = vadd.f32 %v4259_v35, %v4143_v26  ;;  %v4424_v37 = vadd.f32 %v4259_v35, %v4144_v55  ;;  %vm3498_vm4 = vweird.f32 %v5042_v41  ;;  %v3137_v55 = vld [vmem:[%s10007_s6 + $0x80] sm:$0xff]  ;;  %v2860_v14 = vpop.xlane.xlu2 %2859 }
 0x4f0   :  { %v3370_v35 = vsel %vm3369_vm7, %v8513_v18, %v3366_v49  ;;  %vm3499_vm9 = vmor %vm3497_vm8, %vm3498_vm4 }
 0x4f1   :  { %v3493_v47 = vmul.f32 %v5042_v41, %v3492_v31  ;;  %v4503_v17 = vmax.f32 %v4423_v40, 0.0  ;;  %v4504_v32 = vmax.f32 %v4424_v37, 0.0  ;;  %v3655_v37 = vld [vmem:[%s10008_s7 + $0x70] sm:$0xff]  ;;  %v8596_v44 = vmul.f32 %v3370_v35, %v3137_v55 }
 0x4f2   :  { %v3735_v26 = vsub.f32 %v3655_v37, %v3695_v50  ;;  %v2406_v31 = vadd.f32 %v7864_v56, %v7876_v34  ;;  %v10436_v34 = vld [vmem:[#allocation18_spill] sm:$0xff]  ;;  %v10437_v56 = vld [vmem:[#allocation76_spill] sm:$0xff]  ;;  %v10443_v50 = vld [vmem:[#allocation103_spill] sm:$0xff] }
 0x4f3   :  { %v3494_v59 = vmul.f32 0.5, %v3493_v47  ;;  %4583 = vst [vmem:[%s10010_s8 + $0xb0] sm:$0xff] %v4503_v17  ;;  %v1995_v30 = vadd.f32 %v10437_v56, %v10436_v34  ;;  %v10444_v37 = vld [vmem:[#allocation45_spill] sm:$0xff]  ;;  %v10449_v34 = vld [vmem:[#allocation92_spill] sm:$0xff] }
 0x4f4   :  { %4584 = vst.msk [vmem:[%s10010_s8 + $0xb8] sm:$0xff] %vm2560_vm6, %v4504_v32  ;;  %v8616_v32 = vmul.f32 0.0051020407, %v2860_v14  ;;  %v3786_v14 = vld [vmem:[%s10009_s2 + $0xc8] sm:$0xff] }
 0x4f5   :  { %v3495_v13 = vsub.f32 1.5, %v3494_v59  ;;  %2867 = vadd.xlane.f32.xlu1 %v2866_v19  ;;  %4278 = vperm.xlu2 %4850, %v3736_v9   ;;  %v10438_v59 = vld [vmem:[#allocation66_spill] sm:$0xff] }
 0x4f7   :  { %v3496_v46 = vmul.f32 %v5042_v41, %v3495_v13  ;;  %v8609_v47 = vpop.xlane.xlu2 %2583  ;;  %v8638_v13 = vadd.f32 %v10444_v37, %v1995_v30 }
 0x4f9   :  { %v3500_v25 = vsel %vm3499_vm9, %v5042_v41, %v3496_v46  ;;  %4273 = vperm.xlu0 %4848, %v3735_v26   ;;  %v2403_v41 = vadd.f32 %v7826_v29, %v7852_v43  ;;  %v8625_v29 = vadd.f32 %v10438_v59, %v2406_v31  ;;  %v10440_v43 = vld [vmem:[#allocation72_spill] sm:$0xff]  ;;  %10445 = vst [vmem:[#allocation22_spill] sm:$0xff] %v8638_v13  ;;  %v3785_v46 = vld [vmem:[%s10009_s2 + $0xc0] sm:$0xff]  ;;  %v10446_v31 = vld [vmem:[#allocation91_spill] sm:$0xff] }
 0x4fa   :  { %v8594_v53 = vmul.f32 %v3500_v25, %v3150_v0 }
 0x4fb   :  { %10439 = vst [vmem:[#allocation16_spill] sm:$0xff] %v8625_v29  ;;  %v8628_v19 = vadd.f32 %v10440_v43, %v2403_v41  ;;  %v2830_v55 = vmul.f32 %v8625_v29, %v8625_v29  ;;  %v10447_v41 = vld [vmem:[#allocation42_spill] sm:$0xff]  ;;  %v10450_v43 = vld [vmem:[#allocation63_spill] sm:$0xff] }
 0x4fc   :  { %v8600_v10 = vmul.f32 %v8594_v53, %v8510_v62  ;;  %v10435_v62 = vsub.f32 %v7954_v38, %v7958_v36  ;;  %v10442_v36 = vld [vmem:[#allocation15_spill] sm:$0xff] }
 0x4fd   :  { %3923 = vperm.xlu2 %4850, %v8596_v44   ;;  %10441 = vst [vmem:[#allocation49_spill] sm:$0xff] %v8628_v19  ;;  %v1992_v49 = vadd.f32 %v10443_v50, %v10442_v36  ;;  %v10451_v36 = vld [vmem:[#allocation64_spill] sm:$0xff] }
 0x4fe   :  { %v8614_v17 = vadd.f32 1e-05, %v10435_v62  ;;  %v2409_v50 = vadd.f32 %v10451_v36, %v10450_v43 }
 0x4ff   :  { %v8658_v62 = vadd.f32 %v10447_v41, %v1992_v49  ;;  %v4264_v37 = vpop.permute.xlu2 %4263  ;;  %v2829_v49 = vmul.f32 %v8638_v13, %v8638_v13 }
 0x500   :  { %5043 = vrsqrt.f32 %v8614_v17  ;;  %vm3387_vm11 = vweird.f32 %v8614_v17 }
 0x501   :  { %10448 = vst [vmem:[#allocation55_spill] sm:$0xff] %v8658_v62 }
 0x506   :  { %v5044_v4 = vpop.eup %5043 }
 0x507   :  { %vm3388_vm10 = vweird.f32 %v5044_v4 }
 0x508   :  { %vm3389_vm12 = vmor %vm3387_vm11, %vm3388_vm10 }
 0x50a   :  { %v2684_v40 = vpop.xlane.xlu0 %2683 }
 0x50b   :  { %v8630_v9 = vmul.f32 0.0051020407, %v2684_v40 }
 0x50d   :  { %v8647_v35 = vmul.f32 %v8630_v9, %v8630_v9 }
 0x50e   :  { %3913 = vperm.xlu1 %4849, %v3615_v23  }
 0x515   :  { %v2580_v18 = vpop.xlane.xlu1 %2579 }
 0x516   :  { %v8607_v5 = vmul.f32 0.0051020407, %v2580_v18  ;;  %v2693_v18 = vsel %vm2560_vm6, %v8628_v19, 0.0 }
 0x517   :  { %v2694_v38 = vadd.f32 %v2693_v18, %v8658_v62 }
 0x518   :  { %v8620_v23 = vmul.f32 %v8607_v5, %v8607_v5 }
 0x51d   :  { %v2964_v0 = vpop.xlane.xlu1 %2963  ;;  %v3904_v26 = vpop.permute.xlu0 %3903 }
 0x51e   :  { %v8649_v25 = vmul.f32 0.0051020407, %v2964_v0  ;;  %v4065_v40 = vmul.f32 %v3904_v26, %v10446_v31  ;;  %v4066_v56 = vmul.f32 %v3904_v26, %v10449_v34  ;;  %v2977_v31 = vsel %vm2560_vm6, %v2830_v55, 0.0 }
 0x51f   :  { %v2978_v34 = vadd.f32 %v2977_v31, %v2829_v49 }
 0x520   :  { %v4145_v59 = vadd.f32 %v4065_v40, %v3785_v46  ;;  %v4146_v0 = vadd.f32 %v4066_v56, %v3786_v14  ;;  %v3382_v46 = vmul.f32 %v5044_v4, %v8614_v17  ;;  %v10452_v40 = vld [vmem:[#allocation104_spill] sm:$0xff]  ;;  %v10454_v14 = vld [vmem:[#allocation21_spill] sm:$0xff]  ;;  %v10455_v56 = vld [vmem:[#allocation79_spill] sm:$0xff] }
 0x521   :  { %v8671_v30 = vadd.f32 %v10452_v40, %v2409_v50  ;;  %v1998_v18 = vadd.f32 %v10455_v56, %v10454_v14 }
 0x522   :  { %v4425_v45 = vadd.f32 %v4264_v37, %v4145_v59  ;;  %v4426_v41 = vadd.f32 %v4264_v37, %v4146_v0  ;;  %v3383_v36 = vmul.f32 %v5044_v4, %v3382_v46  ;;  %v10459_v37 = vld [vmem:[#allocation48_spill] sm:$0xff] }
 0x523   :  { %2695 = vadd.xlane.f32.xlu0 %v2694_v38  ;;  %10453 = vst [vmem:[#allocation73_spill] sm:$0xff] %v8671_v30  ;;  %v10457_v38 = vld [vmem:[#allocation38_spill] sm:$0xff]  ;;  %v2701_v50 = vsel %vm2560_vm6, %v8671_v30, 0.0  ;;  %v8688_v0 = vadd.f32 %v10459_v37, %v1998_v18 }
 0x524   :  { %v4505_v26 = vmax.f32 %v4425_v45, 0.0  ;;  %v4506_v43 = vmax.f32 %v4426_v41, 0.0  ;;  %v10456_v45 = vld [vmem:[#allocation6_spill] sm:$0xff]  ;;  %v3384_v49 = vmul.f32 0.5, %v3383_v36  ;;  %v3909_v41 = vpop.permute.xlu2 %3908 }
 0x525   :  { %v10458_v55 = vsub.f32 %v10456_v45, %v10457_v38  ;;  %10460 = vst [vmem:[#allocation84_spill] sm:$0xff] %v8688_v0  ;;  %v2702_v31 = vadd.f32 %v2701_v50, %v8688_v0  ;;  %v2688_v40 = vpop.xlane.xlu1 %2687  ;;  %v2828_v45 = vmul.f32 %v8628_v19, %v8628_v19  ;;  %v10462_v38 = vld [vmem:[#allocation93_spill] sm:$0xff]  ;;  %v10463_v36 = vld [vmem:[#allocation94_spill] sm:$0xff] }
 0x526   :  { %4585 = vst [vmem:[%s10010_s8 + $0xc0] sm:$0xff] %v4505_v26  ;;  %2979 = vadd.xlane.f32.xlu2 %v2978_v34  ;;  %v3385_v26 = vsub.f32 1.5, %v3384_v49  ;;  %v8693_v56 = vmul.f32 0.0051020407, %v2688_v40  ;;  %v4068_v50 = vmul.f32 %v3909_v41, %v10463_v36  ;;  %v3787_v40 = vld [vmem:[%s10009_s2 + $0xd0] sm:$0xff] }
 0x527   :  { %4586 = vst.msk [vmem:[%s10010_s8 + $0xc8] sm:$0xff] %vm2560_vm6, %v4506_v43  ;;  %v3180_v59 = vadd.f32 1e-05, %v10458_v55  ;;  %v2589_v43 = vsel %vm2560_vm6, %v8430_v16, 0.0  ;;  %v4067_v55 = vmul.f32 %v3909_v41, %v10462_v38  ;;  %v3788_v41 = vld [vmem:[%s10009_s2 + $0xd8] sm:$0xff]  ;;  %v2827_v38 = vmul.f32 %v8658_v62, %v8658_v62 }
 0x528   :  { %v3386_v14 = vmul.f32 %v5044_v4, %v3385_v26  ;;  %10461 = vst [vmem:[#allocation78_spill] sm:$0xff] %v8693_v56  ;;  %v2590_v18 = vadd.f32 %v2589_v43, %v8433_v7  ;;  %v8707_v17 = vmul.f32 %v8693_v56, %v8693_v56  ;;  %v10464_v7 = vld [vmem:[#allocation30_spill] sm:$0xff] }
 0x529   :  { %5045 = vrsqrt.f32 %v3180_v59  ;;  %vm3397_vm14 = vweird.f32 %v3180_v59 }
 0x52a   :  { %v3390_v49 = vsel %vm3389_vm12, %v5044_v4, %v3386_v14  ;;  %v2973_v4 = vsel %vm2560_vm6, %v2828_v45, 0.0  ;;  %v3659_v45 = vld [vmem:[%s10008_s7 + $0x90] sm:$0xff] }
 0x52b   :  { %v2974_v16 = vadd.f32 %v2973_v4, %v2827_v38 }
 0x52e   :  { %2703 = vadd.xlane.f32.xlu2 %v2702_v31  ;;  %v3139_v31 = vld [vmem:[%s10007_s6 + $0x90] sm:$0xff] }
 0x52f   :  { %v5046_v34 = vpop.eup %5045  ;;  %v8720_v14 = vmul.f32 %v3390_v49, %v3139_v31 }
 0x530   :  { %v3392_v46 = vmul.f32 %v5046_v34, %v3180_v59  ;;  %vm3398_vm13 = vweird.f32 %v5046_v34 }
 0x531   :  { %v3699_v51 = vmul.f32 %v8720_v14, %v10464_v7  ;;  %v2697_v7 = vsel %vm2560_vm6, %v8625_v29, 0.0  ;;  %vm3399_vm15 = vmor %vm3397_vm14, %vm3398_vm13 }
 0x532   :  { %v3393_v26 = vmul.f32 %v5046_v34, %v3392_v46  ;;  %v4147_v46 = vadd.f32 %v4067_v55, %v3787_v40  ;;  %v2698_v31 = vadd.f32 %v2697_v7, %v8638_v13  ;;  %v10491_v13 = vld [vmem:[#allocation40_spill] sm:$0xff] }
 0x534   :  { %v3394_v36 = vmul.f32 0.5, %v3393_v26 }
 0x536   :  { %v3395_v43 = vsub.f32 1.5, %v3394_v36 }
 0x537   :  { %3918 = vperm.xlu0 %4848, %v8553_v27  }
 0x538   :  { %2591 = vadd.xlane.f32.xlu1 %v2590_v18  ;;  %v2968_v37 = vpop.xlane.xlu2 %2967  ;;  %v4148_v18 = vadd.f32 %v4068_v50, %v3788_v41  ;;  %v3396_v55 = vmul.f32 %v5046_v34, %v3395_v43  ;;  %v8739_v50 = vmul.f32 0.0051020407, %v8609_v47 }
 0x539   :  { %v8709_v27 = vmul.f32 0.0051020407, %v2968_v37 }
 0x53a   :  { %v3400_v49 = vsel %vm3399_vm15, %v5046_v34, %v3396_v55 }
 0x53d   :  { %v4269_v37 = vpop.permute.xlu1 %4268 }
 0x53e   :  { %v4427_v19 = vadd.f32 %v4269_v37, %v4147_v46  ;;  %v4428_v57 = vadd.f32 %v4269_v37, %v4148_v18 }
 0x540   :  { %v4507_v58 = vmax.f32 %v4427_v19, 0.0  ;;  %v4508_v42 = vmax.f32 %v4428_v57, 0.0  ;;  %2975 = vadd.xlane.f32.xlu1 %v2974_v16  ;;  %v3739_v19 = vsub.f32 %v3659_v45, %v3699_v51  ;;  %v2277_v57 = vpop.f32.mrf.mxu3  ;;  %v2414_v16 = vpop.f32.mrf.mxu0  ;;  %v3046_v51 = vmul.f32 %v8739_v50, %v8739_v50 }
 0x541   :  { %v2692_v46 = vpop.xlane.xlu2 %2691 }
 0x542   :  { %4587 = vst [vmem:[%s10010_s8 + $0xd0] sm:$0xff] %v4507_v58  ;;  %v8754_v38 = vmul.f32 0.0051020407, %v2692_v46  ;;  %v2557_v46 = vpop.f32.mrf.mxu2 }
 0x543   :  { %4588 = vst.msk [vmem:[%s10010_s8 + $0xd8] sm:$0xff] %vm2560_vm6, %v4508_v42  ;;  %v3140_v42 = vld [vmem:[%s10007_s6 + $0x98] sm:$0xff] }
 0x544   :  { %v8747_v41 = vmul.f32 %v3400_v49, %v3140_v42  ;;  %v2777_v49 = vmul.f32 %v8486_v1, %v8486_v1 }
 0x546   :  { %4293 = vperm.xlu2 %4850, %v3739_v19   ;;  %v3073_v19 = vmul.f32 %v8754_v38, %v8754_v38 }
 0x548   :  { %2699 = vadd.xlane.f32.xlu1 %v2698_v31  ;;  %v2864_v58 = vpop.xlane.xlu0 %2863  ;;  %v8750_v43 = vpop.f32.mrf.mxu3  ;;  %v2778_v31 = vmul.f32 %v8477_v20, %v8477_v20 }
 0x549   :  { %v3006_v26 = vmul.f32 0.0051020407, %v2864_v58  ;;  %v8752_v59 = vpop.f32.mrf.mxu0  ;;  %v3697_v58 = vmul.f32 %v8596_v44, %v8436_v39  ;;  %v10466_v44 = vld [vmem:[#allocation31_spill] sm:$0xff] }
 0x54b   :  { %v3086_v40 = vsub.f32 %v3006_v26, %v3046_v51 }
 0x54d   :  { %v3166_v47 = vadd.f32 1e-05, %v3086_v40  ;;  %v3657_v40 = vld [vmem:[%s10008_s7 + $0x80] sm:$0xff] }
 0x54e   :  { %3938 = vperm.xlu2 %4850, %v8747_v41   ;;  %v3737_v62 = vsub.f32 %v3657_v40, %v3697_v58  ;;  %v2415_v58 = vadd.f32 %v2414_v16, %v2277_v57  ;;  %v2832_v40 = vmul.f32 %v8671_v30, %v8671_v30  ;;  %v10484_v30 = vld [vmem:[#allocation69_spill] sm:$0xff] }
 0x54f   :  { %5047 = vrsqrt.f32 %v3166_v47  ;;  %vm3257_vm0 = vweird.f32 %v3166_v47 }
 0x550   :  { %v2588_v4 = vpop.xlane.xlu0 %2587  ;;  %v2283_v45 = vpop.f32.mrf.mxu3 }
 0x551   :  { %v2420_v7 = vpop.f32.mrf.mxu0 }
 0x552   :  { %v2421_v51 = vadd.f32 %v2420_v7, %v2283_v45 }
 0x554   :  { %v8768_v29 = vadd.f32 %v2557_v46, %v2421_v51  ;;  %v2551_v51 = vpop.f32.mrf.mxu1  ;;  %v3126_v46 = vld [vmem:[%s10007_s6 + $0x28] sm:$0xff] }
 0x555   :  { %v5048_v18 = vpop.eup %5047 }
 0x556   :  { %v3252_v34 = vmul.f32 %v5048_v18, %v3166_v47  ;;  %10465 = vst [vmem:[#allocation88_spill] sm:$0xff] %v8768_v29  ;;  %vm3258_vm1 = vweird.f32 %v5048_v18  ;;  %v2717_v45 = vsel %vm2560_vm6, %v8768_v29, 0.0 }
 0x557   :  { %vm3259_vm2 = vmor %vm3257_vm0, %vm3258_vm1 }
 0x558   :  { %v3253_v36 = vmul.f32 %v5048_v18, %v3252_v34  ;;  %v2972_v37 = vpop.xlane.xlu0 %2971 }
 0x559   :  { %v3033_v55 = vmul.f32 0.0051020407, %v2972_v37  ;;  %v2873_v37 = vsel %vm2560_vm6, %v2778_v31, 0.0  ;;  %v8777_v31 = vmul.f32 0.0051020407, %v2588_v4  ;;  %v10471_v4 = vld [vmem:[#allocation108_spill] sm:$0xff] }
 0x55a   :  { %v3254_v26 = vmul.f32 0.5, %v3253_v36  ;;  %v2874_v20 = vadd.f32 %v2873_v37, %v2777_v49 }
 0x55b   :  { %v3113_v42 = vsub.f32 %v3033_v55, %v3073_v19  ;;  %v10467_v19 = vld [vmem:[#allocation58_spill] sm:$0xff]  ;;  %v8792_v16 = vmul.f32 %v8777_v31, %v8777_v31 }
 0x55c   :  { %v3255_v39 = vsub.f32 1.5, %v3254_v26  ;;  %v2010_v55 = vadd.f32 %v10467_v19, %v10466_v44 }
 0x55d   :  { %v3193_v34 = vadd.f32 1e-05, %v3113_v42  ;;  %v10468_v42 = vld [vmem:[#allocation59_spill] sm:$0xff] }
 0x55e   :  { %v3256_v36 = vmul.f32 %v5048_v18, %v3255_v39  ;;  %v8775_v1 = vadd.f32 %v10468_v42, %v2010_v55  ;;  %v10470_v39 = vld [vmem:[#allocation107_spill] sm:$0xff]  ;;  %v8798_v55 = vadd.f32 %v2551_v51, %v2415_v58  ;;  %v10477_v51 = vld [vmem:[#allocation54_spill] sm:$0xff] }
 0x55f   :  { %5049 = vrsqrt.f32 %v3193_v34  ;;  %v10472_v44 = vsub.f32 %v10470_v39, %v10471_v4  ;;  %v10475_v42 = vld [vmem:[#allocation83_spill] sm:$0xff]  ;;  %v2981_v4 = vsel %vm2560_vm6, %v2832_v40, 0.0  ;;  %vm3527_vm4 = vweird.f32 %v3193_v34 }
 0x560   :  { %10469 = vst [vmem:[#allocation18_spill] sm:$0xff] %v8775_v1  ;;  %v2718_v26 = vadd.f32 %v2717_v45, %v8775_v1  ;;  %v3260_v37 = vsel %vm3259_vm2, %v5048_v18, %v3256_v36  ;;  %v10474_v45 = vld [vmem:[#allocation27_spill] sm:$0xff]  ;;  %v2836_v58 = vmul.f32 %v8798_v55, %v8798_v55 }
 0x561   :  { %4283 = vperm.xlu1 %4849, %v3737_v62   ;;  %2875 = vadd.xlane.f32.xlu0 %v2874_v20  ;;  %v8788_v57 = vadd.f32 1e-05, %v10472_v44  ;;  %v8796_v19 = vmul.f32 %v3260_v37, %v3126_v46  ;;  %v2554_v44 = vpop.f32.mrf.mxu1 }
 0x563   :  { %10473 = vst [vmem:[#allocation76_spill] sm:$0xff] %v8796_v19  ;;  %v8806_v36 = vmul.f32 %v8796_v19, %v8739_v50  ;;  %5051 = vrsqrt.f32 %v8788_v57  ;;  %v2418_v50 = vadd.f32 %v8752_v59, %v8750_v43  ;;  %v10480_v59 = vld [vmem:[#allocation110_spill] sm:$0xff]  ;;  %vm3417_vm8 = vweird.f32 %v8788_v57 }
 0x565   :  { %v5050_v7 = vpop.eup %5049  ;;  %10476 = vst [vmem:[#allocation66_spill] sm:$0xff] %v8806_v36 }
 0x566   :  { %v3522_v49 = vmul.f32 %v5050_v7, %v3193_v34  ;;  %vm3528_vm3 = vweird.f32 %v5050_v7 }
 0x567   :  { %vm3529_vm5 = vmor %vm3527_vm4, %vm3528_vm3 }
 0x568   :  { %v3523_v62 = vmul.f32 %v5050_v7, %v3522_v49  ;;  %v2868_v20 = vpop.xlane.xlu1 %2867  ;;  %v2004_v49 = vadd.f32 %v10475_v42, %v10474_v45 }
 0x569   :  { %v8794_v47 = vmul.f32 0.0051020407, %v2868_v20  ;;  %2719 = vadd.xlane.f32.xlu0 %v2718_v26  ;;  %v2831_v26 = vmul.f32 %v8688_v0, %v8688_v0  ;;  %v8820_v40 = vpop.eup %5051 }
 0x56a   :  { %v3524_v39 = vmul.f32 0.5, %v3523_v62  ;;  %v8815_v20 = vadd.f32 %v10477_v51, %v2004_v49  ;;  %v2989_v62 = vsel %vm2560_vm6, %v2836_v58, 0.0  ;;  %v3412_v49 = vmul.f32 %v8820_v40, %v8788_v57  ;;  %v10481_v58 = vld [vmem:[#allocation111_spill] sm:$0xff] }
 0x56b   :  { %v2982_v46 = vadd.f32 %v2981_v4, %v2831_v26  ;;  %v8826_v4 = vadd.f32 %v2554_v44, %v2418_v50  ;;  %v10479_v26 = vld [vmem:[#allocation20_spill] sm:$0xff]  ;;  %v10482_v51 = vsub.f32 %v10480_v59, %v10481_v58  ;;  %v4274_v48 = vpop.permute.xlu0 %4273  ;;  %vm3418_vm7 = vweird.f32 %v8820_v40 }
 0x56c   :  { %v3525_v37 = vsub.f32 1.5, %v3524_v39  ;;  %v2835_v45 = vmul.f32 %v8815_v20, %v8815_v20  ;;  %v10478_v39 = vld [vmem:[#allocation29_spill] sm:$0xff]  ;;  %vm3419_vm9 = vmor %vm3417_vm8, %vm3418_vm7 }
 0x56d   :  { %v2007_v43 = vadd.f32 %v10479_v26, %v10478_v39  ;;  %v3413_v39 = vmul.f32 %v8820_v40, %v3412_v49  ;;  %v10487_v26 = vld [vmem:[#allocation57_spill] sm:$0xff]  ;;  %v3790_v49 = vld [vmem:[%s10009_s2 + $0xe8] sm:$0xff] }
 0x56e   :  { %v3526_v42 = vmul.f32 %v5050_v7, %v3525_v37  ;;  %v2990_v18 = vadd.f32 %v2989_v62, %v2835_v45  ;;  %v3153_v37 = vld [vmem:[%s10007_s6 + $0x100] sm:$0xff]  ;;  %v10483_v45 = vld [vmem:[#allocation43_spill] sm:$0xff] }
 0x56f   :  { %v10485_v50 = vsub.f32 %v10483_v45, %v10484_v30  ;;  %v8849_v59 = vadd.f32 %v10487_v26, %v2007_v43 }
 0x570   :  { %v3530_v62 = vsel %vm3529_vm5, %v5050_v7, %v3526_v42  ;;  %v3414_v7 = vmul.f32 0.5, %v3413_v39  ;;  %v3789_v42 = vld [vmem:[%s10009_s2 + $0xe0] sm:$0xff] }
 0x571   :  { %2983 = vadd.xlane.f32.xlu0 %v2982_v46  ;;  %v8833_v46 = vadd.f32 1e-05, %v10482_v51  ;;  %v8841_v44 = vadd.f32 1e-05, %v10485_v50  ;;  %v8843_v34 = vmul.f32 %v3530_v62, %v3153_v37  ;;  %v10489_v51 = vld [vmem:[#allocation95_spill] sm:$0xff]  ;;  %v10490_v62 = vld [vmem:[#allocation96_spill] sm:$0xff]  ;;  %v2840_v50 = vmul.f32 %v8768_v29, %v8768_v29 }
 0x573   :  { %10486 = vst [vmem:[#allocation72_spill] sm:$0xff] %v8843_v34  ;;  %v8853_v58 = vmul.f32 %v8843_v34, %v8754_v38  ;;  %5053 = vrsqrt.f32 %v8833_v46  ;;  %v3658_v38 = vld [vmem:[%s10008_s7 + $0x88] sm:$0xff]  ;;  %v2997_v11 = vsel %vm2560_vm6, %v2840_v50, 0.0  ;;  %vm3427_vm12 = vweird.f32 %v8833_v46 }
 0x574   :  { %5055 = vrsqrt.f32 %v8841_v44  ;;  %v3738_v6 = vsub.f32 %v3658_v38, %v10491_v13  ;;  %vm3447_vm14 = vweird.f32 %v8841_v44 }
 0x575   :  { %10488 = vst [vmem:[#allocation15_spill] sm:$0xff] %v8853_v58 }
 0x577   :  { %2991 = vadd.xlane.f32.xlu2 %v2990_v18  ;;  %v2713_v18 = vsel %vm2560_vm6, %v8826_v4, 0.0 }
 0x578   :  { %v2714_v30 = vadd.f32 %v2713_v18, %v8849_v59  ;;  %v3415_v18 = vsub.f32 1.5, %v3414_v7 }
 0x579   :  { %v5054_v39 = vpop.eup %5053 }
 0x57a   :  { %v5056_v26 = vpop.eup %5055  ;;  %vm3428_vm10 = vweird.f32 %v5054_v39 }
 0x57b   :  { %vm3448_vm11 = vweird.f32 %v5056_v26  ;;  %vm3429_vm13 = vmor %vm3427_vm12, %vm3428_vm10 }
 0x57c   :  { %vm3449_vm15 = vmor %vm3447_vm14, %vm3448_vm11 }
 0x57f   :  { %2715 = vadd.xlane.f32.xlu2 %v2714_v30 }
 0x580   :  { %v3914_v43 = vpop.permute.xlu1 %3913 }
 0x581   :  { %v4069_v37 = vmul.f32 %v3914_v43, %v10489_v51  ;;  %v4070_v45 = vmul.f32 %v3914_v43, %v10490_v62  ;;  %v3416_v51 = vmul.f32 %v8820_v40, %v3415_v18  ;;  %v3422_v43 = vmul.f32 %v5054_v39, %v8833_v46 }
 0x582   :  { %v3442_v62 = vmul.f32 %v5056_v26, %v8841_v44 }
 0x583   :  { %v4149_v30 = vadd.f32 %v4069_v37, %v3789_v42  ;;  %v4150_v0 = vadd.f32 %v4070_v45, %v3790_v49  ;;  %v2839_v42 = vmul.f32 %v8775_v1, %v8775_v1  ;;  %v3423_v38 = vmul.f32 %v5054_v39, %v3422_v43  ;;  %v8901_v43 = vpop.xlane.xlu2 %2871 }
 0x584   :  { %v3443_v37 = vmul.f32 %v5056_v26, %v3442_v62 }
 0x585   :  { %v4429_v52 = vadd.f32 %v4274_v48, %v4149_v30  ;;  %v4430_v3 = vadd.f32 %v4274_v48, %v4150_v0  ;;  %4288 = vperm.xlu0 %4848, %v3738_v6   ;;  %v10492_v48 = vld [vmem:[#allocation116_spill] sm:$0xff]  ;;  %v10493_v6 = vld [vmem:[#allocation117_spill] sm:$0xff]  ;;  %v2998_v49 = vadd.f32 %v2997_v11, %v2839_v42  ;;  %v3424_v45 = vmul.f32 0.5, %v3423_v38 }
 0x586   :  { %v10494_v13 = vsub.f32 %v10492_v48, %v10493_v6  ;;  %v3444_v50 = vmul.f32 0.5, %v3443_v37  ;;  %v10495_v11 = vld [vmem:[#allocation68_spill] sm:$0xff]  ;;  %v3145_v37 = vld [vmem:[%s10007_s6 + $0xc0] sm:$0xff] }
 0x587   :  { %v4509_v7 = vmax.f32 %v4429_v52, 0.0  ;;  %v4510_v29 = vmax.f32 %v4430_v3, 0.0  ;;  %v3142_v52 = vld [vmem:[%s10007_s6 + $0xa8] sm:$0xff]  ;;  %v3420_v3 = vsel %vm3419_vm9, %v8820_v40, %v3416_v51  ;;  %v3425_v30 = vsub.f32 1.5, %v3424_v45  ;;  %v10496_v6 = vld [vmem:[#allocation120_spill] sm:$0xff] }
 0x588   :  { %v3186_v0 = vadd.f32 1e-05, %v10494_v13  ;;  %v8894_v57 = vmul.f32 %v3420_v3, %v3142_v52  ;;  %v3662_v40 = vld [vmem:[%s10008_s7 + $0xa8] sm:$0xff]  ;;  %v3143_v3 = vld [vmem:[%s10007_s6 + $0xb0] sm:$0xff] }
 0x589   :  { %4589 = vst [vmem:[%s10010_s8 + $0xe0] sm:$0xff] %v4509_v7  ;;  %v3445_v7 = vsub.f32 1.5, %v3444_v50  ;;  %v3426_v62 = vmul.f32 %v5054_v39, %v3425_v30  ;;  %v10497_v13 = vld [vmem:[#allocation119_spill] sm:$0xff] }
 0x58a   :  { %4590 = vst.msk [vmem:[%s10010_s8 + $0xe8] sm:$0xff] %vm2560_vm6, %v4510_v29  ;;  %5057 = vrsqrt.f32 %v3186_v0  ;;  %v3702_v18 = vmul.f32 %v8894_v57, %v10495_v11  ;;  %vm3457_vm0 = vweird.f32 %v3186_v0 }
 0x58b   :  { %2999 = vadd.xlane.f32.xlu1 %v2998_v49  ;;  %v3446_v42 = vmul.f32 %v5056_v26, %v3445_v7  ;;  %v10498_v49 = vsub.f32 %v10496_v6, %v10497_v13  ;;  %v3430_v38 = vsel %vm3429_vm13, %v5054_v39, %v3426_v62  ;;  %v8924_v30 = vpop.xlane.xlu2 %2595  ;;  %v10499_v39 = vld [vmem:[#allocation112_spill] sm:$0xff]  ;;  %v3665_v62 = vld [vmem:[%s10008_s7 + $0xc0] sm:$0xff]  ;;  %v10501_v13 = vld [vmem:[#allocation109_spill] sm:$0xff] }
 0x58c   :  { %v3742_v29 = vsub.f32 %v3662_v40, %v3702_v18  ;;  %v8917_v44 = vmul.f32 %v3430_v38, %v3143_v3  ;;  %v8922_v18 = vmul.f32 0.0051020407, %v8327_v54 }
 0x58d   :  { %v8908_v52 = vadd.f32 1e-05, %v10498_v49  ;;  %v3450_v46 = vsel %vm3449_vm15, %v5056_v26, %v3446_v42  ;;  %v3029_v26 = vmul.f32 0.0051020407, %v8447_v61 }
 0x58e   :  { %v8919_v50 = vmul.f32 %v3450_v46, %v3145_v37  ;;  %v3069_v54 = vmul.f32 %v8922_v18, %v8922_v18  ;;  %v10502_v37 = vld [vmem:[#allocation25_spill] sm:$0xff] }
 0x58f   :  { %5059 = vrsqrt.f32 %v8908_v52  ;;  %v10503_v46 = vld [vmem:[#allocation81_spill] sm:$0xff]  ;;  %vm3477_vm4 = vweird.f32 %v8908_v52 }
 0x590   :  { %v5058_v51 = vpop.eup %5057  ;;  %v3705_v7 = vmul.f32 %v8919_v50, %v10499_v39  ;;  %v3109_v3 = vsub.f32 %v3029_v26, %v3069_v54  ;;  %v3792_v26 = vld [vmem:[%s10009_s2 + $0xf8] sm:$0xff] }
 0x591   :  { %v3452_v48 = vmul.f32 %v5058_v51, %v3186_v0  ;;  %vm3458_vm1 = vweird.f32 %v5058_v51  ;;  %v10506_v54 = vld [vmem:[#allocation97_spill] sm:$0xff] }
 0x592   :  { %v3745_v61 = vsub.f32 %v3665_v62, %v3705_v7  ;;  %vm8950_vm2 = vmor %vm3457_vm0, %vm3458_vm1  ;;  %v3791_v7 = vld [vmem:[%s10009_s2 + $0xf0] sm:$0xff]  ;;  %v3146_v62 = vld [vmem:[%s10007_s6 + $0xc8] sm:$0xff] }
 0x593   :  { %v3453_v45 = vmul.f32 %v5058_v51, %v3452_v48  ;;  %v10500_v48 = vsub.f32 %v8493_v2, %v8497_v21  ;;  %v4279_v39 = vpop.permute.xlu2 %4278  ;;  %v3008_v2 = vmul.f32 0.0051020407, %v8901_v43 }
 0x595   :  { %v3454_v11 = vmul.f32 0.5, %v3453_v45  ;;  %v8942_v6 = vadd.f32 1e-05, %v10500_v48  ;;  %v2001_v45 = vadd.f32 %v10503_v46, %v10502_v37  ;;  %v10509_v37 = vld [vmem:[#allocation51_spill] sm:$0xff] }
 0x596   :  { %v8930_v40 = vpop.xlane.xlu0 %2695 }
 0x597   :  { %4308 = vperm.xlu2 %4850, %v3742_v29   ;;  %v8932_v29 = vpop.eup %5059  ;;  %v3455_v42 = vsub.f32 1.5, %v3454_v11  ;;  %5061 = vrsqrt.f32 %v8942_v6  ;;  %v8955_v11 = vadd.f32 1e-05, %v3109_v3  ;;  %v8973_v46 = vadd.f32 %v10509_v37, %v2001_v45 }
 0x598   :  { %v3472_v49 = vmul.f32 %v8932_v29, %v8908_v52  ;;  %vm3478_vm3 = vweird.f32 %v8932_v29  ;;  %vm3237_vm9 = vweird.f32 %v8942_v6 }
 0x599   :  { %v3456_v38 = vmul.f32 %v5058_v51, %v3455_v42  ;;  %5063 = vrsqrt.f32 %v8955_v11  ;;  %vm9019_vm5 = vmor %vm3477_vm4, %vm3478_vm3  ;;  %vm3487_vm14 = vweird.f32 %v8955_v11 }
 0x59a   :  { %v3473_v21 = vmul.f32 %v8932_v29, %v3472_v49  ;;  %v10508_v49 = vld [vmem:[#allocation106_spill] sm:$0xff] }
 0x59b   :  { %v3460_v42 = vsel %vm8950_vm2, %v5058_v51, %v3456_v38  ;;  %v2705_v3 = vsel %vm2560_vm6, %v10508_v49, 0.0 }
 0x59c   :  { %v8977_v56 = vmul.f32 %v3460_v42, %v3146_v62  ;;  %v3474_v19 = vmul.f32 0.5, %v3473_v21  ;;  %v2706_v51 = vadd.f32 %v2705_v3, %v8973_v46  ;;  %v10511_v3 = vsub.f32 %v8649_v25, %v8647_v35  ;;  %v3148_v35 = vld [vmem:[%s10007_s6 + $0xd8] sm:$0xff] }
 0x59d   :  { %v8981_v38 = vpop.eup %5061 }
 0x59e   :  { %v3232_v21 = vmul.f32 %v8981_v38, %v8942_v6  ;;  %v3475_v62 = vsub.f32 1.5, %v3474_v19  ;;  %v9015_v37 = vadd.f32 1e-05, %v10511_v3  ;;  %vm3238_vm7 = vweird.f32 %v8981_v38 }
 0x59f   :  { %3953 = vperm.xlu2 %4850, %v8917_v44   ;;  %vm9056_vm10 = vmor %vm3237_vm9, %vm3238_vm7 }
 0x5a0   :  { %v3233_v42 = vmul.f32 %v8981_v38, %v3232_v21  ;;  %v3476_v19 = vmul.f32 %v8932_v29, %v3475_v62 }
 0x5a4   :  { %3928 = vperm.xlu1 %4849, %v10501_v13   ;;  %v10507_v13 = vld [vmem:[#allocation98_spill] sm:$0xff] }
 0x5a7   :  { %4323 = vperm.xlu2 %4850, %v3745_v61  }
 0x5a9   :  { %v3919_v0 = vpop.permute.xlu0 %3918 }
 0x5aa   :  { %v4071_v48 = vmul.f32 %v3919_v0, %v10506_v54  ;;  %v4072_v61 = vmul.f32 %v3919_v0, %v10507_v13  ;;  %v10510_v13 = vsub.f32 %v8616_v32, %v8620_v23  ;;  %v3480_v32 = vsel %vm9019_vm5, %v8932_v29, %v3476_v19 }
 0x5ab   :  { %v2592_v1 = vpop.xlane.xlu1 %2591 }
 0x5ac   :  { %v4151_v58 = vadd.f32 %v4071_v48, %v3791_v7  ;;  %v4152_v36 = vadd.f32 %v4072_v61, %v3792_v26  ;;  %v8975_v34 = vmul.f32 0.0051020407, %v2592_v1  ;;  %v9010_v61 = vadd.f32 1e-05, %v10510_v13 }
 0x5ae   :  { %v4431_v0 = vadd.f32 %v4279_v39, %v4151_v58  ;;  %v4432_v54 = vadd.f32 %v4279_v39, %v4152_v36  ;;  %v3048_v45 = vmul.f32 %v8975_v34, %v8975_v34  ;;  %v8992_v58 = vpop.eup %5063  ;;  %v8994_v36 = vpop.permute.xlu2 %3923  ;;  %vm3247_vm5 = vweird.f32 %v9010_v61 }
 0x5af   :  { %2707 = vadd.xlane.f32.xlu0 %v2706_v51  ;;  %3968 = vperm.xlu2 %4850, %v8977_v56   ;;  %v3482_v48 = vmul.f32 %v8992_v58, %v8955_v11  ;;  %vm3488_vm13 = vweird.f32 %v8992_v58 }
 0x5b0   :  { %v4511_v1 = vmax.f32 %v4431_v0, 0.0  ;;  %v4512_v7 = vmax.f32 %v4432_v54, 0.0  ;;  %v3088_v26 = vsub.f32 %v3008_v2, %v3048_v45  ;;  %v3234_v2 = vmul.f32 0.5, %v3233_v42  ;;  %vm9095_vm15 = vmor %vm3487_vm14, %vm3488_vm13 }
 0x5b1   :  { %v3483_v23 = vmul.f32 %v8992_v58, %v3482_v48 }
 0x5b2   :  { %4591 = vst [vmem:[%s10010_s8 + $0xf0] sm:$0xff] %v4511_v1  ;;  %v3168_v43 = vadd.f32 1e-05, %v3088_v26  ;;  %v3235_v29 = vsub.f32 1.5, %v3234_v2  ;;  %v9038_v26 = vmul.f32 %v3480_v32, %v3148_v35  ;;  %v3668_v35 = vld [vmem:[%s10008_s7 + $0xd8] sm:$0xff] }
 0x5b3   :  { %4592 = vst.msk [vmem:[%s10010_s8 + $0xf8] sm:$0xff] %vm2560_vm6, %v4512_v7  ;;  %v9000_v39 = vpop.xlane.xlu1 %2975  ;;  %v3484_v21 = vmul.f32 0.5, %v3483_v23 }
 0x5b4   :  { %5065 = vrsqrt.f32 %v3168_v43  ;;  %v3236_v51 = vmul.f32 %v8981_v38, %v3235_v29  ;;  %vm3277_vm11 = vweird.f32 %v3168_v43 }
 0x5b5   :  { %5067 = vrsqrt.f32 %v9010_v61  ;;  %v3485_v23 = vsub.f32 1.5, %v3484_v21 }
 0x5b6   :  { %5069 = vrsqrt.f32 %v9015_v37  ;;  %v2980_v25 = vpop.xlane.xlu2 %2979 }
 0x5b7   :  { %3843 = vperm.xlu2 %4850, %v8331_v63   ;;  %v3641_v63 = vld [vmem:[%s10008_s7] sm:$0xff]  ;;  %v3035_v62 = vmul.f32 0.0051020407, %v2980_v25 }
 0x5b8   :  { %v3721_v7 = vsub.f32 %v3641_v63, %v8340_v60  ;;  %v10514_v60 = vld [vmem:[#allocation118_spill] sm:$0xff] }
 0x5b9   :  { %v3708_v32 = vmul.f32 %v9038_v26, %v10514_v60  ;;  %v3794_v60 = vld [vmem:[%s10009_s2 + $0x108] sm:$0xff] }
 0x5ba   :  { %v5066_v0 = vpop.eup %5065 }
 0x5bb   :  { %v3272_v52 = vmul.f32 %v5066_v0, %v3168_v43  ;;  %v2700_v54 = vpop.xlane.xlu1 %2699  ;;  %v9042_v48 = vpop.eup %5067  ;;  %vm3278_vm8 = vweird.f32 %v5066_v0  ;;  %v2834_v43 = vmul.f32 %v10508_v49, %v10508_v49 }
 0x5bc   :  { %v9035_v45 = vmul.f32 0.0051020407, %v2700_v54  ;;  %v9045_v3 = vpop.eup %5069  ;;  %v3128_v54 = vld [vmem:[%s10007_s6 + $0x38] sm:$0xff]  ;;  %vm3279_vm12 = vmor %vm3277_vm11, %vm3278_vm8  ;;  %vm3248_vm0 = vweird.f32 %v9042_v48  ;;  %vm3507_vm8 = vweird.f32 %v9015_v37 }
 0x5bd   :  { %v3273_v1 = vmul.f32 %v5066_v0, %v3272_v52  ;;  %v3242_v52 = vmul.f32 %v9042_v48, %v9010_v61  ;;  %v3502_v6 = vmul.f32 %v9045_v3, %v9015_v37  ;;  %vm3508_vm2 = vweird.f32 %v9045_v3  ;;  %vm9171_vm7 = vmor %vm3247_vm5, %vm3248_vm0 }
 0x5be   :  { %v3075_v42 = vmul.f32 %v9035_v45, %v9035_v45  ;;  %vm3509_vm9 = vmor %vm3507_vm8, %vm3508_vm2 }
 0x5bf   :  { %v3274_v19 = vmul.f32 0.5, %v3273_v1  ;;  %4203 = vperm.xlu2 %4850, %v3721_v7   ;;  %v3124_v1 = vld [vmem:[%s10007_s6 + $0x18] sm:$0xff]  ;;  %v3240_v7 = vsel %vm9056_vm10, %v8981_v38, %v3236_v51 }
 0x5c0   :  { %v3115_v13 = vsub.f32 %v3035_v62, %v3075_v42  ;;  %v3748_v62 = vsub.f32 %v3668_v35, %v3708_v32  ;;  %v9088_v38 = vmul.f32 %v3240_v7, %v3124_v1  ;;  %v2985_v32 = vsel %vm2560_vm6, %v2834_v43, 0.0  ;;  %v10521_v7 = vld [vmem:[#allocation99_spill] sm:$0xff]  ;;  %v9129_v43 = vpop.xlane.xlu2 %2703 }
 0x5c1   :  { %v3275_v2 = vsub.f32 1.5, %v3274_v19  ;;  %v3243_v19 = vmul.f32 %v9042_v48, %v3242_v52 }
 0x5c2   :  { %v9051_v63 = vadd.f32 1e-05, %v3115_v13  ;;  %v10517_v13 = vsub.f32 %v8709_v27, %v8707_v17  ;;  %v10520_v17 = vsub.f32 %v8794_v47, %v8792_v16  ;;  %v3684_v47 = vmul.f32 %v9088_v38, %v8488_v33 }
 0x5c3   :  { %v3276_v29 = vmul.f32 %v5066_v0, %v3275_v2  ;;  %3933 = vperm.xlu0 %4848, %v8720_v14   ;;  %v3486_v14 = vmul.f32 %v8992_v58, %v3485_v23  ;;  %v2833_v23 = vmul.f32 %v8973_v46, %v8973_v46  ;;  %v3244_v25 = vmul.f32 0.5, %v3243_v19 }
 0x5c4   :  { %5071 = vrsqrt.f32 %v9051_v63  ;;  %v9085_v2 = vadd.f32 1e-05, %v10517_v13  ;;  %v9102_v27 = vadd.f32 1e-05, %v10520_v17  ;;  %v9132_v19 = vmul.f32 0.0051020407, %v8930_v40 }
 0x5c5   :  { %v3280_v21 = vsel %vm3279_vm12, %v5066_v0, %v3276_v29  ;;  %v3503_v0 = vmul.f32 %v9045_v3, %v3502_v6  ;;  %v3490_v35 = vsel %vm9095_vm15, %v8992_v58, %v3486_v14  ;;  %v3644_v29 = vld [vmem:[%s10008_s7 + $0x18] sm:$0xff]  ;;  %v2709_v58 = vsel %vm2560_vm6, %v8798_v55, 0.0 }
 0x5c6   :  { %v9079_v42 = vmul.f32 %v3280_v21, %v3128_v54  ;;  %5073 = vrsqrt.f32 %v9085_v2  ;;  %v2986_v54 = vadd.f32 %v2985_v32, %v2833_v23  ;;  %v4073_v21 = vmul.f32 %v8994_v36, %v10521_v7 }
 0x5c7   :  { %4338 = vperm.xlu2 %4850, %v3748_v62   ;;  %v3504_v52 = vmul.f32 0.5, %v3503_v0  ;;  %5075 = vrsqrt.f32 %v9102_v27  ;;  %v10522_v62 = vld [vmem:[#allocation100_spill] sm:$0xff]  ;;  %v3245_v14 = vsub.f32 1.5, %v3244_v25  ;;  %v3793_v0 = vld [vmem:[%s10009_s2 + $0x100] sm:$0xff]  ;;  %v3724_v17 = vsub.f32 %v3644_v29, %v3684_v47 }
 0x5c8   :  { %v9093_v51 = vmul.f32 %v9079_v42, %v8975_v34  ;;  %v3149_v34 = vld [vmem:[%s10007_s6 + $0xe0] sm:$0xff]  ;;  %v4074_v33 = vmul.f32 %v8994_v36, %v10522_v62  ;;  %v2710_v32 = vadd.f32 %v2709_v58, %v8815_v20  ;;  %v9145_v40 = vmul.f32 0.0051020407, %v8924_v30  ;;  %v3155_v30 = vld [vmem:[%s10007_s6 + $0x110] sm:$0xff] }
 0x5c9   :  { %v9121_v1 = vmul.f32 %v3490_v35, %v3149_v34  ;;  %v3505_v36 = vsub.f32 1.5, %v3504_v52  ;;  %v3034_v34 = vmul.f32 0.0051020407, %v9000_v39  ;;  %v4153_v25 = vadd.f32 %v4073_v21, %v3793_v0 }
 0x5ca   :  { %v5072_v11 = vpop.eup %5071  ;;  %v3246_v47 = vmul.f32 %v9042_v48, %v3245_v14  ;;  %v3074_v52 = vmul.f32 %v9132_v19, %v9132_v19  ;;  %vm3547_vm3 = vweird.f32 %v9051_v63  ;;  %vm3517_vm12 = vweird.f32 %v9085_v2 }
 0x5cb   :  { %v3542_v16 = vmul.f32 %v5072_v11, %v9051_v63  ;;  %vm3548_vm1 = vweird.f32 %v5072_v11  ;;  %vm3267_vm14 = vweird.f32 %v9102_v27 }
 0x5cc   :  { %v9142_v23 = vpop.eup %5073  ;;  %vm3549_vm4 = vmor %vm3547_vm3, %vm3548_vm1  ;;  %v3114_v14 = vsub.f32 %v3034_v34, %v3074_v52 }
 0x5cd   :  { %v3543_v6 = vmul.f32 %v5072_v11, %v3542_v16  ;;  %v4154_v16 = vadd.f32 %v4074_v33, %v3794_v60  ;;  %v3512_v58 = vmul.f32 %v9142_v23, %v9085_v2  ;;  %v3049_v33 = vmul.f32 %v9145_v40, %v9145_v40 }
 0x5ce   :  { %2987 = vadd.xlane.f32.xlu1 %v2986_v54  ;;  %v9150_v54 = vpop.eup %5075  ;;  %v9187_v61 = vadd.f32 1e-05, %v3114_v14  ;;  %v3671_v14 = vld [vmem:[%s10008_s7 + $0xf0] sm:$0xff]  ;;  %vm3518_vm10 = vweird.f32 %v9142_v23  ;;  %v2837_v2 = vmul.f32 %v8849_v59, %v8849_v59 }
 0x5cf   :  { %v3544_v13 = vmul.f32 0.5, %v3543_v6  ;;  %3983 = vperm.xlu2 %4850, %v9121_v1   ;;  %v3506_v6 = vmul.f32 %v9045_v3, %v3505_v36  ;;  %v3262_v60 = vmul.f32 %v9150_v54, %v9102_v27  ;;  %vm3268_vm11 = vweird.f32 %v9150_v54  ;;  %vm9244_vm13 = vmor %vm3517_vm12, %vm3518_vm10 }
 0x5d0   :  { %vm9252_vm15 = vmor %vm3267_vm14, %vm3268_vm11 }
 0x5d1   :  { %v3545_v35 = vsub.f32 1.5, %v3544_v13  ;;  %v3263_v52 = vmul.f32 %v9150_v54, %v3262_v60  ;;  %v2838_v60 = vmul.f32 %v8826_v4, %v8826_v4 }
 0x5d3   :  { %v3546_v39 = vmul.f32 %v5072_v11, %v3545_v35  ;;  %v4284_v29 = vpop.permute.xlu1 %4283 }
 0x5d4   :  { %v4433_v7 = vadd.f32 %v4284_v29, %v4153_v25  ;;  %v4434_v21 = vadd.f32 %v4284_v29, %v4154_v16  ;;  %v2876_v62 = vpop.xlane.xlu0 %2875  ;;  %v3513_v16 = vmul.f32 %v9142_v23, %v3512_v58 }
 0x5d5   :  { %v3550_v13 = vsel %vm3549_vm4, %v5072_v11, %v3546_v39  ;;  %v3009_v0 = vmul.f32 0.0051020407, %v2876_v62  ;;  %v9176_v11 = vpop.permute.xlu2 %4293  ;;  %vm3537_vm4 = vweird.f32 %v9187_v61 }
 0x5d6   :  { %v9166_v63 = vmul.f32 %v3550_v13, %v3155_v30  ;;  %v4513_v35 = vmax.f32 %v4433_v7, 0.0  ;;  %v4514_v36 = vmax.f32 %v4434_v21, 0.0  ;;  %2711 = vadd.xlane.f32.xlu1 %v2710_v32  ;;  %v3510_v32 = vsel %vm3509_vm9, %v9045_v3, %v3506_v6  ;;  %v3151_v30 = vld [vmem:[%s10007_s6 + $0xf0] sm:$0xff] }
 0x5d7   :  { %v3089_v49 = vsub.f32 %v3009_v0, %v3049_v33  ;;  %4218 = vperm.xlu2 %4850, %v3724_v17   ;;  %v3250_v17 = vsel %vm9171_vm7, %v9042_v48, %v3246_v47  ;;  %v9213_v29 = vmul.f32 %v3510_v32, %v3151_v30  ;;  %v3514_v48 = vmul.f32 0.5, %v3513_v16 }
 0x5d8   :  { %v9180_v34 = vmul.f32 %v9166_v63, %v9035_v45  ;;  %4593 = vst [vmem:[%s10010_s8 + $0x100] sm:$0xff] %v4513_v35  ;;  %v3125_v45 = vld [vmem:[%s10007_s6 + $0x20] sm:$0xff]  ;;  %v3264_v3 = vmul.f32 0.5, %v3263_v52  ;;  %v9219_v6 = vmul.f32 0.0051020407, %v9129_v43  ;;  %v2993_v30 = vsel %vm2560_vm6, %v2838_v60, 0.0 }
 0x5d9   :  { %4594 = vst.msk [vmem:[%s10010_s8 + $0x108] sm:$0xff] %vm2560_vm6, %v4514_v36  ;;  %v9193_v37 = vadd.f32 1e-05, %v3089_v49  ;;  %v9210_v39 = vmul.f32 %v3250_v17, %v3125_v45  ;;  %v3711_v58 = vmul.f32 %v9213_v29, %v8630_v9  ;;  %v3515_v7 = vsub.f32 1.5, %v3514_v48  ;;  %v10527_v48 = vld [vmem:[#allocation32_spill] sm:$0xff] }
 0x5da   :  { %v3265_v21 = vsub.f32 1.5, %v3264_v3  ;;  %v3076_v9 = vmul.f32 %v9219_v6, %v9219_v6  ;;  %v3700_v3 = vmul.f32 %v8747_v41, %v10527_v48  ;;  %v3660_v41 = vld [vmem:[%s10008_s7 + $0x98] sm:$0xff] }
 0x5db   :  { %5077 = vrsqrt.f32 %v9193_v37  ;;  %v3751_v36 = vsub.f32 %v3671_v14, %v3711_v58  ;;  %v3516_v25 = vmul.f32 %v9142_v23, %v3515_v7  ;;  %v3152_v14 = vld [vmem:[%s10007_s6 + $0xf8] sm:$0xff]  ;;  %vm3287_vm0 = vweird.f32 %v9193_v37 }
 0x5dc   :  { %v9208_v49 = vpop.xlane.xlu0 %2719  ;;  %5079 = vrsqrt.f32 %v9187_v61  ;;  %v3266_v45 = vmul.f32 %v9150_v54, %v3265_v21 }
 0x5dd   :  { %v9223_v62 = vpop.permute.xlu2 %3938 }
 0x5de   :  { %v3270_v21 = vsel %vm9252_vm15, %v9150_v54, %v3266_v45  ;;  %v3127_v54 = vld [vmem:[%s10007_s6 + $0x30] sm:$0xff] }
 0x5df   :  { %3863 = vperm.xlu2 %4850, %v9210_v39  }
 0x5e1   :  { %v9216_v47 = vpop.eup %5077 }
 0x5e2   :  { %v3282_v33 = vmul.f32 %v9216_v47, %v9193_v37  ;;  %v9230_v13 = vpop.eup %5079  ;;  %vm3288_vm1 = vweird.f32 %v9216_v47 }
 0x5e3   :  { %v3532_v17 = vmul.f32 %v9230_v13, %v9187_v61  ;;  %vm3289_vm2 = vmor %vm3287_vm0, %vm3288_vm1  ;;  %vm3538_vm3 = vweird.f32 %v9230_v13 }
 0x5e4   :  { %v3283_v0 = vmul.f32 %v9216_v47, %v3282_v33  ;;  %v2984_v43 = vpop.xlane.xlu0 %2983  ;;  %vm3539_vm5 = vmor %vm3537_vm4, %vm3538_vm3 }
 0x5e5   :  { %v3036_v35 = vmul.f32 0.0051020407, %v2984_v43  ;;  %v3533_v27 = vmul.f32 %v9230_v13, %v3532_v17  ;;  %v2994_v43 = vadd.f32 %v2993_v30, %v2837_v2  ;;  %v3647_v30 = vld [vmem:[%s10008_s7 + $0x30] sm:$0xff] }
 0x5e6   :  { %v3284_v52 = vmul.f32 0.5, %v3283_v0  ;;  %v3520_v0 = vsel %vm9244_vm13, %v9142_v23, %v3516_v25 }
 0x5e7   :  { %v3116_v32 = vsub.f32 %v3036_v35, %v3076_v9  ;;  %4353 = vperm.xlu2 %4850, %v3751_v36   ;;  %v3740_v9 = vsub.f32 %v3660_v41, %v3700_v3  ;;  %v9279_v35 = vmul.f32 %v3520_v0, %v3152_v14  ;;  %v9281_v36 = vmul.f32 %v3270_v21, %v3127_v54  ;;  %v3129_v3 = vld [vmem:[%s10007_s6 + $0x40] sm:$0xff]  ;;  %v10530_v21 = vld [vmem:[#allocation113_spill] sm:$0xff] }
 0x5e8   :  { %v3285_v60 = vsub.f32 1.5, %v3284_v52  ;;  %v3534_v45 = vmul.f32 0.5, %v3533_v27  ;;  %v10531_v14 = vld [vmem:[#allocation77_spill] sm:$0xff] }
 0x5e9   :  { %v9256_v7 = vadd.f32 1e-05, %v3116_v32  ;;  %v3687_v17 = vmul.f32 %v9281_v36, %v8777_v31 }
 0x5ea   :  { %v9264_v33 = vpop.xlane.xlu2 %2991  ;;  %v3286_v23 = vmul.f32 %v9216_v47, %v3285_v60  ;;  %v3535_v32 = vsub.f32 1.5, %v3534_v45  ;;  %v9321_v60 = vmul.f32 0.0051020407, %v9208_v49 }
 0x5eb   :  { %5081 = vrsqrt.f32 %v9256_v7  ;;  %v3727_v31 = vsub.f32 %v3647_v30, %v3687_v17  ;;  %vm3557_vm8 = vweird.f32 %v9256_v7 }
 0x5ec   :  { %v3290_v58 = vsel %vm3289_vm2, %v9216_v47, %v3286_v23  ;;  %v3536_v37 = vmul.f32 %v9230_v13, %v3535_v32  ;;  %v3703_v47 = vmul.f32 %v8917_v44, %v10531_v14  ;;  %v3661_v44 = vld [vmem:[%s10008_s7 + $0xa0] sm:$0xff]  ;;  %v3080_v23 = vmul.f32 %v9321_v60, %v9321_v60  ;;  %v10534_v14 = vld [vmem:[#allocation115_spill] sm:$0xff] }
 0x5ed   :  { %2995 = vadd.xlane.f32.xlu0 %v2994_v43  ;;  %v9299_v2 = vmul.f32 %v3290_v58, %v3129_v3  ;;  %v3663_v43 = vld [vmem:[%s10008_s7 + $0xb0] sm:$0xff]  ;;  %v10532_v32 = vld [vmem:[#allocation114_spill] sm:$0xff]  ;;  %v3674_v58 = vld [vmem:[%s10008_s7 + $0x108] sm:$0xff] }
 0x5ee   :  { %v3540_v0 = vsel %vm3539_vm5, %v9230_v13, %v3536_v37 }
 0x5ef   :  { %4298 = vperm.xlu1 %4849, %v3740_v9   ;;  %3998 = vperm.xlu2 %4850, %v9279_v35   ;;  %v9306_v27 = vmul.f32 %v9299_v2, %v9145_v40  ;;  %v3154_v40 = vld [vmem:[%s10007_s6 + $0x108] sm:$0xff]  ;;  %v3743_v9 = vsub.f32 %v3663_v43, %v3703_v47  ;;  %v3706_v47 = vmul.f32 %v8977_v56, %v10534_v14  ;;  %v10535_v56 = vld [vmem:[#allocation82_spill] sm:$0xff] }
 0x5f0   :  { %v9326_v13 = vmul.f32 %v3540_v0, %v3154_v40 }
 0x5f1   :  { %v5082_v25 = vpop.eup %5081 }
 0x5f2   :  { %v3552_v16 = vmul.f32 %v5082_v25, %v9256_v7  ;;  %v9290_v52 = vpop.xlane.xlu2 %2715  ;;  %vm3558_vm7 = vweird.f32 %v5082_v25 }
 0x5f3   :  { %vm3559_vm9 = vmor %vm3557_vm8, %vm3558_vm7 }
 0x5f4   :  { %v3553_v48 = vmul.f32 %v5082_v25, %v3552_v16  ;;  %v3741_v16 = vsub.f32 %v3661_v44, %v10532_v32  ;;  %v3796_v32 = vld [vmem:[%s10009_s2 + $0x118] sm:$0xff] }
 0x5f6   :  { %v3554_v41 = vmul.f32 0.5, %v3553_v48  ;;  %v3714_v48 = vmul.f32 %v9326_v13, %v9132_v19  ;;  %v10533_v19 = vld [vmem:[#allocation71_spill] sm:$0xff] }
 0x5f7   :  { %3943 = vperm.xlu1 %4849, %v10530_v21   ;;  %4233 = vperm.xlu2 %4850, %v3727_v31  }
 0x5f8   :  { %v3555_v61 = vsub.f32 1.5, %v3554_v41  ;;  %v3754_v21 = vsub.f32 %v3674_v58, %v3714_v48  ;;  %v10537_v48 = vld [vmem:[#allocation102_spill] sm:$0xff] }
 0x5fa   :  { %v9312_v54 = vpop.permute.xlu2 %4308  ;;  %v3556_v49 = vmul.f32 %v5082_v25, %v3555_v61  ;;  %v3664_v61 = vld [vmem:[%s10008_s7 + $0xb8] sm:$0xff] }
 0x5fc   :  { %v3560_v37 = vsel %vm3559_vm9, %v5082_v25, %v3556_v49  ;;  %v3666_v25 = vld [vmem:[%s10008_s7 + $0xc8] sm:$0xff] }
 0x5fd   :  { %v3746_v44 = vsub.f32 %v3666_v25, %v3706_v47 }
 0x5fe   :  { %v3000_v45 = vpop.xlane.xlu1 %2999 }
 0x5ff   :  { %v3040_v17 = vmul.f32 0.0051020407, %v3000_v45  ;;  %4313 = vperm.xlu1 %4849, %v3743_v9   ;;  %3878 = vperm.xlu2 %4850, %v9079_v42   ;;  %v3156_v42 = vld [vmem:[%s10007_s6 + $0x118] sm:$0xff]  ;;  %v3744_v9 = vsub.f32 %v3664_v61, %v10535_v56  ;;  %v10539_v56 = vld [vmem:[#allocation62_spill] sm:$0xff] }
 0x600   :  { %v9343_v41 = vmul.f32 %v3560_v37, %v3156_v42 }
 0x601   :  { %v3120_v30 = vsub.f32 %v3040_v17, %v3080_v23  ;;  %4303 = vperm.xlu0 %4848, %v3741_v16   ;;  %v3795_v17 = vld [vmem:[%s10009_s2 + $0x110] sm:$0xff] }
 0x602   :  { %v9335_v3 = vpop.permute.xlu2 %3953  ;;  %v9348_v7 = vmul.f32 %v9343_v41, %v9219_v6 }
 0x603   :  { %v3200_v31 = vadd.f32 1e-05, %v3120_v30  ;;  %v10536_v30 = vld [vmem:[#allocation101_spill] sm:$0xff] }
 0x605   :  { %5083 = vrsqrt.f32 %v3200_v31  ;;  %vm3597_vm11 = vweird.f32 %v3200_v31 }
 0x607   :  { %3958 = vperm.xlu1 %4849, %v10533_v19   ;;  %4368 = vperm.xlu2 %4850, %v3754_v21   ;;  %v3642_v21 = vld [vmem:[%s10008_s7 + $0x8] sm:$0xff]  ;;  %v4289_v19 = vpop.permute.xlu0 %4288 }
 0x608   :  { %v3722_v61 = vsub.f32 %v3642_v21, %v8367_v12 }
 0x609   :  { %3948 = vperm.xlu0 %4848, %v8894_v57  }
 0x60a   :  { %v9356_v0 = vpop.permute.xlu2 %4323 }
 0x60b   :  { %v5084_v43 = vpop.eup %5083 }
 0x60c   :  { %v3592_v40 = vmul.f32 %v5084_v43, %v3200_v31  ;;  %vm3598_vm10 = vweird.f32 %v5084_v43 }
 0x60d   :  { %vm3599_vm12 = vmor %vm3597_vm11, %vm3598_vm10 }
 0x60e   :  { %v3593_v6 = vmul.f32 %v5084_v43, %v3592_v40 }
 0x60f   :  { %4328 = vperm.xlu1 %4849, %v3746_v44   ;;  %4013 = vperm.xlu2 %4850, %v9166_v63  }
 0x610   :  { %v3594_v57 = vmul.f32 0.5, %v3593_v6 }
 0x611   :  { %4318 = vperm.xlu0 %4848, %v3744_v9  }
 0x612   :  { %v9363_v45 = vpop.permute.xlu2 %3968  ;;  %v3595_v23 = vsub.f32 1.5, %v3594_v57  ;;  %v3761_v57 = vld [vmem:[%s10009_s2] sm:$0xff] }
 0x614   :  { %v3596_v49 = vmul.f32 %v5084_v43, %v3595_v23 }
 0x616   :  { %v3929_v16 = vpop.permute.xlu1 %3928  ;;  %v3600_v47 = vsel %vm3599_vm12, %v5084_v43, %v3596_v49  ;;  %v3762_v43 = vld [vmem:[%s10009_s2 + $0x8] sm:$0xff] }
 0x617   :  { %v4075_v63 = vmul.f32 %v3929_v16, %v10536_v30  ;;  %v4076_v58 = vmul.f32 %v3929_v16, %v10537_v48  ;;  %3973 = vperm.xlu1 %4849, %v8304_v28   ;;  %v10538_v28 = vld [vmem:[#allocation28_spill] sm:$0xff] }
 0x619   :  { %v4155_v42 = vadd.f32 %v4075_v63, %v3795_v17  ;;  %v4156_v37 = vadd.f32 %v4076_v58, %v3796_v32  ;;  %3963 = vperm.xlu0 %4848, %v8919_v50   ;;  %v3160_v50 = vld [vmem:[%s10007_s6 + $0x138] sm:$0xff]  ;;  %v3667_v63 = vld [vmem:[%s10008_s7 + $0xd0] sm:$0xff] }
 0x61a   :  { %v3844_v14 = vpop.permute.xlu2 %3843  ;;  %v9390_v23 = vmul.f32 %v3600_v47, %v3160_v50  ;;  %v10541_v47 = vld [vmem:[#allocation41_spill] sm:$0xff] }
 0x61b   :  { %v4435_v25 = vadd.f32 %v4289_v19, %v4155_v42  ;;  %v4436_v40 = vadd.f32 %v4289_v19, %v4156_v37  ;;  %v4041_v31 = vmul.f32 %v3844_v14, %v10538_v28  ;;  %v4042_v9 = vmul.f32 %v3844_v14, %v10539_v56  ;;  %v3669_v42 = vld [vmem:[%s10008_s7 + $0xe0] sm:$0xff]  ;;  %v10540_v19 = vld [vmem:[#allocation4_spill] sm:$0xff] }
 0x61c   :  { %v9401_v12 = vmul.f32 %v9390_v23, %v9321_v60  ;;  %v3747_v60 = vsub.f32 %v3667_v63, %v8319_v22  ;;  %v3643_v22 = vld [vmem:[%s10008_s7 + $0x10] sm:$0xff] }
 0x61d   :  { %v4515_v44 = vmax.f32 %v4435_v25, 0.0  ;;  %v4516_v6 = vmax.f32 %v4436_v40, 0.0  ;;  %v4121_v17 = vadd.f32 %v4041_v31, %v3761_v57  ;;  %v4122_v32 = vadd.f32 %v4042_v9, %v3762_v43 }
 0x61f   :  { %4595 = vst [vmem:[%s10010_s8 + $0x110] sm:$0xff] %v4515_v44  ;;  %4208 = vperm.xlu1 %4849, %v3722_v61   ;;  %v3685_v44 = vmul.f32 %v9210_v39, %v8607_v5 }
 0x620   :  { %4596 = vst.msk [vmem:[%s10010_s8 + $0x118] sm:$0xff] %vm2560_vm6, %v4516_v6  ;;  %v3645_v6 = vld [vmem:[%s10008_s7 + $0x20] sm:$0xff] }
 0x621   :  { %3848 = vperm.xlu0 %4848, %v8360_v8   ;;  %v3709_v8 = vmul.f32 %v9121_v1, %v8922_v18  ;;  %v3798_v18 = vld [vmem:[%s10009_s2 + $0x128] sm:$0xff]  ;;  %v3725_v50 = vsub.f32 %v3645_v6, %v3685_v44  ;;  %v3677_v44 = vld [vmem:[%s10008_s7 + $0x120] sm:$0xff]  ;;  %v10546_v6 = vld [vmem:[#allocation9_spill] sm:$0xff] }
 0x622   :  { %v4204_v16 = vpop.permute.xlu2 %4203  ;;  %v2708_v37 = vpop.xlane.xlu0 %2707 }
 0x623   :  { %v4401_v49 = vadd.f32 %v4204_v16, %v4121_v17  ;;  %v4402_v30 = vadd.f32 %v4204_v16, %v4122_v32  ;;  %v3749_v21 = vsub.f32 %v3669_v42, %v3709_v8  ;;  %v10542_v32 = vld [vmem:[#allocation76_spill] sm:$0xff] }
 0x625   :  { %v4481_v48 = vmax.f32 %v4401_v49, 0.0  ;;  %v4482_v58 = vmax.f32 %v4402_v30, 0.0  ;;  %v10543_v49 = vld [vmem:[#allocation78_spill] sm:$0xff] }
 0x626   :  { %v3712_v30 = vmul.f32 %v9279_v35, %v10543_v49 }
 0x627   :  { %4561 = vst [vmem:[%s10010_s8] sm:$0xff] %v4481_v48  ;;  %3853 = vperm.xlu1 %4849, %v8528_v15   ;;  %v3797_v15 = vld [vmem:[%s10009_s2 + $0x120] sm:$0xff]  ;;  %v3038_v48 = vmul.f32 0.0051020407, %v9264_v33 }
 0x628   :  { %4562 = vst.msk [vmem:[%s10010_s8 + $0x8] sm:$0xff] %vm2560_vm6, %v4482_v58 }
 0x629   :  { %4333 = vperm.xlu0 %4848, %v3747_v60  }
 0x62f   :  { %4343 = vperm.xlu1 %4849, %v3749_v21  }
 0x631   :  { %3978 = vperm.xlu0 %4848, %v9038_v26   ;;  %v3723_v26 = vsub.f32 %v3643_v22, %v8534_v24  ;;  %v3646_v22 = vld [vmem:[%s10008_s7 + $0x28] sm:$0xff] }
 0x635   :  { %v3934_v1 = vpop.permute.xlu0 %3933 }
 0x636   :  { %v4077_v14 = vmul.f32 %v3934_v1, %v10540_v19  ;;  %v4078_v25 = vmul.f32 %v3934_v1, %v10541_v47  ;;  %v10545_v1 = vld [vmem:[#allocation66_spill] sm:$0xff] }
 0x637   :  { %3988 = vperm.xlu1 %4849, %v8594_v53   ;;  %v2757_v53 = vmul.f32 0.0051020407, %v2708_v37  ;;  %v3726_v19 = vsub.f32 %v3646_v22, %v10545_v1  ;;  %v3675_v22 = vld [vmem:[%s10008_s7 + $0x110] sm:$0xff]  ;;  %v10550_v1 = vld [vmem:[#allocation53_spill] sm:$0xff] }
 0x638   :  { %v4157_v40 = vadd.f32 %v4077_v14, %v3797_v15  ;;  %v4158_v61 = vadd.f32 %v4078_v25, %v3798_v18  ;;  %v10544_v18 = vld [vmem:[#allocation72_spill] sm:$0xff]  ;;  %v3157_v14 = vld [vmem:[%s10007_s6 + $0x120] sm:$0xff] }
 0x639   :  { %4213 = vperm.xlu0 %4848, %v3723_v26   ;;  %v3077_v5 = vmul.f32 %v2757_v53, %v2757_v53  ;;  %v3648_v26 = vld [vmem:[%s10008_s7 + $0x38] sm:$0xff] }
 0x63a   :  { %v4437_v28 = vadd.f32 %v9176_v11, %v4157_v40  ;;  %v4438_v31 = vadd.f32 %v9176_v11, %v4158_v61  ;;  %v3670_v11 = vld [vmem:[%s10008_s7 + $0xe8] sm:$0xff] }
 0x63b   :  { %v3750_v17 = vsub.f32 %v3670_v11, %v8600_v10  ;;  %v3800_v11 = vld [vmem:[%s10009_s2 + $0x138] sm:$0xff] }
 0x63c   :  { %v4517_v56 = vmax.f32 %v4437_v28, 0.0  ;;  %v4518_v9 = vmax.f32 %v4438_v31, 0.0  ;;  %v4079_v28 = vmul.f32 %v9223_v62, %v10546_v6  ;;  %v10547_v31 = vld [vmem:[#allocation44_spill] sm:$0xff]  ;;  %v10552_v6 = vld [vmem:[#allocation47_spill] sm:$0xff] }
 0x63e   :  { %4597 = vst [vmem:[%s10010_s8 + $0x120] sm:$0xff] %v4517_v56  ;;  %v4080_v56 = vmul.f32 %v9223_v62, %v10547_v31 }
 0x63f   :  { %4598 = vst.msk [vmem:[%s10010_s8 + $0x128] sm:$0xff] %vm2560_vm6, %v4518_v9  ;;  %4223 = vperm.xlu1 %4849, %v3725_v50   ;;  %v3728_v50 = vsub.f32 %v3648_v26, %v9093_v51  ;;  %v10551_v26 = vld [vmem:[#allocation11_spill] sm:$0xff] }
 0x640   :  { %v4160_v51 = vadd.f32 %v4080_v56, %v3800_v11 }
 0x641   :  { %v2988_v24 = vpop.xlane.xlu1 %2987  ;;  %3858 = vperm.xlu0 %4848, %v9088_v38   ;;  %v3672_v38 = vld [vmem:[%s10008_s7 + $0xf8] sm:$0xff] }
 0x642   :  { %v3037_v39 = vmul.f32 0.0051020407, %v2988_v24  ;;  %v3752_v10 = vsub.f32 %v3672_v38, %v3712_v30  ;;  %v9489_v24 = vmul.f32 0.0051020407, %v9290_v52  ;;  %v3158_v38 = vld [vmem:[%s10007_s6 + $0x128] sm:$0xff] }
 0x644   :  { %v3117_v57 = vsub.f32 %v3037_v39, %v3077_v5  ;;  %v3799_v39 = vld [vmem:[%s10009_s2 + $0x130] sm:$0xff]  ;;  %v3079_v52 = vmul.f32 %v9489_v24, %v9489_v24 }
 0x646   :  { %v3197_v43 = vadd.f32 1e-05, %v3117_v57 }
 0x647   :  { %3868 = vperm.xlu1 %4849, %v10542_v32  }
 0x648   :  { %5085 = vrsqrt.f32 %v3197_v43  ;;  %vm3567_vm14 = vweird.f32 %v3197_v43 }
 0x649   :  { %v2712_v16 = vpop.xlane.xlu1 %2711  ;;  %4348 = vperm.xlu0 %4848, %v3750_v17  }
 0x64a   :  { %v9457_v63 = vmul.f32 0.0051020407, %v2712_v16 }
 0x64c   :  { %v3078_v58 = vmul.f32 %v9457_v63, %v9457_v63 }
 0x64e   :  { %v5086_v60 = vpop.eup %5085  ;;  %v3118_v8 = vsub.f32 %v3038_v48, %v3078_v58 }
 0x64f   :  { %v3562_v42 = vmul.f32 %v5086_v60, %v3197_v43  ;;  %4358 = vperm.xlu1 %4849, %v3752_v10   ;;  %vm3568_vm13 = vweird.f32 %v5086_v60 }
 0x650   :  { %v3198_v37 = vadd.f32 1e-05, %v3118_v8  ;;  %vm3569_vm15 = vmor %vm3567_vm14, %vm3568_vm13  ;;  %v3673_v8 = vld [vmem:[%s10008_s7 + $0x100] sm:$0xff] }
 0x651   :  { %v3563_v21 = vmul.f32 %v5086_v60, %v3562_v42  ;;  %3993 = vperm.xlu0 %4848, %v9213_v29  }
 0x652   :  { %5087 = vrsqrt.f32 %v3198_v37  ;;  %vm3577_vm0 = vweird.f32 %v3198_v37 }
 0x653   :  { %v3564_v35 = vmul.f32 0.5, %v3563_v21 }
 0x655   :  { %v3565_v15 = vsub.f32 1.5, %v3564_v35 }
 0x657   :  { %v3566_v33 = vmul.f32 %v5086_v60, %v3565_v15  ;;  %4003 = vperm.xlu1 %4849, %v10544_v18   ;;  %v3680_v15 = vld [vmem:[%s10008_s7 + $0x138] sm:$0xff] }
 0x658   :  { %v5088_v47 = vpop.eup %5087 }
 0x659   :  { %v3570_v29 = vsel %vm3569_vm15, %v5086_v60, %v3566_v33  ;;  %v3572_v25 = vmul.f32 %v5088_v47, %v3198_v37  ;;  %4228 = vperm.xlu0 %4848, %v3726_v19   ;;  %vm3578_vm1 = vweird.f32 %v5088_v47  ;;  %v10549_v33 = vld [vmem:[#allocation17_spill] sm:$0xff] }
 0x65a   :  { %v9477_v40 = vmul.f32 %v3570_v29, %v3157_v14  ;;  %vm3579_vm2 = vmor %vm3577_vm0, %vm3578_vm1  ;;  %v4085_v18 = vmul.f32 %v9335_v3, %v10549_v33  ;;  %v3755_v14 = vsub.f32 %v3675_v22, %v9180_v34  ;;  %v3806_v29 = vld [vmem:[%s10009_s2 + $0x168] sm:$0xff]  ;;  %v3801_v34 = vld [vmem:[%s10009_s2 + $0x140] sm:$0xff] }
 0x65b   :  { %v3573_v61 = vmul.f32 %v5088_v47, %v3572_v25  ;;  %v10556_v22 = vld [vmem:[#allocation50_spill] sm:$0xff]  ;;  %v10557_v33 = vld [vmem:[#allocation85_spill] sm:$0xff] }
 0x65c   :  { %v3717_v9 = vmul.f32 %v9477_v40, %v2757_v53  ;;  %v4159_v53 = vadd.f32 %v4079_v28, %v3799_v39 }
 0x65d   :  { %v3574_v5 = vmul.f32 0.5, %v3573_v61 }
 0x65e   :  { %v3757_v57 = vsub.f32 %v3677_v44, %v3717_v9  ;;  %v3760_v44 = vsub.f32 %v3680_v15, %v9401_v12  ;;  %v3802_v9 = vld [vmem:[%s10009_s2 + $0x148] sm:$0xff] }
 0x65f   :  { %v3575_v43 = vsub.f32 1.5, %v3574_v5  ;;  %4238 = vperm.xlu1 %4849, %v3728_v50  }
 0x660   :  { %4383 = vperm.xlu2 %4850, %v3757_v57   ;;  %v2996_v62 = vpop.xlane.xlu0 %2995 }
 0x661   :  { %v3576_v17 = vmul.f32 %v5088_v47, %v3575_v43  ;;  %v3039_v32 = vmul.f32 0.0051020407, %v2996_v62  ;;  %v4299_v16 = vpop.permute.xlu1 %4298  ;;  %3873 = vperm.xlu0 %4848, %v9281_v36   ;;  %v10548_v36 = vld [vmem:[#allocation15_spill] sm:$0xff] }
 0x662   :  { %v4439_v49 = vadd.f32 %v4299_v16, %v4159_v53  ;;  %v4440_v30 = vadd.f32 %v4299_v16, %v4160_v51  ;;  %v3753_v21 = vsub.f32 %v3673_v8, %v10548_v36 }
 0x663   :  { %v3580_v48 = vsel %vm3579_vm2, %v5088_v47, %v3576_v17  ;;  %v3119_v58 = vsub.f32 %v3039_v32, %v3079_v52  ;;  %v3805_v47 = vld [vmem:[%s10009_s2 + $0x160] sm:$0xff] }
 0x664   :  { %v4519_v10 = vmax.f32 %v4439_v49, 0.0  ;;  %v4520_v60 = vmax.f32 %v4440_v30, 0.0  ;;  %v9506_v37 = vmul.f32 %v3580_v48, %v3158_v38  ;;  %v4165_v31 = vadd.f32 %v4085_v18, %v3805_v47  ;;  %v3649_v17 = vld [vmem:[%s10008_s7 + $0x40] sm:$0xff]  ;;  %v3159_v48 = vld [vmem:[%s10007_s6 + $0x130] sm:$0xff]  ;;  %v3812_v47 = vld [vmem:[%s10009_s2 + $0x198] sm:$0xff] }
 0x665   :  { %v3199_v42 = vadd.f32 1e-05, %v3119_v58  ;;  %v3729_v30 = vsub.f32 %v3649_v17, %v9306_v27  ;;  %v3803_v27 = vld [vmem:[%s10009_s2 + $0x150] sm:$0xff]  ;;  %v3804_v58 = vld [vmem:[%s10009_s2 + $0x158] sm:$0xff] }
 0x666   :  { %4599 = vst [vmem:[%s10010_s8 + $0x130] sm:$0xff] %v4519_v10 }
 0x667   :  { %5089 = vrsqrt.f32 %v3199_v42  ;;  %4600 = vst.msk [vmem:[%s10010_s8 + $0x138] sm:$0xff] %vm2560_vm6, %v4520_v60  ;;  %3883 = vperm.xlu1 %4849, %v9299_v2   ;;  %v4086_v2 = vmul.f32 %v9335_v3, %v10550_v1  ;;  %vm3587_vm4 = vweird.f32 %v3199_v42  ;;  %v10553_v60 = vld [vmem:[#allocation89_spill] sm:$0xff]  ;;  %v10558_v1 = vld [vmem:[#allocation56_spill] sm:$0xff] }
 0x668   :  { %4028 = vperm.xlu2 %4850, %v9506_v37   ;;  %v4091_v8 = vmul.f32 %v9363_v45, %v10553_v60 }
 0x669   :  { %v3944_v35 = vpop.permute.xlu1 %3943  ;;  %4363 = vperm.xlu0 %4848, %v3753_v21   ;;  %v4166_v56 = vadd.f32 %v4086_v2, %v3806_v29  ;;  %v10555_v21 = vld [vmem:[#allocation14_spill] sm:$0xff] }
 0x66a   :  { %v4081_v61 = vmul.f32 %v3944_v35, %v10551_v26  ;;  %v4082_v28 = vmul.f32 %v3944_v35, %v10552_v6  ;;  %v3808_v26 = vld [vmem:[%s10009_s2 + $0x178] sm:$0xff] }
 0x66c   :  { %v4161_v11 = vadd.f32 %v4081_v61, %v3801_v34  ;;  %v4162_v43 = vadd.f32 %v4082_v28, %v3802_v9  ;;  %v9593_v61 = vpop.permute.xlu2 %4338 }
 0x66d   :  { %v5090_v19 = vpop.eup %5089 }
 0x66e   :  { %v3582_v25 = vmul.f32 %v5090_v19, %v3199_v42  ;;  %vm3588_vm3 = vweird.f32 %v5090_v19  ;;  %v10554_v42 = vld [vmem:[#allocation24_spill] sm:$0xff] }
 0x66f   :  { %4373 = vperm.xlu1 %4849, %v3755_v14   ;;  %vm3589_vm5 = vmor %vm3587_vm4, %vm3588_vm3  ;;  %v4092_v36 = vmul.f32 %v9363_v45, %v10554_v42  ;;  %v3811_v14 = vld [vmem:[%s10009_s2 + $0x190] sm:$0xff] }
 0x670   :  { %v3583_v3 = vmul.f32 %v5090_v19, %v3582_v25  ;;  %4398 = vperm.xlu2 %4850, %v3760_v44   ;;  %v3807_v45 = vld [vmem:[%s10009_s2 + $0x170] sm:$0xff]  ;;  %v4171_v28 = vadd.f32 %v4091_v8, %v3811_v14 }
 0x671   :  { %v4314_v50 = vpop.permute.xlu1 %4313  ;;  %4008 = vperm.xlu0 %4848, %v9326_v13   ;;  %v4172_v34 = vadd.f32 %v4092_v36, %v3812_v47 }
 0x672   :  { %v3584_v5 = vmul.f32 0.5, %v3583_v3  ;;  %v4445_v12 = vadd.f32 %v4314_v50, %v4165_v31  ;;  %v4446_v39 = vadd.f32 %v4314_v50, %v4166_v56  ;;  %v3718_v3 = vmul.f32 %v9506_v37, %v9457_v63  ;;  %v3678_v50 = vld [vmem:[%s10008_s7 + $0x128] sm:$0xff] }
 0x673   :  { %v4304_v57 = vpop.permute.xlu0 %4303 }
 0x674   :  { %v3585_v62 = vsub.f32 1.5, %v3584_v5  ;;  %v4525_v53 = vmax.f32 %v4445_v12, 0.0  ;;  %v4526_v51 = vmax.f32 %v4446_v39, 0.0  ;;  %v4441_v52 = vadd.f32 %v4304_v57, %v4161_v11  ;;  %v3984_v17 = vpop.permute.xlu2 %3983 }
 0x675   :  { %v4442_v32 = vadd.f32 %v4304_v57, %v4162_v43 }
 0x676   :  { %v3586_v16 = vmul.f32 %v5090_v19, %v3585_v62  ;;  %4605 = vst [vmem:[%s10010_s8 + $0x160] sm:$0xff] %v4525_v53  ;;  %v4521_v13 = vmax.f32 %v4441_v52, 0.0  ;;  %v3758_v62 = vsub.f32 %v3678_v50, %v3718_v3  ;;  %v10565_v50 = vld [vmem:[#allocation36_spill] sm:$0xff] }
 0x677   :  { %4606 = vst.msk [vmem:[%s10010_s8 + $0x168] sm:$0xff] %vm2560_vm6, %v4526_v51  ;;  %v4522_v49 = vmax.f32 %v4442_v32, 0.0  ;;  %4018 = vperm.xlu1 %4849, %v9343_v41  }
 0x678   :  { %4601 = vst [vmem:[%s10010_s8 + $0x140] sm:$0xff] %v4521_v13  ;;  %v3590_v41 = vsel %vm3589_vm5, %v5090_v19, %v3586_v16  ;;  %v3809_v16 = vld [vmem:[%s10009_s2 + $0x180] sm:$0xff] }
 0x679   :  { %4602 = vst.msk [vmem:[%s10010_s8 + $0x148] sm:$0xff] %vm2560_vm6, %v4522_v49  ;;  %v3959_v38 = vpop.permute.xlu1 %3958  ;;  %4243 = vperm.xlu0 %4848, %v3729_v30   ;;  %v3639_v19 = vmul.f32 %v3590_v41, %v3159_v48  ;;  %v10559_v49 = vld [vmem:[#allocation87_spill] sm:$0xff] }
 0x67a   :  { %v4087_v18 = vmul.f32 %v3959_v38, %v10557_v33  ;;  %v4088_v2 = vmul.f32 %v3959_v38, %v10558_v1  ;;  %v10560_v38 = vld [vmem:[#allocation23_spill] sm:$0xff]  ;;  %v10562_v33 = vld [vmem:[#allocation2_spill] sm:$0xff]  ;;  %v3679_v1 = vld [vmem:[%s10008_s7 + $0x130] sm:$0xff] }
 0x67b   :  { %v3949_v10 = vpop.permute.xlu0 %3948 }
 0x67c   :  { %v4083_v35 = vmul.f32 %v3949_v10, %v10555_v21  ;;  %v4084_v15 = vmul.f32 %v3949_v10, %v10556_v22  ;;  %v4167_v56 = vadd.f32 %v4087_v18, %v3807_v45  ;;  %v4168_v9 = vadd.f32 %v4088_v2, %v3808_v26  ;;  %v9639_v36 = vpop.permute.xlu2 %4218  ;;  %v3763_v21 = vld [vmem:[%s10009_s2 + $0x10] sm:$0xff]  ;;  %v3813_v45 = vld [vmem:[%s10009_s2 + $0x1a0] sm:$0xff]  ;;  %v3814_v26 = vld [vmem:[%s10009_s2 + $0x1a8] sm:$0xff] }
 0x67d   :  { %v10563_v2 = vld [vmem:[#allocation60_spill] sm:$0xff] }
 0x67e   :  { %v4163_v29 = vadd.f32 %v4083_v35, %v3803_v27  ;;  %v4164_v25 = vadd.f32 %v4084_v15, %v3804_v58  ;;  %v3764_v35 = vld [vmem:[%s10009_s2 + $0x18] sm:$0xff]  ;;  %v3719_v15 = vmul.f32 %v3639_v19, %v9489_v24  ;;  %v10564_v24 = vld [vmem:[#allocation26_spill] sm:$0xff] }
 0x67f   :  { %4033 = vperm.xlu1 %4849, %v3639_v19  }
 0x680   :  { %v4443_v44 = vadd.f32 %v9312_v54, %v4163_v29  ;;  %v4444_v6 = vadd.f32 %v9312_v54, %v4164_v25  ;;  %v3759_v25 = vsub.f32 %v3679_v1, %v3719_v15 }
 0x681   :  { %v4329_v31 = vpop.permute.xlu1 %4328  ;;  %4038 = vperm.xlu0 %4848, %v9390_v23   ;;  %v3676_v23 = vld [vmem:[%s10008_s7 + $0x118] sm:$0xff] }
 0x682   :  { %v4523_v5 = vmax.f32 %v4443_v44, 0.0  ;;  %v4524_v12 = vmax.f32 %v4444_v6, 0.0  ;;  %v4451_v39 = vadd.f32 %v4329_v31, %v4171_v28  ;;  %v4452_v11 = vadd.f32 %v4329_v31, %v4172_v34 }
 0x683   :  { %v4319_v57 = vpop.permute.xlu0 %4318  ;;  %v3756_v52 = vsub.f32 %v3676_v23, %v9348_v7  ;;  %v3810_v7 = vld [vmem:[%s10009_s2 + $0x188] sm:$0xff] }
 0x684   :  { %4603 = vst [vmem:[%s10010_s8 + $0x150] sm:$0xff] %v4523_v5  ;;  %v4531_v54 = vmax.f32 %v4451_v39, 0.0  ;;  %v4532_v63 = vmax.f32 %v4452_v11, 0.0  ;;  %v4447_v37 = vadd.f32 %v4319_v57, %v4167_v56  ;;  %v4448_v43 = vadd.f32 %v4319_v57, %v4168_v9 }
 0x685   :  { %4604 = vst.msk [vmem:[%s10010_s8 + $0x158] sm:$0xff] %vm2560_vm6, %v4524_v12  ;;  %v4097_v5 = vmul.f32 %v3984_v17, %v10565_v50  ;;  %v10566_v12 = vld [vmem:[#allocation3_spill] sm:$0xff]  ;;  %v3767_v50 = vld [vmem:[%s10009_s2 + $0x30] sm:$0xff] }
 0x686   :  { %4611 = vst [vmem:[%s10010_s8 + $0x190] sm:$0xff] %v4531_v54  ;;  %v4527_v53 = vmax.f32 %v4447_v37, 0.0  ;;  %v4528_v51 = vmax.f32 %v4448_v43, 0.0  ;;  %v4098_v39 = vmul.f32 %v3984_v17, %v10566_v12  ;;  %v3864_v54 = vpop.permute.xlu2 %3863  ;;  %v3818_v37 = vld [vmem:[%s10009_s2 + $0x1c8] sm:$0xff] }
 0x687   :  { %4612 = vst.msk [vmem:[%s10010_s8 + $0x198] sm:$0xff] %vm2560_vm6, %v4532_v63  ;;  %4388 = vperm.xlu1 %4849, %v3758_v62   ;;  %v3817_v63 = vld [vmem:[%s10009_s2 + $0x1c0] sm:$0xff] }
 0x688   :  { %4607 = vst [vmem:[%s10010_s8 + $0x170] sm:$0xff] %v4527_v53  ;;  %v4177_v62 = vadd.f32 %v4097_v5, %v3817_v63  ;;  %v4178_v53 = vadd.f32 %v4098_v39, %v3818_v37  ;;  %v3768_v5 = vld [vmem:[%s10009_s2 + $0x38] sm:$0xff]  ;;  %v10574_v63 = vld [vmem:[#allocation8_spill] sm:$0xff] }
 0x689   :  { %4608 = vst.msk [vmem:[%s10010_s8 + $0x178] sm:$0xff] %vm2560_vm6, %v4528_v51  ;;  %v3974_v32 = vpop.permute.xlu1 %3973  ;;  %4378 = vperm.xlu0 %4848, %v3756_v52  }
 0x68a   :  { %v4093_v14 = vmul.f32 %v3974_v32, %v10563_v2  ;;  %v4094_v19 = vmul.f32 %v3974_v32, %v10564_v24  ;;  %v3815_v32 = vld [vmem:[%s10009_s2 + $0x1b0] sm:$0xff] }
 0x68b   :  { %v3964_v13 = vpop.permute.xlu0 %3963  ;;  %v10571_v24 = vld [vmem:[#allocation80_spill] sm:$0xff] }
 0x68c   :  { %v4089_v30 = vmul.f32 %v3964_v13, %v10559_v49  ;;  %v4090_v48 = vmul.f32 %v3964_v13, %v10560_v38  ;;  %v4173_v31 = vadd.f32 %v4093_v14, %v3813_v45  ;;  %v4174_v56 = vadd.f32 %v4094_v19, %v3814_v26  ;;  %v3770_v26 = vld [vmem:[%s10009_s2 + $0x48] sm:$0xff] }
 0x68d   :  { %v4049_v19 = vmul.f32 %v3864_v54, %v10571_v24  ;;  %v3822_v24 = vld [vmem:[%s10009_s2 + $0x1e8] sm:$0xff] }
 0x68e   :  { %v4169_v41 = vadd.f32 %v4089_v30, %v3809_v16  ;;  %v4170_v27 = vadd.f32 %v4090_v48, %v3810_v7  ;;  %v3816_v16 = vld [vmem:[%s10009_s2 + $0x1b8] sm:$0xff]  ;;  %v10567_v30 = vld [vmem:[#allocation70_spill] sm:$0xff] }
 0x68f   :  { %v10568_v48 = vld [vmem:[#allocation34_spill] sm:$0xff] }
 0x690   :  { %v4449_v58 = vadd.f32 %v9356_v0, %v4169_v41  ;;  %v4450_v10 = vadd.f32 %v9356_v0, %v4170_v27  ;;  %v10561_v0 = vld [vmem:[#allocation61_spill] sm:$0xff]  ;;  %v10569_v27 = vld [vmem:[#allocation74_spill] sm:$0xff] }
 0x691   :  { %v4209_v60 = vpop.permute.xlu1 %4208  ;;  %4023 = vperm.xlu0 %4848, %v9477_v40  }
 0x692   :  { %v4529_v8 = vmax.f32 %v4449_v58, 0.0  ;;  %v4530_v42 = vmax.f32 %v4450_v10, 0.0  ;;  %v10570_v10 = vld [vmem:[#allocation65_spill] sm:$0xff] }
 0x693   :  { %v3849_v22 = vpop.permute.xlu0 %3848 }
 0x694   :  { %4609 = vst [vmem:[%s10010_s8 + $0x180] sm:$0xff] %v4529_v8  ;;  %v4043_v40 = vmul.f32 %v3849_v22, %v10561_v0  ;;  %v4044_v18 = vmul.f32 %v3849_v22, %v10562_v33  ;;  %v3766_v22 = vld [vmem:[%s10009_s2 + $0x28] sm:$0xff] }
 0x695   :  { %4610 = vst.msk [vmem:[%s10010_s8 + $0x188] sm:$0xff] %vm2560_vm6, %v4530_v42 }
 0x696   :  { %v4123_v47 = vadd.f32 %v4043_v40, %v3763_v21  ;;  %v4124_v29 = vadd.f32 %v4044_v18, %v3764_v35  ;;  %v9703_v21 = vpop.permute.xlu2 %4353  ;;  %v3765_v35 = vld [vmem:[%s10009_s2 + $0x20] sm:$0xff] }
 0x698   :  { %v4403_v44 = vadd.f32 %v4209_v60, %v4123_v47  ;;  %v4404_v6 = vadd.f32 %v4209_v60, %v4124_v29  ;;  %v10572_v47 = vld [vmem:[#allocation10_spill] sm:$0xff] }
 0x699   :  { %v3854_v28 = vpop.permute.xlu1 %3853  ;;  %4393 = vperm.xlu0 %4848, %v3759_v25   ;;  %v4050_v29 = vmul.f32 %v3864_v54, %v10572_v47 }
 0x69a   :  { %v4483_v34 = vmax.f32 %v4403_v44, 0.0  ;;  %v4484_v3 = vmax.f32 %v4404_v6, 0.0  ;;  %v4045_v58 = vmul.f32 %v3854_v28, %v10569_v27  ;;  %v4046_v60 = vmul.f32 %v3854_v28, %v10570_v10 }
 0x69b   :  { %v4334_v9 = vpop.permute.xlu0 %4333 }
 0x69c   :  { %4563 = vst [vmem:[%s10010_s8 + $0x10] sm:$0xff] %v4483_v34  ;;  %v4453_v11 = vadd.f32 %v4334_v9, %v4173_v31  ;;  %v4454_v57 = vadd.f32 %v4334_v9, %v4174_v56  ;;  %v4125_v1 = vadd.f32 %v4045_v58, %v3765_v35  ;;  %v4126_v2 = vadd.f32 %v4046_v60, %v3766_v22  ;;  %v10577_v58 = vld [vmem:[#allocation35_spill] sm:$0xff]  ;;  %v10578_v60 = vld [vmem:[#allocation90_spill] sm:$0xff]  ;;  %v3824_v22 = vld [vmem:[%s10009_s2 + $0x1f8] sm:$0xff] }
 0x69d   :  { %4564 = vst.msk [vmem:[%s10010_s8 + $0x18] sm:$0xff] %vm2560_vm6, %v4484_v3  ;;  %v4130_v34 = vadd.f32 %v4050_v29, %v3770_v26 }
 0x69e   :  { %v4533_v43 = vmax.f32 %v4453_v11, 0.0  ;;  %v4534_v23 = vmax.f32 %v4454_v57, 0.0  ;;  %v3999_v3 = vpop.permute.xlu2 %3998  ;;  %v10573_v57 = vld [vmem:[#allocation67_spill] sm:$0xff] }
 0x69f   :  { %v4103_v10 = vmul.f32 %v3999_v3, %v10577_v58  ;;  %v3774_v58 = vld [vmem:[%s10009_s2 + $0x68] sm:$0xff] }
 0x6a0   :  { %4613 = vst [vmem:[%s10010_s8 + $0x1a0] sm:$0xff] %v4533_v43  ;;  %v10575_v43 = vld [vmem:[#allocation33_spill] sm:$0xff] }
 0x6a1   :  { %4614 = vst.msk [vmem:[%s10010_s8 + $0x1a8] sm:$0xff] %vm2560_vm6, %v4534_v23  ;;  %v4344_v51 = vpop.permute.xlu1 %4343 }
 0x6a2   :  { %v4457_v52 = vadd.f32 %v4344_v51, %v4177_v62  ;;  %v4458_v17 = vadd.f32 %v4344_v51, %v4178_v53  ;;  %v10576_v62 = vld [vmem:[#allocation105_spill] sm:$0xff] }
 0x6a3   :  { %v3979_v7 = vpop.permute.xlu0 %3978 }
 0x6a4   :  { %v4537_v13 = vmax.f32 %v4457_v52, 0.0  ;;  %v4538_v49 = vmax.f32 %v4458_v17, 0.0  ;;  %v4095_v38 = vmul.f32 %v3979_v7, %v10567_v30  ;;  %v4096_v41 = vmul.f32 %v3979_v7, %v10568_v48  ;;  %v3819_v17 = vld [vmem:[%s10009_s2 + $0x1d0] sm:$0xff] }
 0x6a6   :  { %4617 = vst [vmem:[%s10010_s8 + $0x1c0] sm:$0xff] %v4537_v13  ;;  %v4175_v8 = vadd.f32 %v4095_v38, %v3815_v32  ;;  %v4176_v42 = vadd.f32 %v4096_v41, %v3816_v16  ;;  %v3820_v32 = vld [vmem:[%s10009_s2 + $0x1d8] sm:$0xff]  ;;  %v9764_v41 = vpop.permute.xlu2 %4233 }
 0x6a7   :  { %4618 = vst.msk [vmem:[%s10010_s8 + $0x1c8] sm:$0xff] %vm2560_vm6, %v4538_v49 }
 0x6a8   :  { %v4455_v15 = vadd.f32 %v9593_v61, %v4175_v8  ;;  %v4456_v0 = vadd.f32 %v9593_v61, %v4176_v42  ;;  %v3769_v61 = vld [vmem:[%s10009_s2 + $0x40] sm:$0xff]  ;;  %v4104_v8 = vmul.f32 %v3999_v3, %v10578_v60 }
 0x6a9   :  { %v3989_v40 = vpop.permute.xlu1 %3988  ;;  %v4129_v28 = vadd.f32 %v4049_v19, %v3769_v61  ;;  %v10580_v61 = vld [vmem:[#allocation121_spill] sm:$0xff] }
 0x6aa   :  { %v4535_v33 = vmax.f32 %v4455_v15, 0.0  ;;  %v4536_v18 = vmax.f32 %v4456_v0, 0.0  ;;  %v4099_v23 = vmul.f32 %v3989_v40, %v10575_v43  ;;  %v4100_v53 = vmul.f32 %v3989_v40, %v10576_v62  ;;  %v10583_v43 = vld [vmem:[#allocation19_spill] sm:$0xff]  ;;  %v10584_v62 = vld [vmem:[#allocation12_spill] sm:$0xff] }
 0x6ab   :  { %v4214_v14 = vpop.permute.xlu0 %4213 }
 0x6ac   :  { %4615 = vst [vmem:[%s10010_s8 + $0x1b0] sm:$0xff] %v4535_v33  ;;  %v4405_v25 = vadd.f32 %v4214_v14, %v4125_v1  ;;  %v4406_v45 = vadd.f32 %v4214_v14, %v4126_v2  ;;  %v4179_v38 = vadd.f32 %v4099_v23, %v3819_v17  ;;  %v4180_v48 = vadd.f32 %v4100_v53, %v3820_v32  ;;  %v3821_v14 = vld [vmem:[%s10009_s2 + $0x1e0] sm:$0xff]  ;;  %v3776_v17 = vld [vmem:[%s10009_s2 + $0x78] sm:$0xff] }
 0x6ad   :  { %4616 = vst.msk [vmem:[%s10010_s8 + $0x1b8] sm:$0xff] %vm2560_vm6, %v4536_v18  ;;  %v4184_v33 = vadd.f32 %v4104_v8, %v3824_v22 }
 0x6ae   :  { %v4485_v44 = vmax.f32 %v4405_v25, 0.0  ;;  %v4486_v6 = vmax.f32 %v4406_v45, 0.0  ;;  %v10579_v25 = vld [vmem:[#allocation5_spill] sm:$0xff] }
 0x6b0   :  { %4565 = vst [vmem:[%s10010_s8 + $0x20] sm:$0xff] %v4485_v44  ;;  %v3879_v44 = vpop.permute.xlu2 %3878 }
 0x6b1   :  { %4566 = vst.msk [vmem:[%s10010_s8 + $0x28] sm:$0xff] %vm2560_vm6, %v4486_v6  ;;  %v4224_v31 = vpop.permute.xlu1 %4223  ;;  %v10581_v6 = vld [vmem:[#allocation46_spill] sm:$0xff]  ;;  %v4055_v23 = vmul.f32 %v3879_v44, %v10583_v43  ;;  %v4056_v53 = vmul.f32 %v3879_v44, %v10584_v62  ;;  %v3828_v43 = vld [vmem:[%s10009_s2 + $0x218] sm:$0xff] }
 0x6b2   :  { %v4409_v56 = vadd.f32 %v4224_v31, %v4129_v28  ;;  %v4410_v9 = vadd.f32 %v4224_v31, %v4130_v34  ;;  %v10582_v34 = vld [vmem:[#allocation13_spill] sm:$0xff] }
 0x6b3   :  { %v3859_v12 = vpop.permute.xlu0 %3858 }
 0x6b4   :  { %v4489_v39 = vmax.f32 %v4409_v56, 0.0  ;;  %v4490_v11 = vmax.f32 %v4410_v9, 0.0  ;;  %v4047_v54 = vmul.f32 %v3859_v12, %v10573_v57  ;;  %v4048_v37 = vmul.f32 %v3859_v12, %v10574_v63  ;;  %v3771_v9 = vld [vmem:[%s10009_s2 + $0x50] sm:$0xff] }
 0x6b6   :  { %4569 = vst [vmem:[%s10010_s8 + $0x40] sm:$0xff] %v4489_v39  ;;  %v4127_v51 = vadd.f32 %v4047_v54, %v3767_v50  ;;  %v4128_v52 = vadd.f32 %v4048_v37, %v3768_v5  ;;  %v3772_v50 = vld [vmem:[%s10009_s2 + $0x58] sm:$0xff] }
 0x6b7   :  { %4570 = vst.msk [vmem:[%s10010_s8 + $0x48] sm:$0xff] %vm2560_vm6, %v4490_v11 }
 0x6b8   :  { %v4407_v16 = vadd.f32 %v9639_v36, %v4127_v51  ;;  %v4408_v7 = vadd.f32 %v9639_v36, %v4128_v52  ;;  %v3823_v36 = vld [vmem:[%s10009_s2 + $0x1f0] sm:$0xff] }
 0x6b9   :  { %v3869_v13 = vpop.permute.xlu1 %3868  ;;  %v4183_v40 = vadd.f32 %v4103_v10, %v3823_v36  ;;  %v10586_v36 = vld [vmem:[#allocation52_spill] sm:$0xff] }
 0x6ba   :  { %v4487_v49 = vmax.f32 %v4407_v16, 0.0  ;;  %v4488_v30 = vmax.f32 %v4408_v7, 0.0  ;;  %v4051_v28 = vmul.f32 %v3869_v13, %v10581_v6  ;;  %v4052_v3 = vmul.f32 %v3869_v13, %v10582_v34  ;;  %v9828_v7 = vpop.permute.xlu2 %4368  ;;  %v10589_v6 = vld [vmem:[#allocation22_spill] sm:$0xff]  ;;  %v10590_v34 = vld [vmem:[#allocation16_spill] sm:$0xff] }
 0x6bb   :  { %v4349_v27 = vpop.permute.xlu0 %4348 }
 0x6bc   :  { %4567 = vst [vmem:[%s10010_s8 + $0x30] sm:$0xff] %v4487_v49  ;;  %v4459_v42 = vadd.f32 %v4349_v27, %v4179_v38  ;;  %v4460_v35 = vadd.f32 %v4349_v27, %v4180_v48  ;;  %v4131_v54 = vadd.f32 %v4051_v28, %v3771_v9  ;;  %v4132_v63 = vadd.f32 %v4052_v3, %v3772_v50  ;;  %v3773_v27 = vld [vmem:[%s10009_s2 + $0x60] sm:$0xff]  ;;  %v3830_v9 = vld [vmem:[%s10009_s2 + $0x228] sm:$0xff] }
 0x6bd   :  { %4568 = vst.msk [vmem:[%s10010_s8 + $0x38] sm:$0xff] %vm2560_vm6, %v4488_v30  ;;  %v4136_v49 = vadd.f32 %v4056_v53, %v3776_v17 }
 0x6be   :  { %v4539_v15 = vmax.f32 %v4459_v42, 0.0  ;;  %v4540_v0 = vmax.f32 %v4460_v35, 0.0  ;;  %v10585_v42 = vld [vmem:[#allocation75_spill] sm:$0xff] }
 0x6c0   :  { %4619 = vst [vmem:[%s10010_s8 + $0x1d0] sm:$0xff] %v4539_v15  ;;  %v10587_v15 = vld [vmem:[#allocation37_spill] sm:$0xff] }
 0x6c1   :  { %4620 = vst.msk [vmem:[%s10010_s8 + $0x1d8] sm:$0xff] %vm2560_vm6, %v4540_v0  ;;  %v4359_v18 = vpop.permute.xlu1 %4358 }
 0x6c2   :  { %v4463_v1 = vadd.f32 %v4359_v18, %v4183_v40  ;;  %v4464_v2 = vadd.f32 %v4359_v18, %v4184_v33  ;;  %v10588_v40 = vld [vmem:[#allocation7_spill] sm:$0xff] }
 0x6c3   :  { %v3994_v19 = vpop.permute.xlu0 %3993 }
 0x6c4   :  { %v4543_v47 = vmax.f32 %v4463_v1, 0.0  ;;  %v4544_v29 = vmax.f32 %v4464_v2, 0.0  ;;  %v4101_v45 = vmul.f32 %v3994_v19, %v10579_v25  ;;  %v4102_v26 = vmul.f32 %v3994_v19, %v10580_v61  ;;  %v3825_v2 = vld [vmem:[%s10009_s2 + $0x200] sm:$0xff] }
 0x6c6   :  { %4623 = vst [vmem:[%s10010_s8 + $0x1f0] sm:$0xff] %v4543_v47  ;;  %v4181_v31 = vadd.f32 %v4101_v45, %v3821_v14  ;;  %v4182_v56 = vadd.f32 %v4102_v26, %v3822_v24  ;;  %v3826_v14 = vld [vmem:[%s10009_s2 + $0x208] sm:$0xff]  ;;  %v4014_v47 = vpop.permute.xlu2 %4013 }
 0x6c7   :  { %4624 = vst.msk [vmem:[%s10010_s8 + $0x1f8] sm:$0xff] %vm2560_vm6, %v4544_v29  ;;  %v4109_v28 = vmul.f32 %v4014_v47, %v10589_v6  ;;  %v4110_v3 = vmul.f32 %v4014_v47, %v10590_v34  ;;  %v10595_v47 = vld [vmem:[#allocation18_spill] sm:$0xff]  ;;  %v3836_v34 = vld [vmem:[%s10009_s2 + $0x258] sm:$0xff] }
 0x6c8   :  { %v4461_v5 = vadd.f32 %v9703_v21, %v4181_v31  ;;  %v4462_v12 = vadd.f32 %v9703_v21, %v4182_v56  ;;  %v3775_v21 = vld [vmem:[%s10009_s2 + $0x70] sm:$0xff] }
 0x6c9   :  { %v4004_v39 = vpop.permute.xlu1 %4003  ;;  %v4135_v13 = vadd.f32 %v4055_v23, %v3775_v21  ;;  %v10592_v21 = vld [vmem:[#allocation49_spill] sm:$0xff] }
 0x6ca   :  { %v4541_v11 = vmax.f32 %v4461_v5, 0.0  ;;  %v4542_v57 = vmax.f32 %v4462_v12, 0.0  ;;  %v4105_v0 = vmul.f32 %v4004_v39, %v10587_v15  ;;  %v4106_v33 = vmul.f32 %v4004_v39, %v10588_v40 }
 0x6cb   :  { %v4229_v37 = vpop.permute.xlu0 %4228  ;;  %v4190_v39 = vadd.f32 %v4110_v3, %v3830_v9 }
 0x6cc   :  { %4621 = vst [vmem:[%s10010_s8 + $0x1e0] sm:$0xff] %v4541_v11  ;;  %v4411_v51 = vadd.f32 %v4229_v37, %v4131_v54  ;;  %v4412_v52 = vadd.f32 %v4229_v37, %v4132_v63  ;;  %v4185_v61 = vadd.f32 %v4105_v0, %v3825_v2  ;;  %v4186_v26 = vadd.f32 %v4106_v33, %v3826_v14  ;;  %v3827_v37 = vld [vmem:[%s10009_s2 + $0x210] sm:$0xff]  ;;  %v3840_v2 = vld [vmem:[%s10009_s2 + $0x278] sm:$0xff] }
 0x6cd   :  { %4622 = vst.msk [vmem:[%s10010_s8 + $0x1e8] sm:$0xff] %vm2560_vm6, %v4542_v57 }
 0x6ce   :  { %v4491_v32 = vmax.f32 %v4411_v51, 0.0  ;;  %v4492_v16 = vmax.f32 %v4412_v52, 0.0  ;;  %v9884_v63 = vpop.permute.xlu2 %4383  ;;  %v10591_v51 = vld [vmem:[#allocation55_spill] sm:$0xff] }
 0x6d0   :  { %4571 = vst [vmem:[%s10010_s8 + $0x50] sm:$0xff] %v4491_v32  ;;  %v10593_v32 = vld [vmem:[#allocation86_spill] sm:$0xff] }
 0x6d1   :  { %4572 = vst.msk [vmem:[%s10010_s8 + $0x58] sm:$0xff] %vm2560_vm6, %v4492_v16  ;;  %v4239_v30 = vpop.permute.xlu1 %4238 }
 0x6d2   :  { %v4415_v38 = vadd.f32 %v4239_v30, %v4135_v13  ;;  %v4416_v48 = vadd.f32 %v4239_v30, %v4136_v49  ;;  %v10594_v13 = vld [vmem:[#allocation39_spill] sm:$0xff] }
 0x6d3   :  { %v3874_v10 = vpop.permute.xlu0 %3873 }
 0x6d4   :  { %v4495_v60 = vmax.f32 %v4415_v38, 0.0  ;;  %v4496_v8 = vmax.f32 %v4416_v48, 0.0  ;;  %v4053_v35 = vmul.f32 %v3874_v10, %v10585_v42  ;;  %v4054_v22 = vmul.f32 %v3874_v10, %v10586_v36  ;;  %v3777_v48 = vld [vmem:[%s10009_s2 + $0x80] sm:$0xff] }
 0x6d6   :  { %4575 = vst [vmem:[%s10010_s8 + $0x70] sm:$0xff] %v4495_v60  ;;  %v4133_v18 = vadd.f32 %v4053_v35, %v3773_v27  ;;  %v4134_v1 = vadd.f32 %v4054_v22, %v3774_v58  ;;  %v3778_v27 = vld [vmem:[%s10009_s2 + $0x88] sm:$0xff]  ;;  %v4029_v40 = vpop.permute.xlu2 %4028 }
 0x6d7   :  { %4576 = vst.msk [vmem:[%s10010_s8 + $0x78] sm:$0xff] %vm2560_vm6, %v4496_v8 }
 0x6d8   :  { %v4413_v24 = vadd.f32 %v9764_v41, %v4133_v18  ;;  %v4414_v19 = vadd.f32 %v9764_v41, %v4134_v1  ;;  %v3829_v41 = vld [vmem:[%s10009_s2 + $0x220] sm:$0xff]  ;;  %v3839_v1 = vld [vmem:[%s10009_s2 + $0x270] sm:$0xff] }
 0x6d9   :  { %v3884_v29 = vpop.permute.xlu1 %3883  ;;  %v4189_v12 = vadd.f32 %v4109_v28, %v3829_v41  ;;  %v3835_v28 = vld [vmem:[%s10009_s2 + $0x250] sm:$0xff] }
 0x6da   :  { %v4493_v25 = vmax.f32 %v4413_v24, 0.0  ;;  %v4494_v45 = vmax.f32 %v4414_v19, 0.0  ;;  %v4057_v16 = vmul.f32 %v3884_v29, %v10593_v32  ;;  %v4058_v49 = vmul.f32 %v3884_v29, %v10594_v13  ;;  %v3833_v32 = vld [vmem:[%s10009_s2 + $0x240] sm:$0xff] }
 0x6db   :  { %v4364_v44 = vpop.permute.xlu0 %4363  ;;  %v4115_v24 = vmul.f32 %v4029_v40, %v8815_v20  ;;  %v4116_v19 = vmul.f32 %v4029_v40, %v8798_v55  ;;  %v3831_v55 = vld [vmem:[%s10009_s2 + $0x230] sm:$0xff] }
 0x6dc   :  { %4573 = vst [vmem:[%s10010_s8 + $0x60] sm:$0xff] %v4493_v25  ;;  %v4465_v31 = vadd.f32 %v4364_v44, %v4185_v61  ;;  %v4466_v56 = vadd.f32 %v4364_v44, %v4186_v26  ;;  %v4137_v35 = vadd.f32 %v4057_v16, %v3777_v48  ;;  %v4138_v36 = vadd.f32 %v4058_v49, %v3778_v27  ;;  %v10596_v25 = vld [vmem:[#allocation88_spill] sm:$0xff]  ;;  %v10598_v44 = vld [vmem:[#allocation73_spill] sm:$0xff]  ;;  %v3834_v16 = vld [vmem:[%s10009_s2 + $0x248] sm:$0xff] }
 0x6dd   :  { %4574 = vst.msk [vmem:[%s10010_s8 + $0x68] sm:$0xff] %vm2560_vm6, %v4494_v45  ;;  %v10597_v61 = vld [vmem:[#allocation84_spill] sm:$0xff] }
 0x6de   :  { %v4545_v50 = vmax.f32 %v4465_v31, 0.0  ;;  %v4546_v5 = vmax.f32 %v4466_v56, 0.0  ;;  %v3832_v31 = vld [vmem:[%s10009_s2 + $0x238] sm:$0xff]  ;;  %v4399_v56 = vpop.permute.xlu2 %4398 }
 0x6e0   :  { %4625 = vst [vmem:[%s10010_s8 + $0x200] sm:$0xff] %v4545_v50  ;;  %v4195_v50 = vadd.f32 %v4115_v24, %v3835_v28 }
 0x6e1   :  { %4626 = vst.msk [vmem:[%s10010_s8 + $0x208] sm:$0xff] %vm2560_vm6, %v4546_v5  ;;  %v4374_v11 = vpop.permute.xlu1 %4373  ;;  %v4196_v5 = vadd.f32 %v4116_v19, %v3836_v34 }
 0x6e2   :  { %v4469_v57 = vadd.f32 %v4374_v11, %v4189_v12  ;;  %v4470_v54 = vadd.f32 %v4374_v11, %v4190_v39 }
 0x6e3   :  { %v4009_v23 = vpop.permute.xlu0 %4008 }
 0x6e4   :  { %v4549_v62 = vmax.f32 %v4469_v57, 0.0  ;;  %v4550_v53 = vmax.f32 %v4470_v54, 0.0  ;;  %v4107_v52 = vmul.f32 %v4009_v23, %v10591_v51  ;;  %v4108_v17 = vmul.f32 %v4009_v23, %v10592_v21 }
 0x6e6   :  { %4629 = vst [vmem:[%s10010_s8 + $0x220] sm:$0xff] %v4549_v62  ;;  %v4187_v30 = vadd.f32 %v4107_v52, %v3827_v37  ;;  %v4188_v38 = vadd.f32 %v4108_v17, %v3828_v43 }
 0x6e7   :  { %4630 = vst.msk [vmem:[%s10010_s8 + $0x228] sm:$0xff] %vm2560_vm6, %v4550_v53 }
 0x6e8   :  { %v4467_v58 = vadd.f32 %v9828_v7, %v4187_v30  ;;  %v4468_v10 = vadd.f32 %v9828_v7, %v4188_v38  ;;  %v10599_v30 = vld [vmem:[#allocation106_spill] sm:$0xff] }
 0x6e9   :  { %v4019_v60 = vpop.permute.xlu1 %4018 }
 0x6ea   :  { %v4547_v8 = vmax.f32 %v4467_v58, 0.0  ;;  %v4548_v42 = vmax.f32 %v4468_v10, 0.0  ;;  %v4111_v26 = vmul.f32 %v4019_v60, %v10597_v61  ;;  %v4112_v6 = vmul.f32 %v4019_v60, %v10598_v44  ;;  %v3837_v60 = vld [vmem:[%s10009_s2 + $0x260] sm:$0xff] }
 0x6eb   :  { %v4244_v22 = vpop.permute.xlu0 %4243 }
 0x6ec   :  { %4627 = vst [vmem:[%s10010_s8 + $0x210] sm:$0xff] %v4547_v8  ;;  %v4417_v15 = vadd.f32 %v4244_v22, %v4137_v35  ;;  %v4418_v0 = vadd.f32 %v4244_v22, %v4138_v36  ;;  %v4191_v39 = vadd.f32 %v4111_v26, %v3831_v55  ;;  %v4192_v11 = vadd.f32 %v4112_v6, %v3832_v31  ;;  %v3838_v8 = vld [vmem:[%s10009_s2 + $0x268] sm:$0xff] }
 0x6ed   :  { %4628 = vst.msk [vmem:[%s10010_s8 + $0x218] sm:$0xff] %vm2560_vm6, %v4548_v42 }
 0x6ee   :  { %v4497_v33 = vmax.f32 %v4417_v15, 0.0  ;;  %v4498_v7 = vmax.f32 %v4418_v0, 0.0 }
 0x6f0   :  { %4577 = vst [vmem:[%s10010_s8 + $0x80] sm:$0xff] %v4497_v33 }
 0x6f1   :  { %4578 = vst.msk [vmem:[%s10010_s8 + $0x88] sm:$0xff] %vm2560_vm6, %v4498_v7  ;;  %v4034_v18 = vpop.permute.xlu1 %4033 }
 0x6f2   :  { %v4117_v48 = vmul.f32 %v4034_v18, %v8849_v59  ;;  %v4118_v27 = vmul.f32 %v4034_v18, %v8826_v4 }
 0x6f3   :  { %v4039_v14 = vpop.permute.xlu0 %4038 }
 0x6f4   :  { %v4119_v29 = vmul.f32 %v4039_v14, %v10595_v47  ;;  %v4120_v45 = vmul.f32 %v4039_v14, %v10596_v25  ;;  %v4197_v22 = vadd.f32 %v4117_v48, %v3837_v60  ;;  %v4198_v59 = vadd.f32 %v4118_v27, %v3838_v8 }
 0x6f6   :  { %v4199_v3 = vadd.f32 %v4119_v29, %v3839_v1  ;;  %v4200_v20 = vadd.f32 %v4120_v45, %v3840_v2 }
 0x6f8   :  { %v4479_v41 = vadd.f32 %v4399_v56, %v4199_v3  ;;  %v4480_v9 = vadd.f32 %v4399_v56, %v4200_v20 }
 0x6f9   :  { %v4389_v12 = vpop.permute.xlu1 %4388 }
 0x6fa   :  { %v4559_v57 = vmax.f32 %v4479_v41, 0.0  ;;  %v4560_v54 = vmax.f32 %v4480_v9, 0.0  ;;  %v4475_v37 = vadd.f32 %v4389_v12, %v4195_v50  ;;  %v4476_v43 = vadd.f32 %v4389_v12, %v4196_v5 }
 0x6fb   :  { %v4379_v23 = vpop.permute.xlu0 %4378 }
 0x6fc   :  { %4639 = vst [vmem:[%s10010_s8 + $0x270] sm:$0xff] %v4559_v57  ;;  %v4555_v62 = vmax.f32 %v4475_v37, 0.0  ;;  %v4556_v53 = vmax.f32 %v4476_v43, 0.0  ;;  %v4471_v51 = vadd.f32 %v4379_v23, %v4191_v39  ;;  %v4472_v52 = vadd.f32 %v4379_v23, %v4192_v11 }
 0x6fd   :  { %4640 = vst.msk [vmem:[%s10010_s8 + $0x278] sm:$0xff] %vm2560_vm6, %v4560_v54 }
 0x6fe   :  { %4635 = vst [vmem:[%s10010_s8 + $0x250] sm:$0xff] %v4555_v62  ;;  %v4551_v21 = vmax.f32 %v4471_v51, 0.0  ;;  %v4552_v17 = vmax.f32 %v4472_v52, 0.0 }
 0x6ff   :  { %4636 = vst.msk [vmem:[%s10010_s8 + $0x258] sm:$0xff] %vm2560_vm6, %v4556_v53 }
 0x700   :  { %4631 = vst [vmem:[%s10010_s8 + $0x230] sm:$0xff] %v4551_v21 }
 0x701   :  { %4632 = vst.msk [vmem:[%s10010_s8 + $0x238] sm:$0xff] %vm2560_vm6, %v4552_v17 }
 0x703   :  { %v4024_v13 = vpop.permute.xlu0 %4023 }
 0x704   :  { %v4113_v49 = vmul.f32 %v4024_v13, %v8973_v46  ;;  %v4114_v38 = vmul.f32 %v4024_v13, %v10599_v30 }
 0x706   :  { %v4193_v58 = vadd.f32 %v4113_v49, %v3833_v32  ;;  %v4194_v10 = vadd.f32 %v4114_v38, %v3834_v16 }
 0x708   :  { %v4473_v42 = vadd.f32 %v9884_v63, %v4193_v58  ;;  %v4474_v46 = vadd.f32 %v9884_v63, %v4194_v10 }
 0x70a   :  { %v4553_v35 = vmax.f32 %v4473_v42, 0.0  ;;  %v4554_v36 = vmax.f32 %v4474_v46, 0.0 }
 0x70b   :  { %v4394_v15 = vpop.permute.xlu0 %4393 }
 0x70c   :  { %4633 = vst [vmem:[%s10010_s8 + $0x240] sm:$0xff] %v4553_v35  ;;  %v4477_v4 = vadd.f32 %v4394_v15, %v4197_v22  ;;  %v4478_v0 = vadd.f32 %v4394_v15, %v4198_v59 }
 0x70d   :  { %4634 = vst.msk [vmem:[%s10010_s8 + $0x248] sm:$0xff] %vm2560_vm6, %v4554_v36 }
 0x70e   :  { %v4557_v40 = vmax.f32 %v4477_v4, 0.0  ;;  %v4558_v33 = vmax.f32 %v4478_v0, 0.0 }
 0x710   :  { %4637 = vst [vmem:[%s10010_s8 + $0x260] sm:$0xff] %v4557_v40 }
 0x711   :  { %4638 = vst.msk [vmem:[%s10010_s8 + $0x268] sm:$0xff] %vm2560_vm6, %v4558_v33 }

</bundles_post_ra>
